<compile_context>
chip_gen: v7x
topology: tpu7x:2x2x1
jax: 0.10.0
libtpu: 0.0.40
codegen_flags: <defaults>
</compile_context>

<pallas_src>
import functools

import jax
import jax.numpy as jnp
from jax.experimental import pallas as pl
from jax.experimental.pallas import tpu as pltpu


# ----------------------------------------------------------------------------
# Fused Pallas kernel: ConvTranspose2d(4,2,1) + InstanceNorm + LeakyReLU + cat
# ----------------------------------------------------------------------------
def _unet_up_kernel(x_ref, w_ref, s_ref, o_ref, *,
                    H, W, Cin, Cout, Cs, eps, slope):
    """Per-sample fused UNetUp.

    Block shapes:
      x_ref: (1, H+2, W+2, Cin)        bf16   border-padded input, sample n
      w_ref: (16, Cin, Cout)           bf16   taps ordered (a, b, dy, dx)
      s_ref: (1, H, 2, W, 2*Cs)        f32    skip, phase-factored free view
      o_ref: (1, H, 2, W, 2*(Cout+Cs)) f32    output, phase-factored free view

    Output pixel (2t+a, 2s+b) of the stride-2 transpose conv only touches a
    2x2 input window; tap (dy, dx) of phase (a, b) reads padded input rows
    starting at (t+a+dy, s+b+dx) and kernel element (3-a-2dy, 3-b-2dx).
    """
    Ct = Cout + Cs
    HW = H * W

    # --- ConvTranspose2d via phase decomposition (16 MXU dots, f32 accum) ---
    ys = []
    for a in (0, 1):
        for b in (0, 1):
            acc = jnp.zeros((HW, Cout), jnp.float32)
            for dy in (0, 1):
                for dx in (0, 1):
                    tap = ((a * 2 + b) * 2 + dy) * 2 + dx
                    patch = x_ref[0, a + dy:a + dy + H,
                                  b + dx:b + dx + W, :].reshape(HW, Cin)
                    acc = acc + jnp.dot(patch, w_ref[tap],
                                        preferred_element_type=jnp.float32)
            ys.append(acc)

    # --- InstanceNorm2d(affine=False) stats over all 4*H*W = 2H*2W pixels ---
    npix = 4.0 * HW
    s1 = ys[0].sum(axis=0, keepdims=True)
    for y in ys[1:]:
        s1 = s1 + y.sum(axis=0, keepdims=True)
    mean = s1 / npix                                   # (1, Cout)
    s2 = jnp.zeros_like(mean)
    for y in ys:                                       # two-pass (stable) var
        d = y - mean
        s2 = s2 + (d * d).sum(axis=0, keepdims=True)
    inv = jax.lax.rsqrt(s2 / npix + eps)               # (1, Cout)

    # --- normalize + LeakyReLU(0.2) + channel concat, phase-factored stores -
    # Two lane-aligned stores per phase (no jnp.concatenate): y channels then
    # the untouched skip pass-through.
    for a in (0, 1):
        for b in (0, 1):
            y = ys[a * 2 + b]
            yn = (y - mean) * inv
            ya = jnp.where(yn > 0, yn, slope * yn).reshape(H, W, Cout)
            lo = b * Ct
            o_ref[0, :, a, :, lo:lo + Cout] = ya
            o_ref[0, :, a, :, lo + Cout:lo + Ct] = \
                s_ref[0, :, a, :, b * Cs:(b + 1) * Cs]


# ----------------------------------------------------------------------------
# Wrapper (PyTorch semantics: NCHW in, NCHW out)
# ----------------------------------------------------------------------------
def unet_up(x_nchw, skip_nchw, w, eps=1e-5, slope=0.2):
    """UNetUp.forward: y = LeakyReLU(IN(ConvT(x))); return cat((y, skip), 1)."""
    N, Cin, H, W = x_nchw.shape
    Cin_w, Cout, KH, KW = w.shape
    assert Cin == Cin_w and (KH, KW) == (4, 4)
    Ns, Cs, H2, W2 = skip_nchw.shape
    assert (Ns, H2, W2) == (N, 2 * H, 2 * W)
    Ct = Cout + Cs

    # Input: NCHW -> NHWC, +1 border pad, bf16 MXU operand (one small copy).
    x = jnp.transpose(x_nchw, (0, 2, 3, 1))
    xp = jnp.pad(x, ((0, 0), (1, 1), (1, 1), (0, 0))).astype(jnp.bfloat16)

    # Weights (Cin, Cout, 4, 4) -> (16, Cin, Cout) bf16, tap order (a,b,dy,dx).
    taps = []
    for a in (0, 1):
        for b in (0, 1):
            for dy in (0, 1):
                for dx in (0, 1):
                    taps.append(w[:, :, 3 - a - 2 * dy, 3 - b - 2 * dx])
    w_r = jnp.stack(taps, axis=0).astype(jnp.bfloat16)          # (16,Cin,Cout)

    # Skip: NCHW -> NHWC, then the FREE phase-factored view (pure reshape).
    skip = jnp.transpose(skip_nchw, (0, 2, 3, 1)).astype(jnp.float32)
    skip5 = skip.reshape(N, H, 2, W, 2 * Cs)

    # Per-grid-step VMEM estimate (double-buffered blocks + live phase accs).
    xp_b = (H + 2) * (W + 2) * Cin * 2
    w_b = 16 * Cin * Cout * 2
    s_b = 4 * H * W * Cs * 4
    o_b = 4 * H * W * Ct * 4
    y_b = 4 * H * W * Cout * 4
    vmem_est = 2 * (xp_b + w_b + s_b + o_b) + 2 * y_b + (1 << 20)
    cp = dict(dimension_semantics=("parallel",))
    if vmem_est > 12 * (1 << 20):
        cp["vmem_limit_bytes"] = min(vmem_est, 64 * (1 << 20))   # v7x physical

    out5 = pl.pallas_call(
        functools.partial(_unet_up_kernel, H=H, W=W, Cin=Cin, Cout=Cout,
                          Cs=Cs, eps=eps, slope=slope),
        out_shape=jax.ShapeDtypeStruct((N, H, 2, W, 2 * Ct), jnp.float32),
        grid=(N,),
        in_specs=[
            pl.BlockSpec((1, H + 2, W + 2, Cin), lambda n: (n, 0, 0, 0)),
            # Constant index_map -> weight block is fetched once and stays
            # resident in VMEM across the whole grid.
            pl.BlockSpec((16, Cin, Cout), lambda n: (0, 0, 0)),
            pl.BlockSpec((1, H, 2, W, 2 * Cs), lambda n: (n, 0, 0, 0, 0)),
        ],
        out_specs=pl.BlockSpec((1, H, 2, W, 2 * Ct),
                               lambda n: (n, 0, 0, 0, 0)),
        compiler_params=pltpu.CompilerParams(**cp),
    )(xp, w_r, skip5)

    # Free reshape to NHWC (pure bitcast), then one layout transpose to NCHW.
    out = out5.reshape(N, 2 * H, 2 * W, Ct)
    return jnp.transpose(out, (0, 3, 1, 2))


# ----------------------------------------------------------------------------
# Plain-JAX reference (sanity check)
# ----------------------------------------------------------------------------
def reference_unet_up(x, skip, w, eps=1e-5, slope=0.2):
    wf = jnp.flip(w, axis=(2, 3)).transpose(1, 0, 2, 3)   # (Cout, Cin, 4, 4)
    y = jax.lax.conv_general_dilated(
        x, wf, window_strides=(1, 1), padding=((2, 2), (2, 2)),
        lhs_dilation=(2, 2), dimension_numbers=('NCHW', 'OIHW', 'NCHW'),
        precision=jax.lax.Precision.HIGHEST)
    mean = jnp.mean(y, axis=(2, 3), keepdims=True)
    var = jnp.mean((y - mean) ** 2, axis=(2, 3), keepdims=True)
    yn = (y - mean) * jax.lax.rsqrt(var + eps)
    ya = jnp.where(yn > 0, yn, slope * yn)
    return jnp.concatenate([ya, skip], axis=1)


if __name__ == "__main__":
    key = jax.random.PRNGKey(0)
    kx, ks, kw = jax.random.split(key, 3)
    N, Cin, H, W = 2, 16, 16, 16          # small demo shapes
    Cout, Cskip = 32, 32

    x = jax.random.normal(kx, (N, Cin, H, W), jnp.float32)
    skip = jax.random.normal(ks, (N, Cskip, 2 * H, 2 * W), jnp.float32)
    w = jax.random.normal(kw, (Cin, Cout, 4, 4), jnp.float32) * 0.02

    out = jax.jit(unet_up)(x, skip, w)
    out = jax.block_until_ready(out)
    assert out.shape == (N, Cout + Cskip, 2 * H, 2 * W), out.shape
    assert out.dtype == jnp.float32

    ref = reference_unet_up(x, skip, w)
    max_err = float(jnp.max(jnp.abs(out - ref)))
    assert max_err < 5e-2, f"max abs err {max_err}"

    print("KERNEL_OK")
</pallas_src>

<mosaic_0001>
module attributes {stable_mosaic.version = 11 : i64} {
  func.func @_unet_up_kernel(%arg0: i32, %arg1: memref<1x18x18x16xbf16, #tpu.memory_space<vmem>>, %arg2: memref<16x16x32xbf16, #tpu.memory_space<vmem>>, %arg3: memref<1x16x2x16x64xf32, #tpu.memory_space<vmem>>, %arg4: memref<1x16x2x16x128xf32, #tpu.memory_space<vmem>>) attributes {dimension_semantics = [#tpu.dimension_semantics<parallel>], iteration_bounds = array<i64: 2>, scalar_prefetch = 0 : i64, scratch_operands = 0 : i64, tpu.core_type = #tpu.core_type<tc>, window_params = [{transform_indices = @transform_0, window_bounds = array<i64: 1, 18, 18, 16>}, {pipeline_mode = #tpu.pipeline_mode<synchronous>, transform_indices = @transform_1, window_bounds = array<i64: 16, 16, 32>}, {transform_indices = @transform_2, window_bounds = array<i64: 1, 16, 2, 16, 64>}, {transform_indices = @transform_3, window_bounds = array<i64: 1, 16, 2, 16, 128>}]} {
    %cst = arith.constant 0.000000e+00 : f32
    %0 = vector.broadcast %cst : f32 to vector<256x32xf32>
    %c0 = arith.constant 0 : index
    %c0_0 = arith.constant 0 : index
    %c0_1 = arith.constant 0 : index
    %c0_2 = arith.constant 0 : index
    %1 = vector.load %arg1[%c0, %c0_0, %c0_1, %c0_2] : memref<1x18x18x16xbf16, #tpu.memory_space<vmem>>, vector<1x16x16x16xbf16>
    %2 = vector.shape_cast %1 : vector<1x16x16x16xbf16> to vector<16x16x16xbf16>
    %3 = vector.shape_cast %2 : vector<16x16x16xbf16> to vector<256x16xbf16>
    %c0_3 = arith.constant 0 : index
    %c0_4 = arith.constant 0 : index
    %c0_5 = arith.constant 0 : index
    %4 = vector.load %arg2[%c0_3, %c0_4, %c0_5] : memref<16x16x32xbf16, #tpu.memory_space<vmem>>, vector<1x16x32xbf16>
    %5 = vector.shape_cast %4 : vector<1x16x32xbf16> to vector<16x32xbf16>
    %cst_6 = arith.constant dense<0.000000e+00> : vector<256x32xf32>
    %6 = tpu.matmul %3, %5, %cst_6 {dimension_numbers = #tpu.dot_dimension_numbers<[1], [0], [0], [1], [0, 0, 1, 1], [], []>} : vector<256x16xbf16>, vector<16x32xbf16>, vector<256x32xf32> -> vector<256x32xf32>
    %7 = arith.addf %0, %6 : vector<256x32xf32>
    %c0_7 = arith.constant 0 : index
    %c0_8 = arith.constant 0 : index
    %c1 = arith.constant 1 : index
    %c0_9 = arith.constant 0 : index
    %8 = vector.load %arg1[%c0_7, %c0_8, %c1, %c0_9] : memref<1x18x18x16xbf16, #tpu.memory_space<vmem>>, vector<1x16x16x16xbf16>
    %9 = vector.shape_cast %8 : vector<1x16x16x16xbf16> to vector<16x16x16xbf16>
    %10 = vector.shape_cast %9 : vector<16x16x16xbf16> to vector<256x16xbf16>
    %c1_10 = arith.constant 1 : index
    %c0_11 = arith.constant 0 : index
    %c0_12 = arith.constant 0 : index
    %11 = vector.load %arg2[%c1_10, %c0_11, %c0_12] : memref<16x16x32xbf16, #tpu.memory_space<vmem>>, vector<1x16x32xbf16>
    %12 = vector.shape_cast %11 : vector<1x16x32xbf16> to vector<16x32xbf16>
    %cst_13 = arith.constant dense<0.000000e+00> : vector<256x32xf32>
    %13 = tpu.matmul %10, %12, %cst_13 {dimension_numbers = #tpu.dot_dimension_numbers<[1], [0], [0], [1], [0, 0, 1, 1], [], []>} : vector<256x16xbf16>, vector<16x32xbf16>, vector<256x32xf32> -> vector<256x32xf32>
    %14 = arith.addf %7, %13 : vector<256x32xf32>
    %c0_14 = arith.constant 0 : index
    %c1_15 = arith.constant 1 : index
    %c0_16 = arith.constant 0 : index
    %c0_17 = arith.constant 0 : index
    %15 = vector.load %arg1[%c0_14, %c1_15, %c0_16, %c0_17] : memref<1x18x18x16xbf16, #tpu.memory_space<vmem>>, vector<1x16x16x16xbf16>
    %16 = vector.shape_cast %15 : vector<1x16x16x16xbf16> to vector<16x16x16xbf16>
    %17 = vector.shape_cast %16 : vector<16x16x16xbf16> to vector<256x16xbf16>
    %c2 = arith.constant 2 : index
    %c0_18 = arith.constant 0 : index
    %c0_19 = arith.constant 0 : index
    %18 = vector.load %arg2[%c2, %c0_18, %c0_19] : memref<16x16x32xbf16, #tpu.memory_space<vmem>>, vector<1x16x32xbf16>
    %19 = vector.shape_cast %18 : vector<1x16x32xbf16> to vector<16x32xbf16>
    %cst_20 = arith.constant dense<0.000000e+00> : vector<256x32xf32>
    %20 = tpu.matmul %17, %19, %cst_20 {dimension_numbers = #tpu.dot_dimension_numbers<[1], [0], [0], [1], [0, 0, 1, 1], [], []>} : vector<256x16xbf16>, vector<16x32xbf16>, vector<256x32xf32> -> vector<256x32xf32>
    %21 = arith.addf %14, %20 : vector<256x32xf32>
    %c0_21 = arith.constant 0 : index
    %c1_22 = arith.constant 1 : index
    %c1_23 = arith.constant 1 : index
    %c0_24 = arith.constant 0 : index
    %22 = vector.load %arg1[%c0_21, %c1_22, %c1_23, %c0_24] : memref<1x18x18x16xbf16, #tpu.memory_space<vmem>>, vector<1x16x16x16xbf16>
    %23 = vector.shape_cast %22 : vector<1x16x16x16xbf16> to vector<16x16x16xbf16>
    %24 = vector.shape_cast %23 : vector<16x16x16xbf16> to vector<256x16xbf16>
    %c3 = arith.constant 3 : index
    %c0_25 = arith.constant 0 : index
    %c0_26 = arith.constant 0 : index
    %25 = vector.load %arg2[%c3, %c0_25, %c0_26] : memref<16x16x32xbf16, #tpu.memory_space<vmem>>, vector<1x16x32xbf16>
    %26 = vector.shape_cast %25 : vector<1x16x32xbf16> to vector<16x32xbf16>
    %cst_27 = arith.constant dense<0.000000e+00> : vector<256x32xf32>
    %27 = tpu.matmul %24, %26, %cst_27 {dimension_numbers = #tpu.dot_dimension_numbers<[1], [0], [0], [1], [0, 0, 1, 1], [], []>} : vector<256x16xbf16>, vector<16x32xbf16>, vector<256x32xf32> -> vector<256x32xf32>
    %28 = arith.addf %21, %27 : vector<256x32xf32>
    %cst_28 = arith.constant 0.000000e+00 : f32
    %29 = vector.broadcast %cst_28 : f32 to vector<256x32xf32>
    %c0_29 = arith.constant 0 : index
    %c0_30 = arith.constant 0 : index
    %c1_31 = arith.constant 1 : index
    %c0_32 = arith.constant 0 : index
    %30 = vector.load %arg1[%c0_29, %c0_30, %c1_31, %c0_32] : memref<1x18x18x16xbf16, #tpu.memory_space<vmem>>, vector<1x16x16x16xbf16>
    %31 = vector.shape_cast %30 : vector<1x16x16x16xbf16> to vector<16x16x16xbf16>
    %32 = vector.shape_cast %31 : vector<16x16x16xbf16> to vector<256x16xbf16>
    %c4 = arith.constant 4 : index
    %c0_33 = arith.constant 0 : index
    %c0_34 = arith.constant 0 : index
    %33 = vector.load %arg2[%c4, %c0_33, %c0_34] : memref<16x16x32xbf16, #tpu.memory_space<vmem>>, vector<1x16x32xbf16>
    %34 = vector.shape_cast %33 : vector<1x16x32xbf16> to vector<16x32xbf16>
    %cst_35 = arith.constant dense<0.000000e+00> : vector<256x32xf32>
    %35 = tpu.matmul %32, %34, %cst_35 {dimension_numbers = #tpu.dot_dimension_numbers<[1], [0], [0], [1], [0, 0, 1, 1], [], []>} : vector<256x16xbf16>, vector<16x32xbf16>, vector<256x32xf32> -> vector<256x32xf32>
    %36 = arith.addf %29, %35 : vector<256x32xf32>
    %c0_36 = arith.constant 0 : index
    %c0_37 = arith.constant 0 : index
    %c2_38 = arith.constant 2 : index
    %c0_39 = arith.constant 0 : index
    %37 = vector.load %arg1[%c0_36, %c0_37, %c2_38, %c0_39] : memref<1x18x18x16xbf16, #tpu.memory_space<vmem>>, vector<1x16x16x16xbf16>
    %38 = vector.shape_cast %37 : vector<1x16x16x16xbf16> to vector<16x16x16xbf16>
    %39 = vector.shape_cast %38 : vector<16x16x16xbf16> to vector<256x16xbf16>
    %c5 = arith.constant 5 : index
    %c0_40 = arith.constant 0 : index
    %c0_41 = arith.constant 0 : index
    %40 = vector.load %arg2[%c5, %c0_40, %c0_41] : memref<16x16x32xbf16, #tpu.memory_space<vmem>>, vector<1x16x32xbf16>
    %41 = vector.shape_cast %40 : vector<1x16x32xbf16> to vector<16x32xbf16>
    %cst_42 = arith.constant dense<0.000000e+00> : vector<256x32xf32>
    %42 = tpu.matmul %39, %41, %cst_42 {dimension_numbers = #tpu.dot_dimension_numbers<[1], [0], [0], [1], [0, 0, 1, 1], [], []>} : vector<256x16xbf16>, vector<16x32xbf16>, vector<256x32xf32> -> vector<256x32xf32>
    %43 = arith.addf %36, %42 : vector<256x32xf32>
    %c0_43 = arith.constant 0 : index
    %c1_44 = arith.constant 1 : index
    %c1_45 = arith.constant 1 : index
    %c0_46 = arith.constant 0 : index
    %44 = vector.load %arg1[%c0_43, %c1_44, %c1_45, %c0_46] : memref<1x18x18x16xbf16, #tpu.memory_space<vmem>>, vector<1x16x16x16xbf16>
    %45 = vector.shape_cast %44 : vector<1x16x16x16xbf16> to vector<16x16x16xbf16>
    %46 = vector.shape_cast %45 : vector<16x16x16xbf16> to vector<256x16xbf16>
    %c6 = arith.constant 6 : index
    %c0_47 = arith.constant 0 : index
    %c0_48 = arith.constant 0 : index
    %47 = vector.load %arg2[%c6, %c0_47, %c0_48] : memref<16x16x32xbf16, #tpu.memory_space<vmem>>, vector<1x16x32xbf16>
    %48 = vector.shape_cast %47 : vector<1x16x32xbf16> to vector<16x32xbf16>
    %cst_49 = arith.constant dense<0.000000e+00> : vector<256x32xf32>
    %49 = tpu.matmul %46, %48, %cst_49 {dimension_numbers = #tpu.dot_dimension_numbers<[1], [0], [0], [1], [0, 0, 1, 1], [], []>} : vector<256x16xbf16>, vector<16x32xbf16>, vector<256x32xf32> -> vector<256x32xf32>
    %50 = arith.addf %43, %49 : vector<256x32xf32>
    %c0_50 = arith.constant 0 : index
    %c1_51 = arith.constant 1 : index
    %c2_52 = arith.constant 2 : index
    %c0_53 = arith.constant 0 : index
    %51 = vector.load %arg1[%c0_50, %c1_51, %c2_52, %c0_53] : memref<1x18x18x16xbf16, #tpu.memory_space<vmem>>, vector<1x16x16x16xbf16>
    %52 = vector.shape_cast %51 : vector<1x16x16x16xbf16> to vector<16x16x16xbf16>
    %53 = vector.shape_cast %52 : vector<16x16x16xbf16> to vector<256x16xbf16>
    %c7 = arith.constant 7 : index
    %c0_54 = arith.constant 0 : index
    %c0_55 = arith.constant 0 : index
    %54 = vector.load %arg2[%c7, %c0_54, %c0_55] : memref<16x16x32xbf16, #tpu.memory_space<vmem>>, vector<1x16x32xbf16>
    %55 = vector.shape_cast %54 : vector<1x16x32xbf16> to vector<16x32xbf16>
    %cst_56 = arith.constant dense<0.000000e+00> : vector<256x32xf32>
    %56 = tpu.matmul %53, %55, %cst_56 {dimension_numbers = #tpu.dot_dimension_numbers<[1], [0], [0], [1], [0, 0, 1, 1], [], []>} : vector<256x16xbf16>, vector<16x32xbf16>, vector<256x32xf32> -> vector<256x32xf32>
    %57 = arith.addf %50, %56 : vector<256x32xf32>
    %cst_57 = arith.constant 0.000000e+00 : f32
    %58 = vector.broadcast %cst_57 : f32 to vector<256x32xf32>
    %c0_58 = arith.constant 0 : index
    %c1_59 = arith.constant 1 : index
    %c0_60 = arith.constant 0 : index
    %c0_61 = arith.constant 0 : index
    %59 = vector.load %arg1[%c0_58, %c1_59, %c0_60, %c0_61] : memref<1x18x18x16xbf16, #tpu.memory_space<vmem>>, vector<1x16x16x16xbf16>
    %60 = vector.shape_cast %59 : vector<1x16x16x16xbf16> to vector<16x16x16xbf16>
    %61 = vector.shape_cast %60 : vector<16x16x16xbf16> to vector<256x16xbf16>
    %c8 = arith.constant 8 : index
    %c0_62 = arith.constant 0 : index
    %c0_63 = arith.constant 0 : index
    %62 = vector.load %arg2[%c8, %c0_62, %c0_63] : memref<16x16x32xbf16, #tpu.memory_space<vmem>>, vector<1x16x32xbf16>
    %63 = vector.shape_cast %62 : vector<1x16x32xbf16> to vector<16x32xbf16>
    %cst_64 = arith.constant dense<0.000000e+00> : vector<256x32xf32>
    %64 = tpu.matmul %61, %63, %cst_64 {dimension_numbers = #tpu.dot_dimension_numbers<[1], [0], [0], [1], [0, 0, 1, 1], [], []>} : vector<256x16xbf16>, vector<16x32xbf16>, vector<256x32xf32> -> vector<256x32xf32>
    %65 = arith.addf %58, %64 : vector<256x32xf32>
    %c0_65 = arith.constant 0 : index
    %c1_66 = arith.constant 1 : index
    %c1_67 = arith.constant 1 : index
    %c0_68 = arith.constant 0 : index
    %66 = vector.load %arg1[%c0_65, %c1_66, %c1_67, %c0_68] : memref<1x18x18x16xbf16, #tpu.memory_space<vmem>>, vector<1x16x16x16xbf16>
    %67 = vector.shape_cast %66 : vector<1x16x16x16xbf16> to vector<16x16x16xbf16>
    %68 = vector.shape_cast %67 : vector<16x16x16xbf16> to vector<256x16xbf16>
    %c9 = arith.constant 9 : index
    %c0_69 = arith.constant 0 : index
    %c0_70 = arith.constant 0 : index
    %69 = vector.load %arg2[%c9, %c0_69, %c0_70] : memref<16x16x32xbf16, #tpu.memory_space<vmem>>, vector<1x16x32xbf16>
    %70 = vector.shape_cast %69 : vector<1x16x32xbf16> to vector<16x32xbf16>
    %cst_71 = arith.constant dense<0.000000e+00> : vector<256x32xf32>
    %71 = tpu.matmul %68, %70, %cst_71 {dimension_numbers = #tpu.dot_dimension_numbers<[1], [0], [0], [1], [0, 0, 1, 1], [], []>} : vector<256x16xbf16>, vector<16x32xbf16>, vector<256x32xf32> -> vector<256x32xf32>
    %72 = arith.addf %65, %71 : vector<256x32xf32>
    %c0_72 = arith.constant 0 : index
    %c2_73 = arith.constant 2 : index
    %c0_74 = arith.constant 0 : index
    %c0_75 = arith.constant 0 : index
    %73 = vector.load %arg1[%c0_72, %c2_73, %c0_74, %c0_75] : memref<1x18x18x16xbf16, #tpu.memory_space<vmem>>, vector<1x16x16x16xbf16>
    %74 = vector.shape_cast %73 : vector<1x16x16x16xbf16> to vector<16x16x16xbf16>
    %75 = vector.shape_cast %74 : vector<16x16x16xbf16> to vector<256x16xbf16>
    %c10 = arith.constant 10 : index
    %c0_76 = arith.constant 0 : index
    %c0_77 = arith.constant 0 : index
    %76 = vector.load %arg2[%c10, %c0_76, %c0_77] : memref<16x16x32xbf16, #tpu.memory_space<vmem>>, vector<1x16x32xbf16>
    %77 = vector.shape_cast %76 : vector<1x16x32xbf16> to vector<16x32xbf16>
    %cst_78 = arith.constant dense<0.000000e+00> : vector<256x32xf32>
    %78 = tpu.matmul %75, %77, %cst_78 {dimension_numbers = #tpu.dot_dimension_numbers<[1], [0], [0], [1], [0, 0, 1, 1], [], []>} : vector<256x16xbf16>, vector<16x32xbf16>, vector<256x32xf32> -> vector<256x32xf32>
    %79 = arith.addf %72, %78 : vector<256x32xf32>
    %c0_79 = arith.constant 0 : index
    %c2_80 = arith.constant 2 : index
    %c1_81 = arith.constant 1 : index
    %c0_82 = arith.constant 0 : index
    %80 = vector.load %arg1[%c0_79, %c2_80, %c1_81, %c0_82] : memref<1x18x18x16xbf16, #tpu.memory_space<vmem>>, vector<1x16x16x16xbf16>
    %81 = vector.shape_cast %80 : vector<1x16x16x16xbf16> to vector<16x16x16xbf16>
    %82 = vector.shape_cast %81 : vector<16x16x16xbf16> to vector<256x16xbf16>
    %c11 = arith.constant 11 : index
    %c0_83 = arith.constant 0 : index
    %c0_84 = arith.constant 0 : index
    %83 = vector.load %arg2[%c11, %c0_83, %c0_84] : memref<16x16x32xbf16, #tpu.memory_space<vmem>>, vector<1x16x32xbf16>
    %84 = vector.shape_cast %83 : vector<1x16x32xbf16> to vector<16x32xbf16>
    %cst_85 = arith.constant dense<0.000000e+00> : vector<256x32xf32>
    %85 = tpu.matmul %82, %84, %cst_85 {dimension_numbers = #tpu.dot_dimension_numbers<[1], [0], [0], [1], [0, 0, 1, 1], [], []>} : vector<256x16xbf16>, vector<16x32xbf16>, vector<256x32xf32> -> vector<256x32xf32>
    %86 = arith.addf %79, %85 : vector<256x32xf32>
    %cst_86 = arith.constant 0.000000e+00 : f32
    %87 = vector.broadcast %cst_86 : f32 to vector<256x32xf32>
    %c0_87 = arith.constant 0 : index
    %c1_88 = arith.constant 1 : index
    %c1_89 = arith.constant 1 : index
    %c0_90 = arith.constant 0 : index
    %88 = vector.load %arg1[%c0_87, %c1_88, %c1_89, %c0_90] : memref<1x18x18x16xbf16, #tpu.memory_space<vmem>>, vector<1x16x16x16xbf16>
    %89 = vector.shape_cast %88 : vector<1x16x16x16xbf16> to vector<16x16x16xbf16>
    %90 = vector.shape_cast %89 : vector<16x16x16xbf16> to vector<256x16xbf16>
    %c12 = arith.constant 12 : index
    %c0_91 = arith.constant 0 : index
    %c0_92 = arith.constant 0 : index
    %91 = vector.load %arg2[%c12, %c0_91, %c0_92] : memref<16x16x32xbf16, #tpu.memory_space<vmem>>, vector<1x16x32xbf16>
    %92 = vector.shape_cast %91 : vector<1x16x32xbf16> to vector<16x32xbf16>
    %cst_93 = arith.constant dense<0.000000e+00> : vector<256x32xf32>
    %93 = tpu.matmul %90, %92, %cst_93 {dimension_numbers = #tpu.dot_dimension_numbers<[1], [0], [0], [1], [0, 0, 1, 1], [], []>} : vector<256x16xbf16>, vector<16x32xbf16>, vector<256x32xf32> -> vector<256x32xf32>
    %94 = arith.addf %87, %93 : vector<256x32xf32>
    %c0_94 = arith.constant 0 : index
    %c1_95 = arith.constant 1 : index
    %c2_96 = arith.constant 2 : index
    %c0_97 = arith.constant 0 : index
    %95 = vector.load %arg1[%c0_94, %c1_95, %c2_96, %c0_97] : memref<1x18x18x16xbf16, #tpu.memory_space<vmem>>, vector<1x16x16x16xbf16>
    %96 = vector.shape_cast %95 : vector<1x16x16x16xbf16> to vector<16x16x16xbf16>
    %97 = vector.shape_cast %96 : vector<16x16x16xbf16> to vector<256x16xbf16>
    %c13 = arith.constant 13 : index
    %c0_98 = arith.constant 0 : index
    %c0_99 = arith.constant 0 : index
    %98 = vector.load %arg2[%c13, %c0_98, %c0_99] : memref<16x16x32xbf16, #tpu.memory_space<vmem>>, vector<1x16x32xbf16>
    %99 = vector.shape_cast %98 : vector<1x16x32xbf16> to vector<16x32xbf16>
    %cst_100 = arith.constant dense<0.000000e+00> : vector<256x32xf32>
    %100 = tpu.matmul %97, %99, %cst_100 {dimension_numbers = #tpu.dot_dimension_numbers<[1], [0], [0], [1], [0, 0, 1, 1], [], []>} : vector<256x16xbf16>, vector<16x32xbf16>, vector<256x32xf32> -> vector<256x32xf32>
    %101 = arith.addf %94, %100 : vector<256x32xf32>
    %c0_101 = arith.constant 0 : index
    %c2_102 = arith.constant 2 : index
    %c1_103 = arith.constant 1 : index
    %c0_104 = arith.constant 0 : index
    %102 = vector.load %arg1[%c0_101, %c2_102, %c1_103, %c0_104] : memref<1x18x18x16xbf16, #tpu.memory_space<vmem>>, vector<1x16x16x16xbf16>
    %103 = vector.shape_cast %102 : vector<1x16x16x16xbf16> to vector<16x16x16xbf16>
    %104 = vector.shape_cast %103 : vector<16x16x16xbf16> to vector<256x16xbf16>
    %c14 = arith.constant 14 : index
    %c0_105 = arith.constant 0 : index
    %c0_106 = arith.constant 0 : index
    %105 = vector.load %arg2[%c14, %c0_105, %c0_106] : memref<16x16x32xbf16, #tpu.memory_space<vmem>>, vector<1x16x32xbf16>
    %106 = vector.shape_cast %105 : vector<1x16x32xbf16> to vector<16x32xbf16>
    %cst_107 = arith.constant dense<0.000000e+00> : vector<256x32xf32>
    %107 = tpu.matmul %104, %106, %cst_107 {dimension_numbers = #tpu.dot_dimension_numbers<[1], [0], [0], [1], [0, 0, 1, 1], [], []>} : vector<256x16xbf16>, vector<16x32xbf16>, vector<256x32xf32> -> vector<256x32xf32>
    %108 = arith.addf %101, %107 : vector<256x32xf32>
    %c0_108 = arith.constant 0 : index
    %c2_109 = arith.constant 2 : index
    %c2_110 = arith.constant 2 : index
    %c0_111 = arith.constant 0 : index
    %109 = vector.load %arg1[%c0_108, %c2_109, %c2_110, %c0_111] : memref<1x18x18x16xbf16, #tpu.memory_space<vmem>>, vector<1x16x16x16xbf16>
    %110 = vector.shape_cast %109 : vector<1x16x16x16xbf16> to vector<16x16x16xbf16>
    %111 = vector.shape_cast %110 : vector<16x16x16xbf16> to vector<256x16xbf16>
    %c15 = arith.constant 15 : index
    %c0_112 = arith.constant 0 : index
    %c0_113 = arith.constant 0 : index
    %112 = vector.load %arg2[%c15, %c0_112, %c0_113] : memref<16x16x32xbf16, #tpu.memory_space<vmem>>, vector<1x16x32xbf16>
    %113 = vector.shape_cast %112 : vector<1x16x32xbf16> to vector<16x32xbf16>
    %cst_114 = arith.constant dense<0.000000e+00> : vector<256x32xf32>
    %114 = tpu.matmul %111, %113, %cst_114 {dimension_numbers = #tpu.dot_dimension_numbers<[1], [0], [0], [1], [0, 0, 1, 1], [], []>} : vector<256x16xbf16>, vector<16x32xbf16>, vector<256x32xf32> -> vector<256x32xf32>
    %115 = arith.addf %108, %114 : vector<256x32xf32>
    %cst_115 = arith.constant dense<0.000000e+00> : vector<32xf32>
    %116 = vector.multi_reduction <add>, %28, %cst_115 [0] : vector<256x32xf32> to vector<32xf32>
    %117 = vector.shape_cast %116 : vector<32xf32> to vector<1x32xf32>
    %cst_116 = arith.constant dense<0.000000e+00> : vector<32xf32>
    %118 = vector.multi_reduction <add>, %57, %cst_116 [0] : vector<256x32xf32> to vector<32xf32>
    %119 = vector.shape_cast %118 : vector<32xf32> to vector<1x32xf32>
    %120 = arith.addf %117, %119 : vector<1x32xf32>
    %cst_117 = arith.constant dense<0.000000e+00> : vector<32xf32>
    %121 = vector.multi_reduction <add>, %86, %cst_117 [0] : vector<256x32xf32> to vector<32xf32>
    %122 = vector.shape_cast %121 : vector<32xf32> to vector<1x32xf32>
    %123 = arith.addf %120, %122 : vector<1x32xf32>
    %cst_118 = arith.constant dense<0.000000e+00> : vector<32xf32>
    %124 = vector.multi_reduction <add>, %115, %cst_118 [0] : vector<256x32xf32> to vector<32xf32>
    %125 = vector.shape_cast %124 : vector<32xf32> to vector<1x32xf32>
    %126 = arith.addf %123, %125 : vector<1x32xf32>
    %cst_119 = arith.constant 1.024000e+03 : f32
    %127 = vector.broadcast %cst_119 : f32 to vector<1x32xf32>
    %128 = arith.divf %126, %127 : vector<1x32xf32>
    %cst_120 = arith.constant 0.000000e+00 : f32
    %129 = vector.broadcast %cst_120 : f32 to vector<1x32xf32>
    %130 = vector.broadcast %128 : vector<1x32xf32> to vector<256x32xf32>
    %131 = arith.subf %28, %130 : vector<256x32xf32>
    %132 = arith.mulf %131, %131 : vector<256x32xf32>
    %cst_121 = arith.constant dense<0.000000e+00> : vector<32xf32>
    %133 = vector.multi_reduction <add>, %132, %cst_121 [0] : vector<256x32xf32> to vector<32xf32>
    %134 = vector.shape_cast %133 : vector<32xf32> to vector<1x32xf32>
    %135 = arith.addf %129, %134 : vector<1x32xf32>
    %136 = vector.broadcast %128 : vector<1x32xf32> to vector<256x32xf32>
    %137 = arith.subf %57, %136 : vector<256x32xf32>
    %138 = arith.mulf %137, %137 : vector<256x32xf32>
    %cst_122 = arith.constant dense<0.000000e+00> : vector<32xf32>
    %139 = vector.multi_reduction <add>, %138, %cst_122 [0] : vector<256x32xf32> to vector<32xf32>
    %140 = vector.shape_cast %139 : vector<32xf32> to vector<1x32xf32>
    %141 = arith.addf %135, %140 : vector<1x32xf32>
    %142 = vector.broadcast %128 : vector<1x32xf32> to vector<256x32xf32>
    %143 = arith.subf %86, %142 : vector<256x32xf32>
    %144 = arith.mulf %143, %143 : vector<256x32xf32>
    %cst_123 = arith.constant dense<0.000000e+00> : vector<32xf32>
    %145 = vector.multi_reduction <add>, %144, %cst_123 [0] : vector<256x32xf32> to vector<32xf32>
    %146 = vector.shape_cast %145 : vector<32xf32> to vector<1x32xf32>
    %147 = arith.addf %141, %146 : vector<1x32xf32>
    %148 = vector.broadcast %128 : vector<1x32xf32> to vector<256x32xf32>
    %149 = arith.subf %115, %148 : vector<256x32xf32>
    %150 = arith.mulf %149, %149 : vector<256x32xf32>
    %cst_124 = arith.constant dense<0.000000e+00> : vector<32xf32>
    %151 = vector.multi_reduction <add>, %150, %cst_124 [0] : vector<256x32xf32> to vector<32xf32>
    %152 = vector.shape_cast %151 : vector<32xf32> to vector<1x32xf32>
    %153 = arith.addf %147, %152 : vector<1x32xf32>
    %cst_125 = arith.constant 1.024000e+03 : f32
    %154 = vector.broadcast %cst_125 : f32 to vector<1x32xf32>
    %155 = arith.divf %153, %154 : vector<1x32xf32>
    %cst_126 = arith.constant 9.99999974E-6 : f32
    %156 = vector.broadcast %cst_126 : f32 to vector<1x32xf32>
    %157 = arith.addf %155, %156 : vector<1x32xf32>
    %158 = math.rsqrt %157 : vector<1x32xf32>
    %159 = vector.broadcast %128 : vector<1x32xf32> to vector<256x32xf32>
    %160 = arith.subf %28, %159 : vector<256x32xf32>
    %161 = vector.broadcast %158 : vector<1x32xf32> to vector<256x32xf32>
    %162 = arith.mulf %160, %161 : vector<256x32xf32>
    %cst_127 = arith.constant 0.000000e+00 : f32
    %163 = vector.broadcast %cst_127 : f32 to vector<256x32xf32>
    %164 = arith.cmpf ogt, %162, %163 : vector<256x32xf32>
    %cst_128 = arith.constant 2.000000e-01 : f32
    %165 = vector.broadcast %cst_128 : f32 to vector<256x32xf32>
    %166 = arith.mulf %165, %162 : vector<256x32xf32>
    %167 = arith.select %164, %162, %166 : vector<256x32xi1>, vector<256x32xf32>
    %168 = vector.shape_cast %167 : vector<256x32xf32> to vector<16x16x32xf32>
    %c0_129 = arith.constant 0 : index
    %c0_130 = arith.constant 0 : index
    %c0_131 = arith.constant 0 : index
    %c0_132 = arith.constant 0 : index
    %c0_133 = arith.constant 0 : index
    %169 = vector.load %arg4[%c0_129, %c0_130, %c0_131, %c0_132, %c0_133] : memref<1x16x2x16x128xf32, #tpu.memory_space<vmem>>, vector<1x16x1x16x32xf32>
    %170 = vector.shape_cast %169 : vector<1x16x1x16x32xf32> to vector<16x16x32xf32>
    %171 = vector.shape_cast %168 : vector<16x16x32xf32> to vector<1x16x1x16x32xf32>
    tpu.vector_store %arg4[%c0_129, %c0_130, %c0_131, %c0_132, %c0_133], %171 {strides = array<i32>} : memref<1x16x2x16x128xf32, #tpu.memory_space<vmem>>, vector<1x16x1x16x32xf32>,
    %c0_134 = arith.constant 0 : index
    %c0_135 = arith.constant 0 : index
    %c0_136 = arith.constant 0 : index
    %c0_137 = arith.constant 0 : index
    %c0_138 = arith.constant 0 : index
    %172 = vector.load %arg3[%c0_134, %c0_135, %c0_136, %c0_137, %c0_138] : memref<1x16x2x16x64xf32, #tpu.memory_space<vmem>>, vector<1x16x1x16x32xf32>
    %173 = vector.shape_cast %172 : vector<1x16x1x16x32xf32> to vector<16x16x32xf32>
    %c0_139 = arith.constant 0 : index
    %c0_140 = arith.constant 0 : index
    %c0_141 = arith.constant 0 : index
    %c0_142 = arith.constant 0 : index
    %c32 = arith.constant 32 : index
    %174 = vector.load %arg4[%c0_139, %c0_140, %c0_141, %c0_142, %c32] : memref<1x16x2x16x128xf32, #tpu.memory_space<vmem>>, vector<1x16x1x16x32xf32>
    %175 = vector.shape_cast %174 : vector<1x16x1x16x32xf32> to vector<16x16x32xf32>
    %176 = vector.shape_cast %173 : vector<16x16x32xf32> to vector<1x16x1x16x32xf32>
    tpu.vector_store %arg4[%c0_139, %c0_140, %c0_141, %c0_142, %c32], %176 {strides = array<i32>} : memref<1x16x2x16x128xf32, #tpu.memory_space<vmem>>, vector<1x16x1x16x32xf32>,
    %177 = vector.broadcast %128 : vector<1x32xf32> to vector<256x32xf32>
    %178 = arith.subf %57, %177 : vector<256x32xf32>
    %179 = vector.broadcast %158 : vector<1x32xf32> to vector<256x32xf32>
    %180 = arith.mulf %178, %179 : vector<256x32xf32>
    %cst_143 = arith.constant 0.000000e+00 : f32
    %181 = vector.broadcast %cst_143 : f32 to vector<256x32xf32>
    %182 = arith.cmpf ogt, %180, %181 : vector<256x32xf32>
    %cst_144 = arith.constant 2.000000e-01 : f32
    %183 = vector.broadcast %cst_144 : f32 to vector<256x32xf32>
    %184 = arith.mulf %183, %180 : vector<256x32xf32>
    %185 = arith.select %182, %180, %184 : vector<256x32xi1>, vector<256x32xf32>
    %186 = vector.shape_cast %185 : vector<256x32xf32> to vector<16x16x32xf32>
    %c0_145 = arith.constant 0 : index
    %c0_146 = arith.constant 0 : index
    %c0_147 = arith.constant 0 : index
    %c0_148 = arith.constant 0 : index
    %c64 = arith.constant 64 : index
    %187 = vector.load %arg4[%c0_145, %c0_146, %c0_147, %c0_148, %c64] : memref<1x16x2x16x128xf32, #tpu.memory_space<vmem>>, vector<1x16x1x16x32xf32>
    %188 = vector.shape_cast %187 : vector<1x16x1x16x32xf32> to vector<16x16x32xf32>
    %189 = vector.shape_cast %186 : vector<16x16x32xf32> to vector<1x16x1x16x32xf32>
    tpu.vector_store %arg4[%c0_145, %c0_146, %c0_147, %c0_148, %c64], %189 {strides = array<i32>} : memref<1x16x2x16x128xf32, #tpu.memory_space<vmem>>, vector<1x16x1x16x32xf32>,
    %c0_149 = arith.constant 0 : index
    %c0_150 = arith.constant 0 : index
    %c0_151 = arith.constant 0 : index
    %c0_152 = arith.constant 0 : index
    %c32_153 = arith.constant 32 : index
    %190 = vector.load %arg3[%c0_149, %c0_150, %c0_151, %c0_152, %c32_153] : memref<1x16x2x16x64xf32, #tpu.memory_space<vmem>>, vector<1x16x1x16x32xf32>
    %191 = vector.shape_cast %190 : vector<1x16x1x16x32xf32> to vector<16x16x32xf32>
    %c0_154 = arith.constant 0 : index
    %c0_155 = arith.constant 0 : index
    %c0_156 = arith.constant 0 : index
    %c0_157 = arith.constant 0 : index
    %c96 = arith.constant 96 : index
    %192 = vector.load %arg4[%c0_154, %c0_155, %c0_156, %c0_157, %c96] : memref<1x16x2x16x128xf32, #tpu.memory_space<vmem>>, vector<1x16x1x16x32xf32>
    %193 = vector.shape_cast %192 : vector<1x16x1x16x32xf32> to vector<16x16x32xf32>
    %194 = vector.shape_cast %191 : vector<16x16x32xf32> to vector<1x16x1x16x32xf32>
    tpu.vector_store %arg4[%c0_154, %c0_155, %c0_156, %c0_157, %c96], %194 {strides = array<i32>} : memref<1x16x2x16x128xf32, #tpu.memory_space<vmem>>, vector<1x16x1x16x32xf32>,
    %195 = vector.broadcast %128 : vector<1x32xf32> to vector<256x32xf32>
    %196 = arith.subf %86, %195 : vector<256x32xf32>
    %197 = vector.broadcast %158 : vector<1x32xf32> to vector<256x32xf32>
    %198 = arith.mulf %196, %197 : vector<256x32xf32>
    %cst_158 = arith.constant 0.000000e+00 : f32
    %199 = vector.broadcast %cst_158 : f32 to vector<256x32xf32>
    %200 = arith.cmpf ogt, %198, %199 : vector<256x32xf32>
    %cst_159 = arith.constant 2.000000e-01 : f32
    %201 = vector.broadcast %cst_159 : f32 to vector<256x32xf32>
    %202 = arith.mulf %201, %198 : vector<256x32xf32>
    %203 = arith.select %200, %198, %202 : vector<256x32xi1>, vector<256x32xf32>
    %204 = vector.shape_cast %203 : vector<256x32xf32> to vector<16x16x32xf32>
    %c0_160 = arith.constant 0 : index
    %c0_161 = arith.constant 0 : index
    %c1_162 = arith.constant 1 : index
    %c0_163 = arith.constant 0 : index
    %c0_164 = arith.constant 0 : index
    %205 = vector.load %arg4[%c0_160, %c0_161, %c1_162, %c0_163, %c0_164] : memref<1x16x2x16x128xf32, #tpu.memory_space<vmem>>, vector<1x16x1x16x32xf32>
    %206 = vector.shape_cast %205 : vector<1x16x1x16x32xf32> to vector<16x16x32xf32>
    %207 = vector.shape_cast %204 : vector<16x16x32xf32> to vector<1x16x1x16x32xf32>
    tpu.vector_store %arg4[%c0_160, %c0_161, %c1_162, %c0_163, %c0_164], %207 {strides = array<i32>} : memref<1x16x2x16x128xf32, #tpu.memory_space<vmem>>, vector<1x16x1x16x32xf32>,
    %c0_165 = arith.constant 0 : index
    %c0_166 = arith.constant 0 : index
    %c1_167 = arith.constant 1 : index
    %c0_168 = arith.constant 0 : index
    %c0_169 = arith.constant 0 : index
    %208 = vector.load %arg3[%c0_165, %c0_166, %c1_167, %c0_168, %c0_169] : memref<1x16x2x16x64xf32, #tpu.memory_space<vmem>>, vector<1x16x1x16x32xf32>
    %209 = vector.shape_cast %208 : vector<1x16x1x16x32xf32> to vector<16x16x32xf32>
    %c0_170 = arith.constant 0 : index
    %c0_171 = arith.constant 0 : index
    %c1_172 = arith.constant 1 : index
    %c0_173 = arith.constant 0 : index
    %c32_174 = arith.constant 32 : index
    %210 = vector.load %arg4[%c0_170, %c0_171, %c1_172, %c0_173, %c32_174] : memref<1x16x2x16x128xf32, #tpu.memory_space<vmem>>, vector<1x16x1x16x32xf32>
    %211 = vector.shape_cast %210 : vector<1x16x1x16x32xf32> to vector<16x16x32xf32>
    %212 = vector.shape_cast %209 : vector<16x16x32xf32> to vector<1x16x1x16x32xf32>
    tpu.vector_store %arg4[%c0_170, %c0_171, %c1_172, %c0_173, %c32_174], %212 {strides = array<i32>} : memref<1x16x2x16x128xf32, #tpu.memory_space<vmem>>, vector<1x16x1x16x32xf32>,
    %213 = vector.broadcast %128 : vector<1x32xf32> to vector<256x32xf32>
    %214 = arith.subf %115, %213 : vector<256x32xf32>
    %215 = vector.broadcast %158 : vector<1x32xf32> to vector<256x32xf32>
    %216 = arith.mulf %214, %215 : vector<256x32xf32>
    %cst_175 = arith.constant 0.000000e+00 : f32
    %217 = vector.broadcast %cst_175 : f32 to vector<256x32xf32>
    %218 = arith.cmpf ogt, %216, %217 : vector<256x32xf32>
    %cst_176 = arith.constant 2.000000e-01 : f32
    %219 = vector.broadcast %cst_176 : f32 to vector<256x32xf32>
    %220 = arith.mulf %219, %216 : vector<256x32xf32>
    %221 = arith.select %218, %216, %220 : vector<256x32xi1>, vector<256x32xf32>
    %222 = vector.shape_cast %221 : vector<256x32xf32> to vector<16x16x32xf32>
    %c0_177 = arith.constant 0 : index
    %c0_178 = arith.constant 0 : index
    %c1_179 = arith.constant 1 : index
    %c0_180 = arith.constant 0 : index
    %c64_181 = arith.constant 64 : index
    %223 = vector.load %arg4[%c0_177, %c0_178, %c1_179, %c0_180, %c64_181] : memref<1x16x2x16x128xf32, #tpu.memory_space<vmem>>, vector<1x16x1x16x32xf32>
    %224 = vector.shape_cast %223 : vector<1x16x1x16x32xf32> to vector<16x16x32xf32>
    %225 = vector.shape_cast %222 : vector<16x16x32xf32> to vector<1x16x1x16x32xf32>
    tpu.vector_store %arg4[%c0_177, %c0_178, %c1_179, %c0_180, %c64_181], %225 {strides = array<i32>} : memref<1x16x2x16x128xf32, #tpu.memory_space<vmem>>, vector<1x16x1x16x32xf32>,
    %c0_182 = arith.constant 0 : index
    %c0_183 = arith.constant 0 : index
    %c1_184 = arith.constant 1 : index
    %c0_185 = arith.constant 0 : index
    %c32_186 = arith.constant 32 : index
    %226 = vector.load %arg3[%c0_182, %c0_183, %c1_184, %c0_185, %c32_186] : memref<1x16x2x16x64xf32, #tpu.memory_space<vmem>>, vector<1x16x1x16x32xf32>
    %227 = vector.shape_cast %226 : vector<1x16x1x16x32xf32> to vector<16x16x32xf32>
    %c0_187 = arith.constant 0 : index
    %c0_188 = arith.constant 0 : index
    %c1_189 = arith.constant 1 : index
    %c0_190 = arith.constant 0 : index
    %c96_191 = arith.constant 96 : index
    %228 = vector.load %arg4[%c0_187, %c0_188, %c1_189, %c0_190, %c96_191] : memref<1x16x2x16x128xf32, #tpu.memory_space<vmem>>, vector<1x16x1x16x32xf32>
    %229 = vector.shape_cast %228 : vector<1x16x1x16x32xf32> to vector<16x16x32xf32>
    %230 = vector.shape_cast %227 : vector<16x16x32xf32> to vector<1x16x1x16x32xf32>
    tpu.vector_store %arg4[%c0_187, %c0_188, %c1_189, %c0_190, %c96_191], %230 {strides = array<i32>} : memref<1x16x2x16x128xf32, #tpu.memory_space<vmem>>, vector<1x16x1x16x32xf32>,
    return
  }
  func.func @transform_0(%arg0: i32) -> (i32, i32, i32, i32) {
    %c0_i32 = arith.constant 0 : i32
    %c0_i32_0 = arith.constant 0 : i32
    %c0_i32_1 = arith.constant 0 : i32
    %c0_i32_2 = arith.constant 0 : i32
    return %arg0, %c0_i32, %c0_i32_0, %c0_i32_1 : i32, i32, i32, i32
  }
  func.func @transform_1(%arg0: i32) -> (i32, i32, i32) {
    %c0_i32 = arith.constant 0 : i32
    %c0_i32_0 = arith.constant 0 : i32
    %c0_i32_1 = arith.constant 0 : i32
    %c0_i32_2 = arith.constant 0 : i32
    return %c0_i32, %c0_i32_0, %c0_i32_1 : i32, i32, i32
  }
  func.func @transform_2(%arg0: i32) -> (i32, i32, i32, i32, i32) {
    %c0_i32 = arith.constant 0 : i32
    %c0_i32_0 = arith.constant 0 : i32
    %c0_i32_1 = arith.constant 0 : i32
    %c0_i32_2 = arith.constant 0 : i32
    %c0_i32_3 = arith.constant 0 : i32
    return %arg0, %c0_i32, %c0_i32_0, %c0_i32_1, %c0_i32_2 : i32, i32, i32, i32, i32
  }
  func.func @transform_3(%arg0: i32) -> (i32, i32, i32, i32, i32) {
    %c0_i32 = arith.constant 0 : i32
    %c0_i32_0 = arith.constant 0 : i32
    %c0_i32_1 = arith.constant 0 : i32
    %c0_i32_2 = arith.constant 0 : i32
    %c0_i32_3 = arith.constant 0 : i32
    return %arg0, %c0_i32, %c0_i32_0, %c0_i32_1, %c0_i32_2 : i32, i32, i32, i32, i32
  }
}

</mosaic_0001>

<bundles_post_ra>
// kernel: unet_up.1
= control target key start
LH: loop header
LB: loop body
LE: loop exit
PB: predicated region body
PF: predicated region fallthrough
CT: control target
= control target key end

     0   :  { %s10793_s12 = smov 0   ;;  %s16604_s0 = inlined_call_operand.vmem [shape: bf16[2,18,18,16], index: 0, kind: input, shape index: {}]   ;;  %s16605_s1 = inlined_call_operand.vmem [shape: bf16[16,16,32], index: 1, kind: input, shape index: {}]   ;;  %s16606_s2 = inlined_call_operand.vmem [shape: f32[2,16,2,16,64], index: 2, kind: input, shape index: {}]   ;;  %s16607_s3 = inlined_call_operand.vmem [shape: f32[2,16,2,16,128], index: 3, kind: output, shape index: {}]  }
   0x1 LB: > { %s8565_s13 = sadd.s32 4294967295, %s10769_s12   ;;  %p8569_p0 = scmp.ge.s32.totalorder %s10769_s12, 1  ;;  %s10769_s12 = sphi %s10793_s12, %s13_s12  }
   0x2   : > { %p147_p1 = scmp.lt.s32.totalorder %s10769_s12, 3 }
   0x4   : > { %p148_p2 = pnand %p8569_p0, %p147_p1 }
   0x6   : > { %151 = sbr.rel (%p148_p2) target bundleno = 1367 (0x557), region = 32 }
   0xd   : > { %v10668_v0 = vld [vmem:[%s16605_s1 + $0x28] sm:$0xff]   ;;  %p176_p3 = scmp.lt.s32.totalorder %s8565_s13, 1  ;;  %v10812_v2 = vld [vmem:[%s16605_s1] sm:$0xff]   ;;  %vm2335_vm0 = vcmask 1042432   ;;  %vm2336_vm1 = vcmask 1046532   ;;  %vm686_vm3 = vcmask 130048  }
   0xe   : > { %v10669_v1 = vld [vmem:[%s16605_s1 + $0x8] sm:$0xff]   ;;  %9865 = vmatprep.subr.bf16.mxu1 %v10668_v0  ;;  %vm242_vm2 = vsmask.f32 3328  ;;  %v10671_v3 = vld [vmem:[%s16605_s1 + $0x20] sm:$0xff]   ;;  %vm10824_vm4 = vmor %vm2335_vm0, %vm2336_vm1  ;;  %v16907_v4 = vmov 0  ;;  %s10771_s30 = smov 32  }
   0xf   : > { %s17809_s13 = smov (!%p176_p3, %s8565_s13), 1  ;;  %9866 = vmatpush3.bf16.msra.mxu1 %v10668_v0  ;;  %9729 = vmatprep.subr.bf16.mxu0 %v10669_v1  ;;  %v16908_v4 = vsel %vm10824_vm4, 4294967295, %v16907_v4  ;;  %vm243_vm5 = vsmask.f32 7440  ;;  %v10852_v36 = vld [vmem:[%s16605_s1 + $0x30] sm:$0xff]   ;;  %vm6008_vm7 = vcmask 261120  }
  0x10   : > { %s10657_s20 = smul.u32 216, %s17809_s13  ;;  %9730 = vmatpush3.bf16.msra.mxu0 %v10669_v1  ;;  %16909 = vst [vmem:[#allocation2_spill] sm:$0xff] %v16908_v4  ;;  %9899 = vmatprep.subr.bf16.mxu1 %v10671_v3  ;;  %vm10863_vm6 = vmor %vm242_vm2, %vm243_vm5  ;;  %s9455_s26 = sshll.u32 %s17809_s13, 9  ;;  %vm7149_vm9 = vcmask 523520  }
  0x11   : > { %9763 = vmatprep.subr.bf16.mxu0 %v10812_v2  ;;  %s12559_s29 = scalar_lea.vmem %s16606_s2, %s9455_s26  ;;  %s14955_s6 = scalar_lea.vmem %s16607_s3, %s9455_s26 }
  0x12   : > { %s10822_s25 = scalar_lea.vmem %s16604_s0, %s10657_s20 }
  0x13   : > { %v193_v5 = vld [vmem:[%s10822_s25 + $0x4] sm:$0xf]  ;;  %v226_v6 = vld [vmem:[%s10822_s25 + $0x8] sm:$0x1]  ;;  %v2287_v7 = vld [vmem:[%s10822_s25] sm:$0xe] }
  0x14   : > { %v8795_v8 = vrot.slane %v2287_v7, 9  ;;  %v2340_v9 = vrot.slane %v193_v5, 5  ;;  %v2343_v10 = vrot.slane %v226_v6, 5  ;;  %v195_v11 = vld [vmem:[%s10822_s25 + $0x10] sm:$0xf]  ;;  %v255_v12 = vshll.u32 %v193_v5, 16 }
  0x15   : > { %v227_v13 = vld [vmem:[%s10822_s25 + $0x14] sm:$0x1]  ;;  %v2288_v14 = vld [vmem:[%s10822_s25 + $0xc] sm:$0xe]  ;;  %v2347_v15 = vrot.slane %v195_v11, 5  ;;  %v259_v16 = vshrl.u32 %v193_v5, 16 }
  0x16   : > { %v2341_v17 = vsel %vm10824_vm4, %v8795_v8, %v2340_v9  ;;  %v2342_v18 = vrot.slane %v2340_v9, 4  ;;  %v8796_v19 = vrot.slane %v2288_v14, 9  ;;  %v2350_v20 = vrot.slane %v227_v13, 5  ;;  %v10837_v21 = vld [vmem:[%s10822_s25] sm:$0xf] }
  0x17   : > { %v2349_v22 = vrot.slane %v2347_v15, 4  ;;  %v246_v23 = vshrl.u32 %v10837_v21, 16  ;;  %v249_v24 = vshll.u32 %v10837_v21, 16  ;;  %v257_v25 = vrot.slane %v255_v12, 5  ;;  %v194_v26 = vld [vmem:[%s10822_s25 + $0xc] sm:$0xf] }
  0x18   : > { %v2344_v27 = vsel %vm10824_vm4, %v2342_v18, %v2343_v10  ;;  %v2348_v28 = vsel %vm10824_vm4, %v8796_v19, %v2347_v15  ;;  %v261_v29 = vrot.slane %v259_v16, 4  ;;  %v265_v30 = vshll.u32 %v226_v6, 16  ;;  %v2289_v35 = vld [vmem:[%s10822_s25 + $0x18] sm:$0xe]  ;;  %v10855_v41 = vld [vmem:[%s10822_s25 + $0x1c] sm:$0xf] }
  0x19   : > { %v8813_v31 = vcombine.low %v2341_v17, %v2344_v27  ;;  %v2351_v32 = vsel %vm10824_vm4, %v2349_v22, %v2350_v20  ;;  %v248_v33 = vrot.slane %v246_v23, 4  ;;  %v251_v34 = vrot.slane %v249_v24, 5  ;;  %v10858_v42 = vld [vmem:[%s10822_s25 + $0x20] sm:$0x1]  ;;  %v10868_v48 = vld [vmem:[%s10822_s25 + $0x28] sm:$0xf] }
  0x1a   : > { %v8814_v37 = vcombine.low %v2348_v28, %v2351_v32  ;;  %v262_v38 = vor.u32 %v261_v29, %v257_v25  ;;  %v267_v39 = vrot.slane %v265_v30, 5  ;;  %v270_v40 = vshrl.u32 %v194_v26, 16  ;;  %v2290_v53 = vld [vmem:[%s10822_s25 + $0x24] sm:$0xe]  ;;  %v10873_v58 = vld [vmem:[%s10822_s25 + $0x2c] sm:$0x1] }
  0x1b   : > { %9867 = vmatprep.mubr.msk.bf16.mxu1 %vm686_vm3, %v8813_v31  ;;  %v252_v44 = vor.u32 %v251_v34, %v248_v33  ;;  %v273_v45 = vshll.u32 %v194_v26, 16  ;;  %v279_v46 = vshll.u32 %v195_v11, 16  ;;  %v283_v47 = vshrl.u32 %v195_v11, 16  ;;  %v10880_v63 = vld [vmem:[%s10822_s25 + $0x18] sm:$0xf]  ;;  %v10917_v29 = vld [vmem:[%s16605_s1 + $0x10] sm:$0xff]  }
  0x1c   : > { %9868 = vmatmul.mubr.msk.bf16.vlgmr.msra.gmra.mrb[0].mxu1 %vm686_vm3, %v8814_v37  ;;  %v263_v49 = vrot.slane %v262_v38, 4  ;;  %v272_v50 = vrot.slane %v270_v40, 4  ;;  %v289_v51 = vshll.u32 %v227_v13, 16  ;;  %v8797_v52 = vrot.slane %v2289_v35, 9  ;;  %v10900_v18 = vld [vmem:[%s10822_s25 + $0x24] sm:$0xf] }
  0x1d   : > { %v253_v54 = vrot.slane %v252_v44, 4  ;;  %v275_v55 = vrot.slane %v273_v45, 5  ;;  %v281_v56 = vrot.slane %v279_v46, 5  ;;  %v285_v57 = vrot.slane %v283_v47, 4  ;;  %9900 = vmatpush3.bf16.msra.mxu1 %v10671_v3  ;;  %v10912_v28 = vld [vmem:[%s10822_s25 + $0x34] sm:$0xf] }
  0x1e   : > { %v268_v59 = vsel %vm10863_vm6, %v263_v49, %v267_v39  ;;  %v291_v60 = vrot.slane %v289_v51, 5  ;;  %v2354_v61 = vrot.slane %v10855_v41, 5  ;;  %v2357_v62 = vrot.slane %v10858_v42, 5  ;;  %9933 = vmatprep.subr.bf16.mxu1 %v10852_v36  ;;  %v10924_v34 = vld [vmem:[%s10822_s25 + $0x38] sm:$0x1] }
  0x1f   : > { %v258_v0 = vsel %vm10863_vm6, %v253_v54, %v257_v25  ;;  %v276_v1 = vor.u32 %v275_v55, %v272_v50  ;;  %v286_v3 = vor.u32 %v285_v57, %v281_v56  ;;  %v8798_v5 = vrot.slane %v2290_v53, 9  ;;  %v2291_v40 = vld [vmem:[%s10822_s25 + $0x30] sm:$0xe]  ;;  %v10935_v46 = vld [vmem:[%s10822_s25 + $0x40] sm:$0xf] }
  0x20   : > { %v10885_v6 = vcombine.low %v258_v0, %v268_v59  ;;  %v2355_v7 = vsel %vm10824_vm4, %v8797_v52, %v2354_v61  ;;  %v2356_v8 = vrot.slane %v2354_v61, 4  ;;  %v2361_v9 = vrot.slane %v10868_v48, 5  ;;  %v10939_v52 = vld [vmem:[%s10822_s25 + $0x44] sm:$0x1]  ;;  %v10948_v61 = vld [vmem:[%s10822_s25 + $0x30] sm:$0xf] }
  0x21   : > { %v277_v10 = vrot.slane %v276_v1, 4  ;;  %v287_v11 = vrot.slane %v286_v3, 4  ;;  %v2364_v12 = vrot.slane %v10873_v58, 5  ;;  %v294_v13 = vshrl.u32 %v10880_v63, 16 }
  0x22   : > { %9731 = vmatprep.mubr.msk.bf16.mxu0 %vm686_vm3, %v10885_v6  ;;  %v2358_v14 = vsel %vm10824_vm4, %v2356_v8, %v2357_v62  ;;  %v2362_v15 = vsel %vm10824_vm4, %v8798_v5, %v2361_v9  ;;  %v2363_v16 = vrot.slane %v2361_v9, 4  ;;  %v297_v17 = vshll.u32 %v10880_v63, 16 }
  0x23   : > { %v282_v19 = vsel %vm10863_vm6, %v277_v10, %v281_v56  ;;  %v292_v20 = vsel %vm10863_vm6, %v287_v11, %v291_v60  ;;  %v8815_v22 = vcombine.low %v2355_v7, %v2358_v14  ;;  %v296_v23 = vrot.slane %v294_v13, 4  ;;  %v2292_v56 = vld [vmem:[%s10822_s25 + $0x3c] sm:$0xe] }
  0x24   : > { %v10906_v24 = vcombine.low %v282_v19, %v292_v20  ;;  %v2365_v25 = vsel %vm10824_vm4, %v2363_v16, %v2364_v12  ;;  %v299_v26 = vrot.slane %v297_v17, 5  ;;  %v303_v27 = vshll.u32 %v10855_v41, 16  ;;  %v10966_v17 = vld [vmem:[%s10822_s25 + $0x3c] sm:$0xf] }
  0x25   : > { %9871 = vmatprep.mubr.msk.bf16.mxu1 %vm686_vm3, %v8815_v22  ;;  %v8816_v30 = vcombine.low %v2362_v15, %v2365_v25  ;;  %v307_v31 = vshrl.u32 %v10855_v41, 16  ;;  %v313_v32 = vshll.u32 %v10858_v42, 16  ;;  %v318_v33 = vshrl.u32 %v10900_v18, 16 }
  0x26   : > { %9732 = vmatmul.mubr.msk.bf16.vlgmr.msra.gmra.mrb[0].mxu0 %vm686_vm3, %v10906_v24  ;;  %v300_v35 = vor.u32 %v299_v26, %v296_v23  ;;  %v305_v37 = vrot.slane %v303_v27, 5  ;;  %v321_v38 = vshll.u32 %v10900_v18, 16  ;;  %v327_v39 = vshll.u32 %v10868_v48, 16 }
  0x27   : > { %9764 = vmatpush3.bf16.msra.mxu0 %v10812_v2  ;;  %9872 = vmatmul.mubr.msk.bf16.gmra.mrb[4].mxu1 %vm686_vm3, %v8816_v30  ;;  %v309_v41 = vrot.slane %v307_v31, 4  ;;  %v315_v42 = vrot.slane %v313_v32, 5  ;;  %v320_v44 = vrot.slane %v318_v33, 4  ;;  %v331_v45 = vshrl.u32 %v10868_v48, 16 }
  0x28   : > { %v301_v47 = vrot.slane %v300_v35, 4  ;;  %v323_v49 = vrot.slane %v321_v38, 5  ;;  %v329_v50 = vrot.slane %v327_v39, 5  ;;  %v337_v51 = vshll.u32 %v10873_v58, 16  ;;  %9797 = vmatprep.subr.bf16.mxu0 %v10917_v29 }
  0x29   : > { %v310_v2 = vor.u32 %v309_v41, %v305_v37  ;;  %v333_v53 = vrot.slane %v331_v45, 4  ;;  %v8799_v54 = vrot.slane %v2291_v40, 9  ;;  %v2368_v55 = vrot.slane %v10912_v28, 5 }
  0x2a   : > { %v306_v48 = vsel %vm10863_vm6, %v301_v47, %v305_v37  ;;  %v324_v57 = vor.u32 %v323_v49, %v320_v44  ;;  %v339_v59 = vrot.slane %v337_v51, 5  ;;  %v2371_v60 = vrot.slane %v10924_v34, 5  ;;  %v2293_v37 = vld [vmem:[%s10822_s25 + $0x48] sm:$0xe]  ;;  %v232_v49 = vld [vmem:[%s10822_s25 + $0x50] sm:$0x1] }
  0x2b   : > { %v311_v58 = vrot.slane %v310_v2, 4  ;;  %v334_v62 = vor.u32 %v333_v53, %v329_v50  ;;  %v2369_v0 = vsel %vm10824_vm4, %v8799_v54, %v2368_v55  ;;  %v2370_v1 = vrot.slane %v2368_v55, 4  ;;  %v10995_v54 = vld [vmem:[%s10822_s25 + $0x58] sm:$0xf] }
  0x2c   : > { %v325_v3 = vrot.slane %v324_v57, 4  ;;  %v8800_v5 = vrot.slane %v2292_v56, 9  ;;  %v2375_v7 = vrot.slane %v10935_v46, 5  ;;  %v2378_v8 = vrot.slane %v10939_v52, 5 }
  0x2d   : > { %v316_v9 = vsel %vm10863_vm6, %v311_v58, %v315_v42  ;;  %v335_v10 = vrot.slane %v334_v62, 4  ;;  %v2372_v11 = vsel %vm10824_vm4, %v2370_v1, %v2371_v60  ;;  %v342_v12 = vshrl.u32 %v10948_v61, 16  ;;  %v10987_v42 = vld [vmem:[%s10822_s25 + $0x4c] sm:$0xf]  ;;  %v233_v1 = vld [vmem:[%s10822_s25 + $0x5c] sm:$0x1] }
  0x2e   : > { %v10959_v13 = vcombine.low %v306_v48, %v316_v9  ;;  %v330_v14 = vsel %vm10863_vm6, %v325_v3, %v329_v50  ;;  %v8817_v15 = vcombine.low %v2369_v0, %v2372_v11  ;;  %v2376_v16 = vsel %vm10824_vm4, %v8800_v5, %v2375_v7  ;;  %v11008_v11 = vld [vmem:[%s10822_s25 + $0x48] sm:$0xf] }
  0x2f   : > { %v340_v19 = vsel %vm10863_vm6, %v335_v10, %v339_v59  ;;  %v2377_v20 = vrot.slane %v2375_v7, 4  ;;  %v344_v22 = vrot.slane %v342_v12, 4  ;;  %v345_v23 = vshll.u32 %v10948_v61, 16  ;;  %v2294_v59 = vld [vmem:[%s10822_s25 + $0x54] sm:$0xe] }
  0x30   : > { %9735 = vmatprep.mubr.msk.bf16.mxu0 %vm686_vm3, %v10959_v13  ;;  %v10973_v25 = vcombine.low %v330_v14, %v340_v19  ;;  %9875 = vmatprep.mubr.msk.bf16.mxu1 %vm686_vm3, %v8817_v15  ;;  %v351_v26 = vshll.u32 %v10912_v28, 16  ;;  %v355_v27 = vshrl.u32 %v10912_v28, 16  ;;  %v361_v30 = vshll.u32 %v10924_v34, 16  ;;  %v11017_v19 = vld [vmem:[%s10822_s25 + $0x54] sm:$0xf] }
  0x31   : > { %v2379_v31 = vsel %vm10824_vm4, %v2377_v20, %v2378_v8  ;;  %v347_v32 = vrot.slane %v345_v23, 5  ;;  %v366_v33 = vshrl.u32 %v10966_v17, 16  ;;  %v369_v35 = vshll.u32 %v10966_v17, 16 }
  0x32   : > { %9736 = vmatmul.mubr.msk.bf16.gmra.mrb[4].mxu0 %vm686_vm3, %v10973_v25  ;;  %v8818_v38 = vcombine.low %v2376_v16, %v2379_v31  ;;  %v353_v39 = vrot.slane %v351_v26, 5  ;;  %v357_v40 = vrot.slane %v355_v27, 4  ;;  %v363_v41 = vrot.slane %v361_v30, 5 }
  0x33   : > { %v348_v34 = vor.u32 %v347_v32, %v344_v22  ;;  %v368_v44 = vrot.slane %v366_v33, 4  ;;  %v371_v45 = vrot.slane %v369_v35, 5  ;;  %v375_v47 = vshll.u32 %v10935_v46, 16 }
  0x34   : > { %9876 = vmatmul.mubr.msk.bf16.gmra.mrb[8].mxu1 %vm686_vm3, %v8818_v38  ;;  %v358_v50 = vor.u32 %v357_v40, %v353_v39  ;;  %v379_v51 = vshrl.u32 %v10935_v46, 16  ;;  %v385_v2 = vshll.u32 %v10939_v52, 16  ;;  %v8801_v53 = vrot.slane %v2293_v37, 9 }
  0x35   : > { %v349_v55 = vrot.slane %v348_v34, 4  ;;  %v372_v56 = vor.u32 %v371_v45, %v368_v44  ;;  %v377_v48 = vrot.slane %v375_v47, 5  ;;  %v2382_v57 = vrot.slane %v10987_v42, 5  ;;  %v11036_v44 = vld [vmem:[%s10822_s25 + $0x64] sm:$0xf] }
  0x36   : > { %v359_v60 = vrot.slane %v358_v50, 4  ;;  %v381_v58 = vrot.slane %v379_v51, 4  ;;  %v387_v62 = vrot.slane %v385_v2, 5  ;;  %v2385_v0 = vrot.slane %v232_v49, 5  ;;  %v2295_v45 = vld [vmem:[%s10822_s25 + $0x60] sm:$0xe] }
  0x37   : > { %v354_v46 = vsel %vm10863_vm6, %v349_v55, %v353_v39  ;;  %v373_v52 = vrot.slane %v372_v56, 4  ;;  %v2383_v3 = vsel %vm10824_vm4, %v8801_v53, %v2382_v57  ;;  %v2384_v5 = vrot.slane %v2382_v57, 4  ;;  %v11040_v53 = vld [vmem:[%s10822_s25 + $0x68] sm:$0x1]  ;;  %v11049_v57 = vld [vmem:[%s10822_s25 + $0x70] sm:$0xf] }
  0x38   : > { %v364_v7 = vsel %vm10863_vm6, %v359_v60, %v363_v41  ;;  %v382_v8 = vor.u32 %v381_v58, %v377_v48  ;;  %v8802_v9 = vrot.slane %v2294_v59, 9  ;;  %v2389_v10 = vrot.slane %v10995_v54, 5 }
  0x39   : > { %v11010_v12 = vcombine.low %v354_v46, %v364_v7  ;;  %v378_v14 = vsel %vm10863_vm6, %v373_v52, %v377_v48  ;;  %v2386_v15 = vsel %vm10824_vm4, %v2384_v5, %v2385_v0  ;;  %v2392_v16 = vrot.slane %v233_v1, 5  ;;  %v11053_v0 = vld [vmem:[%s10822_s25 + $0x74] sm:$0x1]  ;;  %v2296_v7 = vld [vmem:[%s10822_s25 + $0x6c] sm:$0xe] }
  0x3a   : > { %v383_v20 = vrot.slane %v382_v8, 4  ;;  %v8819_v22 = vcombine.low %v2383_v3, %v2386_v15  ;;  %v2390_v23 = vsel %vm10824_vm4, %v8802_v9, %v2389_v10  ;;  %v2391_v26 = vrot.slane %v2389_v10, 4  ;;  %v11059_v15 = vld [vmem:[%s10822_s25 + $0x60] sm:$0xf] }
  0x3b   : > { %9739 = vmatprep.mubr.msk.bf16.mxu0 %vm686_vm3, %v11010_v12  ;;  %v390_v27 = vshrl.u32 %v11008_v11, 16  ;;  %v393_v30 = vshll.u32 %v11008_v11, 16  ;;  %v399_v31 = vshll.u32 %v10987_v42, 16  ;;  %v403_v32 = vshrl.u32 %v10987_v42, 16 }
  0x3c   : > { %v388_v33 = vsel %vm10863_vm6, %v383_v20, %v387_v62  ;;  %9879 = vmatprep.mubr.msk.bf16.mxu1 %vm686_vm3, %v8819_v22  ;;  %v2393_v35 = vsel %vm10824_vm4, %v2391_v26, %v2392_v16  ;;  %v409_v37 = vshll.u32 %v232_v49, 16  ;;  %v414_v38 = vshrl.u32 %v11017_v19, 16 }
  0x3d   : > { %v11033_v39 = vcombine.low %v378_v14, %v388_v33  ;;  %v8820_v40 = vcombine.low %v2390_v23, %v2393_v35  ;;  %v392_v41 = vrot.slane %v390_v27, 4  ;;  %v395_v34 = vrot.slane %v393_v30, 5 }
  0x3e   : > { %v401_v47 = vrot.slane %v399_v31, 5  ;;  %v405_v50 = vrot.slane %v403_v32, 4  ;;  %v411_v51 = vrot.slane %v409_v37, 5  ;;  %v416_v2 = vrot.slane %v414_v38, 4 }
  0x3f   : > { %9740 = vmatmul.mubr.msk.bf16.gmra.mrb[8].mxu0 %vm686_vm3, %v11033_v39  ;;  %9880 = vmatmul.mubr.msk.bf16.gmra.mrb[12].mxu1 %vm686_vm3, %v8820_v40  ;;  %v396_v49 = vor.u32 %v395_v34, %v392_v41  ;;  %v417_v55 = vshll.u32 %v11017_v19, 16  ;;  %v423_v56 = vshll.u32 %v10995_v54, 16  ;;  %v427_v48 = vshrl.u32 %v10995_v54, 16 }
  0x40   : > { %v406_v59 = vor.u32 %v405_v50, %v401_v47  ;;  %v433_v60 = vshll.u32 %v233_v1, 16  ;;  %v8803_v58 = vrot.slane %v2295_v45, 9  ;;  %v2396_v62 = vrot.slane %v11036_v44, 5 }
  0x41   : > { %v397_v46 = vrot.slane %v396_v49, 4  ;;  %v419_v52 = vrot.slane %v417_v55, 5  ;;  %v425_v3 = vrot.slane %v423_v56, 5  ;;  %v429_v5 = vrot.slane %v427_v48, 4 }
  0x42   : > { %v407_v8 = vrot.slane %v406_v59, 4  ;;  %v435_v9 = vrot.slane %v433_v60, 5  ;;  %v2397_v10 = vsel %vm10824_vm4, %v8803_v58, %v2396_v62  ;;  %v2398_v14 = vrot.slane %v2396_v62, 4  ;;  %v11094_v62 = vld [vmem:[%s10822_s25 + $0x7c] sm:$0xf] }
  0x43   : > { %v402_v1 = vsel %vm10863_vm6, %v397_v46, %v401_v47  ;;  %v420_v16 = vor.u32 %v419_v52, %v416_v2  ;;  %v430_v20 = vor.u32 %v429_v5, %v425_v3  ;;  %v2399_v22 = vrot.slane %v11040_v53, 5  ;;  %v11097_v46 = vld [vmem:[%s10822_s25 + $0x80] sm:$0x1]  ;;  %v2297_v52 = vld [vmem:[%s10822_s25 + $0x78] sm:$0xe] }
  0x44   : > { %v412_v23 = vsel %vm10863_vm6, %v407_v8, %v411_v51  ;;  %v8804_v26 = vrot.slane %v2296_v7, 9  ;;  %v2403_v27 = vrot.slane %v11049_v57, 5  ;;  %v2406_v30 = vrot.slane %v11053_v0, 5  ;;  %v11084_v51 = vld [vmem:[%s10822_s25 + $0x6c] sm:$0xf] }
  0x45   : > { %v11068_v31 = vcombine.low %v402_v1, %v412_v23  ;;  %v421_v32 = vrot.slane %v420_v16, 4  ;;  %v431_v33 = vrot.slane %v430_v20, 4  ;;  %v2400_v35 = vsel %vm10824_vm4, %v2398_v14, %v2399_v22  ;;  %v2298_v16 = vld [vmem:[%s10822_s25 + $0x84] sm:$0xe] }
  0x46   : > { %v8821_v37 = vcombine.low %v2397_v10, %v2400_v35  ;;  %v2404_v38 = vsel %vm10824_vm4, %v8804_v26, %v2403_v27  ;;  %v2405_v40 = vrot.slane %v2403_v27, 4  ;;  %v438_v41 = vshrl.u32 %v11059_v15, 16  ;;  %v237_v35 = vld [vmem:[%s10822_s25 + $0x8c] sm:$0x1] }
  0x47   : > { %9743 = vmatprep.mubr.msk.bf16.mxu0 %vm686_vm3, %v11068_v31  ;;  %v426_v34 = vsel %vm10863_vm6, %v421_v32, %v425_v3  ;;  %v436_v45 = vsel %vm10863_vm6, %v431_v33, %v435_v9  ;;  %v441_v47 = vshll.u32 %v11059_v15, 16  ;;  %v447_v50 = vshll.u32 %v11036_v44, 16  ;;  %v11106_v9 = vld [vmem:[%s10822_s25 + $0x88] sm:$0xf] }
  0x48   : > { %v11086_v2 = vcombine.low %v426_v34, %v436_v45  ;;  %9883 = vmatprep.mubr.msk.bf16.mxu1 %vm686_vm3, %v8821_v37  ;;  %v2407_v49 = vsel %vm10824_vm4, %v2405_v40, %v2406_v30  ;;  %v440_v55 = vrot.slane %v438_v41, 4  ;;  %v451_v56 = vshrl.u32 %v11036_v44, 16 }
  0x49   : > { %v8822_v48 = vcombine.low %v2404_v38, %v2407_v49  ;;  %v443_v59 = vrot.slane %v441_v47, 5  ;;  %v449_v60 = vrot.slane %v447_v50, 5  ;;  %v457_v58 = vshll.u32 %v11040_v53, 16  ;;  %v11119_v50 = vld [vmem:[%s10822_s25 + $0x78] sm:$0xf] }
  0x4a   : > { %9744 = vmatmul.mubr.msk.bf16.gmra.mrb[12].mxu0 %vm686_vm3, %v11086_v2  ;;  %v453_v3 = vrot.slane %v451_v56, 4  ;;  %v462_v5 = vshrl.u32 %v11084_v51, 16  ;;  %v465_v7 = vshll.u32 %v11084_v51, 16  ;;  %v471_v8 = vshll.u32 %v11049_v57, 16 }
  0x4b   : > { %9884 = vmatmul.mubr.msk.bf16.gmra.mrb[16].mxu1 %vm686_vm3, %v8822_v48  ;;  %v444_v53 = vor.u32 %v443_v59, %v440_v55  ;;  %v459_v10 = vrot.slane %v457_v58, 5  ;;  %v475_v14 = vshrl.u32 %v11049_v57, 16  ;;  %v481_v1 = vshll.u32 %v11053_v0, 16 }
  0x4c   : > { %v454_v20 = vor.u32 %v453_v3, %v449_v60  ;;  %v464_v22 = vrot.slane %v462_v5, 4  ;;  %v467_v23 = vrot.slane %v465_v7, 5  ;;  %v473_v26 = vrot.slane %v471_v8, 5 }
  0x4d   : > { %v445_v27 = vrot.slane %v444_v53, 4  ;;  %v477_v30 = vrot.slane %v475_v14, 4  ;;  %v483_v32 = vrot.slane %v481_v1, 5  ;;  %v8805_v33 = vrot.slane %v2297_v52, 9  ;;  %v11135_v53 = vld [vmem:[%s10822_s25 + $0x84] sm:$0xf] }
  0x4e   : > { %v455_v37 = vrot.slane %v454_v20, 4  ;;  %v468_v38 = vor.u32 %v467_v23, %v464_v22  ;;  %v2410_v40 = vrot.slane %v11094_v62, 5  ;;  %v2413_v41 = vrot.slane %v11097_v46, 5 }
  0x4f   : > { %v450_v0 = vsel %vm10863_vm6, %v445_v27, %v449_v60  ;;  %v478_v34 = vor.u32 %v477_v30, %v473_v26  ;;  %v8806_v45 = vrot.slane %v2298_v16, 9  ;;  %v2417_v47 = vrot.slane %v11106_v9, 5 }
  0x50   : > { %v460_v49 = vsel %vm10863_vm6, %v455_v37, %v459_v10  ;;  %v469_v55 = vrot.slane %v468_v38, 4  ;;  %v2411_v56 = vsel %vm10824_vm4, %v8805_v33, %v2410_v40  ;;  %v2412_v48 = vrot.slane %v2410_v40, 4  ;;  %v11151_v37 = vld [vmem:[%s10822_s25 + $0x94] sm:$0xf]  ;;  %v11154_v38 = vld [vmem:[%s10822_s25 + $0x98] sm:$0x1] }
  0x51   : > { %v11125_v59 = vcombine.low %v450_v0, %v460_v49  ;;  %v479_v58 = vrot.slane %v478_v34, 4  ;;  %v2418_v60 = vsel %vm10824_vm4, %v8806_v45, %v2417_v47  ;;  %v2419_v52 = vrot.slane %v2417_v47, 4  ;;  %v2299_v45 = vld [vmem:[%s10822_s25 + $0x90] sm:$0xe] }
  0x52   : > { %v474_v3 = vsel %vm10863_vm6, %v469_v55, %v473_v26  ;;  %v2414_v5 = vsel %vm10824_vm4, %v2412_v48, %v2413_v41  ;;  %v2420_v7 = vrot.slane %v237_v35, 5  ;;  %v486_v8 = vshrl.u32 %v11119_v50, 16 }
  0x53   : > { %9747 = vmatprep.mubr.msk.bf16.mxu0 %vm686_vm3, %v11125_v59  ;;  %v484_v10 = vsel %vm10863_vm6, %v479_v58, %v483_v32  ;;  %v8823_v14 = vcombine.low %v2411_v56, %v2414_v5  ;;  %v489_v1 = vshll.u32 %v11119_v50, 16  ;;  %v495_v16 = vshll.u32 %v11094_v62, 16  ;;  %v11165_v56 = vld [vmem:[%s10822_s25 + $0xa0] sm:$0xf] }
  0x54   : > { %v11143_v20 = vcombine.low %v474_v3, %v484_v10  ;;  %v2421_v22 = vsel %vm10824_vm4, %v2419_v52, %v2420_v7  ;;  %v488_v23 = vrot.slane %v486_v8, 4  ;;  %v499_v26 = vshrl.u32 %v11094_v62, 16  ;;  %v2300_v3 = vld [vmem:[%s10822_s25 + $0x9c] sm:$0xe] }
  0x55   : > { %9887 = vmatprep.mubr.msk.bf16.mxu1 %vm686_vm3, %v8823_v14  ;;  %v8824_v27 = vcombine.low %v2418_v60, %v2421_v22  ;;  %v491_v30 = vrot.slane %v489_v1, 5  ;;  %v497_v32 = vrot.slane %v495_v16, 5  ;;  %v505_v33 = vshll.u32 %v11097_v46, 16  ;;  %v239_v14 = vld [vmem:[%s10822_s25 + $0xa4] sm:$0x1] }
  0x56   : > { %9748 = vmatmul.mubr.msk.bf16.gmra.mrb[16].mxu0 %vm686_vm3, %v11143_v20  ;;  %v501_v40 = vrot.slane %v499_v26, 4  ;;  %v510_v41 = vshrl.u32 %v11135_v53, 16  ;;  %v513_v0 = vshll.u32 %v11135_v53, 16  ;;  %v519_v34 = vshll.u32 %v11106_v9, 16  ;;  %v11170_v1 = vld [vmem:[%s10822_s25 + $0x90] sm:$0xf] }
  0x57   : > { %9888 = vmatmul.mubr.msk.bf16.gmra.mrb[20].mxu1 %vm686_vm3, %v8824_v27  ;;  %v492_v46 = vor.u32 %v491_v30, %v488_v23  ;;  %v507_v47 = vrot.slane %v505_v33, 5  ;;  %v523_v49 = vshrl.u32 %v11106_v9, 16  ;;  %v529_v55 = vshll.u32 %v237_v35, 16 }
  0x58   : > { %v502_v48 = vor.u32 %v501_v40, %v497_v32  ;;  %v512_v58 = vrot.slane %v510_v41, 4  ;;  %v515_v60 = vrot.slane %v513_v0, 5  ;;  %v521_v52 = vrot.slane %v519_v34, 5 }
  0x59   : > { %v493_v5 = vrot.slane %v492_v46, 4  ;;  %v525_v7 = vrot.slane %v523_v49, 4  ;;  %v531_v8 = vrot.slane %v529_v55, 5  ;;  %v8807_v10 = vrot.slane %v2299_v45, 9 }
  0x5a   : > { %v503_v16 = vrot.slane %v502_v48, 4  ;;  %v516_v22 = vor.u32 %v515_v60, %v512_v58  ;;  %v2424_v23 = vrot.slane %v11151_v37, 5  ;;  %v2427_v35 = vrot.slane %v11154_v38, 5 }
  0x5b   : > { %v498_v26 = vsel %vm10863_vm6, %v493_v5, %v497_v32  ;;  %v526_v27 = vor.u32 %v525_v7, %v521_v52  ;;  %v8808_v30 = vrot.slane %v2300_v3, 9  ;;  %v2431_v33 = vrot.slane %v11165_v56, 5 }
  0x5c   : > { %v508_v40 = vsel %vm10863_vm6, %v503_v16, %v507_v47  ;;  %v517_v41 = vrot.slane %v516_v22, 4  ;;  %v2425_v0 = vsel %vm10824_vm4, %v8807_v10, %v2424_v23  ;;  %v2426_v34 = vrot.slane %v2424_v23, 4 }
  0x5d   : > { %v11181_v45 = vcombine.low %v498_v26, %v508_v40  ;;  %v527_v46 = vrot.slane %v526_v27, 4  ;;  %v2432_v49 = vsel %vm10824_vm4, %v8808_v30, %v2431_v33  ;;  %v2433_v32 = vrot.slane %v2431_v33, 4  ;;  %v11207_v30 = vld [vmem:[%s10822_s25 + $0xac] sm:$0xf]  ;;  %v11210_v33 = vld [vmem:[%s10822_s25 + $0xb0] sm:$0x1] }
  0x5e   : > { %v522_v55 = vsel %vm10863_vm6, %v517_v41, %v521_v52  ;;  %v2428_v48 = vsel %vm10824_vm4, %v2426_v34, %v2427_v35  ;;  %v2434_v47 = vrot.slane %v239_v14, 5  ;;  %v534_v58 = vshrl.u32 %v11170_v1, 16  ;;  %v11197_v52 = vld [vmem:[%s10822_s25 + $0x9c] sm:$0xf] }
  0x5f   : > { %16912 = vst [vmem:[#allocation3_spill] sm:$0xff] %v11181_v45  ;;  %9751 = vmatprep.mubr.msk.bf16.mxu0 %vm686_vm3, %v11181_v45  ;;  %v532_v60 = vsel %vm10863_vm6, %v527_v46, %v531_v8  ;;  %v8825_v3 = vcombine.low %v2425_v0, %v2428_v48  ;;  %v537_v5 = vshll.u32 %v11170_v1, 16  ;;  %v543_v7 = vshll.u32 %v11151_v37, 16  ;;  %v2301_v46 = vld [vmem:[%s10822_s25 + $0xa8] sm:$0xe] }
  0x60   : > { %v11199_v10 = vcombine.low %v522_v55, %v532_v60  ;;  %v2435_v16 = vsel %vm10824_vm4, %v2433_v32, %v2434_v47  ;;  %v536_v22 = vrot.slane %v534_v58, 4  ;;  %v547_v23 = vshrl.u32 %v11151_v37, 16  ;;  %v11221_v48 = vld [vmem:[%s10822_s25 + $0xb8] sm:$0xf] }
  0x61   : > { %9891 = vmatprep.mubr.msk.bf16.mxu1 %vm686_vm3, %v8825_v3  ;;  %v8826_v35 = vcombine.low %v2432_v49, %v2435_v16  ;;  %v539_v8 = vrot.slane %v537_v5, 5  ;;  %v545_v26 = vrot.slane %v543_v7, 5  ;;  %v553_v27 = vshll.u32 %v11154_v38, 16  ;;  %16914 = vst [vmem:[#allocation5_spill] sm:$0xff] %v11221_v48  ;;  %v2302_v5 = vld [vmem:[%s10822_s25 + $0xb4] sm:$0xe] }
  0x62   : > { %16913 = vst [vmem:[#allocation4_spill] sm:$0xff] %v11199_v10  ;;  %9752 = vmatmul.mubr.msk.bf16.gmra.mrb[20].mxu0 %vm686_vm3, %v11199_v10  ;;  %v549_v40 = vrot.slane %v547_v23, 4  ;;  %v558_v41 = vshrl.u32 %v11197_v52, 16  ;;  %v561_v0 = vshll.u32 %v11197_v52, 16  ;;  %v567_v34 = vshll.u32 %v11165_v56, 16 }
  0x63   : > { %9892 = vmatmul.mubr.msk.bf16.gmra.mrb[24].mxu1 %vm686_vm3, %v8826_v35  ;;  %v540_v49 = vor.u32 %v539_v8, %v536_v22  ;;  %v555_v38 = vrot.slane %v553_v27, 5  ;;  %v571_v32 = vshrl.u32 %v11165_v56, 16  ;;  %v577_v55 = vshll.u32 %v239_v14, 16  ;;  %v241_v27 = vld [vmem:[%s10822_s25 + $0xbc] sm:$0x1] }
  0x64   : > { %v550_v47 = vor.u32 %v549_v40, %v545_v26  ;;  %v560_v58 = vrot.slane %v558_v41, 4  ;;  %v563_v60 = vrot.slane %v561_v0, 5  ;;  %v569_v3 = vrot.slane %v567_v34, 5  ;;  %v11231_v34 = vld [vmem:[%s10822_s25 + $0xa8] sm:$0xf] }
  0x65   : > { %v541_v7 = vrot.slane %v540_v49, 4  ;;  %v573_v16 = vrot.slane %v571_v32, 4  ;;  %v579_v23 = vrot.slane %v577_v55, 5  ;;  %v8809_v10 = vrot.slane %v2301_v46, 9 }
  0x66   : > { %v551_v45 = vrot.slane %v550_v47, 4  ;;  %v564_v35 = vor.u32 %v563_v60, %v560_v58  ;;  %v2438_v22 = vrot.slane %v11207_v30, 5  ;;  %v2441_v8 = vrot.slane %v11210_v33, 5 }
  0x67   : > { %v546_v14 = vsel %vm10863_vm6, %v541_v7, %v545_v26  ;;  %v574_v40 = vor.u32 %v573_v16, %v569_v3  ;;  %v8810_v41 = vrot.slane %v2302_v5, 9  ;;  %v2445_v0 = vrot.slane %v11221_v48, 5 }
  0x68   : > { %v556_v49 = vsel %vm10863_vm6, %v551_v45, %v555_v38  ;;  %v565_v46 = vrot.slane %v564_v35, 4  ;;  %v2439_v32 = vsel %vm10824_vm4, %v8809_v10, %v2438_v22  ;;  %v2440_v55 = vrot.slane %v2438_v22, 4 }
  0x69   : > { %v11237_v47 = vcombine.low %v546_v14, %v556_v49  ;;  %v575_v58 = vrot.slane %v574_v40, 4  ;;  %v2446_v26 = vsel %vm10824_vm4, %v8810_v41, %v2445_v0  ;;  %v2447_v60 = vrot.slane %v2445_v0, 4  ;;  %v11253_v14 = vld [vmem:[%s10822_s25 + $0xb4] sm:$0xf] }
  0x6a   : > { %v570_v5 = vsel %vm10863_vm6, %v565_v46, %v569_v3  ;;  %v2442_v7 = vsel %vm10824_vm4, %v2440_v55, %v2441_v8  ;;  %v2448_v45 = vrot.slane %v241_v27, 5  ;;  %v582_v38 = vshrl.u32 %v11231_v34, 16  ;;  %16915 = vst [vmem:[#allocation6_spill] sm:$0xff] %v11253_v14 }
  0x6b   : > { %9755 = vmatprep.mubr.msk.bf16.mxu0 %vm686_vm3, %v11237_v47  ;;  %v580_v10 = vsel %vm10863_vm6, %v575_v58, %v579_v23  ;;  %v8827_v16 = vcombine.low %v2439_v32, %v2442_v7  ;;  %v585_v35 = vshll.u32 %v11231_v34, 16  ;;  %v591_v22 = vshll.u32 %v11207_v30, 16 }
  0x6c   : > { %v11255_v3 = vcombine.low %v570_v5, %v580_v10  ;;  %v2449_v8 = vsel %vm10824_vm4, %v2447_v60, %v2448_v45  ;;  %v584_v40 = vrot.slane %v582_v38, 4  ;;  %v595_v41 = vshrl.u32 %v11207_v30, 16 }
  0x6d   : > { %9895 = vmatprep.mubr.msk.bf16.mxu1 %vm686_vm3, %v8827_v16  ;;  %v8828_v0 = vcombine.low %v2446_v26, %v2449_v8  ;;  %v587_v49 = vrot.slane %v585_v35, 5  ;;  %v593_v23 = vrot.slane %v591_v22, 5  ;;  %v601_v46 = vshll.u32 %v11210_v33, 16 }
  0x6e   : > { %9756 = vmatmul.mubr.msk.bf16.gmra.mrb[24].mxu0 %vm686_vm3, %v11255_v3  ;;  %v597_v32 = vrot.slane %v595_v41, 4  ;;  %v606_v55 = vshrl.u32 %v11253_v14, 16  ;;  %v609_v58 = vshll.u32 %v11253_v14, 16  ;;  %v615_v60 = vshll.u32 %v11221_v48, 16 }
  0x6f   : > { %9896 = vmatmul.mubr.msk.bf16.gmra.mrb[28].mxu1 %vm686_vm3, %v8828_v0  ;;  %v588_v5 = vor.u32 %v587_v49, %v584_v40  ;;  %v603_v7 = vrot.slane %v601_v46, 5  ;;  %v619_v26 = vshrl.u32 %v11221_v48, 16  ;;  %v625_v45 = vshll.u32 %v241_v27, 16  ;;  %v11413_v48 = vld [vmem:[%s10822_s25 + $0x58] sm:$0xf] }
  0x70   : > { %v598_v38 = vor.u32 %v597_v32, %v593_v23  ;;  %v608_v33 = vrot.slane %v606_v55, 4  ;;  %v611_v10 = vrot.slane %v609_v58, 5  ;;  %v617_v16 = vrot.slane %v615_v60, 5  ;;  %9901 = vmatprep.mubr.msk.bf16.mxu1 %vm686_vm3, %v10885_v6  ;;  %v10734_v32 = vld [vmem:[%s10822_s25 + $0x4] sm:$0xf]  ;;  %16923 = vst [vmem:[#allocation14_spill] sm:$0xff] %v11413_v48 }
  0x71   : > { %v589_v35 = vrot.slane %v588_v5, 4  ;;  %v621_v22 = vrot.slane %v619_v26, 4  ;;  %v627_v49 = vrot.slane %v625_v45, 5  ;;  %v8610_v55 = vcombine.low %v10837_v21, %v10734_v32 }
  0x72   : > { %v599_v8 = vrot.slane %v598_v38, 4  ;;  %v612_v41 = vor.u32 %v611_v10, %v608_v33  ;;  %v8716_v10 = vld [vmem:[%s10822_s25 + $0x24] sm:$0xf] }
  0x73   : > { %v594_v0 = vsel %vm10863_vm6, %v589_v35, %v593_v23  ;;  %v622_v40 = vor.u32 %v621_v22, %v617_v16 }
  0x74   : > { %v604_v46 = vsel %vm10863_vm6, %v599_v8, %v603_v7  ;;  %v613_v27 = vrot.slane %v612_v41, 4  ;;  %v11288_v7 = vld [vmem:[%s16605_s1 + $0x38] sm:$0xff]   ;;  %v8710_v8 = vld [vmem:[%s10822_s25 + $0xc] sm:$0xf] }
  0x75   : > { %v11279_v6 = vcombine.low %v594_v0, %v604_v46  ;;  %v623_v60 = vrot.slane %v622_v40, 4  ;;  %16916 = vst [vmem:[#allocation7_spill] sm:$0xff] %v11288_v7  ;;  %v1603_v41 = vshrl.u32 %v8710_v8, 16  ;;  %v8713_v0 = vld [vmem:[%s10822_s25 + $0x18] sm:$0xf]  ;;  %v1606_v46 = vshll.u32 %v8710_v8, 16 }
  0x76   : > { %v618_v21 = vsel %vm10863_vm6, %v613_v27, %v617_v16  ;;  %v10736_v40 = vld [vmem:[%s10822_s25 + $0xc] sm:$0xf]  ;;  %v10737_v27 = vld [vmem:[%s10822_s25 + $0x1c] sm:$0xf]  ;;  %v8712_v8 = vld [vmem:[%s10822_s25 + $0x14] sm:$0x1] }
  0x77   : > { %9759 = vmatprep.mubr.msk.bf16.mxu0 %vm686_vm3, %v11279_v6  ;;  %v628_v33 = vsel %vm10863_vm6, %v623_v60, %v627_v49  ;;  %9902 = vmatmul.mubr.msk.bf16.vlgmr.msra.gmra.mrb[0].mxu1 %vm686_vm3, %v10906_v24  ;;  %v8612_v32 = vcombine.low %v10880_v63, %v10737_v27  ;;  %v1630_v24 = vshll.u32 %v8713_v0, 16  ;;  %v1608_v63 = vrot.slane %v1606_v46, 5  ;;  %v8717_v46 = vld [vmem:[%s10822_s25 + $0x28] sm:$0xf] }
  0x78   : > { %v11308_v35 = vcombine.low %v618_v21, %v628_v33  ;;  %9934 = vmatpush3.bf16.msra.mxu1 %v10852_v36  ;;  %9905 = vmatprep.mubr.msk.bf16.mxu1 %vm686_vm3, %v10959_v13  ;;  %v8711_v36 = vld [vmem:[%s10822_s25 + $0x10] sm:$0xf]  ;;  %v8714_v33 = vld [vmem:[%s10822_s25 + $0x1c] sm:$0xf] }
  0x79   : > { %9967 = vmatprep.subr.bf16.mxu1 %v11288_v7  ;;  %v10735_v13 = vld [vmem:[%s10822_s25 + $0x10] sm:$0xf]  ;;  %v1612_v60 = vshll.u32 %v8711_v36, 16  ;;  %v1616_v21 = vshrl.u32 %v8711_v36, 16  ;;  %v8715_v36 = vld [vmem:[%s10822_s25 + $0x20] sm:$0x1] }
  0x7a   : > { %9760 = vmatmul.mubr.msk.bf16.gmra.mrb[28].mxu0 %vm686_vm3, %v11308_v35  ;;  %v8611_v49 = vcombine.low %v10736_v40, %v10735_v13  ;;  %v11336_v13 = vld [vmem:[%s16605_s1 + $0x18] sm:$0xff]   ;;  %v1636_v40 = vshll.u32 %v8714_v33, 16  ;;  %v1640_v27 = vshrl.u32 %v8714_v33, 16  ;;  %v1632_v16 = vrot.slane %v1630_v24, 5  ;;  %v11452_v7 = vld [vmem:[%s10822_s25 + $0x64] sm:$0xf] }
  0x7b   : > { %9765 = vmatprep.mubr.msk.bf16.mxu0 %vm686_vm3, %v8610_v55  ;;  %v1627_v55 = vshrl.u32 %v8713_v0, 16  ;;  %16917 = vst [vmem:[#allocation8_spill] sm:$0xff] %v11336_v13  ;;  %v1618_v0 = vrot.slane %v1616_v21, 4  ;;  %v1646_v33 = vshll.u32 %v8715_v36, 16  ;;  %v11370_v36 = vld [vmem:[%s10822_s25 + $0x40] sm:$0xf] }
  0x7c   : > { %v11352_v38 = vrot.slane %v1636_v40, 5  ;;  %v1642_v21 = vrot.slane %v1640_v27, 4  ;;  %16919 = vst [vmem:[#allocation10_spill] sm:$0xff] %v11370_v36  ;;  %v8725_v27 = vld [vmem:[%s10822_s25 + $0x48] sm:$0xf] }
  0x7d   : > { %v1629_v22 = vrot.slane %v1627_v55, 4 }
  0x7f   : > { %9906 = vmatmul.mubr.msk.bf16.gmra.mrb[4].mxu1 %vm686_vm3, %v10973_v25  ;;  %v1605_v25 = vrot.slane %v1603_v41, 4  ;;  %v10738_v41 = vld [vmem:[%s10822_s25 + $0x28] sm:$0xf]  ;;  %v1633_v55 = vor.u32 %v1632_v16, %v1629_v22  ;;  %v11377_v16 = vrot.slane %v1646_v33, 5  ;;  %v11380_v22 = vld [vmem:[%s10822_s25 + $0x2c] sm:$0x1] }
  0x80   : > { %9909 = vmatprep.mubr.msk.bf16.mxu1 %vm686_vm3, %v11010_v12  ;;  %v11343_v12 = vrot.slane %v1612_v60, 5  ;;  %v1622_v60 = vshll.u32 %v8712_v8, 16  ;;  %v8719_v8 = vld [vmem:[%s10822_s25 + $0x30] sm:$0xf]  ;;  %16920 = vst [vmem:[#allocation11_spill] sm:$0xff] %v11380_v22 }
  0x81   : > { %v1675_v45 = vshrl.u32 %v8719_v8, 16  ;;  %v1678_v23 = vshll.u32 %v8719_v8, 16  ;;  %v1726_v8 = vshll.u32 %v8725_v27, 16 }
  0x82   : > { %9766 = vmatmul.mubr.msk.bf16.vlgmr.msra.gmra.mrb[0].mxu0 %vm686_vm3, %v8611_v49  ;;  %v8613_v49 = vcombine.low %v10900_v18, %v10738_v41  ;;  %v1619_v24 = vor.u32 %v1618_v0, %v11343_v12  ;;  %v1651_v18 = vshrl.u32 %v8716_v10, 16  ;;  %v11367_v0 = vrot.slane %v1622_v60, 5 }
  0x83   : > { %9798 = vmatpush3.bf16.msra.mxu0 %v10917_v29  ;;  %9769 = vmatprep.mubr.msk.bf16.mxu0 %vm686_vm3, %v8612_v32  ;;  %v8614_v29 = vcombine.low %v10948_v61, %v10912_v28  ;;  %v1609_v32 = vor.u32 %v1608_v63, %v1605_v25  ;;  %v1654_v28 = vshll.u32 %v8716_v10, 16  ;;  %v1660_v61 = vshll.u32 %v8717_v46, 16  ;;  %v11361_v25 = vld [vmem:[%s10822_s25 + $0x34] sm:$0xf] }
  0x84   : > { %9831 = vmatprep.subr.bf16.mxu0 %v11336_v13  ;;  %16918 = vst [vmem:[#allocation9_spill] sm:$0xff] %v11361_v25  ;;  %v1664_v63 = vshrl.u32 %v8717_v46, 16  ;;  %v1643_v10 = vor.u32 %v1642_v21, %v11352_v38  ;;  %v1653_v41 = vrot.slane %v1651_v18, 4  ;;  %v11385_v46 = vrot.slane %v1633_v55, 4  ;;  %v10739_v21 = vld [vmem:[%s10822_s25 + $0x40] sm:$0xf] }
  0x85   : > { %v11365_v40 = vrot.slane %v1609_v32, 4  ;;  %v1656_v32 = vrot.slane %v1654_v28, 5  ;;  %v11387_v60 = vrot.slane %v1660_v61, 5  ;;  %v8615_v33 = vcombine.low %v10966_v17, %v10739_v21 }
  0x86   : > { %v1666_v26 = vrot.slane %v1664_v63, 4  ;;  %v1708_v55 = vshll.u32 %v11370_v36, 16  ;;  %v1712_v28 = vshrl.u32 %v11370_v36, 16  ;;  %v1723_v61 = vshrl.u32 %v8725_v27, 16  ;;  %v11407_v36 = vld [vmem:[%s10822_s25 + $0x38] sm:$0x1] }
  0x87   : > { %9910 = vmatmul.mubr.msk.bf16.gmra.mrb[8].mxu1 %vm686_vm3, %v11033_v39  ;;  %v8722_v39 = vld [vmem:[%s10822_s25 + $0x3c] sm:$0xf]  ;;  %v11399_v63 = vrot.slane %v1643_v10, 4  ;;  %v1670_v17 = vshll.u32 %v11380_v22, 16  ;;  %v1657_v58 = vor.u32 %v1656_v32, %v1653_v41  ;;  %16922 = vst [vmem:[#allocation13_spill] sm:$0xff] %v11407_v36  ;;  %v1677_v27 = vrot.slane %v1675_v45, 4 }
  0x88   : > { %9913 = vmatprep.mubr.msk.bf16.mxu1 %vm686_vm3, %v11068_v31  ;;  %v11374_v31 = vrot.slane %v1619_v24, 4  ;;  %v1688_v24 = vshrl.u32 %v11361_v25, 16  ;;  %v1699_v18 = vshrl.u32 %v8722_v39, 16  ;;  %v1702_v5 = vshll.u32 %v8722_v39, 16  ;;  %v11420_v41 = vld [vmem:[%s10822_s25 + $0x44] sm:$0x1] }
  0x89   : > { %v1667_v13 = vor.u32 %v1666_v26, %v11387_v60  ;;  %v1680_v4 = vrot.slane %v1678_v23, 5  ;;  %16925 = vst [vmem:[#allocation15_spill] sm:$0xff] %v11420_v41  ;;  %v11422_v26 = vrot.slane %v1708_v55, 5  ;;  %v1714_v45 = vrot.slane %v1712_v28, 4  ;;  %v11425_v23 = vld [vmem:[%s10822_s25 + $0x50] sm:$0x1] }
  0x8a   : > { %9770 = vmatmul.mubr.msk.bf16.gmra.mrb[4].mxu0 %vm686_vm3, %v8613_v49  ;;  %v11383_v49 = vld [vmem:[%s10822_s25 + $0x4c] sm:$0xf]  ;;  %v1690_v10 = vrot.slane %v1688_v24, 4  ;;  %v1701_v22 = vrot.slane %v1699_v18, 4  ;;  %16926 = vst [vmem:[#allocation16_spill] sm:$0xff] %v11425_v23  ;;  %v1725_v32 = vrot.slane %v1723_v61, 4 }
  0x8b   : > { %9773 = vmatprep.mubr.msk.bf16.mxu0 %vm686_vm3, %v8614_v29  ;;  %16921 = vst [vmem:[#allocation12_spill] sm:$0xff] %v11383_v49  ;;  %v1684_v29 = vshll.u32 %v11361_v25, 16  ;;  %v1732_v39 = vshll.u32 %v11383_v49, 16  ;;  %v1736_v21 = vshrl.u32 %v11383_v49, 16  ;;  %v1704_v25 = vrot.slane %v1702_v5, 5 }
  0x8c   : > { %v16924_v49 = vcombine.low %v11008_v11, %v10987_v42  ;;  %v11429_v14 = vrot.slane %v1657_v58, 4  ;;  %v11431_v42 = vrot.slane %v1667_v13, 4  ;;  %v11433_v11 = vrot.slane %v1670_v17, 5  ;;  %v16927_v58 = vld [vmem:[#allocation3_spill] sm:$0xff] }
  0x8d   : > { %v11427_v24 = vrot.slane %v1732_v39, 5  ;;  %v1738_v5 = vrot.slane %v1736_v21, 4  ;;  %v1681_v55 = vor.u32 %v1680_v4, %v1677_v27  ;;  %v1756_v61 = vshll.u32 %v11413_v48, 16  ;;  %v8731_v39 = vld [vmem:[%s10822_s25 + $0x60] sm:$0xf] }
  0x8e   : > { %v1705_v13 = vor.u32 %v1704_v25, %v1701_v22  ;;  %v1715_v17 = vor.u32 %v1714_v45, %v11422_v26  ;;  %v1718_v21 = vshll.u32 %v11420_v41, 16  ;;  %v1615_v25 = vsel %vm10863_vm6, %v11365_v40, %v11343_v12 }
  0x8f   : > { %9914 = vmatmul.mubr.msk.bf16.gmra.mrb[12].mxu1 %vm686_vm3, %v11086_v2  ;;  %v8728_v2 = vld [vmem:[%s10822_s25 + $0x54] sm:$0xf]  ;;  %v1739_v27 = vor.u32 %v1738_v5, %v11427_v24  ;;  %v1625_v22 = vsel %vm10863_vm6, %v11374_v31, %v11367_v0  ;;  %v1771_v45 = vshrl.u32 %v8731_v39, 16 }
  0x90   : > { %9917 = vmatprep.mubr.msk.bf16.mxu1 %vm686_vm3, %v11125_v59  ;;  %v11410_v59 = vrot.slane %v1684_v29, 5  ;;  %v1728_v29 = vrot.slane %v1726_v8, 5  ;;  %v1750_v18 = vshll.u32 %v8728_v2, 16  ;;  %v1760_v8 = vshrl.u32 %v11413_v48, 16 }
  0x91   : > { %v16928_v48 = vcombine.low %v11017_v19, %v10995_v54  ;;  %v1682_v54 = vrot.slane %v1681_v55, 4  ;;  %v1716_v12 = vrot.slane %v1715_v17, 4  ;;  %v1720_v40 = vrot.slane %v1718_v21, 5  ;;  %v16930_v55 = vld [vmem:[#allocation4_spill] sm:$0xff]  ;;  %v11517_v17 = vld [vmem:[%s10822_s25 + $0x68] sm:$0x1] }
  0x92   : > { %9774 = vmatmul.mubr.msk.bf16.gmra.mrb[8].mxu0 %vm686_vm3, %v8615_v33  ;;  %v1747_v33 = vshrl.u32 %v8728_v2, 16  ;;  %v1691_v28 = vor.u32 %v1690_v10, %v11410_v59  ;;  %v1742_v2 = vshll.u32 %v11425_v23, 16  ;;  %v1729_v4 = vor.u32 %v1728_v29, %v1725_v32 }
  0x93   : > { %9777 = vmatprep.mubr.msk.bf16.mxu0 %vm686_vm3, %v16924_v49  ;;  %v1694_v49 = vshll.u32 %v11407_v36, 16  ;;  %v1752_v36 = vrot.slane %v1750_v18, 5  ;;  %v1774_v32 = vshll.u32 %v8731_v39, 16  ;;  %v16929_v29 = vcombine.low %v11059_v15, %v11036_v44 }
  0x94   : > { %v1749_v10 = vrot.slane %v1747_v33, 4  ;;  %v1762_v5 = vrot.slane %v1760_v8, 4  ;;  %v1692_v33 = vrot.slane %v1691_v28, 4  ;;  %v1706_v18 = vrot.slane %v1705_v13, 4 }
  0x95   : > { %v1696_v19 = vrot.slane %v1694_v49, 5  ;;  %v1740_v23 = vrot.slane %v1739_v27, 4  ;;  %v1744_v41 = vrot.slane %v1742_v2, 5  ;;  %v1773_v39 = vrot.slane %v1771_v45, 4  ;;  %v11526_v2 = vld [vmem:[%s10822_s25 + $0x70] sm:$0xf] }
  0x96   : > { %v1753_v31 = vor.u32 %v1752_v36, %v1749_v10  ;;  %v1776_v44 = vrot.slane %v1774_v32, 5  ;;  %v1780_v15 = vshll.u32 %v11452_v7, 16  ;;  %v1639_v49 = vsel %vm10863_vm6, %v11385_v46, %v11352_v38 }
  0x97   : > { %9918 = vmatmul.mubr.msk.bf16.gmra.mrb[16].mxu1 %vm686_vm3, %v11143_v20  ;;  %v11448_v20 = vld [vmem:[%s10822_s25 + $0x5c] sm:$0x1]  ;;  %v1649_v28 = vsel %vm10863_vm6, %v11399_v63, %v11377_v16  ;;  %v1663_v8 = vsel %vm10863_vm6, %v11429_v14, %v11387_v60  ;;  %v1673_v38 = vsel %vm10863_vm6, %v11431_v42, %v11433_v11  ;;  %v1687_v16 = vsel %vm10863_vm6, %v1682_v54, %v11410_v59  ;;  %v8734_v63 = vld [vmem:[%s10822_s25 + $0x6c] sm:$0xf] }
  0x98   : > { %9921 = vmatprep.mubr.msk.bf16.mxu1 %vm686_vm3, %v16927_v58  ;;  %v1730_v58 = vrot.slane %v1729_v4, 4  ;;  %v1766_v0 = vshll.u32 %v11448_v20, 16  ;;  %v1697_v46 = vsel %vm10863_vm6, %v1692_v33, %v1696_v19  ;;  %v1721_v14 = vsel %vm10863_vm6, %v1716_v12, %v1720_v40  ;;  %v11545_v54 = vld [vmem:[%s10822_s25 + $0x7c] sm:$0xf]  ;;  %v8740_v33 = vld [vmem:[%s10822_s25 + $0x84] sm:$0xf] }
  0x99   : > { %v16931_v59 = vcombine.low %v11084_v51, %v11049_v57  ;;  %v1745_v11 = vsel %vm10863_vm6, %v1740_v23, %v1744_v41  ;;  %v1754_v13 = vrot.slane %v1753_v31, 4  ;;  %v11519_v21 = vrot.slane %v1780_v15, 5 }
  0x9a   : > { %9778 = vmatmul.mubr.msk.bf16.gmra.mrb[12].mxu0 %vm686_vm3, %v16928_v48  ;;  %v11470_v48 = vrot.slane %v1756_v61, 5  ;;  %v1784_v61 = vshrl.u32 %v11452_v7, 16  ;;  %v1735_v60 = vsel %vm10863_vm6, %v1730_v58, %v11427_v24  ;;  %v1768_v42 = vrot.slane %v1766_v0, 5 }
  0x9b   : > { %9781 = vmatprep.mubr.msk.bf16.mxu0 %vm686_vm3, %v16929_v29  ;;  %v16932_v24 = vcombine.low %v11119_v50, %v11094_v62  ;;  %v1795_v41 = vshrl.u32 %v8734_v63, 16  ;;  %v1798_v23 = vshll.u32 %v8734_v63, 16  ;;  %v11528_v4 = vcombine.low %v1615_v25, %v1625_v22  ;;  %v11541_v50 = vld [vmem:[%s10822_s25 + $0x74] sm:$0x1]  ;;  %v8737_v29 = vld [vmem:[%s10822_s25 + $0x78] sm:$0xf] }
  0x9c   : > { %v1763_v36 = vor.u32 %v1762_v5, %v11470_v48  ;;  %v1786_v51 = vrot.slane %v1784_v61, 4  ;;  %v11530_v27 = vcombine.low %v1639_v49, %v1649_v28  ;;  %v11532_v10 = vcombine.low %v1663_v8, %v1673_v38  ;;  %v8743_v38 = vld [vmem:[%s10822_s25 + $0x90] sm:$0xf] }
  0x9d   : > { %v11534_v45 = vcombine.low %v1687_v16, %v1697_v46  ;;  %v11538_v62 = vcombine.low %v1735_v60, %v1745_v11  ;;  %v1759_v25 = vsel %vm10863_vm6, %v1754_v13, %v11470_v48  ;;  %v1790_v19 = vshll.u32 %v11517_v17, 16  ;;  %v11597_v46 = vld [vmem:[%s10822_s25 + $0x80] sm:$0x1] }
  0x9e   : > { %v1764_v57 = vrot.slane %v1763_v36, 4  ;;  %16933 = vst [vmem:[#allocation3_spill] sm:$0xff] %v11532_v10  ;;  %v1804_v5 = vshll.u32 %v11526_v2, 16  ;;  %v1787_v12 = vor.u32 %v1786_v51, %v11519_v21  ;;  %v11560_v40 = vrot.slane %v1795_v41, 4  ;;  %v11613_v51 = vld [vmem:[%s10822_s25 + $0x8c] sm:$0x1] }
  0x9f   : > { %9922 = vmatmul.mubr.msk.bf16.gmra.mrb[20].mxu1 %vm686_vm3, %v16930_v55  ;;  %16934 = vst [vmem:[#allocation4_spill] sm:$0xff] %v11534_v45  ;;  %v11562_v58 = vrot.slane %v1798_v23, 5  ;;  %v1808_v48 = vshrl.u32 %v11526_v2, 16  ;;  %v1814_v0 = vshll.u32 %v11541_v50, 16  ;;  %v1819_v31 = vshrl.u32 %v8737_v29, 16 }
  0xa0   : > { %9925 = vmatprep.mubr.msk.bf16.mxu1 %vm686_vm3, %v11237_v47  ;;  %v1711_v47 = vsel %vm10863_vm6, %v1706_v18, %v11422_v26  ;;  %v1777_v26 = vor.u32 %v1776_v44, %v1773_v39  ;;  %v1769_v18 = vsel %vm10863_vm6, %v1764_v57, %v1768_v42  ;;  %v11569_v39 = vld [vmem:[%s10822_s25 + $0x88] sm:$0xf]  ;;  %v1828_v44 = vshll.u32 %v11545_v54, 16  ;;  %v11610_v57 = vld [vmem:[%s10822_s25 + $0xa0] sm:$0xf] }
  0xa1   : > { %v11536_v32 = vcombine.low %v1711_v47, %v1721_v14  ;;  %v1832_v15 = vshrl.u32 %v11545_v54, 16  ;;  %v1843_v55 = vshrl.u32 %v8740_v33, 16  ;;  %v1846_v49 = vshll.u32 %v8740_v33, 16  ;;  %v11602_v14 = vld [vmem:[%s10822_s25 + $0x94] sm:$0xf] }
  0xa2   : > { %9782 = vmatmul.mubr.msk.bf16.gmra.mrb[16].mxu0 %vm686_vm3, %v16931_v59  ;;  %v11550_v22 = vrot.slane %v1777_v26, 4  ;;  %v16936_v28 = vcombine.low %v11135_v53, %v11106_v9  ;;  %v11583_v61 = vrot.slane %v1790_v19, 5  ;;  %v11585_v8 = vrot.slane %v1804_v5, 5  ;;  %v8746_v59 = vld [vmem:[%s10822_s25 + $0x9c] sm:$0xf] }
  0xa3   : > { %9785 = vmatprep.mubr.msk.bf16.mxu0 %vm686_vm3, %v16932_v24  ;;  %16935 = vst [vmem:[#allocation17_spill] sm:$0xff] %v11536_v32  ;;  %v16937_v16 = vcombine.low %v11170_v1, %v11151_v37  ;;  %v11592_v9 = vrot.slane %v1787_v12, 4  ;;  %v1801_v53 = vor.u32 %v11562_v58, %v11560_v40  ;;  %v1852_v63 = vshll.u32 %v11569_v39, 16 }
  0xa4   : > { %v1783_v36 = vsel %vm10863_vm6, %v11550_v22, %v11519_v21  ;;  %v1856_v47 = vshrl.u32 %v11569_v39, 16  ;;  %v1810_v60 = vrot.slane %v1808_v48, 4  ;;  %v11604_v42 = vrot.slane %v1814_v0, 5  ;;  %v8885_v22 = vld [vmem:[%s10822_s25 + $0x30] sm:$0xe] }
  0xa5   : > { %v1821_v37 = vrot.slane %v1819_v31, 4  ;;  %v11607_v11 = vrot.slane %v1828_v44, 5  ;;  %v1834_v13 = vrot.slane %v1832_v15, 4  ;;  %v1845_v26 = vrot.slane %v1843_v55, 4 }
  0xa6   : > { %v1848_v24 = vrot.slane %v1846_v49, 5  ;;  %v1867_v41 = vshrl.u32 %v8743_v38, 16  ;;  %v1870_v23 = vshll.u32 %v8743_v38, 16  ;;  %v11619_v19 = vrot.slane %v1852_v63, 5  ;;  %v11648_v63 = vld [vmem:[%s10822_s25 + $0xa4] sm:$0x1] }
  0xa7   : > { %9926 = vmatmul.mubr.msk.bf16.gmra.mrb[24].mxu1 %vm686_vm3, %v11255_v3  ;;  %v1822_v3 = vshll.u32 %v8737_v29, 16  ;;  %v1876_v29 = vshll.u32 %v11602_v14, 16  ;;  %v1858_v5 = vrot.slane %v1856_v47, 4  ;;  %v1891_v33 = vshrl.u32 %v8746_v59, 16 }
  0xa8   : > { %9929 = vmatprep.mubr.msk.bf16.mxu1 %vm686_vm3, %v11279_v6  ;;  %v11577_v6 = vcombine.low %v1759_v25, %v1769_v18  ;;  %v1880_v25 = vshrl.u32 %v11602_v14, 16  ;;  %v1894_v18 = vshll.u32 %v8746_v59, 16  ;;  %v1811_v12 = vor.u32 %v1810_v60, %v11585_v8  ;;  %v8749_v59 = vld [vmem:[%s10822_s25 + $0xa8] sm:$0xf] }
  0xa9   : > { %v1824_v1 = vrot.slane %v1822_v3, 5  ;;  %v1838_v40 = vshll.u32 %v11597_v46, 16  ;;  %v1900_v58 = vshll.u32 %v11610_v57, 16  ;;  %v1904_v48 = vshrl.u32 %v11610_v57, 16 }
  0xaa   : > { %9786 = vmatmul.mubr.msk.bf16.gmra.mrb[20].mxu0 %vm686_vm3, %v16936_v28  ;;  %v1849_v31 = vor.u32 %v1848_v24, %v1845_v26  ;;  %v1862_v3 = vshll.u32 %v11613_v51, 16  ;;  %v16938_v44 = vcombine.low %v11197_v52, %v11165_v56  ;;  %v1869_v15 = vrot.slane %v1867_v41, 4  ;;  %v11645_v52 = vld [vmem:[%s10822_s25 + $0x98] sm:$0x1] }
  0xab   : > { %9789 = vmatprep.mubr.msk.bf16.mxu0 %vm686_vm3, %v16937_v16  ;;  %v1825_v0 = vor.u32 %v1824_v1, %v1821_v37  ;;  %v1872_v55 = vrot.slane %v1870_v23, 5  ;;  %v11633_v49 = vrot.slane %v1876_v29, 5  ;;  %v1882_v28 = vrot.slane %v1880_v25, 4  ;;  %v11661_v25 = vld [vmem:[%s10822_s25 + $0xac] sm:$0xf] }
  0xac   : > { %v16939_v38 = vcombine.low %v11231_v34, %v11207_v30  ;;  %v1793_v16 = vsel %vm10863_vm6, %v11592_v9, %v11583_v61  ;;  %v1859_v56 = vor.u32 %v1858_v5, %v11619_v19  ;;  %v1893_v47 = vrot.slane %v1891_v33, 4  ;;  %v11656_v9 = vld [vmem:[%s16605_s1 + $0x68] sm:$0xff]  }
  0xad   : > { %v1896_v60 = vrot.slane %v1894_v18, 5  ;;  %v1802_v37 = vrot.slane %v1801_v53, 4  ;;  %v1812_v1 = vrot.slane %v1811_v12, 4  ;;  %v11650_v30 = vrot.slane %v1900_v58, 5  ;;  %v11666_v5 = vld [vmem:[%s10822_s25 + $0xc] sm:$0xff]  }
  0xae   : > { %v1906_v34 = vrot.slane %v1904_v48, 4  ;;  %v1840_v24 = vrot.slane %v1838_v40, 5  ;;  %v1864_v61 = vrot.slane %v1862_v3, 5  ;;  %v1850_v41 = vrot.slane %v1849_v31, 4  ;;  %16940 = vst [vmem:[#allocation18_spill] sm:$0xff] %v11666_v5  ;;  %v16941_v58 = vld [vmem:[#allocation7_spill] sm:$0xff] }
  0xaf   : > { %9930 = vmatmul.mubr.msk.bf16.gmra.mrb[28].mxu1 %vm686_vm3, %v11308_v35  ;;  %v1835_v35 = vor.u32 %v1834_v13, %v11607_v11  ;;  %v1826_v13 = vrot.slane %v1825_v0, 4  ;;  %v1873_v23 = vor.u32 %v1872_v55, %v1869_v15  ;;  %v1883_v29 = vor.u32 %v1882_v28, %v11633_v49  ;;  %v16943_v28 = vld [vmem:[#allocation5_spill] sm:$0xff] }
  0xb0   : > { %9935 = vmatprep.mubr.msk.bf16.mxu1 %vm686_vm3, %v11528_v4  ;;  %v1886_v53 = vshll.u32 %v11645_v52, 16  ;;  %v1860_v33 = vrot.slane %v1859_v56, 4  ;;  %v1897_v18 = vor.u32 %v1896_v60, %v1893_v47  ;;  %v1915_v12 = vshrl.u32 %v8749_v59, 16  ;;  %v8752_v60 = vld [vmem:[%s10822_s25 + $0xb4] sm:$0xf] }
  0xb1   : > { %v1836_v26 = vrot.slane %v1835_v35, 4  ;;  %v1918_v40 = vshll.u32 %v8749_v59, 16  ;;  %v1807_v48 = vsel %vm10863_vm6, %v1802_v37, %v11585_v8  ;;  %v1817_v0 = vsel %vm10863_vm6, %v1812_v1, %v11604_v42  ;;  %v16942_v8 = vld [vmem:[#allocation6_spill] sm:$0xff] }
  0xb2   : > { %9790 = vmatmul.mubr.msk.bf16.gmra.mrb[24].mxu0 %vm686_vm3, %v16938_v44  ;;  %v1907_v35 = vor.u32 %v1906_v34, %v11650_v30  ;;  %v1910_v31 = vshll.u32 %v11648_v63, 16  ;;  %v1831_v3 = vsel %vm10863_vm6, %v1826_v13, %v11607_v11  ;;  %v1924_v15 = vshll.u32 %v11661_v25, 16 }
  0xb3   : > { %9793 = vmatprep.mubr.msk.bf16.mxu0 %vm686_vm3, %v16939_v38  ;;  %v1841_v44 = vsel %vm10863_vm6, %v1836_v26, %v1840_v24  ;;  %v1928_v55 = vshrl.u32 %v11661_v25, 16  ;;  %v16944_v42 = vcombine.low %v16942_v8, %v16943_v28  ;;  %v1855_v11 = vsel %vm10863_vm6, %v1850_v41, %v11619_v19  ;;  %v11728_v41 = vld [vmem:[%s10822_s25 + $0xb8] sm:$0xf] }
  0xb4   : > { %v11694_v38 = vrot.slane %v1873_v23, 4  ;;  %v11696_v56 = vrot.slane %v1883_v29, 4  ;;  %v11698_v47 = vrot.slane %v1886_v53, 5  ;;  %v1865_v37 = vsel %vm10863_vm6, %v1860_v33, %v1864_v61  ;;  %v11725_v61 = vld [vmem:[%s10822_s25 + $0xb0] sm:$0x1]  ;;  %v16948_v8 = vld [vmem:[#allocation9_spill] sm:$0xff] }
  0xb5   : > { %v11705_v1 = vrot.slane %v1897_v18, 4  ;;  %v11707_v34 = vrot.slane %v1915_v12, 4  ;;  %v11709_v19 = vrot.slane %v1918_v40, 5  ;;  %v11716_v59 = vcombine.low %v1783_v36, %v1793_v16  ;;  %v11736_v36 = vld [vmem:[%s10822_s25 + $0x18] sm:$0xff]   ;;  %v11753_v40 = vld [vmem:[%s10822_s25 + $0x24] sm:$0xff]  }
  0xb6   : > { %v11718_v13 = vcombine.low %v1807_v48, %v1817_v0  ;;  %v11720_v26 = vrot.slane %v1907_v35, 4  ;;  %v11722_v24 = vrot.slane %v1910_v31, 5  ;;  %v11730_v23 = vrot.slane %v1924_v15, 5  ;;  %16945 = vst [vmem:[#allocation7_spill] sm:$0xff] %v11736_v36  ;;  %16946 = vst [vmem:[#allocation6_spill] sm:$0xff] %v11753_v40  ;;  %v11774_v15 = vld [vmem:[%s16605_s1 + $0x48] sm:$0xff]  }
  0xb7   : > { %9936 = vmatmul.mubr.msk.bf16.vlgmr.msra.gmra.mrb[0].mxu1 %vm686_vm3, %v11530_v27  ;;  %v11732_v29 = vrot.slane %v1928_v55, 4  ;;  %v1939_v53 = vshrl.u32 %v8752_v60, 16  ;;  %v1942_v21 = vshll.u32 %v8752_v60, 16  ;;  %v11738_v16 = vcombine.low %v1831_v3, %v1841_v44  ;;  %v8886_v31 = vld [vmem:[%s10822_s25 + $0x3c] sm:$0xe]  ;;  %16947 = vst [vmem:[#allocation5_spill] sm:$0xff] %v11774_v15 }
  0xb8   : > { %9968 = vmatpush3.bf16.msra.mxu1 %v16941_v58  ;;  %9939 = vmatprep.mubr.msk.bf16.mxu1 %vm686_vm3, %v11532_v10  ;;  %v11740_v33 = vcombine.low %v1855_v11, %v1865_v37  ;;  %v1948_v35 = vshll.u32 %v11728_v41, 16  ;;  %v1952_v44 = vshrl.u32 %v11728_v41, 16  ;;  %v8901_v55 = vrot.slane %v8885_v22, 9  ;;  %v16949_v0 = vld [vmem:[#allocation13_spill] sm:$0xff]  ;;  %v16951_v18 = vld [vmem:[#allocation10_spill] sm:$0xff] }
  0xb9   : > { %10137 = vmatprep.subr.bf16.mxu1 %v11656_v9  ;;  %v3172_v28 = vrot.slane %v16948_v8, 5  ;;  %v11780_v60 = vrot.slane %v1939_v53, 4  ;;  %v11782_v37 = vrot.slane %v1942_v21, 5  ;;  %v3175_v48 = vrot.slane %v16949_v0, 5  ;;  %v16953_v21 = vld [vmem:[#allocation15_spill] sm:$0xff] }
  0xba   : > { %9794 = vmatmul.mubr.msk.bf16.gmra.mrb[28].mxu0 %vm686_vm3, %v16944_v42  ;;  %v8887_v42 = vld [vmem:[%s10822_s25 + $0x48] sm:$0xe]  ;;  %v8902_v8 = vrot.slane %v8886_v31, 9  ;;  %v3179_v12 = vrot.slane %v16951_v18, 5  ;;  %v11793_v53 = vrot.slane %v1948_v35, 5  ;;  %v3182_v0 = vrot.slane %v16953_v21, 5 }
  0xbb   : > { %9799 = vmatprep.mubr.msk.bf16.mxu0 %vm686_vm3, %v11666_v5  ;;  %v3173_v3 = vsel %vm10824_vm4, %v8901_v55, %v3172_v28  ;;  %v3174_v22 = vrot.slane %v3172_v28, 4  ;;  %v16952_v5 = vld [vmem:[#allocation8_spill] sm:$0xff]  ;;  %v8903_v11 = vrot.slane %v8887_v42, 9  ;;  %v11798_v55 = vrot.slane %v1952_v44, 4  ;;  %v8889_v31 = vld [vmem:[%s10822_s25 + $0x60] sm:$0xe] }
  0xbc   : > { %v3180_v18 = vsel %vm10824_vm4, %v8902_v8, %v3179_v12  ;;  %v3181_v35 = vrot.slane %v3179_v12, 4  ;;  %v16955_v44 = vld [vmem:[#allocation16_spill] sm:$0xff]  ;;  %v3196_v12 = vrot.slane %v11448_v20, 5  ;;  %v8890_v8 = vld [vmem:[%s10822_s25 + $0x6c] sm:$0xe] }
  0xbd   : > { %v3189_v21 = vrot.slane %v16955_v44, 5  ;;  %v3200_v44 = vrot.slane %v11452_v7, 5  ;;  %v3207_v7 = vrot.slane %v11526_v2, 5 }
  0xbe   : > { %v3183_v10 = vsel %vm10824_vm4, %v3181_v35, %v3182_v0 }
  0xbf   : > { %9940 = vmatmul.mubr.msk.bf16.gmra.mrb[4].mxu1 %vm686_vm3, %v11534_v45  ;;  %v8888_v45 = vld [vmem:[%s10822_s25 + $0x54] sm:$0xe] }
  0xc0   : > { %9943 = vmatprep.mubr.msk.bf16.mxu1 %vm686_vm3, %v11536_v32 }
  0xc2   : > { %9800 = vmatmul.mubr.msk.bf16.vlgmr.msra.gmra.mrb[0].mxu0 %vm686_vm3, %v11736_v36  ;;  %v16954_v36 = vld [vmem:[#allocation12_spill] sm:$0xff] }
  0xc3   : > { %9832 = vmatpush3.bf16.msra.mxu0 %v16952_v5  ;;  %9803 = vmatprep.mubr.msk.bf16.mxu0 %vm686_vm3, %v11753_v40  ;;  %v3186_v32 = vrot.slane %v16954_v36, 5  ;;  %v3176_v5 = vsel %vm10824_vm4, %v3174_v22, %v3175_v48  ;;  %v11812_v40 = vld [vmem:[%s10822_s25 + $0x30] sm:$0xff]   ;;  %v8904_v48 = vrot.slane %v8888_v45, 9  ;;  %v16956_v22 = vld [vmem:[#allocation14_spill] sm:$0xff]  ;;  %v8891_v45 = vld [vmem:[%s10822_s25 + $0x78] sm:$0xe] }
  0xc4   : > { %10001 = vmatprep.subr.bf16.mxu0 %v11774_v15  ;;  %v11806_v28 = vcombine.low %v3173_v3, %v3176_v5  ;;  %v3193_v15 = vrot.slane %v16956_v22, 5  ;;  %v11822_v3 = vld [vmem:[%s10822_s25 + $0x3c] sm:$0xff]   ;;  %v8905_v5 = vrot.slane %v8889_v31, 9  ;;  %v3202_v31 = vrot.slane %v3200_v44, 4 }
  0xc5   : > { %v3187_v36 = vsel %vm10824_vm4, %v8903_v11, %v3186_v32  ;;  %v3188_v42 = vrot.slane %v3186_v32, 4  ;;  %v11824_v11 = vcombine.low %v3180_v18, %v3183_v10  ;;  %v3203_v10 = vrot.slane %v11517_v17, 5  ;;  %v8892_v17 = vld [vmem:[%s10822_s25 + $0x84] sm:$0xe] }
  0xc6   : > { %v3194_v0 = vsel %vm10824_vm4, %v8904_v48, %v3193_v15  ;;  %v3195_v35 = vrot.slane %v3193_v15, 4  ;;  %v3201_v18 = vsel %vm10824_vm4, %v8905_v5, %v3200_v44  ;;  %v8907_v48 = vrot.slane %v8891_v45, 9 }
  0xc7   : > { %9944 = vmatmul.mubr.msk.bf16.gmra.mrb[8].mxu1 %vm686_vm3, %v11538_v62  ;;  %v3190_v32 = vsel %vm10824_vm4, %v3188_v42, %v3189_v21  ;;  %v8906_v42 = vrot.slane %v8890_v8, 9  ;;  %v3210_v21 = vrot.slane %v11541_v50, 5  ;;  %v3214_v15 = vrot.slane %v11545_v54, 5  ;;  %v8893_v50 = vld [vmem:[%s10822_s25 + $0x90] sm:$0xe] }
  0xc8   : > { %9947 = vmatprep.mubr.msk.bf16.mxu1 %vm686_vm3, %v11577_v6  ;;  %v11832_v20 = vcombine.low %v3187_v36, %v3190_v32  ;;  %v3197_v36 = vsel %vm10824_vm4, %v3195_v35, %v3196_v12  ;;  %v3204_v2 = vsel %vm10824_vm4, %v3202_v31, %v3203_v10  ;;  %v3209_v12 = vrot.slane %v3207_v7, 4  ;;  %v8894_v31 = vld [vmem:[%s10822_s25 + $0x9c] sm:$0xe] }
  0xc9   : > { %v11849_v22 = vcombine.low %v3194_v0, %v3197_v36  ;;  %v3208_v8 = vsel %vm10824_vm4, %v8906_v42, %v3207_v7  ;;  %v11856_v32 = vcombine.low %v3201_v18, %v3204_v2  ;;  %v3215_v54 = vsel %vm10824_vm4, %v8907_v48, %v3214_v15  ;;  %v11867_v42 = vld [vmem:[%s10822_s25 + $0x48] sm:$0xff]  }
  0xca   : > { %9804 = vmatmul.mubr.msk.bf16.gmra.mrb[4].mxu0 %vm686_vm3, %v11812_v40  ;;  %v3216_v5 = vrot.slane %v3214_v15, 4  ;;  %v3217_v44 = vrot.slane %v11597_v46, 5  ;;  %v3211_v45 = vsel %vm10824_vm4, %v3209_v12, %v3210_v21  ;;  %v8908_v0 = vrot.slane %v8892_v17, 9  ;;  %v8895_v46 = vld [vmem:[%s10822_s25 + $0xa8] sm:$0xe]  ;;  %v11878_v21 = vld [vmem:[%s10822_s25 + $0x54] sm:$0xff]  }
  0xcb   : > { %9807 = vmatprep.mubr.msk.bf16.mxu0 %vm686_vm3, %v11822_v3  ;;  %v3221_v35 = vrot.slane %v11569_v39, 5  ;;  %v3224_v10 = vrot.slane %v11613_v51, 5  ;;  %v11869_v18 = vcombine.low %v3208_v8, %v3211_v45  ;;  %v8909_v36 = vrot.slane %v8893_v50, 9  ;;  %16957 = vst [vmem:[#allocation9_spill] sm:$0xff] %v11878_v21 }
  0xcc   : > { %v3218_v7 = vsel %vm10824_vm4, %v3216_v5, %v3217_v44  ;;  %v3228_v48 = vrot.slane %v11602_v14, 5  ;;  %v3231_v17 = vrot.slane %v11645_v52, 5  ;;  %v8910_v8 = vrot.slane %v8894_v31, 9  ;;  %v8896_v44 = vld [vmem:[%s10822_s25 + $0xb4] sm:$0xe] }
  0xcd   : > { %v11880_v39 = vcombine.low %v3215_v54, %v3218_v7  ;;  %v3222_v51 = vsel %vm10824_vm4, %v8908_v0, %v3221_v35  ;;  %v3223_v15 = vrot.slane %v3221_v35, 4  ;;  %v3235_v12 = vrot.slane %v11610_v57, 5 }
  0xce   : > { %v3229_v14 = vsel %vm10824_vm4, %v8909_v36, %v3228_v48  ;;  %v3230_v2 = vrot.slane %v3228_v48, 4  ;;  %v3238_v54 = vrot.slane %v11648_v63, 5  ;;  %v8911_v5 = vrot.slane %v8895_v46, 9  ;;  %v8754_v63 = vld [vmem:[%s10822_s25 + $0xbc] sm:$0x1] }
  0xcf   : > { %9948 = vmatmul.mubr.msk.bf16.gmra.mrb[12].mxu1 %vm686_vm3, %v11716_v59  ;;  %v3225_v50 = vsel %vm10824_vm4, %v3223_v15, %v3224_v10  ;;  %v3242_v52 = vrot.slane %v11661_v25, 5  ;;  %v3236_v57 = vsel %vm10824_vm4, %v8910_v8, %v3235_v12  ;;  %v3237_v35 = vrot.slane %v3235_v12, 4  ;;  %v8897_v10 = vld [vmem:[%s10822_s25 + $0xc0] sm:$0xe]  ;;  %v8756_v46 = vld [vmem:[%s10822_s25 + $0xc4] sm:$0xf] }
  0xd0   : > { %9951 = vmatprep.mubr.msk.bf16.mxu1 %vm686_vm3, %v11718_v13  ;;  %v11897_v45 = vcombine.low %v3222_v51, %v3225_v50  ;;  %v3232_v0 = vsel %vm10824_vm4, %v3230_v2, %v3231_v17  ;;  %v8755_v25 = vld [vmem:[%s10822_s25 + $0xc0] sm:$0xf]  ;;  %v3245_v48 = vrot.slane %v11725_v61, 5  ;;  %v8912_v15 = vrot.slane %v8896_v44, 9  ;;  %v8757_v8 = vld [vmem:[%s10822_s25 + $0xc8] sm:$0x1] }
  0xd1   : > { %v11908_v31 = vcombine.low %v3229_v14, %v3232_v0  ;;  %v3243_v7 = vsel %vm10824_vm4, %v8911_v5, %v3242_v52  ;;  %v3244_v36 = vrot.slane %v3242_v52, 4  ;;  %v3239_v51 = vsel %vm10824_vm4, %v3237_v35, %v3238_v54  ;;  %v11923_v52 = vld [vmem:[%s10822_s25 + $0x60] sm:$0xff]  }
  0xd2   : > { %9808 = vmatmul.mubr.msk.bf16.gmra.mrb[8].mxu0 %vm686_vm3, %v11867_v42  ;;  %v3249_v17 = vrot.slane %v11728_v41, 5  ;;  %v3252_v2 = vrot.slane %v8754_v63, 5  ;;  %v11918_v12 = vcombine.low %v3236_v57, %v3239_v51  ;;  %v8913_v50 = vrot.slane %v8897_v10, 9  ;;  %v11932_v41 = vld [vmem:[%s10822_s25 + $0x6c] sm:$0xff]  }
  0xd3   : > { %9811 = vmatprep.mubr.msk.bf16.mxu0 %vm686_vm3, %v11878_v21  ;;  %v3246_v14 = vsel %vm10824_vm4, %v3244_v36, %v3245_v48  ;;  %v3256_v5 = vrot.slane %v8756_v46, 5  ;;  %v3259_v44 = vrot.slane %v8757_v8, 5  ;;  %v1958_v57 = vshll.u32 %v8754_v63, 16 }
  0xd4   : > { %v11925_v0 = vcombine.low %v3243_v7, %v3246_v14  ;;  %v3250_v21 = vsel %vm10824_vm4, %v8912_v15, %v3249_v17  ;;  %v3251_v54 = vrot.slane %v3249_v17, 4  ;;  %v1963_v35 = vshrl.u32 %v8755_v25, 16 }
  0xd5   : > { %v3257_v10 = vsel %vm10824_vm4, %v8913_v50, %v3256_v5  ;;  %v3258_v36 = vrot.slane %v3256_v5, 4  ;;  %v1966_v7 = vshll.u32 %v8755_v25, 16  ;;  %v1972_v48 = vshll.u32 %v8756_v46, 16 }
  0xd6   : > { %v1976_v51 = vshrl.u32 %v8756_v46, 16  ;;  %v3253_v15 = vsel %vm10824_vm4, %v3251_v54, %v3252_v2  ;;  %v1945_v17 = vor.u32 %v11782_v37, %v11780_v60  ;;  %v1955_v63 = vor.u32 %v11798_v55, %v11793_v53 }
  0xd7   : > { %9952 = vmatmul.mubr.msk.bf16.gmra.mrb[16].mxu1 %vm686_vm3, %v11738_v16  ;;  %v11944_v14 = vcombine.low %v3250_v21, %v3253_v15  ;;  %v3260_v50 = vsel %vm10824_vm4, %v3258_v36, %v3259_v44  ;;  %v16958_v25 = vsel %vm10863_vm6, %v11696_v56, %v11698_v47  ;;  %v16959_v60 = vsel %vm10863_vm6, %v11694_v38, %v11633_v49  ;;  %v11987_v15 = vld [vmem:[%s10822_s25 + $0x78] sm:$0xff]  }
  0xd8   : > { %9955 = vmatprep.mubr.msk.bf16.mxu1 %vm686_vm3, %v11740_v33  ;;  %v11960_v37 = vcombine.low %v16959_v60, %v16958_v25  ;;  %v11962_v55 = vcombine.low %v3257_v10, %v3260_v50  ;;  %v16960_v21 = vsel %vm10863_vm6, %v11720_v26, %v11722_v24  ;;  %v16961_v56 = vsel %vm10863_vm6, %v11705_v1, %v11650_v30 }
  0xd9   : > { %v11976_v47 = vcombine.low %v16961_v56, %v16960_v21  ;;  %v16962_v49 = vor.u32 %v11709_v19, %v11707_v34  ;;  %v16963_v46 = vor.u32 %v11732_v29, %v11730_v23  ;;  %v16964_v5 = vshll.u32 %v11725_v61, 16  ;;  %v11992_v34 = vld [vmem:[%s10822_s25 + $0x84] sm:$0xff]   ;;  %v10741_v56 = vld [vmem:[%s10822_s25 + $0x14] sm:$0x1] }
  0xda   : > { %9812 = vmatmul.mubr.msk.bf16.gmra.mrb[12].mxu0 %vm686_vm3, %v11923_v52  ;;  %v1965_v44 = vrot.slane %v1963_v35, 4  ;;  %v1968_v26 = vrot.slane %v1966_v7, 5  ;;  %v1974_v24 = vrot.slane %v1972_v48, 5  ;;  %v1978_v10 = vrot.slane %v1976_v51, 4  ;;  %v10740_v51 = vld [vmem:[%s10822_s25 + $0x10] sm:$0xf] }
  0xdb   : > { %9815 = vmatprep.mubr.msk.bf16.mxu0 %vm686_vm3, %v11932_v41  ;;  %v1922_v38 = vrot.slane %v16962_v49, 4  ;;  %v1932_v2 = vrot.slane %v16963_v46, 4  ;;  %v1936_v54 = vrot.slane %v16964_v5, 5  ;;  %v1946_v36 = vrot.slane %v1945_v17, 4  ;;  %v8882_v17 = vld [vmem:[%s10822_s25 + $0xc] sm:$0xe] }
  0xdc   : > { %v1956_v30 = vrot.slane %v1955_v63, 4  ;;  %v1960_v1 = vrot.slane %v1958_v57, 5  ;;  %v1969_v29 = vor.u32 %v1968_v26, %v1965_v44  ;;  %v1979_v35 = vor.u32 %v1978_v10, %v1974_v24  ;;  %v12023_v46 = vld [vmem:[%s10822_s25 + $0x9c] sm:$0xff]  }
  0xdd   : > { %v1927_v19 = vsel %vm10863_vm6, %v1922_v38, %v11730_v23  ;;  %v1937_v61 = vsel %vm10863_vm6, %v1932_v2, %v1936_v54  ;;  %v1982_v57 = vshll.u32 %v8757_v8, 16  ;;  %v1951_v7 = vsel %vm10863_vm6, %v1946_v36, %v11793_v53  ;;  %v12018_v38 = vld [vmem:[%s10822_s25 + $0x90] sm:$0xff]   ;;  %v10742_v54 = vld [vmem:[%s10822_s25 + $0x1c] sm:$0xf]  ;;  %v8883_v36 = vld [vmem:[%s10822_s25 + $0x18] sm:$0xe] }
  0xde   : > { %v1961_v48 = vsel %vm10863_vm6, %v1956_v30, %v1960_v1  ;;  %v3151_v23 = vrot.slane %v10740_v51, 5  ;;  %v12012_v8 = vcombine.low %v1927_v19, %v1937_v61  ;;  %v1970_v53 = vrot.slane %v1969_v29, 4  ;;  %v10743_v30 = vld [vmem:[%s10822_s25 + $0x28] sm:$0xf] }
  0xdf   : > { %9956 = vmatmul.mubr.msk.bf16.gmra.mrb[20].mxu1 %vm686_vm3, %v11960_v37  ;;  %v12014_v63 = vcombine.low %v1951_v7, %v1961_v48  ;;  %v1980_v50 = vrot.slane %v1979_v35, 4  ;;  %v1984_v25 = vrot.slane %v1982_v57, 5  ;;  %v8898_v60 = vrot.slane %v8882_v17, 9  ;;  %v10744_v57 = vld [vmem:[%s10822_s25 + $0x20] sm:$0x1] }
  0xe0   : > { %9959 = vmatprep.mubr.msk.bf16.mxu1 %vm686_vm3, %v11976_v47  ;;  %v3153_v21 = vrot.slane %v3151_v23, 4  ;;  %v3154_v49 = vrot.slane %v10741_v56, 5  ;;  %v1975_v2 = vsel %vm10863_vm6, %v1970_v53, %v1974_v24  ;;  %v3158_v44 = vrot.slane %v10742_v54, 5  ;;  %v8884_v24 = vld [vmem:[%s10822_s25 + $0x24] sm:$0xe]  ;;  %v12048_v53 = vld [vmem:[%s10822_s25 + $0xa8] sm:$0xff]  }
  0xe1   : > { %v1985_v5 = vsel %vm10863_vm6, %v1980_v50, %v1984_v25  ;;  %v3152_v26 = vsel %vm10824_vm4, %v8898_v60, %v3151_v23  ;;  %v3165_v1 = vrot.slane %v10743_v30, 5  ;;  %v8899_v29 = vrot.slane %v8883_v36, 9  ;;  %v16965_v23 = vld [vmem:[#allocation11_spill] sm:$0xff]  ;;  %v12053_v50 = vld [vmem:[%s10822_s25 + $0xb4] sm:$0xff]   ;;  %v12072_v54 = vld [vmem:[%s10822_s25 + $0xc0] sm:$0xff]  }
  0xe2   : > { %9816 = vmatmul.mubr.msk.bf16.gmra.mrb[16].mxu0 %vm686_vm3, %v11987_v15  ;;  %v3155_v10 = vsel %vm10824_vm4, %v3153_v21, %v3154_v49  ;;  %v12043_v19 = vcombine.low %v1975_v2, %v1985_v5  ;;  %v3160_v35 = vrot.slane %v3158_v44, 4  ;;  %v3161_v7 = vrot.slane %v10744_v57, 5  ;;  %v10711_v5 = vld [vmem:[%s16605_s1 + $0x60] sm:$0xff]   ;;  %v16969_v36 = vld [vmem:[#allocation17_spill] sm:$0xff]  ;;  %v10713_v30 = vld [vmem:[%s16605_s1 + $0x70] sm:$0xff]  }
  0xe3   : > { %9819 = vmatprep.mubr.msk.bf16.mxu0 %vm686_vm3, %v11992_v34  ;;  %v8916_v61 = vcombine.low %v3152_v26, %v3155_v10  ;;  %v8900_v48 = vrot.slane %v8884_v24, 9  ;;  %v3167_v51 = vrot.slane %v3165_v1, 4  ;;  %v3168_v17 = vrot.slane %v16965_v23, 5  ;;  %v16967_v26 = vld [vmem:[#allocation3_spill] sm:$0xff]  ;;  %v16968_v10 = vld [vmem:[#allocation4_spill] sm:$0xff] }
  0xe4   : > { %v3159_v25 = vsel %vm10824_vm4, %v8899_v29, %v3158_v44  ;;  %v3162_v60 = vsel %vm10824_vm4, %v3160_v35, %v3161_v7  ;;  %v10710_v44 = vld [vmem:[%s16605_s1 + $0x40] sm:$0xff]   ;;  %v12249_v29 = vld [vmem:[%s10822_s25 + $0x5c] sm:$0x1]  ;;  %v9199_v35 = vld [vmem:[%s10822_s25 + $0x54] sm:$0xe] }
  0xe5   : > { %v3166_v21 = vsel %vm10824_vm4, %v8900_v48, %v3165_v1  ;;  %v3169_v56 = vsel %vm10824_vm4, %v3167_v51, %v3168_v17  ;;  %v8917_v49 = vcombine.low %v3159_v25, %v3162_v60  ;;  %v10712_v1 = vld [vmem:[%s16605_s1 + $0x50] sm:$0xff]   ;;  %v9215_v57 = vrot.slane %v9199_v35, 9 }
  0xe6   : > { %v8918_v2 = vcombine.low %v3166_v21, %v3169_v56 }
  0xe7   : > { %9960 = vmatmul.mubr.msk.bf16.gmra.mrb[24].mxu1 %vm686_vm3, %v12012_v8 }
  0xe8   : > { %9963 = vmatprep.mubr.msk.bf16.mxu1 %vm686_vm3, %v12014_v63 }
  0xea   : > { %9820 = vmatmul.mubr.msk.bf16.gmra.mrb[20].mxu0 %vm686_vm3, %v12018_v38 }
  0xeb   : > { %9823 = vmatprep.mubr.msk.bf16.mxu0 %vm686_vm3, %v12023_v46 }
  0xef   : > { %9964 = vmatmul.mubr.msk.bf16.gmra.mrb[28].mxu1 %vm686_vm3, %v12043_v19 }
  0xf0   : > { %9969 = vmatprep.mubr.msk.bf16.mxu1 %vm686_vm3, %v8916_v61 }
  0xf2   : > { %9824 = vmatmul.mubr.msk.bf16.gmra.mrb[24].mxu0 %vm686_vm3, %v12048_v53 }
  0xf3   : > { %9827 = vmatprep.mubr.msk.bf16.mxu0 %vm686_vm3, %v12053_v50 }
  0xf7   : > { %9970 = vmatmul.mubr.msk.bf16.vlgmr.msra.gmra.mrb[0].mxu1 %vm686_vm3, %v8917_v49 }
  0xf8   : > { %10138 = vmatpush3.bf16.msra.mxu1 %v11656_v9  ;;  %9973 = vmatprep.mubr.msk.bf16.mxu1 %vm686_vm3, %v8918_v2  ;;  %v16966_v9 = vld [vmem:[#allocation5_spill] sm:$0xff] }
  0xf9   : > { %10171 = vmatprep.subr.bf16.mxu1 %v10711_v5 }
  0xfa   : > { %9828 = vmatmul.mubr.msk.bf16.gmra.mrb[28].mxu0 %vm686_vm3, %v12072_v54 }
  0xfb   : > { %9833 = vmatprep.mubr.msk.bf16.mxu0 %vm686_vm3, %v11528_v4 }
  0xff   : > { %9974 = vmatmul.mubr.msk.bf16.gmra.mrb[4].mxu1 %vm686_vm3, %v11806_v28 }
 0x100   : > { %9977 = vmatprep.mubr.msk.bf16.mxu1 %vm686_vm3, %v11824_v11 }
 0x102   : > { %9834 = vmatmul.mubr.msk.bf16.vlgmr.msra.gmra.mrb[0].mxu0 %vm686_vm3, %v11530_v27 }
 0x103   : > { %10002 = vmatpush3.bf16.msra.mxu0 %v16966_v9  ;;  %9837 = vmatprep.mubr.msk.bf16.mxu0 %vm686_vm3, %v16967_v26  ;;  %v12276_v9 = vld [vmem:[%s10822_s25 + $0x70] sm:$0xf] }
 0x104   : > { %10035 = vmatprep.subr.bf16.mxu0 %v10710_v44 }
 0x107   : > { %9978 = vmatmul.mubr.msk.bf16.gmra.mrb[8].mxu1 %vm686_vm3, %v11832_v20 }
 0x108   : > { %9981 = vmatprep.mubr.msk.bf16.mxu1 %vm686_vm3, %v11849_v22 }
 0x10a   : > { %9838 = vmatmul.mubr.msk.bf16.gmra.mrb[4].mxu0 %vm686_vm3, %v16968_v10 }
 0x10b   : > { %9841 = vmatprep.mubr.msk.bf16.mxu0 %vm686_vm3, %v16969_v36 }
 0x10f   : > { %9982 = vmatmul.mubr.msk.bf16.gmra.mrb[12].mxu1 %vm686_vm3, %v11856_v32 }
 0x110   : > { %9985 = vmatprep.mubr.msk.bf16.mxu1 %vm686_vm3, %v11869_v18 }
 0x112   : > { %9842 = vmatmul.mubr.msk.bf16.gmra.mrb[8].mxu0 %vm686_vm3, %v11538_v62 }
 0x113   : > { %9845 = vmatprep.mubr.msk.bf16.mxu0 %vm686_vm3, %v11577_v6 }
 0x117   : > { %9986 = vmatmul.mubr.msk.bf16.gmra.mrb[16].mxu1 %vm686_vm3, %v11880_v39 }
 0x118   : > { %9989 = vmatprep.mubr.msk.bf16.mxu1 %vm686_vm3, %v11897_v45 }
 0x11a   : > { %9846 = vmatmul.mubr.msk.bf16.gmra.mrb[12].mxu0 %vm686_vm3, %v11716_v59 }
 0x11b   : > { %9849 = vmatprep.mubr.msk.bf16.mxu0 %vm686_vm3, %v11718_v13 }
 0x11f   : > { %9990 = vmatmul.mubr.msk.bf16.gmra.mrb[20].mxu1 %vm686_vm3, %v11908_v31 }
 0x120   : > { %9993 = vmatprep.mubr.msk.bf16.mxu1 %vm686_vm3, %v11918_v12 }
 0x122   : > { %9850 = vmatmul.mubr.msk.bf16.gmra.mrb[16].mxu0 %vm686_vm3, %v11738_v16 }
 0x123   : > { %9853 = vmatprep.mubr.msk.bf16.mxu0 %vm686_vm3, %v11740_v33 }
 0x127   : > { %9994 = vmatmul.mubr.msk.bf16.gmra.mrb[24].mxu1 %vm686_vm3, %v11925_v0 }
 0x128   : > { %9997 = vmatprep.mubr.msk.bf16.mxu1 %vm686_vm3, %v11944_v14 }
 0x12a   : > { %9854 = vmatmul.mubr.msk.bf16.gmra.mrb[20].mxu0 %vm686_vm3, %v11960_v37 }
 0x12b   : > { %9857 = vmatprep.mubr.msk.bf16.mxu0 %vm686_vm3, %v11976_v47 }
 0x12f   : > { %9998 = vmatmul.mubr.msk.bf16.gmra.mrb[28].mxu1 %vm686_vm3, %v11962_v55 }
 0x130   : > { %10139 = vmatprep.mubr.msk.bf16.mxu1 %vm686_vm3, %v8916_v61 }
 0x132   : > { %9858 = vmatmul.mubr.msk.bf16.gmra.mrb[24].mxu0 %vm686_vm3, %v12012_v8 }
 0x133   : > { %9861 = vmatprep.mubr.msk.bf16.mxu0 %vm686_vm3, %v12014_v63 }
 0x137   : > { %10140 = vmatmul.mubr.msk.bf16.vlgmr.msra.gmra.mrb[32].mxu1 %vm686_vm3, %v8917_v49  ;;  %v9090_v49 = vld [vmem:[%s10822_s25 + $0xa8] sm:$0xf] }
 0x138   : > { %10172 = vmatpush3.bf16.msra.mxu1 %v10711_v5  ;;  %10143 = vmatprep.mubr.msk.bf16.mxu1 %vm686_vm3, %v8918_v2  ;;  %v9059_v2 = vld [vmem:[%s10822_s25 + $0x2c] sm:$0x1] }
 0x139   : > { %10205 = vmatprep.subr.bf16.mxu1 %v10713_v30 }
 0x13a   : > { %9862 = vmatmul.mubr.msk.bf16.gmra.mrb[28].mxu0 %vm686_vm3, %v12043_v19 }
 0x13b   : > { %10003 = vmatprep.mubr.msk.bf16.mxu0 %vm686_vm3, %v11528_v4 }
 0x13f   : > { %10144 = vmatmul.mubr.msk.bf16.gmra.mrb[36].mxu1 %vm686_vm3, %v11806_v28  ;;  %v12211_v28 = vld [vmem:[%s16605_s1 + $0x78] sm:$0xff]  }
 0x140   : > { %10147 = vmatprep.mubr.msk.bf16.mxu1 %vm686_vm3, %v11824_v11  ;;  %v16971_v11 = vld [vmem:[#allocation7_spill] sm:$0xff] }
 0x142   : > { %10004 = vmatmul.mubr.msk.bf16.vlgmr.msra.gmra.mrb[32].mxu0 %vm686_vm3, %v11530_v27 }
 0x143   : > { %10036 = vmatpush3.bf16.msra.mxu0 %v10710_v44  ;;  %10007 = vmatprep.mubr.msk.bf16.mxu0 %vm686_vm3, %v16967_v26 }
 0x144   : > { %10069 = vmatprep.subr.bf16.mxu0 %v10712_v1 }
 0x147   : > { %10148 = vmatmul.mubr.msk.bf16.gmra.mrb[40].mxu1 %vm686_vm3, %v11832_v20  ;;  %v16972_v20 = vld [vmem:[#allocation6_spill] sm:$0xff] }
 0x148   : > { %10151 = vmatprep.mubr.msk.bf16.mxu1 %vm686_vm3, %v11849_v22  ;;  %v9054_v22 = vld [vmem:[%s10822_s25 + $0x18] sm:$0xf] }
 0x14a   : > { %10008 = vmatmul.mubr.msk.bf16.gmra.mrb[36].mxu0 %vm686_vm3, %v16968_v10 }
 0x14b   : > { %10011 = vmatprep.mubr.msk.bf16.mxu0 %vm686_vm3, %v16969_v36 }
 0x14f   : > { %10152 = vmatmul.mubr.msk.bf16.gmra.mrb[44].mxu1 %vm686_vm3, %v11856_v32  ;;  %v9055_v32 = vld [vmem:[%s10822_s25 + $0x1c] sm:$0xf] }
 0x150   : > { %10155 = vmatprep.mubr.msk.bf16.mxu1 %vm686_vm3, %v11869_v18  ;;  %v9057_v18 = vld [vmem:[%s10822_s25 + $0x24] sm:$0xf] }
 0x151   : > { %v4335_v24 = vshrl.u32 %v9057_v18, 16  ;;  %v4338_v61 = vshll.u32 %v9057_v18, 16 }
 0x152   : > { %10012 = vmatmul.mubr.msk.bf16.gmra.mrb[40].mxu0 %vm686_vm3, %v11538_v62 }
 0x153   : > { %10015 = vmatprep.mubr.msk.bf16.mxu0 %vm686_vm3, %v11577_v6  ;;  %v4337_v21 = vrot.slane %v4335_v24, 4  ;;  %v4340_v56 = vrot.slane %v4338_v61, 5  ;;  %v9063_v61 = vld [vmem:[%s10822_s25 + $0x3c] sm:$0xf] }
 0x157   : > { %10156 = vmatmul.mubr.msk.bf16.gmra.mrb[48].mxu1 %vm686_vm3, %v11880_v39  ;;  %v4311_v39 = vshrl.u32 %v9054_v22, 16 }
 0x158   : > { %10159 = vmatprep.mubr.msk.bf16.mxu1 %vm686_vm3, %v11897_v45  ;;  %v12240_v45 = vld [vmem:[%s10822_s25 + $0x58] sm:$0xf] }
 0x159   : > { %v4313_v48 = vrot.slane %v4311_v39, 4 }
 0x15a   : > { %10016 = vmatmul.mubr.msk.bf16.gmra.mrb[44].mxu0 %vm686_vm3, %v11716_v59 }
 0x15b   : > { %10019 = vmatprep.mubr.msk.bf16.mxu0 %vm686_vm3, %v11718_v13 }
 0x15f   : > { %10160 = vmatmul.mubr.msk.bf16.gmra.mrb[52].mxu1 %vm686_vm3, %v11908_v31  ;;  %v4314_v31 = vshll.u32 %v9054_v22, 16  ;;  %v4354_v22 = vshll.u32 %v9059_v2, 16  ;;  %v4383_v2 = vshrl.u32 %v9063_v61, 16 }
 0x160   : > { %10163 = vmatprep.mubr.msk.bf16.mxu1 %vm686_vm3, %v11918_v12  ;;  %v4320_v12 = vshll.u32 %v9055_v32, 16 }
 0x162   : > { %10020 = vmatmul.mubr.msk.bf16.gmra.mrb[48].mxu0 %vm686_vm3, %v11738_v16  ;;  %v12257_v17 = vrot.slane %v4320_v12, 5  ;;  %v9061_v12 = vld [vmem:[%s10822_s25 + $0x34] sm:$0xf] }
 0x163   : > { %10023 = vmatprep.mubr.msk.bf16.mxu0 %vm686_vm3, %v11740_v33 }
 0x167   : > { %10164 = vmatmul.mubr.msk.bf16.gmra.mrb[56].mxu1 %vm686_vm3, %v11925_v0  ;;  %v4324_v0 = vshrl.u32 %v9055_v32, 16 }
 0x168   : > { %10167 = vmatprep.mubr.msk.bf16.mxu1 %vm686_vm3, %v11944_v14  ;;  %v9058_v14 = vld [vmem:[%s10822_s25 + $0x28] sm:$0xf] }
 0x169   : > { %v4344_v51 = vshll.u32 %v9058_v14, 16  ;;  %v4348_v23 = vshrl.u32 %v9058_v14, 16 }
 0x16a   : > { %10024 = vmatmul.mubr.msk.bf16.gmra.mrb[52].mxu0 %vm686_vm3, %v11960_v37 }
 0x16b   : > { %10027 = vmatprep.mubr.msk.bf16.mxu0 %vm686_vm3, %v11976_v47  ;;  %v12273_v5 = vrot.slane %v4344_v51, 5  ;;  %v4350_v44 = vrot.slane %v4348_v23, 4 }
 0x16f   : > { %10168 = vmatmul.mubr.msk.bf16.gmra.mrb[60].mxu1 %vm686_vm3, %v11962_v55  ;;  %v5635_v55 = vrot.slane %v12240_v45, 5 }
 0x170   : > { %10173 = vmatprep.mubr.msk.bf16.mxu1 %vm686_vm3, %v11528_v4  ;;  %v16970_v4 = vld [vmem:[#allocation18_spill] sm:$0xff] }
 0x171   : > { %v5637_v7 = vrot.slane %v5635_v55, 4  ;;  %v12261_v25 = vsel %vm10824_vm4, %v9215_v57, %v5635_v55 }
 0x172   : > { %10028 = vmatmul.mubr.msk.bf16.gmra.mrb[56].mxu0 %vm686_vm3, %v12012_v8 }
 0x173   : > { %10031 = vmatprep.mubr.msk.bf16.mxu0 %vm686_vm3, %v12014_v63 }
 0x177   : > { %10174 = vmatmul.mubr.msk.bf16.vlgmr.msra.gmra.mrb[32].mxu1 %vm686_vm3, %v11530_v27  ;;  %v12229_v27 = vld [vmem:[%s16605_s1 + $0x58] sm:$0xff]  }
 0x178   : > { %10206 = vmatpush3.bf16.msra.mxu1 %v10713_v30  ;;  %10177 = vmatprep.mubr.msk.bf16.mxu1 %vm686_vm3, %v16967_v26  ;;  %v9060_v26 = vld [vmem:[%s10822_s25 + $0x30] sm:$0xf] }
 0x179   : > { %10239 = vmatprep.subr.bf16.mxu1 %v12211_v28  ;;  %v4359_v39 = vshrl.u32 %v9060_v26, 16 }
 0x17a   : > { %10032 = vmatmul.mubr.msk.bf16.gmra.mrb[60].mxu0 %vm686_vm3, %v12043_v19 }
 0x17b   : > { %10037 = vmatprep.mubr.msk.bf16.mxu0 %vm686_vm3, %v16970_v4  ;;  %v4341_v4 = vor.u32 %v4340_v56, %v4337_v21  ;;  %v4361_v23 = vrot.slane %v4359_v39, 4  ;;  %v12310_v21 = vld [vmem:[%s10822_s25 + $0x88] sm:$0xf] }
 0x17f   : > { %10178 = vmatmul.mubr.msk.bf16.gmra.mrb[36].mxu1 %vm686_vm3, %v16968_v10  ;;  %v5649_v10 = vrot.slane %v12276_v9, 5 }
 0x180   : > { %10181 = vmatprep.mubr.msk.bf16.mxu1 %vm686_vm3, %v16969_v36 }
 0x182   : > { %10038 = vmatmul.mubr.msk.bf16.vlgmr.msra.gmra.mrb[32].mxu0 %vm686_vm3, %v16971_v11  ;;  %v12287_v11 = vld [vmem:[%s10822_s25 + $0x74] sm:$0x1] }
 0x183   : > { %10070 = vmatpush3.bf16.msra.mxu0 %v10712_v1  ;;  %10041 = vmatprep.mubr.msk.bf16.mxu0 %vm686_vm3, %v16972_v20  ;;  %v9201_v20 = vld [vmem:[%s10822_s25 + $0x6c] sm:$0xe]  ;;  %v5652_v18 = vrot.slane %v12287_v11, 5 }
 0x184   : > { %10103 = vmatprep.subr.bf16.mxu0 %v12229_v27  ;;  %v9217_v32 = vrot.slane %v9201_v20, 9 }
 0x186   : > { %v12299_v14 = vsel %vm10824_vm4, %v9217_v32, %v5649_v10 }
 0x187   : > { %10182 = vmatmul.mubr.msk.bf16.gmra.mrb[40].mxu1 %vm686_vm3, %v11538_v62  ;;  %v5638_v62 = vrot.slane %v12249_v29, 5 }
 0x188   : > { %10185 = vmatprep.mubr.msk.bf16.mxu1 %vm686_vm3, %v11577_v6  ;;  %v4316_v6 = vrot.slane %v4314_v31, 5  ;;  %v16973_v31 = vld [vmem:[#allocation9_spill] sm:$0xff] }
 0x189   : > { %v12265_v60 = vsel %vm10824_vm4, %v5637_v7, %v5638_v62  ;;  %v4342_v7 = vrot.slane %v4341_v4, 4  ;;  %v4356_v62 = vrot.slane %v4354_v22, 5  ;;  %v9203_v4 = vld [vmem:[%s10822_s25 + $0x84] sm:$0xe] }
 0x18a   : > { %10042 = vmatmul.mubr.msk.bf16.gmra.mrb[36].mxu0 %vm686_vm3, %v11812_v40  ;;  %v4326_v40 = vrot.slane %v4324_v0, 4  ;;  %v4317_v36 = vor.u32 %v4316_v6, %v4313_v48  ;;  %v4362_v0 = vshll.u32 %v9060_v26, 16  ;;  %v9064_v48 = vld [vmem:[%s10822_s25 + $0x40] sm:$0xf]  ;;  %v4368_v6 = vshll.u32 %v9061_v12, 16 }
 0x18b   : > { %10045 = vmatprep.mubr.msk.bf16.mxu0 %vm686_vm3, %v11822_v3  ;;  %v12270_v3 = vld [vmem:[%s10822_s25 + $0x20] sm:$0x1]  ;;  %v5663_v26 = vrot.slane %v12310_v21, 5  ;;  %v9219_v20 = vrot.slane %v9203_v4, 9  ;;  %v12375_v4 = vld [vmem:[%s10822_s25 + $0xa4] sm:$0x1] }
 0x18c   : > { %v4327_v30 = vor.u32 %v4326_v40, %v12257_v17  ;;  %v4330_v1 = vshll.u32 %v12270_v3, 16  ;;  %v4318_v24 = vrot.slane %v4317_v36, 4  ;;  %v4372_v40 = vshrl.u32 %v9061_v12, 16 }
 0x18d   : > { %v4364_v56 = vrot.slane %v4362_v0, 5  ;;  %v4392_v36 = vshll.u32 %v9064_v48, 16  ;;  %v5665_v22 = vrot.slane %v5663_v26, 4  ;;  %v12344_v12 = vsel %vm10824_vm4, %v9219_v20, %v5663_v26 }
 0x18e   : > { %v4328_v35 = vrot.slane %v4327_v30, 4  ;;  %v4332_v57 = vrot.slane %v4330_v1, 5  ;;  %v4396_v30 = vshrl.u32 %v9064_v48, 16  ;;  %v12321_v1 = vld [vmem:[%s10822_s25 + $0x8c] sm:$0x1] }
 0x18f   : > { %10186 = vmatmul.mubr.msk.bf16.gmra.mrb[44].mxu1 %vm686_vm3, %v11716_v59  ;;  %v5651_v59 = vrot.slane %v5649_v10, 4  ;;  %v4323_v10 = vsel %vm10863_vm6, %v4318_v24, %v12257_v17  ;;  %v5666_v32 = vrot.slane %v12321_v1, 5  ;;  %v4365_v39 = vor.u32 %v4364_v56, %v4361_v23  ;;  %v12363_v23 = vld [vmem:[%s10822_s25 + $0xa0] sm:$0xf] }
 0x190   : > { %10189 = vmatprep.mubr.msk.bf16.mxu1 %vm686_vm3, %v11718_v13  ;;  %v4351_v13 = vor.u32 %v4350_v44, %v12273_v5  ;;  %v4386_v44 = vshll.u32 %v9063_v61, 16  ;;  %v12350_v24 = vrot.slane %v4392_v36, 5  ;;  %v4398_v61 = vrot.slane %v4396_v30, 4 }
 0x191   : > { %v12303_v55 = vsel %vm10824_vm4, %v5651_v59, %v5652_v18  ;;  %v12334_v59 = vrot.slane %v4368_v6, 5  ;;  %v4374_v18 = vrot.slane %v4372_v40, 4  ;;  %v12367_v6 = vrot.slane %v4365_v39, 4  ;;  %v9068_v39 = vld [vmem:[%s10822_s25 + $0x50] sm:$0x1] }
 0x192   : > { %10046 = vmatmul.mubr.msk.bf16.gmra.mrb[40].mxu0 %vm686_vm3, %v11867_v42  ;;  %v4352_v51 = vrot.slane %v4351_v13, 4  ;;  %v12339_v13 = vld [vmem:[%s10822_s25 + $0x38] sm:$0x1]  ;;  %v4388_v0 = vrot.slane %v4386_v44, 5  ;;  %v5677_v44 = vrot.slane %v12363_v23, 5  ;;  %v4426_v42 = vshll.u32 %v9068_v39, 16 }
 0x193   : > { %10049 = vmatprep.mubr.msk.bf16.mxu0 %vm686_vm3, %v16973_v31  ;;  %v9065_v31 = vld [vmem:[%s10822_s25 + $0x44] sm:$0x1]  ;;  %v4375_v48 = vor.u32 %v4374_v18, %v12334_v59 }
 0x194   : > { %v4357_v17 = vsel %vm10863_vm6, %v4352_v51, %v4356_v62  ;;  %v4378_v51 = vshll.u32 %v12339_v13, 16  ;;  %v4402_v40 = vshll.u32 %v9065_v31, 16  ;;  %v4440_v31 = vshll.u32 %v12240_v45, 16 }
 0x197   : > { %10190 = vmatmul.mubr.msk.bf16.gmra.mrb[48].mxu1 %vm686_vm3, %v11738_v16  ;;  %v4333_v16 = vsel %vm10863_vm6, %v4328_v35, %v4332_v57  ;;  %v9067_v57 = vld [vmem:[%s10822_s25 + $0x4c] sm:$0xf]  ;;  %v9073_v35 = vld [vmem:[%s10822_s25 + $0x64] sm:$0xf] }
 0x198   : > { %10193 = vmatprep.mubr.msk.bf16.mxu1 %vm686_vm3, %v11740_v33  ;;  %v4347_v33 = vsel %vm10863_vm6, %v4342_v7, %v12273_v5  ;;  %v12348_v5 = vsel %vm10824_vm4, %v5665_v22, %v5666_v32  ;;  %v12356_v7 = vcombine.low %v4323_v10, %v4333_v16  ;;  %v4399_v10 = vor.u32 %v4398_v61, %v12350_v24 }
 0x199   : > { %v12358_v62 = vcombine.low %v4347_v33, %v4357_v17  ;;  %v4416_v30 = vshll.u32 %v9067_v57, 16  ;;  %v4420_v16 = vshrl.u32 %v9067_v57, 16  ;;  %v5679_v22 = vrot.slane %v5677_v44, 4 }
 0x19a   : > { %10050 = vmatmul.mubr.msk.bf16.gmra.mrb[44].mxu0 %vm686_vm3, %v11923_v52  ;;  %v4385_v52 = vrot.slane %v4383_v2, 4  ;;  %v9069_v2 = vld [vmem:[%s10822_s25 + $0x54] sm:$0xf]  ;;  %v5680_v32 = vrot.slane %v12375_v4, 5  ;;  %v4376_v33 = vrot.slane %v4375_v48, 4  ;;  %v4404_v57 = vrot.slane %v4402_v40, 5 }
 0x19b   : > { %10053 = vmatprep.mubr.msk.bf16.mxu0 %vm686_vm3, %v11932_v41  ;;  %v9066_v41 = vld [vmem:[%s10822_s25 + $0x48] sm:$0xf]  ;;  %v4431_v17 = vshrl.u32 %v9069_v2, 16  ;;  %v4434_v18 = vshll.u32 %v9069_v2, 16 }
 0x19c   : > { %v4407_v56 = vshrl.u32 %v9066_v41, 16  ;;  %v4389_v26 = vor.u32 %v4388_v0, %v4385_v52  ;;  %v4410_v36 = vshll.u32 %v9066_v41, 16  ;;  %v4444_v52 = vshrl.u32 %v12240_v45, 16  ;;  %v9072_v0 = vld [vmem:[%s10822_s25 + $0x60] sm:$0xf] }
 0x19d   : > { %v4422_v45 = vrot.slane %v4420_v16, 4  ;;  %v4436_v40 = vrot.slane %v4434_v18, 5  ;;  %v4464_v16 = vshll.u32 %v9073_v35, 16  ;;  %v9207_v18 = vld [vmem:[%s10822_s25 + $0xb4] sm:$0xe] }
 0x19e   : > { %v4390_v41 = vrot.slane %v4389_v26, 4  ;;  %v4409_v48 = vrot.slane %v4407_v56, 4  ;;  %v4412_v2 = vrot.slane %v4410_v36, 5  ;;  %v12405_v56 = vrot.slane %v4440_v31, 5  ;;  %v9074_v31 = vld [vmem:[%s10822_s25 + $0x68] sm:$0x1] }
 0x19f   : > { %10194 = vmatmul.mubr.msk.bf16.gmra.mrb[52].mxu1 %vm686_vm3, %v11960_v37  ;;  %v9205_v37 = vld [vmem:[%s10822_s25 + $0x9c] sm:$0xe]  ;;  %v4446_v26 = vrot.slane %v4444_v52, 4  ;;  %v4371_v36 = vsel %vm10863_vm6, %v12367_v6, %v12334_v59  ;;  %v9223_v52 = vrot.slane %v9207_v18, 9  ;;  %v4450_v6 = vshll.u32 %v12249_v29, 16 }
 0x1a0   : > { %10197 = vmatprep.mubr.msk.bf16.mxu1 %vm686_vm3, %v11976_v47  ;;  %v9221_v20 = vrot.slane %v9205_v37, 9  ;;  %v4380_v47 = vrot.slane %v4378_v51, 5  ;;  %v4400_v51 = vrot.slane %v4399_v10, 4  ;;  %v12397_v37 = vrot.slane %v4416_v30, 5 }
 0x1a1   : > { %v4413_v39 = vor.u32 %v4412_v2, %v4409_v48  ;;  %v4447_v48 = vor.u32 %v4446_v26, %v12405_v56 }
 0x1a2   : > { %10054 = vmatmul.mubr.msk.bf16.gmra.mrb[48].mxu0 %vm686_vm3, %v11987_v15  ;;  %v12389_v61 = vsel %vm10824_vm4, %v9221_v20, %v5677_v44  ;;  %v12393_v15 = vsel %vm10824_vm4, %v5679_v22, %v5680_v32  ;;  %v4433_v44 = vrot.slane %v4431_v17, 4  ;;  %v4455_v20 = vshrl.u32 %v9072_v0, 16  ;;  %v12401_v32 = vld [vmem:[%s10822_s25 + $0xb8] sm:$0xf]  ;;  %v12417_v17 = vld [vmem:[%s10822_s25 + $0xbc] sm:$0x1] }
 0x1a3   : > { %10057 = vmatprep.mubr.msk.bf16.mxu0 %vm686_vm3, %v11992_v34  ;;  %16974 = vst [vmem:[#allocation13_spill] sm:$0xff] %v12393_v15  ;;  %v4458_v22 = vshll.u32 %v9072_v0, 16  ;;  %v5691_v10 = vrot.slane %v12401_v32, 5  ;;  %v4381_v30 = vsel %vm10863_vm6, %v4376_v33, %v4380_v47  ;;  %v4423_v59 = vor.u32 %v4422_v45, %v12397_v37  ;;  %v9075_v47 = vld [vmem:[%s10822_s25 + $0x6c] sm:$0xf] }
 0x1a4   : > { %v4457_v34 = vrot.slane %v4455_v20, 4  ;;  %v12438_v45 = vrot.slane %v4464_v16, 5  ;;  %v4474_v20 = vshll.u32 %v9074_v31, 16  ;;  %v4479_v26 = vshrl.u32 %v9075_v47, 16  ;;  %v9209_v31 = vld [vmem:[%s10822_s25 + $0xcc] sm:$0xe] }
 0x1a5   : > { %v5693_v0 = vrot.slane %v5691_v10, 4  ;;  %v4460_v33 = vrot.slane %v4458_v22, 5  ;;  %v12432_v2 = vsel %vm10824_vm4, %v9223_v52, %v5691_v10  ;;  %v12449_v10 = vrot.slane %v4413_v39, 4 }
 0x1a6   : > { %16975 = vst [vmem:[#allocation2_spill] sm:$0xff] %v12432_v2  ;;  %v12451_v16 = vrot.slane %v4423_v59, 4  ;;  %v12470_v39 = vrot.slane %v4474_v20, 5  ;;  %v4481_v52 = vrot.slane %v4479_v26, 4  ;;  %v9081_v20 = vld [vmem:[%s10822_s25 + $0x84] sm:$0xf] }
 0x1a7   : > { %10198 = vmatmul.mubr.msk.bf16.gmra.mrb[56].mxu1 %vm686_vm3, %v12012_v8  ;;  %v4468_v8 = vshrl.u32 %v9073_v35, 16  ;;  %v4437_v35 = vor.u32 %v4436_v40, %v4433_v44  ;;  %v4395_v44 = vsel %vm10863_vm6, %v4390_v41, %v12350_v24  ;;  %v4405_v40 = vsel %vm10863_vm6, %v4400_v51, %v4404_v57  ;;  %v6994_v2 = vld [vmem:[%s12559_s29 + $0x48] sm:$0xff] }
 0x1a8   : > { %10201 = vmatprep.mubr.msk.bf16.mxu1 %vm686_vm3, %v12014_v63  ;;  %v5694_v63 = vrot.slane %v12417_v17, 5  ;;  %v4461_v18 = vor.u32 %v4460_v33, %v4457_v34  ;;  %v12462_v41 = vrot.slane %v4450_v6, 5  ;;  %v4482_v57 = vshll.u32 %v9075_v47, 16 }
 0x1a9   : > { %v4470_v29 = vrot.slane %v4468_v8, 4  ;;  %v12453_v8 = vrot.slane %v4426_v42, 5  ;;  %v12460_v24 = vrot.slane %v4437_v35, 4  ;;  %v4448_v42 = vrot.slane %v4447_v48, 4 }
 0x1aa   : > { %10058 = vmatmul.mubr.msk.bf16.gmra.mrb[52].mxu0 %vm686_vm3, %v12018_v38  ;;  %v12436_v38 = vsel %vm10824_vm4, %v5693_v0, %v5694_v63  ;;  %v9078_v0 = vld [vmem:[%s10822_s25 + $0x78] sm:$0xf]  ;;  %v9225_v63 = vrot.slane %v9209_v31, 9  ;;  %v4419_v33 = vsel %vm10863_vm6, %v12449_v10, %v12397_v37  ;;  %v4462_v35 = vrot.slane %v4461_v18, 4 }
 0x1ab   : > { %10061 = vmatprep.mubr.msk.bf16.mxu0 %vm686_vm3, %v12023_v46  ;;  %16976 = vst [vmem:[#allocation10_spill] sm:$0xff] %v12436_v38  ;;  %v12442_v46 = vcombine.low %v4371_v36, %v4381_v30  ;;  %v12456_v36 = vld [vmem:[%s10822_s25 + $0xd0] sm:$0xf]  ;;  %v12467_v30 = vcombine.low %v4395_v44, %v4405_v40  ;;  %v4471_v34 = vor.u32 %v4470_v29, %v12438_v45  ;;  %v4488_v48 = vshll.u32 %v12276_v9, 16  ;;  %v12490_v29 = vld [vmem:[%s10822_s25 + $0x7c] sm:$0xf] }
 0x1ac   : > { %v5705_v51 = vrot.slane %v12456_v36, 5  ;;  %v4429_v47 = vsel %vm10863_vm6, %v12451_v16, %v12453_v8  ;;  %v4492_v44 = vshrl.u32 %v12276_v9, 16  ;;  %v4503_v10 = vshrl.u32 %v9078_v0, 16 }
 0x1ad   : > { %v4472_v26 = vrot.slane %v4471_v34, 4  ;;  %v4506_v16 = vshll.u32 %v9078_v0, 16  ;;  %v4516_v9 = vshrl.u32 %v12490_v29, 16  ;;  %v4527_v18 = vshrl.u32 %v9081_v20, 16 }
 0x1ae   : > { %v5707_v59 = vrot.slane %v5705_v51, 4  ;;  %v12498_v37 = vsel %vm10824_vm4, %v9225_v63, %v5705_v51  ;;  %v4443_v51 = vsel %vm10863_vm6, %v12460_v24, %v12405_v56  ;;  %v4453_v34 = vsel %vm10863_vm6, %v4448_v42, %v12462_v41  ;;  %v10714_v63 = vld [vmem:[%s10822_s25 + $0x18] sm:$0xff]   ;;  %v9084_v56 = vld [vmem:[%s10822_s25 + $0x90] sm:$0xf]  ;;  %v12534_v41 = vld [vmem:[%s10822_s25 + $0x80] sm:$0x1] }
 0x1af   : > { %10202 = vmatmul.mubr.msk.bf16.gmra.mrb[60].mxu1 %vm686_vm3, %v12043_v19  ;;  %v12473_v19 = vld [vmem:[%s10822_s25 + $0xd4] sm:$0x1]  ;;  %16977 = vst [vmem:[#allocation8_spill] sm:$0xff] %v12498_v37  ;;  %v4536_v31 = vshll.u32 %v12310_v21, 16  ;;  %v4540_v0 = vshrl.u32 %v12310_v21, 16  ;;  %v4498_v8 = vshll.u32 %v12287_v11, 16  ;;  %v4467_v21 = vsel %vm10863_vm6, %v4462_v35, %v12438_v45 }
 0x1b0   : > { %10207 = vmatprep.mubr.msk.bf16.mxu1 %vm686_vm3, %v12356_v7  ;;  %v5708_v6 = vrot.slane %v12473_v19, 5  ;;  %v4477_v24 = vsel %vm10863_vm6, %v4472_v26, %v12470_v39  ;;  %v4505_v42 = vrot.slane %v4503_v10, 4  ;;  %v4551_v39 = vshrl.u32 %v9084_v56, 16 }
 0x1b1   : > { %v12543_v45 = vrot.slane %v4536_v31, 5  ;;  %v4542_v35 = vrot.slane %v4540_v0, 4  ;;  %v4554_v26 = vshll.u32 %v9084_v56, 16  ;;  %v12547_v10 = vcombine.low %v4419_v33, %v4429_v47 }
 0x1b2   : > { %10062 = vmatmul.mubr.msk.bf16.gmra.mrb[56].mxu0 %vm686_vm3, %v12048_v53  ;;  %v4484_v53 = vrot.slane %v4482_v57, 5  ;;  %v12502_v40 = vsel %vm10824_vm4, %v5707_v59, %v5708_v6  ;;  %v4530_v57 = vshll.u32 %v9081_v20, 16  ;;  %v12520_v6 = vrot.slane %v4488_v48, 5 }
 0x1b3   : > { %10065 = vmatprep.mubr.msk.bf16.mxu0 %vm686_vm3, %v12053_v50  ;;  %16978 = vst [vmem:[#allocation15_spill] sm:$0xff] %v12502_v40  ;;  %v4512_v50 = vshll.u32 %v12490_v29, 16  ;;  %v4494_v20 = vrot.slane %v4492_v44, 4  ;;  %v4529_v48 = vrot.slane %v4527_v18, 4  ;;  %v12539_v44 = vld [vmem:[%s10822_s25 + $0x94] sm:$0xf]  ;;  %v4543_v56 = vor.u32 %v4542_v35, %v12543_v45 }
 0x1b4   : > { %v4485_v59 = vor.u32 %v4484_v53, %v4481_v52  ;;  %v4508_v52 = vrot.slane %v4506_v16, 5  ;;  %v4532_v53 = vrot.slane %v4530_v57, 5  ;;  %v12549_v16 = vcombine.low %v4443_v51, %v4453_v34  ;;  %v9087_v57 = vld [vmem:[%s10822_s25 + $0x9c] sm:$0xf]  ;;  %v6991_v51 = vld [vmem:[%s12559_s29 + $0x20] sm:$0xff] }
 0x1b5   : > { %v12536_v11 = vrot.slane %v4512_v50, 5  ;;  %v12563_v18 = vrot.slane %v4498_v8, 5  ;;  %v4522_v47 = vshll.u32 %v12534_v41, 16  ;;  %v6989_v34 = vld [vmem:[%s12559_s29] sm:$0xff]  ;;  %v4546_v0 = vshll.u32 %v12321_v1, 16  ;;  %7057 = vrot.lane.b32.xlu1 %v6991_v51, %s10771_s30  ;;  %v10718_v1 = vld [vmem:[%s10822_s25 + $0x30] sm:$0xff]  }
 0x1b6   : > { %v12551_v50 = vrot.slane %v4485_v59, 4  ;;  %v4509_v33 = vor.u32 %v4508_v52, %v4505_v42  ;;  %v4564_v59 = vshrl.u32 %v12539_v44, 16  ;;  %7053 = vrot.lane.b32.xlu0 %v6989_v34, %s10771_s30  ;;  %v10716_v8 = vld [vmem:[%s10822_s25 + $0x24] sm:$0xff]   ;;  %v4578_v35 = vshll.u32 %v9087_v57, 16  ;;  %v17050_v58 = vld [vmem:[#allocation8_spill] sm:$0xff] }
 0x1b7   : > { %10208 = vmatmul.mubr.msk.bf16.vlgmr.msra.gmra.mrb[32].mxu1 %vm686_vm3, %v12358_v62  ;;  %v6992_v42 = vld [vmem:[%s12559_s29 + $0x28] sm:$0xff]  ;;  %v4584_v34 = vshll.u32 %v12363_v23, 16  ;;  %v4588_v22 = vshrl.u32 %v12363_v23, 16 }
 0x1b8   : > { %10240 = vmatpush3.bf16.msra.mxu1 %v12211_v28  ;;  %10211 = vmatprep.mubr.msk.bf16.mxu1 %vm686_vm3, %v12442_v46  ;;  %v4518_v28 = vrot.slane %v4516_v9, 4  ;;  %v4495_v9 = vor.u32 %v4494_v20, %v12520_v6  ;;  %v4533_v20 = vor.u32 %v4532_v53, %v4529_v48  ;;  %v6990_v52 = vld [vmem:[%s12559_s29 + $0x8] sm:$0xff]  ;;  %v12589_v48 = vld [vmem:[%s10822_s25 + $0x98] sm:$0x1]  ;;  %v4575_v53 = vshrl.u32 %v9087_v57, 16 }
 0x1b9   : > { %v4566_v37 = vrot.slane %v4564_v59, 4  ;;  %v12603_v57 = vld [vmem:[%s10822_s25 + $0xac] sm:$0xf]  ;;  %7059 = vrot.lane.b32.xlu1 %v6992_v42, %s10771_s30  ;;  %v4570_v23 = vshll.u32 %v12589_v48, 16  ;;  %v4599_v59 = vshrl.u32 %v9090_v49, 16  ;;  %v4602_v42 = vshll.u32 %v9090_v49, 16 }
 0x1ba   : > { %10066 = vmatmul.mubr.msk.bf16.gmra.mrb[60].mxu0 %vm686_vm3, %v12072_v54  ;;  %v12561_v54 = vcombine.low %v4467_v21, %v4477_v24  ;;  %v4519_v31 = vor.u32 %v4518_v28, %v12536_v11  ;;  %v4553_v21 = vrot.slane %v4551_v39, 4  ;;  %v4556_v24 = vrot.slane %v4554_v26, 5  ;;  %7055 = vrot.lane.b32.xlu0 %v6990_v52, %s10771_s30 }
 0x1bb   : > { %10071 = vmatprep.mubr.msk.bf16.mxu0 %vm686_vm3, %v10714_v63  ;;  %v4560_v63 = vshll.u32 %v12539_v44, 16  ;;  %v12586_v51 = vrot.slane %v4495_v9, 4  ;;  %v12593_v39 = vrot.slane %v4509_v33, 4  ;;  %v12595_v26 = vrot.slane %v4522_v47, 5 }
 0x1bc   : > { %v4520_v9 = vrot.slane %v4519_v31, 4  ;;  %v4548_v28 = vrot.slane %v4546_v0, 5  ;;  %v4534_v33 = vrot.slane %v4533_v20, 4  ;;  %v4544_v47 = vrot.slane %v4543_v56, 4  ;;  %v6993_v31 = vld [vmem:[%s12559_s29 + $0x40] sm:$0xff] }
 0x1bd   : > { %v12600_v40 = vrot.slane %v4560_v63, 5  ;;  %v4557_v38 = vor.u32 %v4556_v24, %v4553_v21  ;;  %v4577_v0 = vrot.slane %v4575_v53, 4  ;;  %v4580_v63 = vrot.slane %v4578_v35, 5  ;;  %v10719_v21 = vld [vmem:[%s10822_s25 + $0x3c] sm:$0xff]   ;;  %7063 = vrot.lane.b32.xlu1 %v6994_v2, %s10771_s30  ;;  %v10720_v35 = vld [vmem:[%s10822_s25 + $0x48] sm:$0xff]  }
 0x1be   : > { %v12613_v52 = vrot.slane %v4584_v34, 5  ;;  %v4608_v20 = vshll.u32 %v12603_v57, 16  ;;  %v4612_v56 = vshrl.u32 %v12603_v57, 16  ;;  %v4515_v49 = vsel %vm10863_vm6, %v12593_v39, %v12536_v11  ;;  %7061 = vrot.lane.b32.xlu0 %v6993_v31, %s10771_s30  ;;  %v12641_v11 = vld [vmem:[%s10822_s25 + $0xb0] sm:$0x1]  ;;  %v12647_v2 = vld [vmem:[%s12559_s29 + $0x60] sm:$0xff] }
 0x1bf   : > { %10212 = vmatmul.mubr.msk.bf16.gmra.mrb[36].mxu1 %vm686_vm3, %v12467_v30  ;;  %v4567_v24 = vor.u32 %v4566_v37, %v12600_v40  ;;  %v12638_v53 = vrot.slane %v4570_v23, 5  ;;  %v12644_v37 = vld [vmem:[%s12559_s29 + $0x68] sm:$0xff]  ;;  %16980 = vst [vmem:[#allocation16_spill] sm:$0xff] %v12647_v2  ;;  %v12652_v39 = vrot.slane %v4557_v38, 4  ;;  %v4604_v34 = vrot.slane %v4602_v42, 5 }
 0x1c0   : > { %10215 = vmatprep.mubr.msk.bf16.mxu1 %vm686_vm3, %v12547_v10  ;;  %16979 = vst [vmem:[#allocation12_spill] sm:$0xff] %v12644_v37  ;;  %v4618_v38 = vshll.u32 %v12641_v11, 16 }
 0x1c1   : > { %v12660_v23 = vrot.slane %v4567_v24, 4  ;;  %7067 = vrot.lane.b32.xlu1 %v12644_v37, %s10771_s30  ;;  %v10721_v24 = vld [vmem:[%s10822_s25 + $0x54] sm:$0xff]  }
 0x1c2   : > { %10072 = vmatmul.mubr.msk.bf16.vlgmr.msra.gmra.mrb[32].mxu0 %vm686_vm3, %v10716_v8  ;;  %v4590_v8 = vrot.slane %v4588_v22, 4  ;;  %v9093_v22 = vld [vmem:[%s10822_s25 + $0xb4] sm:$0xf]  ;;  %7065 = vrot.lane.b32.xlu0 %v12647_v2, %s10771_s30 }
 0x1c3   : > { %10104 = vmatpush3.bf16.msra.mxu0 %v12229_v27  ;;  %10075 = vmatprep.mubr.msk.bf16.mxu0 %vm686_vm3, %v10718_v1  ;;  %v4501_v27 = vsel %vm10863_vm6, %v12586_v51, %v12563_v18  ;;  %v4525_v1 = vsel %vm10863_vm6, %v4520_v9, %v12595_v26  ;;  %v4539_v18 = vsel %vm10863_vm6, %v4534_v33, %v12543_v45  ;;  %v4594_v26 = vshll.u32 %v12375_v4, 16 }
 0x1c4   : > { %v4549_v51 = vsel %vm10863_vm6, %v4544_v47, %v4548_v28  ;;  %v4601_v45 = vrot.slane %v4599_v59, 4  ;;  %v4581_v28 = vor.u32 %v4580_v63, %v4577_v0  ;;  %v4591_v9 = vor.u32 %v4590_v8, %v12613_v52  ;;  %v12682_v8 = vld [vmem:[%s12559_s29 + $0x88] sm:$0xff] }
 0x1c5   : > { %v12658_v33 = vrot.slane %v4608_v20, 5  ;;  %v4614_v47 = vrot.slane %v4612_v56, 4  ;;  %v4623_v31 = vshrl.u32 %v9093_v22, 16  ;;  %v4626_v15 = vshll.u32 %v9093_v22, 16  ;;  %16983 = vst [vmem:[#allocation11_spill] sm:$0xff] %v12682_v8  ;;  %v12685_v20 = vld [vmem:[%s12559_s29 + $0x80] sm:$0xff]  ;;  %7071 = vrot.lane.b32.xlu1 %v12682_v8, %s10771_s30 }
 0x1c6   : > { %v16982_v0 = vsel %vm10863_vm6, %v12551_v50, %v12520_v6  ;;  %v12677_v59 = vcombine.low %v4515_v49, %v4525_v1  ;;  %v12679_v42 = vcombine.low %v4539_v18, %v4549_v51  ;;  %16984 = vst [vmem:[#allocation5_spill] sm:$0xff] %v12685_v20  ;;  %v4605_v6 = vor.u32 %v4604_v34, %v4601_v45  ;;  %v9096_v49 = vld [vmem:[%s10822_s25 + $0xc0] sm:$0xf]  ;;  %v12710_v34 = vld [vmem:[%s10822_s25 + $0xc4] sm:$0xf] }
 0x1c7   : > { %10216 = vmatmul.mubr.msk.bf16.gmra.mrb[40].mxu1 %vm686_vm3, %v12549_v16  ;;  %v12675_v63 = vcombine.low %v16982_v0, %v4501_v27  ;;  %v4632_v50 = vshll.u32 %v12401_v32, 16  ;;  %v4636_v27 = vshrl.u32 %v12401_v32, 16  ;;  %v4582_v1 = vrot.slane %v4581_v28, 4  ;;  %7069 = vrot.lane.b32.xlu0 %v12685_v20, %s10771_s30 }
 0x1c8   : > { %10219 = vmatprep.mubr.msk.bf16.mxu1 %vm686_vm3, %v12561_v54  ;;  %v4592_v18 = vrot.slane %v4591_v9, 4  ;;  %v4596_v51 = vrot.slane %v4594_v26, 5  ;;  %v12707_v32 = vrot.slane %v4618_v38, 5  ;;  %v4628_v45 = vrot.slane %v4626_v15, 5  ;;  %v10722_v38 = vld [vmem:[%s10822_s25 + $0x60] sm:$0xff]  }
 0x1c9   : > { %v4647_v9 = vshrl.u32 %v9096_v49, 16  ;;  %v12729_v20 = vrot.slane %v4632_v50, 5  ;;  %v4638_v8 = vrot.slane %v4636_v27, 4  ;;  %v4642_v27 = vshll.u32 %v12417_v17, 16  ;;  %v12756_v17 = vld [vmem:[%s12559_s29 + $0xc8] sm:$0xff] }
 0x1ca   : > { %10076 = vmatmul.mubr.msk.bf16.gmra.mrb[36].mxu0 %vm686_vm3, %v10719_v21  ;;  %v12668_v4 = vpop.f32.mrb[0].mxu1  ;;  %v4563_v21 = vsel %vm10863_vm6, %v12652_v39, %v12600_v40  ;;  %v4573_v40 = vsel %vm10863_vm6, %v12660_v23, %v12638_v53  ;;  %v4625_v39 = vrot.slane %v4623_v31, 4  ;;  %v4650_v53 = vshll.u32 %v9096_v49, 16  ;;  %v12724_v23 = vld [vmem:[%s12559_s29 + $0xa0] sm:$0xff]  ;;  %16991 = vst [vmem:[#allocation9_spill] sm:$0xff] %v12756_v17 }
 0x1cb   : > { %16981 = vst [vmem:[#allocation14_spill] sm:$0xff] %v12668_v4  ;;  %10079 = vmatprep.mubr.msk.bf16.mxu0 %vm686_vm3, %v10720_v35  ;;  %v12688_v56 = vpop.f32.mrb[1].mxu1  ;;  %v4615_v35 = vor.u32 %v4614_v47, %v12658_v33  ;;  %v12721_v47 = vld [vmem:[%s12559_s29 + $0xa8] sm:$0xff]  ;;  %16989 = vst [vmem:[#allocation7_spill] sm:$0xff] %v12724_v23  ;;  %v4606_v31 = vrot.slane %v4605_v6, 4  ;;  %v4587_v6 = vsel %vm10863_vm6, %v4582_v1, %v12613_v52  ;;  %7073 = vrot.lane.b32.xlu0 %v12724_v23, %s10771_s30 }
 0x1cc   : > { %16985 = vst [vmem:[#allocation3_spill] sm:$0xff] %v12688_v56  ;;  %v12698_v22 = vpop.f32.mrb[2].mxu1  ;;  %v6078_v26 = vsel %vm6008_vm7, %v12688_v56, 0.0  ;;  %16988 = vst [vmem:[#allocation18_spill] sm:$0xff] %v12721_v47  ;;  %v6081_v56 = vsel %vm6008_vm7, %v12668_v4, 0.0  ;;  %v4597_v50 = vsel %vm10863_vm6, %v4592_v18, %v4596_v51  ;;  %7075 = vrot.lane.b32.xlu1 %v12721_v47, %s10771_s30  ;;  %v4629_v1 = vor.u32 %v4628_v45, %v4625_v39 }
 0x1cd   : > { %16986 = vst [vmem:[#allocation4_spill] sm:$0xff] %v12698_v22  ;;  %v12701_v0 = vpop.f32.mrb[3].mxu1  ;;  %v4616_v49 = vrot.slane %v4615_v35, 4  ;;  %v12744_v4 = vld [vmem:[%s10822_s25 + $0xc8] sm:$0x1]  ;;  %v4649_v18 = vrot.slane %v4647_v9, 4  ;;  %v12764_v47 = vcombine.low %v4563_v21, %v4573_v40  ;;  %v4639_v39 = vor.u32 %v4638_v8, %v12729_v20 }
 0x1ce   : > { %16987 = vst [vmem:[#allocation17_spill] sm:$0xff] %v12701_v0  ;;  %v6079_v28 = vsel %vm6008_vm7, %v12701_v0, 0.0  ;;  %v4656_v0 = vshll.u32 %v12710_v34, 16  ;;  %v4652_v51 = vrot.slane %v4650_v53, 5  ;;  %v12759_v35 = vld [vmem:[%s12559_s29 + $0xc0] sm:$0xff] }
 0x1cf   : > { %v6080_v15 = vadd.f32 %v6079_v28, %v6078_v26  ;;  %10220 = vmatmul.mubr.msk.bf16.gmra.mrb[44].mxu1 %vm686_vm3, %v12675_v63  ;;  %v4660_v26 = vshrl.u32 %v12710_v34, 16  ;;  %16992 = vst [vmem:[#allocation19_spill] sm:$0xff] %v12759_v35  ;;  %v9099_v45 = vld [vmem:[%s10822_s25 + $0xcc] sm:$0xf]  ;;  %7077 = vrot.lane.b32.xlu0 %v12759_v35, %s10771_s30  ;;  %v10724_v35 = vld [vmem:[%s10822_s25 + $0x78] sm:$0xff]  }
 0x1d0   : > { %10223 = vmatprep.mubr.msk.bf16.mxu1 %vm686_vm3, %v12677_v59  ;;  %7079 = vrot.lane.b32.xlu1 %v12756_v17, %s10771_s30  ;;  %v4674_v2 = vshll.u32 %v9099_v45, 16 }
 0x1d1   : > { %v6082_v28 = vadd.f32 %v6081_v56, %v6080_v15  ;;  %v6083_v56 = vsel %vm6008_vm7, %v12698_v22, 0.0  ;;  %v12778_v22 = vrot.slane %v4656_v0, 5  ;;  %v4662_v21 = vrot.slane %v4660_v26, 4 }
 0x1d2   : > { %10080 = vmatmul.mubr.msk.bf16.gmra.mrb[40].mxu0 %vm686_vm3, %v10721_v24  ;;  %v12753_v52 = vpop.f32.mrb[4].mxu1  ;;  %v4611_v24 = vsel %vm10863_vm6, %v4606_v31, %v12658_v33  ;;  %v10723_v31 = vld [vmem:[%s10822_s25 + $0x6c] sm:$0xff]   ;;  %v4671_v26 = vshrl.u32 %v9099_v45, 16 }
 0x1d3   : > { %16990 = vst [vmem:[#allocation6_spill] sm:$0xff] %v12753_v52  ;;  %10083 = vmatprep.mubr.msk.bf16.mxu0 %vm686_vm3, %v10722_v38  ;;  %v12762_v15 = vpop.f32.mrb[5].mxu1  ;;  %v6084_v23 = vadd.f32 %v6083_v56, %v6082_v28  ;;  %v4621_v38 = vsel %vm10863_vm6, %v4616_v49, %v12707_v32  ;;  %v12785_v28 = vcombine.low %v4587_v6, %v4597_v50  ;;  %v12787_v56 = vrot.slane %v4642_v27, 5  ;;  %v12801_v6 = vld [vmem:[%s12559_s29 + $0xe8] sm:$0xff]  ;;  %v12804_v50 = vld [vmem:[%s12559_s29 + $0xe0] sm:$0xff] }
 0x1d4   : > { %16993 = vst [vmem:[#allocation20_spill] sm:$0xff] %v12762_v15  ;;  %v6085_v9 = vsel %vm6008_vm7, %v12762_v15, 0.0  ;;  %v12773_v53 = vpop.f32.mrb[6].mxu1  ;;  %v4666_v15 = vshll.u32 %v12744_v4, 16  ;;  %v4653_v49 = vor.u32 %v4652_v51, %v4649_v18  ;;  %16998 = vst [vmem:[#allocation25_spill] sm:$0xff] %v12801_v6  ;;  %v12811_v17 = vcombine.low %v4611_v24, %v4621_v38  ;;  %7083 = vrot.lane.b32.xlu1 %v12801_v6, %s10771_s30 }
 0x1d5   : > { %16994 = vst [vmem:[#allocation21_spill] sm:$0xff] %v12773_v53  ;;  %v12780_v40 = vpop.f32.mrb[0].mxu0  ;;  %v6086_v33 = vadd.f32 %v6085_v9, %v6084_v23  ;;  %v12783_v8 = vpop.f32.mrb[7].mxu1  ;;  %v12798_v23 = vrot.slane %v4629_v1, 4  ;;  %16999 = vst [vmem:[#allocation26_spill] sm:$0xff] %v12804_v50  ;;  %v6089_v18 = vsel %vm6008_vm7, %v12753_v52, 0.0  ;;  %7081 = vrot.lane.b32.xlu0 %v12804_v50, %s10771_s30 }
 0x1d6   : > { %16995 = vst [vmem:[#allocation22_spill] sm:$0xff] %v12780_v40  ;;  %16996 = vst [vmem:[#allocation23_spill] sm:$0xff] %v12783_v8  ;;  %v12794_v0 = vpop.f32.mrb[1].mxu0  ;;  %v6087_v32 = vsel %vm6008_vm7, %v12783_v8, 0.0  ;;  %v4680_v8 = vshll.u32 %v12456_v36, 16  ;;  %v12820_v51 = vrot.slane %v4639_v39, 4 }
 0x1d7   : > { %16997 = vst [vmem:[#allocation24_spill] sm:$0xff] %v12794_v0  ;;  %v12806_v27 = vpop.f32.mrb[2].mxu0  ;;  %v6088_v9 = vadd.f32 %v6087_v32, %v6086_v33  ;;  %10224 = vmatmul.mubr.msk.bf16.gmra.mrb[48].mxu1 %vm686_vm3, %v12679_v42  ;;  %v4663_v33 = vor.u32 %v4662_v21, %v12778_v22  ;;  %v4684_v24 = vshrl.u32 %v12456_v36, 16  ;;  %v6009_v45 = vsel %vm6008_vm7, %v12794_v0, 0.0 }
 0x1d8   : > { %17000 = vst [vmem:[#allocation27_spill] sm:$0xff] %v12806_v27  ;;  %v12814_v1 = vpop.f32.mrb[3].mxu0  ;;  %10227 = vmatprep.mubr.msk.bf16.mxu1 %vm686_vm3, %v12764_v47  ;;  %v12828_v37 = vrot.slane %v4666_v15, 5  ;;  %v6091_v36 = vsel %vm6008_vm7, %v12773_v53, 0.0  ;;  %v12839_v52 = vrot.slane %v4653_v49, 4  ;;  %v12845_v15 = vld [vmem:[%s12559_s29 + $0x100] sm:$0xff] }
 0x1d9   : > { %17001 = vst [vmem:[#allocation28_spill] sm:$0xff] %v12814_v1  ;;  %v6010_v38 = vsel %vm6008_vm7, %v12814_v1, 0.0  ;;  %v6090_v32 = vadd.f32 %v6089_v18, %v6088_v9  ;;  %v4673_v1 = vrot.slane %v4671_v26, 4  ;;  %v12842_v9 = vld [vmem:[%s12559_s29 + $0x108] sm:$0xff]  ;;  %v6012_v18 = vsel %vm6008_vm7, %v12780_v40, 0.0  ;;  %7085 = vrot.lane.b32.xlu0 %v12845_v15, %s10771_s30 }
 0x1da   : > { %v6011_v39 = vadd.f32 %v6010_v38, %v6009_v45  ;;  %10084 = vmatmul.mubr.msk.bf16.gmra.mrb[44].mxu0 %vm686_vm3, %v10723_v31  ;;  %v12837_v21 = vpop.f32.mrb[8].mxu1  ;;  %v4676_v38 = vrot.slane %v4674_v2, 5  ;;  %v12852_v53 = vrot.slane %v4680_v8, 5  ;;  %v4664_v50 = vrot.slane %v4663_v33, 4  ;;  %7087 = vrot.lane.b32.xlu1 %v12842_v9, %s10771_s30 }
 0x1db   : > { %17002 = vst [vmem:[#allocation29_spill] sm:$0xff] %v12837_v21  ;;  %10087 = vmatprep.mubr.msk.bf16.mxu0 %vm686_vm3, %v10724_v35  ;;  %v12850_v45 = vpop.f32.mrb[9].mxu1  ;;  %v6092_v31 = vadd.f32 %v6091_v36, %v6090_v32  ;;  %v4686_v6 = vrot.slane %v4684_v24, 4  ;;  %v6014_v35 = vsel %vm6008_vm7, %v12806_v27, 0.0  ;;  %v4635_v8 = vsel %vm10863_vm6, %v12798_v23, %v12729_v20  ;;  %v12883_v23 = vld [vmem:[%s12559_s29 + $0x128] sm:$0xff] }
 0x1dc   : > { %17003 = vst [vmem:[#allocation30_spill] sm:$0xff] %v12850_v45  ;;  %v6013_v0 = vadd.f32 %v6012_v18, %v6011_v39  ;;  %v6093_v49 = vsel %vm6008_vm7, %v12850_v45, 0.0  ;;  %v12856_v26 = vpop.f32.mrb[10].mxu1  ;;  %v10725_v39 = vld [vmem:[%s10822_s25 + $0x84] sm:$0xff]   ;;  %v4645_v18 = vsel %vm10863_vm6, %v12820_v51, %v12787_v56  ;;  %v4690_v20 = vshll.u32 %v12473_v19, 16 }
 0x1dd   : > { %17004 = vst [vmem:[#allocation31_spill] sm:$0xff] %v12856_v26  ;;  %v12860_v40 = vpop.f32.mrb[4].mxu0  ;;  %v6094_v32 = vadd.f32 %v6093_v49, %v6092_v31  ;;  %v12862_v2 = vpop.f32.mrb[11].mxu1  ;;  %v12886_v31 = vld [vmem:[%s12559_s29 + $0x120] sm:$0xff]  ;;  %v4659_v19 = vsel %vm10863_vm6, %v12839_v52, %v12778_v22  ;;  %v4677_v56 = vor.u32 %v4676_v38, %v4673_v1  ;;  %v9194_v1 = vld [vmem:[%s10822_s25 + $0x18] sm:$0xe] }
 0x1de   : > { %17005 = vst [vmem:[#allocation32_spill] sm:$0xff] %v12860_v40  ;;  %17006 = vst [vmem:[#allocation33_spill] sm:$0xff] %v12862_v2  ;;  %v12872_v33 = vpop.f32.mrb[5].mxu0  ;;  %v6015_v24 = vadd.f32 %v6014_v35, %v6013_v0  ;;  %v6095_v36 = vsel %vm6008_vm7, %v12862_v2, 0.0  ;;  %v10726_v2 = vld [vmem:[%s10822_s25 + $0x90] sm:$0xff]   ;;  %7091 = vrot.lane.b32.xlu1 %v12883_v23, %s10771_s30  ;;  %7089 = vrot.lane.b32.xlu0 %v12886_v31, %s10771_s30  ;;  %v9210_v27 = vrot.slane %v9194_v1, 9 }
 0x1df   : > { %17007 = vst [vmem:[#allocation34_spill] sm:$0xff] %v12872_v33  ;;  %17008 = vst [vmem:[#allocation35_spill] sm:$0xff] %v12886_v31  ;;  %v6016_v49 = vsel %vm6008_vm7, %v12872_v33, 0.0  ;;  %v12890_v0 = vpop.f32.mrb[6].mxu0  ;;  %v6096_v35 = vadd.f32 %v6095_v36, %v6094_v32  ;;  %10228 = vmatmul.mubr.msk.bf16.gmra.mrb[52].mxu1 %vm686_vm3, %v12785_v28  ;;  %v6097_v33 = vsel %vm6008_vm7, %v12837_v21, 0.0  ;;  %v4669_v32 = vsel %vm10863_vm6, %v4664_v50, %v12828_v37  ;;  %v10727_v1 = vld [vmem:[%s10822_s25 + $0x9c] sm:$0xff]  }
 0x1e0   : > { %17009 = vst [vmem:[#allocation36_spill] sm:$0xff] %v12890_v0  ;;  %v6017_v51 = vadd.f32 %v6016_v49, %v6015_v24  ;;  %v12899_v45 = vpop.f32.mrb[7].mxu0  ;;  %10231 = vmatprep.mubr.msk.bf16.mxu1 %vm686_vm3, %v12811_v17  ;;  %v4687_v36 = vor.u32 %v4686_v6, %v12852_v53  ;;  %v10745_v38 = vld [vmem:[%s10822_s25 + $0x1c] sm:$0xf]  ;;  %v6099_v37 = vsel %vm6008_vm7, %v12856_v26, 0.0  ;;  %v12922_v50 = vcombine.low %v4635_v8, %v4645_v18 }
 0x1e1   : > { %17010 = vst [vmem:[#allocation37_spill] sm:$0xff] %v12899_v45  ;;  %v6018_v22 = vsel %vm6008_vm7, %v12899_v45, 0.0  ;;  %v6098_v52 = vadd.f32 %v6097_v33, %v6096_v35  ;;  %v5600_v24 = vrot.slane %v10745_v38, 5  ;;  %v12924_v33 = vrot.slane %v4690_v20, 5  ;;  %v12927_v35 = vld [vmem:[%s12559_s29 + $0x148] sm:$0xff]  ;;  %v12930_v38 = vld [vmem:[%s12559_s29 + $0x140] sm:$0xff] }
 0x1e2   : > { %v6019_v49 = vadd.f32 %v6018_v22, %v6017_v51  ;;  %10088 = vmatmul.mubr.msk.bf16.gmra.mrb[48].mxu0 %vm686_vm3, %v10725_v39  ;;  %v12920_v6 = vpop.f32.mrb[12].mxu1  ;;  %17012 = vst [vmem:[#allocation39_spill] sm:$0xff] %v12927_v35  ;;  %17013 = vst [vmem:[#allocation40_spill] sm:$0xff] %v12930_v38  ;;  %v6020_v21 = vsel %vm6008_vm7, %v12860_v40, 0.0  ;;  %v12937_v22 = vcombine.low %v4659_v19, %v4669_v32  ;;  %v4678_v26 = vrot.slane %v4677_v56, 4 }
 0x1e3   : > { %17011 = vst [vmem:[#allocation38_spill] sm:$0xff] %v12920_v6  ;;  %10091 = vmatprep.mubr.msk.bf16.mxu0 %vm686_vm3, %v10726_v2  ;;  %v12935_v51 = vpop.f32.mrb[13].mxu1  ;;  %v6100_v39 = vadd.f32 %v6099_v37, %v6098_v52  ;;  %v4688_v45 = vrot.slane %v4687_v36, 4  ;;  %v6022_v2 = vsel %vm6008_vm7, %v12890_v0, 0.0  ;;  %v5602_v56 = vrot.slane %v5600_v24, 4  ;;  %7095 = vrot.lane.b32.xlu1 %v12927_v35, %s10771_s30 }
 0x1e4   : > { %17014 = vst [vmem:[#allocation41_spill] sm:$0xff] %v12935_v51  ;;  %v6021_v8 = vadd.f32 %v6020_v21, %v6019_v49  ;;  %v6101_v18 = vsel %vm6008_vm7, %v12935_v51, 0.0  ;;  %v12941_v20 = vpop.f32.mrb[14].mxu1  ;;  %v5603_v21 = vrot.slane %v12270_v3, 5  ;;  %7093 = vrot.lane.b32.xlu0 %v12930_v38, %s10771_s30  ;;  %v10746_v37 = vld [vmem:[%s10822_s25 + $0x28] sm:$0xf] }
 0x1e5   : > { %17015 = vst [vmem:[#allocation42_spill] sm:$0xff] %v12941_v20  ;;  %v12945_v40 = vpop.f32.mrb[8].mxu0  ;;  %v6102_v19 = vadd.f32 %v6101_v18, %v6100_v39  ;;  %v12947_v32 = vpop.f32.mrb[15].mxu1  ;;  %v5607_v39 = vrot.slane %v10746_v37, 5  ;;  %v12961_v18 = vld [vmem:[%s12559_s29 + $0x168] sm:$0xff]  ;;  %v12964_v51 = vld [vmem:[%s12559_s29 + $0x160] sm:$0xff] }
 0x1e6   : > { %17016 = vst [vmem:[#allocation43_spill] sm:$0xff] %v12945_v40  ;;  %17017 = vst [vmem:[#allocation44_spill] sm:$0xff] %v12947_v32  ;;  %v12954_v36 = vpop.f32.mrb[9].mxu0  ;;  %v6023_v52 = vadd.f32 %v6022_v2, %v6021_v8  ;;  %v6103_v49 = vsel %vm6008_vm7, %v12947_v32, 0.0  ;;  %v10728_v8 = vld [vmem:[%s10822_s25 + $0xa8] sm:$0xff]   ;;  %v4683_v2 = vsel %vm10863_vm6, %v4678_v26, %v12852_v53 }
 0x1e7   : > { %17018 = vst [vmem:[#allocation45_spill] sm:$0xff] %v12954_v36  ;;  %17019 = vst [vmem:[#allocation46_spill] sm:$0xff] %v12961_v18  ;;  %v6024_v3 = vsel %vm6008_vm7, %v12954_v36, 0.0  ;;  %v12968_v0 = vpop.f32.mrb[10].mxu0  ;;  %v6104_v38 = vadd.f32 %v6103_v49, %v6102_v19  ;;  %10232 = vmatmul.mubr.msk.bf16.gmra.mrb[56].mxu1 %vm686_vm3, %v12922_v50  ;;  %v9195_v37 = vld [vmem:[%s10822_s25 + $0x24] sm:$0xe]  ;;  %v4693_v19 = vsel %vm10863_vm6, %v4688_v45, %v12924_v33  ;;  %7099 = vrot.lane.b32.xlu1 %v12961_v18, %s10771_s30 }
 0x1e8   : > { %17020 = vst [vmem:[#allocation47_spill] sm:$0xff] %v12964_v51  ;;  %17021 = vst [vmem:[#allocation48_spill] sm:$0xff] %v12968_v0  ;;  %v6025_v32 = vadd.f32 %v6024_v3, %v6023_v52  ;;  %v12977_v35 = vpop.f32.mrb[11].mxu0  ;;  %v6105_v36 = vsel %vm6008_vm7, %v12920_v6, 0.0  ;;  %10235 = vmatprep.mubr.msk.bf16.mxu1 %vm686_vm3, %v12937_v22  ;;  %v5601_v49 = vsel %vm10824_vm4, %v9210_v27, %v5600_v24  ;;  %v9196_v3 = vld [vmem:[%s10822_s25 + $0x30] sm:$0xe]  ;;  %7097 = vrot.lane.b32.xlu0 %v12964_v51, %s10771_s30 }
 0x1e9   : > { %17022 = vst [vmem:[#allocation49_spill] sm:$0xff] %v12977_v35  ;;  %v6026_v53 = vsel %vm6008_vm7, %v12977_v35, 0.0  ;;  %v6106_v26 = vadd.f32 %v6105_v36, %v6104_v38  ;;  %v5604_v52 = vsel %vm10824_vm4, %v5602_v56, %v5603_v21  ;;  %v10747_v6 = vld [vmem:[%s10822_s25 + $0x34] sm:$0xf]  ;;  %v6107_v27 = vsel %vm6008_vm7, %v12941_v20, 0.0  ;;  %v13004_v38 = vld [vmem:[%s12559_s29 + $0x188] sm:$0xff] }
 0x1ea   : > { %v5614_v31 = vrot.slane %v10747_v6, 5  ;;  %v6027_v43 = vadd.f32 %v6026_v53, %v6025_v32  ;;  %10092 = vmatmul.mubr.msk.bf16.gmra.mrb[52].mxu0 %vm686_vm3, %v10727_v1  ;;  %v13001_v45 = vpop.f32.mrb[16].mxu1  ;;  %v9211_v24 = vrot.slane %v9195_v37, 9  ;;  %v5609_v33 = vrot.slane %v5607_v39, 4  ;;  %17024 = vst [vmem:[#allocation51_spill] sm:$0xff] %v13004_v38  ;;  %v13007_v6 = vld [vmem:[%s12559_s29 + $0x180] sm:$0xff] }
 0x1eb   : > { %17023 = vst [vmem:[#allocation50_spill] sm:$0xff] %v13001_v45  ;;  %17025 = vst [vmem:[#allocation52_spill] sm:$0xff] %v13007_v6  ;;  %v6028_v56 = vsel %vm6008_vm7, %v12945_v40, 0.0  ;;  %10095 = vmatprep.mubr.msk.bf16.mxu0 %vm686_vm3, %v10728_v8  ;;  %v13012_v21 = vpop.f32.mrb[17].mxu1  ;;  %v6108_v32 = vadd.f32 %v6107_v27, %v6106_v26  ;;  %v13014_v36 = vcombine.low %v4683_v2, %v4693_v19  ;;  %v10748_v1 = vld [vmem:[%s10822_s25 + $0x2c] sm:$0x1]  ;;  %7103 = vrot.lane.b32.xlu1 %v13004_v38, %s10771_s30 }
 0x1ec   : > { %17026 = vst [vmem:[#allocation53_spill] sm:$0xff] %v13012_v21  ;;  %v5610_v53 = vrot.slane %v10748_v1, 5  ;;  %v6029_v20 = vadd.f32 %v6028_v56, %v6027_v43  ;;  %v6109_v37 = vsel %vm6008_vm7, %v13012_v21, 0.0  ;;  %v13019_v35 = vpop.f32.mrb[18].mxu1  ;;  %v9228_v51 = vcombine.low %v5601_v49, %v5604_v52  ;;  %7101 = vrot.lane.b32.xlu0 %v13007_v6, %s10771_s30 }
 0x1ed   : > { %17027 = vst [vmem:[#allocation54_spill] sm:$0xff] %v13019_v35  ;;  %v9212_v40 = vrot.slane %v9196_v3, 9  ;;  %v6030_v8 = vsel %vm6008_vm7, %v12968_v0, 0.0  ;;  %v13023_v18 = vpop.f32.mrb[12].mxu0  ;;  %v6110_v2 = vadd.f32 %v6109_v37, %v6108_v32  ;;  %v13025_v19 = vpop.f32.mrb[19].mxu1  ;;  %v5616_v26 = vrot.slane %v5614_v31, 4 }
 0x1ee   : > { %17028 = vst [vmem:[#allocation55_spill] sm:$0xff] %v13023_v18  ;;  %17029 = vst [vmem:[#allocation56_spill] sm:$0xff] %v13025_v19  ;;  %v5617_v43 = vrot.slane %v12339_v13, 5  ;;  %v13032_v49 = vpop.f32.mrb[13].mxu0  ;;  %v6031_v52 = vadd.f32 %v6030_v8, %v6029_v20  ;;  %v10729_v3 = vld [vmem:[%s10822_s25 + $0xb4] sm:$0xff]   ;;  %v6111_v27 = vsel %vm6008_vm7, %v13025_v19, 0.0  ;;  %v5608_v56 = vsel %vm10824_vm4, %v9211_v24, %v5607_v39 }
 0x1ef   : > { %17030 = vst [vmem:[#allocation57_spill] sm:$0xff] %v13032_v49  ;;  %v13040_v32 = vld [vmem:[%s12559_s29 + $0x1a8] sm:$0xff]  ;;  %v13043_v13 = vld [vmem:[%s12559_s29 + $0x1a0] sm:$0xff]  ;;  %v6032_v1 = vsel %vm6008_vm7, %v13032_v49, 0.0  ;;  %v13047_v37 = vpop.f32.mrb[14].mxu0  ;;  %v6112_v21 = vadd.f32 %v6111_v27, %v6110_v2  ;;  %10236 = vmatmul.mubr.msk.bf16.gmra.mrb[60].mxu1 %vm686_vm3, %v13014_v36  ;;  %v5611_v8 = vsel %vm10824_vm4, %v5609_v33, %v5610_v53  ;;  %v6113_v49 = vsel %vm6008_vm7, %v13001_v45, 0.0 }
 0x1f0   : > { %17031 = vst [vmem:[#allocation58_spill] sm:$0xff] %v13040_v32  ;;  %17032 = vst [vmem:[#allocation59_spill] sm:$0xff] %v13043_v13  ;;  %v10730_v20 = vld [vmem:[%s10822_s25 + $0xc0] sm:$0xff]   ;;  %v9197_v39 = vld [vmem:[%s10822_s25 + $0x3c] sm:$0xe]  ;;  %v6033_v0 = vadd.f32 %v6032_v1, %v6031_v52  ;;  %v13056_v6 = vpop.f32.mrb[15].mxu0  ;;  %10241 = vmatprep.mubr.msk.bf16.mxu1 %vm686_vm3, %v9228_v51  ;;  %v5615_v2 = vsel %vm10824_vm4, %v9212_v40, %v5614_v31  ;;  %v5618_v53 = vsel %vm10824_vm4, %v5616_v26, %v5617_v43 }
 0x1f1   : > { %17033 = vst [vmem:[#allocation60_spill] sm:$0xff] %v13047_v37  ;;  %v10749_v24 = vld [vmem:[%s10822_s25 + $0x40] sm:$0xf]  ;;  %17034 = vst [vmem:[#allocation61_spill] sm:$0xff] %v13056_v6  ;;  %v6034_v27 = vsel %vm6008_vm7, %v13056_v6, 0.0  ;;  %v6114_v33 = vadd.f32 %v6113_v49, %v6112_v21  ;;  %7107 = vrot.lane.b32.xlu1 %v13040_v32, %s10771_s30  ;;  %7105 = vrot.lane.b32.xlu0 %v13043_v13, %s10771_s30  ;;  %v6115_v40 = vsel %vm6008_vm7, %v13019_v35, 0.0 }
 0x1f2   : > { %v5621_v19 = vrot.slane %v10749_v24, 5  ;;  %v9198_v52 = vld [vmem:[%s10822_s25 + $0x48] sm:$0xe]  ;;  %v10750_v1 = vld [vmem:[%s10822_s25 + $0x4c] sm:$0xf]  ;;  %v6035_v51 = vadd.f32 %v6034_v27, %v6033_v0  ;;  %10096 = vmatmul.mubr.msk.bf16.gmra.mrb[56].mxu0 %vm686_vm3, %v10729_v3  ;;  %v13076_v31 = vpop.f32.mrb[20].mxu1  ;;  %v9229_v21 = vcombine.low %v5608_v56, %v5611_v8 }
 0x1f3   : > { %v5628_v24 = vrot.slane %v10750_v1, 5  ;;  %17035 = vst [vmem:[#allocation62_spill] sm:$0xff] %v13076_v31  ;;  %v9213_v26 = vrot.slane %v9197_v39, 9  ;;  %v13079_v43 = vld [vmem:[%s12559_s29 + $0x1c8] sm:$0xff]  ;;  %v13082_v49 = vld [vmem:[%s12559_s29 + $0x1c0] sm:$0xff]  ;;  %v6036_v1 = vsel %vm6008_vm7, %v13023_v18, 0.0  ;;  %10099 = vmatprep.mubr.msk.bf16.mxu0 %vm686_vm3, %v10730_v20  ;;  %v6116_v3 = vadd.f32 %v6115_v40, %v6114_v33 }
 0x1f4   : > { %v13087_v0 = vpop.f32.mrb[21].mxu1  ;;  %v5623_v27 = vrot.slane %v5621_v19, 4  ;;  %v10751_v45 = vld [vmem:[%s10822_s25 + $0x44] sm:$0x1]  ;;  %v6037_v6 = vadd.f32 %v6036_v1, %v6035_v51  ;;  %v9230_v39 = vcombine.low %v5615_v2, %v5618_v53  ;;  %v9214_v13 = vrot.slane %v9198_v52, 9  ;;  %v10731_v53 = vld [vmem:[%s10822_s25 + $0xcc] sm:$0xff]  }
 0x1f5   : > { %17036 = vst [vmem:[#allocation63_spill] sm:$0xff] %v13087_v0  ;;  %v5624_v35 = vrot.slane %v10751_v45, 5  ;;  %v6117_v56 = vsel %vm6008_vm7, %v13087_v0, 0.0  ;;  %v13092_v8 = vpop.f32.mrb[22].mxu1  ;;  %v6038_v18 = vsel %vm6008_vm7, %v13047_v37, 0.0  ;;  %v13096_v20 = vpop.f32.mrb[16].mxu0  ;;  %7111 = vrot.lane.b32.xlu1 %v13079_v43, %s10771_s30  ;;  %7109 = vrot.lane.b32.xlu0 %v13082_v49, %s10771_s30 }
 0x1f6   : > { %17037 = vst [vmem:[#allocation64_spill] sm:$0xff] %v13092_v8  ;;  %17038 = vst [vmem:[#allocation65_spill] sm:$0xff] %v13096_v20  ;;  %v6118_v32 = vadd.f32 %v6117_v56, %v6116_v3  ;;  %v13098_v38 = vpop.f32.mrb[23].mxu1  ;;  %v5630_v33 = vrot.slane %v5628_v24, 4  ;;  %v10752_v40 = vld [vmem:[%s10822_s25 + $0x50] sm:$0x1]  ;;  %v6039_v2 = vadd.f32 %v6038_v18, %v6037_v6 }
 0x1f7   : > { %17039 = vst [vmem:[#allocation66_spill] sm:$0xff] %v13098_v38  ;;  %v5631_v45 = vrot.slane %v10752_v40, 5  ;;  %v13105_v51 = vpop.f32.mrb[17].mxu0  ;;  %v6119_v52 = vsel %vm6008_vm7, %v13098_v38, 0.0  ;;  %10242 = vmatmul.mubr.msk.bf16.vlgmr.msra.gmra.mrb[32].mxu1 %vm686_vm3, %v9229_v21  ;;  %v5622_v40 = vsel %vm10824_vm4, %v9213_v26, %v5621_v19  ;;  %v6121_v18 = vsel %vm6008_vm7, %v13076_v31, 0.0 }
 0x1f8   : > { %v6040_v1 = vsel %vm6008_vm7, %v13105_v51, 0.0  ;;  %v13112_v3 = vpop.f32.mrb[18].mxu0  ;;  %v6120_v56 = vadd.f32 %v6119_v52, %v6118_v32  ;;  %10245 = vmatprep.mubr.msk.bf16.mxu1 %vm686_vm3, %v9230_v39  ;;  %v5625_v6 = vsel %vm10824_vm4, %v5623_v27, %v5624_v35  ;;  %v5629_v38 = vsel %vm10824_vm4, %v9214_v13, %v5628_v24  ;;  %v9200_v26 = vld [vmem:[%s10822_s25 + $0x60] sm:$0xe] }
 0x1f9   : > { %v6041_v0 = vadd.f32 %v6040_v1, %v6039_v2  ;;  %v13117_v37 = vpop.f32.mrb[19].mxu0  ;;  %v5632_v19 = vsel %vm10824_vm4, %v5630_v33, %v5631_v45  ;;  %v10753_v2 = vld [vmem:[%s10822_s25 + $0x64] sm:$0xf]  ;;  %v6123_v39 = vsel %vm6008_vm7, %v13092_v8, 0.0  ;;  %v6044_v13 = vsel %vm6008_vm7, %v13096_v20, 0.0 }
 0x1fa   : > { %v6042_v32 = vsel %vm6008_vm7, %v13117_v37, 0.0  ;;  %v6122_v21 = vadd.f32 %v6121_v18, %v6120_v56  ;;  %v5642_v52 = vrot.slane %v10753_v2, 5  ;;  %10100 = vmatmul.mubr.msk.bf16.gmra.mrb[60].mxu0 %vm686_vm3, %v10731_v53  ;;  %v13135_v35 = vpop.f32.mrb[24].mxu1  ;;  %v9231_v33 = vcombine.low %v5622_v40, %v5625_v6  ;;  %v10754_v20 = vld [vmem:[%s10822_s25 + $0x68] sm:$0x1] }
 0x1fb   : > { %v6043_v1 = vadd.f32 %v6042_v32, %v6041_v0  ;;  %17040 = vst [vmem:[#allocation67_spill] sm:$0xff] %v13135_v35  ;;  %10105 = vmatprep.mubr.msk.bf16.mxu0 %vm686_vm3, %v12356_v7  ;;  %v13141_v24 = vpop.f32.mrb[25].mxu1  ;;  %v9232_v56 = vcombine.low %v5629_v38, %v5632_v19  ;;  %v9216_v18 = vrot.slane %v9200_v26, 9  ;;  %v6046_v32 = vsel %vm6008_vm7, %v13112_v3, 0.0 }
 0x1fc   : > { %v6124_v27 = vadd.f32 %v6123_v39, %v6122_v21  ;;  %v6125_v0 = vsel %vm6008_vm7, %v13141_v24, 0.0  ;;  %v13145_v53 = vpop.f32.mrb[26].mxu1  ;;  %v5644_v7 = vrot.slane %v5642_v52, 4  ;;  %v5645_v21 = vrot.slane %v10754_v20, 5 }
 0x1fd   : > { %v6045_v45 = vadd.f32 %v6044_v13, %v6043_v1  ;;  %17041 = vst [vmem:[#allocation68_spill] sm:$0xff] %v13145_v53  ;;  %v13149_v2 = vpop.f32.mrb[20].mxu0  ;;  %v13151_v31 = vpop.f32.mrb[27].mxu1  ;;  %v6129_v20 = vsel %vm6008_vm7, %v13135_v35, 0.0  ;;  %v5659_v35 = vrot.slane %v12534_v41, 5 }
 0x1fe   : > { %v6126_v8 = vadd.f32 %v6125_v0, %v6124_v27  ;;  %v13154_v40 = vpop.f32.mrb[21].mxu0  ;;  %v6127_v1 = vsel %vm6008_vm7, %v13151_v31, 0.0  ;;  %v5643_v27 = vsel %vm10824_vm4, %v9216_v18, %v5642_v52  ;;  %v6052_v52 = vsel %vm6008_vm7, %v13149_v2, 0.0 }
 0x1ff   : > { %v6047_v6 = vadd.f32 %v6046_v32, %v6045_v45  ;;  %v6048_v38 = vsel %vm6008_vm7, %v13154_v40, 0.0  ;;  %v13160_v19 = vpop.f32.mrb[22].mxu0  ;;  %10246 = vmatmul.mubr.msk.bf16.gmra.mrb[36].mxu1 %vm686_vm3, %v9231_v33  ;;  %v9202_v32 = vld [vmem:[%s10822_s25 + $0x78] sm:$0xe]  ;;  %v5656_v33 = vrot.slane %v12490_v29, 5 }
 0x200   : > { %v6128_v26 = vadd.f32 %v6127_v1, %v6126_v8  ;;  %v13163_v13 = vpop.f32.mrb[23].mxu0  ;;  %10249 = vmatprep.mubr.msk.bf16.mxu1 %vm686_vm3, %v9232_v56  ;;  %v5646_v8 = vsel %vm10824_vm4, %v5644_v7, %v5645_v21  ;;  %v6131_v56 = vsel %vm6008_vm7, %v13145_v53, 0.0 }
 0x201   : > { %v6049_v39 = vadd.f32 %v6048_v38, %v6047_v6  ;;  %v6050_v45 = vsel %vm6008_vm7, %v13163_v13, 0.0 }
 0x202   : > { %v6130_v0 = vadd.f32 %v6129_v20, %v6128_v26  ;;  %10106 = vmatmul.mubr.msk.bf16.vlgmr.msra.gmra.mrb[32].mxu0 %vm686_vm3, %v12358_v62  ;;  %v13180_v1 = vpop.f32.mrb[28].mxu1  ;;  %v9234_v62 = vcombine.low %v5643_v27, %v5646_v8  ;;  %v9218_v26 = vrot.slane %v9202_v32, 9 }
 0x203   : > { %v6051_v6 = vadd.f32 %v6050_v45, %v6049_v39  ;;  %10109 = vmatprep.mubr.msk.bf16.mxu0 %vm686_vm3, %v12442_v46  ;;  %v13186_v18 = vpop.f32.mrb[29].mxu1  ;;  %v6054_v39 = vsel %vm6008_vm7, %v13160_v19, 0.0  ;;  %v5658_v46 = vrot.slane %v5656_v33, 4 }
 0x204   : > { %v6132_v7 = vadd.f32 %v6131_v56, %v6130_v0  ;;  %v6133_v29 = vsel %vm6008_vm7, %v13186_v18, 0.0  ;;  %v13190_v38 = vpop.f32.mrb[30].mxu1 }
 0x205   : > { %v6053_v21 = vadd.f32 %v6052_v52, %v6051_v6  ;;  %v13194_v20 = vpop.f32.mrb[24].mxu0  ;;  %v13196_v53 = vpop.f32.mrb[31].mxu1  ;;  %v17042_v52 = vcombine.low %v12261_v25, %v12265_v60  ;;  %v5660_v25 = vsel %vm10824_vm4, %v5658_v46, %v5659_v35  ;;  %v5670_v60 = vrot.slane %v12539_v44, 5 }
 0x206   : > { %v6134_v45 = vadd.f32 %v6133_v29, %v6132_v7  ;;  %v13199_v0 = vpop.f32.mrb[25].mxu0  ;;  %v6135_v56 = vsel %vm6008_vm7, %v13196_v53, 0.0  ;;  %v5657_v29 = vsel %vm10824_vm4, %v9218_v26, %v5656_v33  ;;  %v6060_v33 = vsel %vm6008_vm7, %v13194_v20, 0.0 }
 0x207   : > { %v6055_v6 = vadd.f32 %v6054_v39, %v6053_v21  ;;  %v6056_v27 = vsel %vm6008_vm7, %v13199_v0, 0.0  ;;  %v13205_v8 = vpop.f32.mrb[26].mxu0  ;;  %10250 = vmatmul.mubr.msk.bf16.gmra.mrb[40].mxu1 %vm686_vm3, %v17042_v52  ;;  %v6137_v21 = vsel %vm6008_vm7, %v13180_v1, 0.0  ;;  %v5673_v52 = vrot.slane %v12589_v48, 5 }
 0x208   : > { %v6136_v32 = vadd.f32 %v6135_v56, %v6134_v45  ;;  %v13211_v41 = vpop.f32.mrb[27].mxu0  ;;  %10253 = vmatprep.mubr.msk.bf16.mxu1 %vm686_vm3, %v9234_v62  ;;  %v6139_v56 = vsel %vm6008_vm7, %v13190_v38, 0.0  ;;  %v9204_v62 = vld [vmem:[%s10822_s25 + $0x90] sm:$0xe]  ;;  %v6062_v44 = vsel %vm6008_vm7, %v13205_v8, 0.0 }
 0x209   : > { %v6057_v7 = vadd.f32 %v6056_v27, %v6055_v6  ;;  %v6058_v39 = vsel %vm6008_vm7, %v13211_v41, 0.0  ;;  %v9220_v46 = vrot.slane %v9204_v62, 9 }
 0x20a   : > { %v6138_v45 = vadd.f32 %v6137_v21, %v6136_v32  ;;  %10110 = vmatmul.mubr.msk.bf16.gmra.mrb[36].mxu0 %vm686_vm3, %v12467_v30  ;;  %v9236_v32 = vcombine.low %v5657_v29, %v5660_v25  ;;  %v5672_v30 = vrot.slane %v5670_v60, 4  ;;  %v17043_v29 = vcombine.low %v12299_v14, %v12303_v55  ;;  %v9206_v55 = vld [vmem:[%s10822_s25 + $0xa8] sm:$0xe] }
 0x20b   : > { %v6059_v6 = vadd.f32 %v6058_v39, %v6057_v7  ;;  %10113 = vmatprep.mubr.msk.bf16.mxu0 %vm686_vm3, %v12547_v10 }
 0x20c   : > { %v6140_v26 = vadd.f32 %v6139_v56, %v6138_v45  ;;  %v5671_v56 = vsel %vm10824_vm4, %v9220_v46, %v5670_v60  ;;  %v5674_v62 = vsel %vm10824_vm4, %v5672_v30, %v5673_v52  ;;  %v9222_v46 = vrot.slane %v9206_v55, 9 }
 0x20d   : > { %v6061_v27 = vadd.f32 %v6060_v33, %v6059_v6  ;;  %v13234_v35 = vpop.f32.mrb[28].mxu0  ;;  %v5684_v33 = vrot.slane %v12603_v57, 5 }
 0x20e   : > { %v6141_v7 = vrot.slane %v6140_v26, 4  ;;  %v13237_v21 = vpop.f32.mrb[29].mxu0 }
 0x20f   : > { %v6063_v39 = vadd.f32 %v6062_v44, %v6061_v27  ;;  %v6064_v45 = vsel %vm6008_vm7, %v13237_v21, 0.0  ;;  %v13241_v10 = vpop.f32.mrb[30].mxu0  ;;  %10254 = vmatmul.mubr.msk.bf16.gmra.mrb[44].mxu1 %vm686_vm3, %v17043_v29  ;;  %v5686_v57 = vrot.slane %v5684_v33, 4  ;;  %v5698_v29 = vrot.slane %v12710_v34, 5 }
 0x210   : > { %v13247_v6 = vpop.f32.mrb[31].mxu0  ;;  %10257 = vmatprep.mubr.msk.bf16.mxu1 %vm686_vm3, %v9236_v32  ;;  %v6142_v27 = vadd.f32 %v6141_v7, %v6140_v26  ;;  %v6068_v32 = vsel %vm6008_vm7, %v13234_v35, 0.0  ;;  %v6070_v60 = vsel %vm6008_vm7, %v13241_v10, 0.0  ;;  %v5687_v26 = vrot.slane %v12641_v11, 5 }
 0x211   : > { %v6065_v25 = vadd.f32 %v6064_v45, %v6063_v39  ;;  %v6066_v48 = vsel %vm6008_vm7, %v13247_v6, 0.0  ;;  %v9238_v39 = vcombine.low %v5671_v56, %v5674_v62  ;;  %v5700_v62 = vrot.slane %v5698_v29, 4 }
 0x212   : > { %10114 = vmatmul.mubr.msk.bf16.gmra.mrb[40].mxu0 %vm686_vm3, %v12549_v16  ;;  %v6143_v30 = vrot.slane %v6142_v27, 2  ;;  %v17044_v16 = vcombine.low %v12344_v12, %v12348_v5  ;;  %v5688_v45 = vsel %vm10824_vm4, %v5686_v57, %v5687_v26  ;;  %v7019_v26 = vld [vmem:[%s12559_s29 + $0x1e0] sm:$0xff] }
 0x213   : > { %v6067_v14 = vadd.f32 %v6066_v48, %v6065_v25  ;;  %10117 = vmatprep.mubr.msk.bf16.mxu0 %vm686_vm3, %v12561_v54  ;;  %v5685_v54 = vsel %vm10824_vm4, %v9222_v46, %v5684_v33  ;;  %v9208_v48 = vld [vmem:[%s10822_s25 + $0xc0] sm:$0xe]  ;;  %v5701_v33 = vrot.slane %v12744_v4, 5  ;;  %7113 = vrot.lane.b32.xlu0 %v7019_v26, %s10771_s30  ;;  %s10772_s25 = smov 64  }
 0x214   : > { %v6144_v25 = vadd.f32 %v6143_v30, %v6142_v27  ;;  %v9240_v5 = vcombine.low %v5685_v54, %v5688_v45  ;;  %v9224_v56 = vrot.slane %v9208_v48, 9  ;;  %v17048_v46 = vld [vmem:[#allocation10_spill] sm:$0xff]  ;;  %v17055_v54 = vld [vmem:[#allocation11_spill] sm:$0xff]  ;;  %v17056_v45 = vld [vmem:[#allocation5_spill] sm:$0xff] }
 0x215   : > { %v6069_v44 = vadd.f32 %v6068_v32, %v6067_v14  ;;  %v17045_v32 = vld [vmem:[#allocation13_spill] sm:$0xff]  ;;  %v10756_v30 = vld [vmem:[%s12559_s29] sm:$0xff]  ;;  %v17060_v48 = vld [vmem:[#allocation19_spill] sm:$0xff] }
 0x216   : > { %v6145_v14 = vrot.slane %v6144_v25, 1  ;;  %v17046_v34 = vcombine.low %v12389_v61, %v17045_v32  ;;  %v17071_v32 = vld [vmem:[#allocation59_spill] sm:$0xff] }
 0x217   : > { %v6071_v52 = vadd.f32 %v6070_v60, %v6069_v44  ;;  %10258 = vmatmul.mubr.msk.bf16.gmra.mrb[48].mxu1 %vm686_vm3, %v17044_v16  ;;  %v17047_v60 = vld [vmem:[#allocation2_spill] sm:$0xff]  ;;  %7535 = vrot.lane.b32.xlu0 %v10756_v30, %s10772_s25  ;;  %v17053_v16 = vld [vmem:[#allocation12_spill] sm:$0xff] }
 0x218   : > { %10261 = vmatprep.mubr.msk.bf16.mxu1 %vm686_vm3, %v9238_v39  ;;  %v6146_v44 = vadd.f32 %v6145_v14, %v6144_v25  ;;  %v17049_v57 = vcombine.low %v17047_v60, %v17048_v46  ;;  %v17058_v25 = vld [vmem:[#allocation7_spill] sm:$0xff]  ;;  %v17066_v14 = vld [vmem:[#allocation46_spill] sm:$0xff] }
 0x219   : > { %v6072_v7 = vrot.slane %v6071_v52, 4 }
 0x21a   : > { %10118 = vmatmul.mubr.msk.bf16.gmra.mrb[44].mxu0 %vm686_vm3, %v12675_v63  ;;  %v5699_v63 = vsel %vm10824_vm4, %v9224_v56, %v5698_v29  ;;  %v17057_v29 = vld [vmem:[#allocation18_spill] sm:$0xff]  ;;  %v17063_v56 = vld [vmem:[#allocation35_spill] sm:$0xff] }
 0x21b   : > { %v6073_v11 = vadd.f32 %v6072_v7, %v6071_v52  ;;  %10121 = vmatprep.mubr.msk.bf16.mxu0 %vm686_vm3, %v12677_v59  ;;  %v5702_v59 = vsel %vm10824_vm4, %v5700_v62, %v5701_v33  ;;  %v10760_v52 = vld [vmem:[%s12559_s29 + $0x40] sm:$0xff]  ;;  %v17054_v7 = vld [vmem:[#allocation16_spill] sm:$0xff]  ;;  %v17064_v62 = vld [vmem:[#allocation39_spill] sm:$0xff] }
 0x21c   : > { %v9242_v39 = vcombine.low %v5699_v63, %v5702_v59  ;;  %v17065_v33 = vld [vmem:[#allocation40_spill] sm:$0xff] }
 0x21d   : > { %v6074_v12 = vrot.slane %v6073_v11, 2 }
 0x21f   : > { %v6075_v55 = vadd.f32 %v6074_v12, %v6073_v11  ;;  %10262 = vmatmul.mubr.msk.bf16.gmra.mrb[52].mxu1 %vm686_vm3, %v17046_v34  ;;  %v17059_v11 = vld [vmem:[#allocation9_spill] sm:$0xff] }
 0x220   : > { %10265 = vmatprep.mubr.msk.bf16.mxu1 %vm686_vm3, %v9240_v5  ;;  %v17061_v12 = vld [vmem:[#allocation25_spill] sm:$0xff]  ;;  %v17062_v5 = vld [vmem:[#allocation26_spill] sm:$0xff] }
 0x221   : > { %v6076_v27 = vrot.slane %v6075_v55, 1 }
 0x222   : > { %10122 = vmatmul.mubr.msk.bf16.gmra.mrb[48].mxu0 %vm686_vm3, %v12679_v42  ;;  %v17051_v42 = vld [vmem:[#allocation15_spill] sm:$0xff] }
 0x223   : > { %v6077_v4 = vadd.f32 %v6076_v27, %v6075_v55  ;;  %10125 = vmatprep.mubr.msk.bf16.mxu0 %vm686_vm3, %v12764_v47  ;;  %v17052_v47 = vcombine.low %v17050_v58, %v17051_v42  ;;  %v17070_v55 = vld [vmem:[#allocation58_spill] sm:$0xff] }
 0x225   : > { %v13296_v61 = vadd.f32 %v6146_v44, %v6077_v4 }
 0x227   : > { %10266 = vmatmul.mubr.msk.bf16.gmra.mrb[56].mxu1 %vm686_vm3, %v17049_v57 }
 0x228   : > { %10269 = vmatprep.mubr.msk.bf16.mxu1 %vm686_vm3, %v9242_v39 }
 0x22a   : > { %10126 = vmatmul.mubr.msk.bf16.gmra.mrb[52].mxu0 %vm686_vm3, %v12785_v28  ;;  %v7020_v28 = vld [vmem:[%s12559_s29 + $0x1e8] sm:$0xff] }
 0x22b   : > { %10129 = vmatprep.mubr.msk.bf16.mxu0 %vm686_vm3, %v12811_v17  ;;  %7115 = vrot.lane.b32.xlu1 %v7020_v28, %s10771_s30  ;;  %v10755_v17 = vld [vmem:[%s12559_s29 + $0x8] sm:$0xff] }
 0x22f   : > { %10270 = vmatmul.mubr.msk.bf16.gmra.mrb[60].mxu1 %vm686_vm3, %v17052_v47  ;;  %7537 = vrot.lane.b32.xlu1 %v10755_v17, %s10772_s25 }
 0x232   : > { %10130 = vmatmul.mubr.msk.bf16.gmra.mrb[56].mxu0 %vm686_vm3, %v12922_v50  ;;  %v10757_v50 = vld [vmem:[%s12559_s29 + $0x28] sm:$0xff] }
 0x233   : > { %10133 = vmatprep.mubr.msk.bf16.mxu0 %vm686_vm3, %v12937_v22  ;;  %7541 = vrot.lane.b32.xlu1 %v10757_v50, %s10772_s25  ;;  %v10758_v22 = vld [vmem:[%s12559_s29 + $0x20] sm:$0xff] }
 0x234   : > { %7539 = vrot.lane.b32.xlu0 %v10758_v22, %s10772_s25 }
 0x238   : > { %7543 = vrot.lane.b32.xlu0 %v10760_v52, %s10772_s25 }
 0x23a   : > { %10134 = vmatmul.mubr.msk.bf16.gmra.mrb[60].mxu0 %vm686_vm3, %v13014_v36  ;;  %v10759_v36 = vld [vmem:[%s12559_s29 + $0x48] sm:$0xff] }
 0x23b   : > { %7545 = vrot.lane.b32.xlu1 %v10759_v36, %s10772_s25 }
 0x23c   : > { %7547 = vrot.lane.b32.xlu0 %v17054_v7, %s10772_s25 }
 0x23f   : > { %7549 = vrot.lane.b32.xlu1 %v17053_v16, %s10772_s25 }
 0x240   : > { %7551 = vrot.lane.b32.xlu0 %v17056_v45, %s10772_s25 }
 0x243   : > { %7553 = vrot.lane.b32.xlu1 %v17055_v54, %s10772_s25 }
 0x244   : > { %7555 = vrot.lane.b32.xlu0 %v17058_v25, %s10772_s25 }
 0x247   : > { %7557 = vrot.lane.b32.xlu1 %v17057_v29, %s10772_s25 }
 0x248   : > { %7559 = vrot.lane.b32.xlu0 %v17060_v48, %s10772_s25 }
 0x24b   : > { %7561 = vrot.lane.b32.xlu1 %v17059_v11, %s10772_s25 }
 0x24c   : > { %7563 = vrot.lane.b32.xlu0 %v17062_v5, %s10772_s25 }
 0x24f   : > { %7565 = vrot.lane.b32.xlu1 %v17061_v12, %s10772_s25 }
 0x250   : > { %7567 = vrot.lane.b32.xlu0 %v12845_v15, %s10772_s25  ;;  %v17068_v15 = vld [vmem:[#allocation51_spill] sm:$0xff] }
 0x253   : > { %7569 = vrot.lane.b32.xlu1 %v12842_v9, %s10772_s25  ;;  %v17067_v9 = vld [vmem:[#allocation47_spill] sm:$0xff] }
 0x254   : > { %7571 = vrot.lane.b32.xlu0 %v17063_v56, %s10772_s25 }
 0x257   : > { %7573 = vrot.lane.b32.xlu1 %v12883_v23, %s10772_s25  ;;  %v17069_v23 = vld [vmem:[#allocation52_spill] sm:$0xff] }
 0x258   : > { %7575 = vrot.lane.b32.xlu0 %v17065_v33, %s10772_s25 }
 0x25b   : > { %7577 = vrot.lane.b32.xlu1 %v17064_v62, %s10772_s25 }
 0x25c   : > { %7579 = vrot.lane.b32.xlu0 %v17067_v9, %s10772_s25 }
 0x25f   : > { %7581 = vrot.lane.b32.xlu1 %v17066_v14, %s10772_s25 }
 0x260   : > { %7583 = vrot.lane.b32.xlu0 %v17069_v23, %s10772_s25 }
 0x263   : > { %7585 = vrot.lane.b32.xlu1 %v17068_v15, %s10772_s25 }
 0x264   : > { %7587 = vrot.lane.b32.xlu0 %v17071_v32, %s10772_s25 }
 0x267   : > { %7589 = vrot.lane.b32.xlu1 %v17070_v55, %s10772_s25 }
 0x268   : > { %7591 = vrot.lane.b32.xlu0 %v13082_v49, %s10772_s25 }
 0x26b   : > { %7593 = vrot.lane.b32.xlu1 %v13079_v43, %s10772_s25 }
 0x2ca   : > { %v13381_v34 = vpop.f32.mrb[32].mxu1 }
 0x2cb   : > { %17072 = vst [vmem:[#allocation13_spill] sm:$0xff] %v13381_v34  ;;  %v13383_v27 = vpop.f32.mrb[33].mxu1  ;;  %v6221_v43 = vsel %vm6008_vm7, %v13381_v34, 0.0 }
 0x2cc   : > { %17073 = vst [vmem:[#allocation2_spill] sm:$0xff] %v13383_v27  ;;  %v13385_v63 = vpop.f32.mrb[34].mxu1  ;;  %v6218_v44 = vsel %vm6008_vm7, %v13383_v27, 0.0 }
 0x2cd   : > { %17074 = vst [vmem:[#allocation10_spill] sm:$0xff] %v13385_v63  ;;  %v13387_v59 = vpop.f32.mrb[35].mxu1  ;;  %v6223_v49 = vsel %vm6008_vm7, %v13385_v63, 0.0 }
 0x2ce   : > { %17075 = vst [vmem:[#allocation8_spill] sm:$0xff] %v13387_v59  ;;  %v6219_v4 = vsel %vm6008_vm7, %v13387_v59, 0.0 }
 0x2cf   : > { %v6220_v39 = vadd.f32 %v6219_v4, %v6218_v44 }
 0x2d1   : > { %v6222_v60 = vadd.f32 %v6221_v43, %v6220_v39 }
 0x2d2   : > { %v13397_v46 = vpop.f32.mrb[36].mxu1 }
 0x2d3   : > { %17076 = vst [vmem:[#allocation15_spill] sm:$0xff] %v13397_v46  ;;  %v13399_v57 = vpop.f32.mrb[37].mxu1  ;;  %v6224_v58 = vadd.f32 %v6223_v49, %v6222_v60  ;;  %v6229_v16 = vsel %vm6008_vm7, %v13397_v46, 0.0 }
 0x2d4   : > { %17077 = vst [vmem:[#allocation12_spill] sm:$0xff] %v13399_v57  ;;  %v6225_v42 = vsel %vm6008_vm7, %v13399_v57, 0.0  ;;  %v13403_v47 = vpop.f32.mrb[38].mxu1 }
 0x2d5   : > { %17078 = vst [vmem:[#allocation16_spill] sm:$0xff] %v13403_v47  ;;  %v13405_v28 = vpop.f32.mrb[32].mxu0  ;;  %v6226_v26 = vadd.f32 %v6225_v42, %v6224_v58  ;;  %v13407_v17 = vpop.f32.mrb[39].mxu1  ;;  %v6231_v25 = vsel %vm6008_vm7, %v13403_v47, 0.0 }
 0x2d6   : > { %17079 = vst [vmem:[#allocation11_spill] sm:$0xff] %v13407_v17  ;;  %v13409_v30 = vpop.f32.mrb[33].mxu0  ;;  %v6227_v50 = vsel %vm6008_vm7, %v13407_v17, 0.0  ;;  %v6151_v48 = vsel %vm6008_vm7, %v13405_v28, 0.0 }
 0x2d7   : > { %v13413_v22 = vpop.f32.mrb[34].mxu0  ;;  %v6228_v36 = vadd.f32 %v6227_v50, %v6226_v26  ;;  %v6148_v7 = vsel %vm6008_vm7, %v13409_v30, 0.0 }
 0x2d8   : > { %v13415_v52 = vpop.f32.mrb[35].mxu0  ;;  %v6153_v14 = vsel %vm6008_vm7, %v13413_v22, 0.0 }
 0x2d9   : > { %v6149_v54 = vsel %vm6008_vm7, %v13415_v52, 0.0  ;;  %v6230_v45 = vadd.f32 %v6229_v16, %v6228_v36 }
 0x2da   : > { %v6150_v29 = vadd.f32 %v6149_v54, %v6148_v7  ;;  %v13425_v11 = vpop.f32.mrb[40].mxu1 }
 0x2db   : > { %17080 = vst [vmem:[#allocation5_spill] sm:$0xff] %v13425_v11  ;;  %v13429_v12 = vpop.f32.mrb[41].mxu1  ;;  %v6232_v5 = vadd.f32 %v6231_v25, %v6230_v45  ;;  %v6237_v58 = vsel %vm6008_vm7, %v13425_v11, 0.0 }
 0x2dc   : > { %17081 = vst [vmem:[#allocation18_spill] sm:$0xff] %v13429_v12  ;;  %v6152_v56 = vadd.f32 %v6151_v48, %v6150_v29  ;;  %v6233_v62 = vsel %vm6008_vm7, %v13429_v12, 0.0  ;;  %v13433_v33 = vpop.f32.mrb[42].mxu1 }
 0x2dd   : > { %17082 = vst [vmem:[#allocation7_spill] sm:$0xff] %v13433_v33  ;;  %v13437_v9 = vpop.f32.mrb[36].mxu0  ;;  %v6234_v15 = vadd.f32 %v6233_v62, %v6232_v5  ;;  %v13439_v23 = vpop.f32.mrb[43].mxu1  ;;  %v6239_v36 = vsel %vm6008_vm7, %v13433_v33, 0.0 }
 0x2de   : > { %17083 = vst [vmem:[#allocation9_spill] sm:$0xff] %v13439_v23  ;;  %v13441_v55 = vpop.f32.mrb[37].mxu0  ;;  %v6154_v32 = vadd.f32 %v6153_v14, %v6152_v56  ;;  %v6235_v44 = vsel %vm6008_vm7, %v13439_v23, 0.0  ;;  %v6159_v7 = vsel %vm6008_vm7, %v13437_v9, 0.0 }
 0x2df   : > { %v6155_v4 = vsel %vm6008_vm7, %v13441_v55, 0.0  ;;  %v13447_v39 = vpop.f32.mrb[38].mxu0  ;;  %v6236_v43 = vadd.f32 %v6235_v44, %v6234_v15 }
 0x2e0   : > { %v6156_v60 = vadd.f32 %v6155_v4, %v6154_v32  ;;  %v13449_v49 = vpop.f32.mrb[39].mxu0  ;;  %v6161_v5 = vsel %vm6008_vm7, %v13447_v39, 0.0 }
 0x2e1   : > { %v6157_v42 = vsel %vm6008_vm7, %v13449_v49, 0.0  ;;  %v6238_v26 = vadd.f32 %v6237_v58, %v6236_v43 }
 0x2e2   : > { %v6158_v50 = vadd.f32 %v6157_v42, %v6156_v60  ;;  %v13457_v16 = vpop.f32.mrb[44].mxu1 }
 0x2e3   : > { %17084 = vst [vmem:[#allocation19_spill] sm:$0xff] %v13457_v16  ;;  %v13461_v54 = vpop.f32.mrb[45].mxu1  ;;  %v6240_v45 = vadd.f32 %v6239_v36, %v6238_v26  ;;  %v6245_v26 = vsel %vm6008_vm7, %v13457_v16, 0.0 }
 0x2e4   : > { %17085 = vst [vmem:[#allocation25_spill] sm:$0xff] %v13461_v54  ;;  %v6160_v29 = vadd.f32 %v6159_v7, %v6158_v50  ;;  %v6241_v25 = vsel %vm6008_vm7, %v13461_v54, 0.0  ;;  %v13465_v48 = vpop.f32.mrb[46].mxu1 }
 0x2e5   : > { %17086 = vst [vmem:[#allocation26_spill] sm:$0xff] %v13465_v48  ;;  %v13469_v56 = vpop.f32.mrb[40].mxu0  ;;  %v6242_v62 = vadd.f32 %v6241_v25, %v6240_v45  ;;  %v13471_v14 = vpop.f32.mrb[47].mxu1  ;;  %v6247_v45 = vsel %vm6008_vm7, %v13465_v48, 0.0 }
 0x2e6   : > { %17087 = vst [vmem:[#allocation35_spill] sm:$0xff] %v13471_v14  ;;  %v13473_v15 = vpop.f32.mrb[41].mxu0  ;;  %v6162_v32 = vadd.f32 %v6161_v5, %v6160_v29  ;;  %v6243_v44 = vsel %vm6008_vm7, %v13471_v14, 0.0  ;;  %v6167_v25 = vsel %vm6008_vm7, %v13469_v56, 0.0 }
 0x2e7   : > { %v6163_v4 = vsel %vm6008_vm7, %v13473_v15, 0.0  ;;  %v13479_v43 = vpop.f32.mrb[42].mxu0  ;;  %v6244_v60 = vadd.f32 %v6243_v44, %v6242_v62 }
 0x2e8   : > { %v6164_v58 = vadd.f32 %v6163_v4, %v6162_v32  ;;  %v13481_v42 = vpop.f32.mrb[43].mxu0 }
 0x2e9   : > { %v6165_v50 = vsel %vm6008_vm7, %v13481_v42, 0.0  ;;  %v6246_v36 = vadd.f32 %v6245_v26, %v6244_v60  ;;  %v6169_v60 = vsel %vm6008_vm7, %v13479_v43, 0.0 }
 0x2ea   : > { %v6166_v7 = vadd.f32 %v6165_v50, %v6164_v58  ;;  %v13489_v29 = vpop.f32.mrb[48].mxu1 }
 0x2eb   : > { %17088 = vst [vmem:[#allocation39_spill] sm:$0xff] %v13489_v29  ;;  %v13493_v5 = vpop.f32.mrb[49].mxu1  ;;  %v6248_v62 = vadd.f32 %v6247_v45, %v6246_v36 }
 0x2ec   : > { %17089 = vst [vmem:[#allocation40_spill] sm:$0xff] %v13493_v5  ;;  %v6168_v32 = vadd.f32 %v6167_v25, %v6166_v7  ;;  %v6249_v44 = vsel %vm6008_vm7, %v13493_v5, 0.0  ;;  %v13497_v4 = vpop.f32.mrb[50].mxu1 }
 0x2ed   : > { %17090 = vst [vmem:[#allocation46_spill] sm:$0xff] %v13497_v4  ;;  %v13501_v58 = vpop.f32.mrb[44].mxu0  ;;  %v6250_v26 = vadd.f32 %v6249_v44, %v6248_v62  ;;  %v13503_v50 = vpop.f32.mrb[51].mxu1  ;;  %v6253_v62 = vsel %vm6008_vm7, %v13489_v29, 0.0 }
 0x2ee   : > { %17091 = vst [vmem:[#allocation47_spill] sm:$0xff] %v13503_v50  ;;  %v13505_v48 = vpop.f32.mrb[45].mxu0  ;;  %v6170_v16 = vadd.f32 %v6169_v60, %v6168_v32  ;;  %v6251_v36 = vsel %vm6008_vm7, %v13503_v50, 0.0  ;;  %v6255_v60 = vsel %vm6008_vm7, %v13497_v4, 0.0  ;;  %v6175_v33 = vsel %vm6008_vm7, %v13501_v58, 0.0 }
 0x2ef   : > { %v6171_v7 = vsel %vm6008_vm7, %v13505_v48, 0.0  ;;  %v13511_v45 = vpop.f32.mrb[46].mxu0  ;;  %v6252_v25 = vadd.f32 %v6251_v36, %v6250_v26 }
 0x2f0   : > { %v6172_v5 = vadd.f32 %v6171_v7, %v6170_v16  ;;  %v13513_v14 = vpop.f32.mrb[47].mxu0 }
 0x2f1   : > { %v6173_v44 = vsel %vm6008_vm7, %v13513_v14, 0.0  ;;  %v6254_v54 = vadd.f32 %v6253_v62, %v6252_v25 }
 0x2f2   : > { %v6174_v32 = vadd.f32 %v6173_v44, %v6172_v5  ;;  %v13521_v50 = vpop.f32.mrb[52].mxu1  ;;  %v6177_v5 = vsel %vm6008_vm7, %v13511_v45, 0.0 }
 0x2f3   : > { %17092 = vst [vmem:[#allocation51_spill] sm:$0xff] %v13521_v50  ;;  %v13525_v26 = vpop.f32.mrb[53].mxu1  ;;  %v6256_v16 = vadd.f32 %v6255_v60, %v6254_v54 }
 0x2f4   : > { %17093 = vst [vmem:[#allocation52_spill] sm:$0xff] %v13525_v26  ;;  %v6176_v36 = vadd.f32 %v6175_v33, %v6174_v32  ;;  %v6257_v7 = vsel %vm6008_vm7, %v13525_v26, 0.0  ;;  %v13529_v29 = vpop.f32.mrb[54].mxu1 }
 0x2f5   : > { %17094 = vst [vmem:[#allocation58_spill] sm:$0xff] %v13529_v29  ;;  %v13533_v25 = vpop.f32.mrb[48].mxu0  ;;  %v6258_v62 = vadd.f32 %v6257_v7, %v6256_v16  ;;  %v13535_v44 = vpop.f32.mrb[55].mxu1  ;;  %v6261_v16 = vsel %vm6008_vm7, %v13521_v50, 0.0 }
 0x2f6   : > { %17095 = vst [vmem:[#allocation59_spill] sm:$0xff] %v13535_v44  ;;  %v13537_v4 = vpop.f32.mrb[49].mxu0  ;;  %v6178_v11 = vadd.f32 %v6177_v5, %v6176_v36  ;;  %v6259_v54 = vsel %vm6008_vm7, %v13535_v44, 0.0  ;;  %v6263_v5 = vsel %vm6008_vm7, %v13529_v29, 0.0  ;;  %v6183_v47 = vsel %vm6008_vm7, %v13533_v25, 0.0 }
 0x2f7   : > { %v6179_v33 = vsel %vm6008_vm7, %v13537_v4, 0.0  ;;  %v13543_v32 = vpop.f32.mrb[50].mxu0  ;;  %v6260_v60 = vadd.f32 %v6259_v54, %v6258_v62 }
 0x2f8   : > { %v6180_v26 = vadd.f32 %v6179_v33, %v6178_v11  ;;  %v13545_v23 = vpop.f32.mrb[51].mxu0 }
 0x2f9   : > { %v6181_v7 = vsel %vm6008_vm7, %v13545_v23, 0.0  ;;  %v6262_v12 = vadd.f32 %v6261_v16, %v6260_v60 }
 0x2fa   : > { %v6182_v36 = vadd.f32 %v6181_v7, %v6180_v26  ;;  %v13553_v44 = vpop.f32.mrb[56].mxu1  ;;  %v6185_v26 = vsel %vm6008_vm7, %v13543_v32, 0.0 }
 0x2fb   : > { %17096 = vst [vmem:[#allocation69_spill] sm:$0xff] %v13553_v44  ;;  %v13557_v62 = vpop.f32.mrb[57].mxu1  ;;  %v6264_v11 = vadd.f32 %v6263_v5, %v6262_v12 }
 0x2fc   : > { %17097 = vst [vmem:[#allocation70_spill] sm:$0xff] %v13557_v62  ;;  %v6184_v54 = vadd.f32 %v6183_v47, %v6182_v36  ;;  %v6265_v33 = vsel %vm6008_vm7, %v13557_v62, 0.0  ;;  %v13561_v50 = vpop.f32.mrb[58].mxu1 }
 0x2fd   : > { %17098 = vst [vmem:[#allocation71_spill] sm:$0xff] %v13561_v50  ;;  %v13565_v60 = vpop.f32.mrb[52].mxu0  ;;  %v6266_v16 = vadd.f32 %v6265_v33, %v6264_v11  ;;  %v13567_v7 = vpop.f32.mrb[59].mxu1  ;;  %v6269_v11 = vsel %vm6008_vm7, %v13553_v44, 0.0 }
 0x2fe   : > { %17099 = vst [vmem:[#allocation72_spill] sm:$0xff] %v13565_v60  ;;  %17100 = vst [vmem:[#allocation73_spill] sm:$0xff] %v13567_v7  ;;  %v13569_v29 = vpop.f32.mrb[53].mxu0  ;;  %v6186_v46 = vadd.f32 %v6185_v26, %v6184_v54  ;;  %v6267_v12 = vsel %vm6008_vm7, %v13567_v7, 0.0  ;;  %v6271_v26 = vsel %vm6008_vm7, %v13561_v50, 0.0  ;;  %v6191_v63 = vsel %vm6008_vm7, %v13565_v60, 0.0 }
 0x2ff   : > { %17101 = vst [vmem:[#allocation74_spill] sm:$0xff] %v13569_v29  ;;  %v6187_v47 = vsel %vm6008_vm7, %v13569_v29, 0.0  ;;  %v13575_v36 = vpop.f32.mrb[54].mxu0  ;;  %v6268_v5 = vadd.f32 %v6267_v12, %v6266_v16 }
 0x300   : > { %17102 = vst [vmem:[#allocation75_spill] sm:$0xff] %v13575_v36  ;;  %v6188_v62 = vadd.f32 %v6187_v47, %v6186_v46  ;;  %v13577_v17 = vpop.f32.mrb[55].mxu0 }
 0x301   : > { %17103 = vst [vmem:[#allocation76_spill] sm:$0xff] %v13577_v17  ;;  %v6189_v33 = vsel %vm6008_vm7, %v13577_v17, 0.0  ;;  %v6270_v57 = vadd.f32 %v6269_v11, %v6268_v5 }
 0x302   : > { %v6190_v54 = vadd.f32 %v6189_v33, %v6188_v62  ;;  %v13585_v7 = vpop.f32.mrb[60].mxu1  ;;  %v6193_v62 = vsel %vm6008_vm7, %v13575_v36, 0.0 }
 0x303   : > { %17104 = vst [vmem:[#allocation77_spill] sm:$0xff] %v13585_v7  ;;  %v13589_v16 = vpop.f32.mrb[61].mxu1  ;;  %v6272_v46 = vadd.f32 %v6271_v26, %v6270_v57 }
 0x304   : > { %17105 = vst [vmem:[#allocation78_spill] sm:$0xff] %v13589_v16  ;;  %v6192_v12 = vadd.f32 %v6191_v63, %v6190_v54  ;;  %v6273_v47 = vsel %vm6008_vm7, %v13589_v16, 0.0  ;;  %v13593_v44 = vpop.f32.mrb[62].mxu1 }
 0x305   : > { %17106 = vst [vmem:[#allocation79_spill] sm:$0xff] %v13593_v44  ;;  %v13597_v5 = vpop.f32.mrb[56].mxu0  ;;  %v6274_v11 = vadd.f32 %v6273_v47, %v6272_v46  ;;  %v13599_v33 = vpop.f32.mrb[63].mxu1  ;;  %v6277_v46 = vsel %vm6008_vm7, %v13585_v7, 0.0 }
 0x306   : > { %17107 = vst [vmem:[#allocation80_spill] sm:$0xff] %v13597_v5  ;;  %17108 = vst [vmem:[#allocation81_spill] sm:$0xff] %v13599_v33  ;;  %v13601_v50 = vpop.f32.mrb[57].mxu0  ;;  %v6194_v34 = vadd.f32 %v6193_v62, %v6192_v12  ;;  %v6275_v57 = vsel %vm6008_vm7, %v13599_v33, 0.0  ;;  %v6279_v62 = vsel %vm6008_vm7, %v13593_v44, 0.0  ;;  %v6199_v33 = vsel %vm6008_vm7, %v13597_v5, 0.0 }
 0x307   : > { %17109 = vst [vmem:[#allocation82_spill] sm:$0xff] %v13601_v50  ;;  %v6195_v63 = vsel %vm6008_vm7, %v13601_v50, 0.0  ;;  %v13607_v54 = vpop.f32.mrb[58].mxu0  ;;  %v6276_v26 = vadd.f32 %v6275_v57, %v6274_v11 }
 0x308   : > { %17110 = vst [vmem:[#allocation83_spill] sm:$0xff] %v13607_v54  ;;  %v6196_v16 = vadd.f32 %v6195_v63, %v6194_v34  ;;  %v13609_v59 = vpop.f32.mrb[59].mxu0  ;;  %v6201_v34 = vsel %vm6008_vm7, %v13607_v54, 0.0 }
 0x309   : > { %17111 = vst [vmem:[#allocation84_spill] sm:$0xff] %v13609_v59  ;;  %v6197_v47 = vsel %vm6008_vm7, %v13609_v59, 0.0  ;;  %v6278_v27 = vadd.f32 %v6277_v46, %v6276_v26 }
 0x30a   : > { %v6198_v12 = vadd.f32 %v6197_v47, %v6196_v16 }
 0x30b   : > { %v6280_v50 = vadd.f32 %v6279_v62, %v6278_v27 }
 0x30c   : > { %v6200_v36 = vadd.f32 %v6199_v33, %v6198_v12 }
 0x30d   : > { %v13621_v11 = vpop.f32.mrb[60].mxu0  ;;  %v6281_v46 = vrot.slane %v6280_v50, 4 }
 0x30e   : > { %17112 = vst [vmem:[#allocation85_spill] sm:$0xff] %v13621_v11  ;;  %v13623_v57 = vpop.f32.mrb[61].mxu0  ;;  %v6202_v63 = vadd.f32 %v6201_v34, %v6200_v36  ;;  %v6207_v12 = vsel %vm6008_vm7, %v13621_v11, 0.0 }
 0x30f   : > { %17113 = vst [vmem:[#allocation86_spill] sm:$0xff] %v13623_v57  ;;  %v6203_v26 = vsel %vm6008_vm7, %v13623_v57, 0.0  ;;  %v13627_v16 = vpop.f32.mrb[62].mxu0  ;;  %v6282_v62 = vadd.f32 %v6281_v46, %v6280_v50  ;;  %v17116_v50 = vld [vmem:[#allocation24_spill] sm:$0xff] }
 0x310   : > { %17114 = vst [vmem:[#allocation87_spill] sm:$0xff] %v13627_v16  ;;  %v6204_v47 = vadd.f32 %v6203_v26, %v6202_v63  ;;  %v13629_v44 = vpop.f32.mrb[63].mxu0  ;;  %v6209_v36 = vsel %vm6008_vm7, %v13627_v16, 0.0  ;;  %v17150_v16 = vld [vmem:[#allocation65_spill] sm:$0xff] }
 0x311   : > { %17115 = vst [vmem:[#allocation88_spill] sm:$0xff] %v13629_v44  ;;  %v6205_v27 = vsel %vm6008_vm7, %v13629_v44, 0.0  ;;  %v6283_v57 = vrot.slane %v6282_v62, 2 }
 0x312   : > { %v6206_v33 = vadd.f32 %v6205_v27, %v6204_v47 }
 0x313   : > { %v6284_v59 = vadd.f32 %v6283_v57, %v6282_v62  ;;  %v17128_v57 = vld [vmem:[#allocation32_spill] sm:$0xff] }
 0x314   : > { %v6208_v7 = vadd.f32 %v6207_v12, %v6206_v33  ;;  %v17130_v62 = vld [vmem:[#allocation36_spill] sm:$0xff] }
 0x315   : > { %v6285_v60 = vrot.slane %v6284_v59, 1 }
 0x316   : > { %v6210_v34 = vadd.f32 %v6209_v36, %v6208_v7  ;;  %v17118_v7 = vld [vmem:[#allocation28_spill] sm:$0xff] }
 0x317   : > { %v6286_v44 = vadd.f32 %v6285_v60, %v6284_v59 }
 0x318   : > { %v6211_v54 = vrot.slane %v6210_v34, 4 }
 0x31a   : > { %v6212_v5 = vadd.f32 %v6211_v54, %v6210_v34  ;;  %v17120_v54 = vld [vmem:[#allocation22_spill] sm:$0xff]  ;;  %v17132_v34 = vld [vmem:[#allocation45_spill] sm:$0xff] }
 0x31c   : > { %v6213_v63 = vrot.slane %v6212_v5, 2 }
 0x31e   : > { %v6214_v26 = vadd.f32 %v6213_v63, %v6212_v5 }
 0x320   : > { %v6215_v17 = vrot.slane %v6214_v26, 1 }
 0x322   : > { %v6216_v29 = vadd.f32 %v6215_v17, %v6214_v26  ;;  %v17122_v17 = vld [vmem:[#allocation27_spill] sm:$0xff]  ;;  %v17134_v26 = vld [vmem:[#allocation49_spill] sm:$0xff] }
 0x324   : > { %v6217_v47 = vadd.f32 %v6216_v29, %v13296_v61  ;;  %v17124_v61 = vld [vmem:[#allocation34_spill] sm:$0xff] }
 0x326   : > { %v6287_v27 = vadd.f32 %v6286_v44, %v6217_v47  ;;  %v17126_v44 = vld [vmem:[#allocation37_spill] sm:$0xff] }
 0x328   : > { %v13638_v11 = vmul.f32 0.0009765625, %v6287_v27  ;;  %v17136_v27 = vld [vmem:[#allocation43_spill] sm:$0xff] }
 0x32a   : > { %v13642_v46 = vsub.f32 %v17116_v50, %v13638_v11  ;;  %v13646_v33 = vsub.f32 %v17118_v7, %v13638_v11  ;;  %v13650_v5 = vsub.f32 %v17120_v54, %v13638_v11  ;;  %v13654_v59 = vsub.f32 %v17122_v17, %v13638_v11  ;;  %v17138_v7 = vld [vmem:[#allocation48_spill] sm:$0xff]  ;;  %v17140_v17 = vld [vmem:[#allocation57_spill] sm:$0xff] }
 0x32b   : > { %v13658_v29 = vsub.f32 %v17124_v61, %v13638_v11  ;;  %v13662_v60 = vsub.f32 %v17126_v44, %v13638_v11  ;;  %v13666_v12 = vsub.f32 %v17128_v57, %v13638_v11  ;;  %v13670_v36 = vsub.f32 %v17130_v62, %v13638_v11  ;;  %v17142_v44 = vld [vmem:[#allocation61_spill] sm:$0xff]  ;;  %v17144_v62 = vld [vmem:[#allocation55_spill] sm:$0xff] }
 0x32c   : > { %17117 = vst [vmem:[#allocation24_spill] sm:$0xff] %v13642_v46  ;;  %17119 = vst [vmem:[#allocation28_spill] sm:$0xff] %v13646_v33  ;;  %v13674_v63 = vsub.f32 %v17132_v34, %v13638_v11  ;;  %v13678_v47 = vsub.f32 %v17134_v26, %v13638_v11  ;;  %v13682_v50 = vsub.f32 %v17136_v27, %v13638_v11  ;;  %v17146_v26 = vld [vmem:[#allocation60_spill] sm:$0xff] }
 0x32d   : > { %17121 = vst [vmem:[#allocation22_spill] sm:$0xff] %v13650_v5  ;;  %17123 = vst [vmem:[#allocation27_spill] sm:$0xff] %v13654_v59  ;;  %v13686_v54 = vsub.f32 %v17138_v7, %v13638_v11  ;;  %v13690_v61 = vsub.f32 %v17140_v17, %v13638_v11  ;;  %v13694_v57 = vsub.f32 %v17142_v44, %v13638_v11 }
 0x32e   : > { %17125 = vst [vmem:[#allocation34_spill] sm:$0xff] %v13658_v29  ;;  %17127 = vst [vmem:[#allocation37_spill] sm:$0xff] %v13662_v60  ;;  %v13698_v34 = vsub.f32 %v17144_v62, %v13638_v11  ;;  %v13702_v27 = vsub.f32 %v17146_v26, %v13638_v11  ;;  %v13706_v7 = vsub.f32 %v13105_v51, %v13638_v11 }
 0x32f   : > { %17129 = vst [vmem:[#allocation32_spill] sm:$0xff] %v13666_v12  ;;  %17131 = vst [vmem:[#allocation36_spill] sm:$0xff] %v13670_v36  ;;  %v13710_v17 = vsub.f32 %v13117_v37, %v13638_v11  ;;  %v13714_v44 = vsub.f32 %v17150_v16, %v13638_v11  ;;  %v13718_v62 = vsub.f32 %v13112_v3, %v13638_v11 }
 0x330   : > { %17133 = vst [vmem:[#allocation45_spill] sm:$0xff] %v13674_v63  ;;  %17135 = vst [vmem:[#allocation49_spill] sm:$0xff] %v13678_v47  ;;  %v13722_v26 = vsub.f32 %v13154_v40, %v13638_v11  ;;  %v13726_v51 = vsub.f32 %v13163_v13, %v13638_v11  ;;  %v13730_v37 = vsub.f32 %v13149_v2, %v13638_v11 }
 0x331   : > { %17137 = vst [vmem:[#allocation43_spill] sm:$0xff] %v13682_v50  ;;  %17139 = vst [vmem:[#allocation48_spill] sm:$0xff] %v13686_v54  ;;  %v13734_v16 = vsub.f32 %v13160_v19, %v13638_v11  ;;  %v13738_v3 = vsub.f32 %v13199_v0, %v13638_v11  ;;  %v13742_v40 = vsub.f32 %v13211_v41, %v13638_v11 }
 0x332   : > { %17141 = vst [vmem:[#allocation57_spill] sm:$0xff] %v13690_v61  ;;  %17143 = vst [vmem:[#allocation61_spill] sm:$0xff] %v13694_v57  ;;  %v13746_v13 = vsub.f32 %v13194_v20, %v13638_v11  ;;  %v13750_v2 = vsub.f32 %v13205_v8, %v13638_v11  ;;  %v13754_v19 = vsub.f32 %v13237_v21, %v13638_v11  ;;  %v13770_v8 = vpop.permute.xlu0 %7053 }
 0x333   : > { %17145 = vst [vmem:[#allocation55_spill] sm:$0xff] %v13698_v34  ;;  %17147 = vst [vmem:[#allocation60_spill] sm:$0xff] %v13702_v27  ;;  %v13758_v0 = vsub.f32 %v13247_v6, %v13638_v11  ;;  %v13762_v41 = vsub.f32 %v13234_v35, %v13638_v11  ;;  %v13766_v20 = vsub.f32 %v13241_v10, %v13638_v11 }
 0x334   : > { %17148 = vst [vmem:[#allocation89_spill] sm:$0xff] %v13706_v7  ;;  %17149 = vst [vmem:[#allocation90_spill] sm:$0xff] %v13710_v17  ;;  %v6322_v21 = vmul.f32 %v13642_v46, %v13642_v46  ;;  %v6324_v6 = vmul.f32 %v13650_v5, %v13650_v5  ;;  %v6325_v35 = vmul.f32 %v13654_v59, %v13654_v59  ;;  %v17213_v7 = vld [vmem:[#allocation63_spill] sm:$0xff] }
 0x335   : > { %17151 = vst [vmem:[#allocation65_spill] sm:$0xff] %v13714_v44  ;;  %17152 = vst [vmem:[#allocation91_spill] sm:$0xff] %v13718_v62  ;;  %v6326_v46 = vmul.f32 %v13658_v29, %v13658_v29  ;;  %v6327_v5 = vmul.f32 %v13662_v60, %v13662_v60  ;;  %v17185_v29 = vld [vmem:[#allocation21_spill] sm:$0xff]  ;;  %v17187_v60 = vld [vmem:[#allocation30_spill] sm:$0xff] }
 0x336   : > { %17153 = vst [vmem:[#allocation92_spill] sm:$0xff] %v13722_v26  ;;  %17154 = vst [vmem:[#allocation93_spill] sm:$0xff] %v13726_v51  ;;  %v6359_v59 = vsel %vm6008_vm7, %v6325_v35, 0.0  ;;  %v17173_v35 = vld [vmem:[#allocation17_spill] sm:$0xff]  ;;  %v17199_v51 = vld [vmem:[#allocation38_spill] sm:$0xff] }
 0x337   : > { %17155 = vst [vmem:[#allocation94_spill] sm:$0xff] %v13730_v37  ;;  %17156 = vst [vmem:[#allocation95_spill] sm:$0xff] %v13734_v16  ;;  %v17195_v16 = vld [vmem:[#allocation41_spill] sm:$0xff]  ;;  %v17197_v37 = vld [vmem:[#allocation44_spill] sm:$0xff] }
 0x338   : > { %17157 = vst [vmem:[#allocation96_spill] sm:$0xff] %v13738_v3  ;;  %17158 = vst [vmem:[#allocation97_spill] sm:$0xff] %v13742_v40  ;;  %v17189_v40 = vld [vmem:[#allocation33_spill] sm:$0xff]  ;;  %v17201_v26 = vld [vmem:[#allocation42_spill] sm:$0xff] }
 0x339   : > { %17159 = vst [vmem:[#allocation98_spill] sm:$0xff] %v13746_v13  ;;  %17160 = vst [vmem:[#allocation99_spill] sm:$0xff] %v13750_v2  ;;  %v13768_v13 = vpop.permute.xlu1 %7057  ;;  %v13871_v62 = vsub.f32 %v17201_v26, %v13638_v11 }
 0x33a   : > { %17161 = vst [vmem:[#allocation100_spill] sm:$0xff] %v13754_v19  ;;  %17162 = vst [vmem:[#allocation101_spill] sm:$0xff] %v13758_v0  ;;  %v6323_v19 = vmul.f32 %v13646_v33, %v13646_v33  ;;  %v6357_v33 = vsel %vm6008_vm7, %v6324_v6, 0.0 }
 0x33b   : > { %17163 = vst [vmem:[#allocation102_spill] sm:$0xff] %v13762_v41  ;;  %17164 = vst [vmem:[#allocation103_spill] sm:$0xff] %v13766_v20  ;;  %v6354_v41 = vsel %vm6008_vm7, %v6322_v21, 0.0  ;;  %v6361_v21 = vsel %vm6008_vm7, %v6326_v46, 0.0  ;;  %v17171_v46 = vld [vmem:[#allocation3_spill] sm:$0xff] }
 0x33c   : > { %17165 = vst [vmem:[#allocation104_spill] sm:$0xff] %v13768_v13  ;;  %17166 = vst [vmem:[#allocation105_spill] sm:$0xff] %v13770_v8  ;;  %v6355_v10 = vsel %vm6008_vm7, %v6323_v19, 0.0  ;;  %v13784_v13 = vpop.permute.xlu0 %7055  ;;  %v6328_v19 = vmul.f32 %v13666_v12, %v13666_v12  ;;  %v13806_v6 = vsub.f32 %v17171_v46, %v13638_v11  ;;  %v17183_v46 = vld [vmem:[#allocation6_spill] sm:$0xff] }
 0x33d   : > { %v13782_v20 = vpop.permute.xlu1 %7059  ;;  %17168 = vst [vmem:[#allocation107_spill] sm:$0xff] %v13784_v13  ;;  %v6356_v8 = vadd.f32 %v6355_v10, %v6354_v41  ;;  %v7501_v12 = vld [vmem:[%s12559_s29 + $0x1e0] sm:$0xff]  ;;  %17202 = vst [vmem:[#allocation42_spill] sm:$0xff] %v13871_v62 }
 0x33e   : > { %17167 = vst [vmem:[#allocation106_spill] sm:$0xff] %v13782_v20  ;;  %17172 = vst [vmem:[#allocation3_spill] sm:$0xff] %v13806_v6  ;;  %7595 = vrot.lane.b32.xlu0 %v7501_v12, %s10772_s25 }
 0x33f   : > { %v6358_v0 = vadd.f32 %v6357_v33, %v6356_v8  ;;  %v6329_v33 = vmul.f32 %v13670_v36, %v13670_v36  ;;  %v6330_v8 = vmul.f32 %v13674_v63, %v13674_v63  ;;  %v17179_v63 = vld [vmem:[#allocation20_spill] sm:$0xff]  ;;  %v7502_v36 = vld [vmem:[%s12559_s29 + $0x1e8] sm:$0xff] }
 0x340   : > { %v13797_v20 = vpop.permute.xlu0 %7061  ;;  %7597 = vrot.lane.b32.xlu1 %v7502_v36, %s10772_s25 }
 0x341   : > { %v6360_v2 = vadd.f32 %v6359_v59, %v6358_v0  ;;  %v13795_v10 = vpop.permute.xlu1 %7063  ;;  %17170 = vst [vmem:[#allocation109_spill] sm:$0xff] %v13797_v20  ;;  %v6363_v59 = vsel %vm6008_vm7, %v6327_v5, 0.0  ;;  %v17177_v20 = vld [vmem:[#allocation4_spill] sm:$0xff]  ;;  %v13822_v5 = vsub.f32 %v17179_v63, %v13638_v11  ;;  %v13841_v63 = vsub.f32 %v17187_v60, %v13638_v11 }
 0x342   : > { %17169 = vst [vmem:[#allocation108_spill] sm:$0xff] %v13795_v10  ;;  %v13818_v10 = vsub.f32 %v17177_v20, %v13638_v11  ;;  %v13837_v20 = vsub.f32 %v17185_v29, %v13638_v11  ;;  %v13858_v60 = vsub.f32 %v17195_v16, %v13638_v11 }
 0x343   : > { %v6362_v41 = vadd.f32 %v6361_v21, %v6360_v2  ;;  %v13810_v2 = vsub.f32 %v17173_v35, %v13638_v11  ;;  %v17175_v21 = vld [vmem:[#allocation14_spill] sm:$0xff]  ;;  %17180 = vst [vmem:[#allocation20_spill] sm:$0xff] %v13822_v5  ;;  %v13830_v35 = vsub.f32 %v17183_v46, %v13638_v11  ;;  %17188 = vst [vmem:[#allocation30_spill] sm:$0xff] %v13841_v63  ;;  %v17191_v46 = vld [vmem:[#allocation29_spill] sm:$0xff] }
 0x344   : > { %v13814_v13 = vsub.f32 %v17175_v21, %v13638_v11  ;;  %17178 = vst [vmem:[#allocation4_spill] sm:$0xff] %v13818_v10  ;;  %v6365_v21 = vsel %vm6008_vm7, %v6328_v19, 0.0  ;;  %17186 = vst [vmem:[#allocation21_spill] sm:$0xff] %v13837_v20  ;;  %v13850_v3 = vsub.f32 %v17191_v46, %v13638_v11  ;;  %v17193_v19 = vld [vmem:[#allocation31_spill] sm:$0xff]  ;;  %v13867_v46 = vsub.f32 %v17199_v51, %v13638_v11  ;;  %v13879_v17 = vpop.permute.xlu0 %7065 }
 0x345   : > { %v6364_v0 = vadd.f32 %v6363_v59, %v6362_v41  ;;  %17174 = vst [vmem:[#allocation17_spill] sm:$0xff] %v13810_v2  ;;  %v17181_v41 = vld [vmem:[#allocation23_spill] sm:$0xff]  ;;  %17184 = vst [vmem:[#allocation6_spill] sm:$0xff] %v13830_v35  ;;  %v13854_v29 = vsub.f32 %v17193_v19, %v13638_v11  ;;  %v17203_v19 = vld [vmem:[#allocation53_spill] sm:$0xff]  ;;  %v13877_v16 = vpop.permute.xlu1 %7067 }
 0x346   : > { %17176 = vst [vmem:[#allocation14_spill] sm:$0xff] %v13814_v13  ;;  %v13826_v59 = vsub.f32 %v17181_v41, %v13638_v11  ;;  %v13845_v41 = vsub.f32 %v17189_v40, %v13638_v11  ;;  %17192 = vst [vmem:[#allocation29_spill] sm:$0xff] %v13850_v3  ;;  %v13862_v40 = vsub.f32 %v17197_v37, %v13638_v11  ;;  %v17207_v37 = vld [vmem:[#allocation56_spill] sm:$0xff] }
 0x347   : > { %17194 = vst [vmem:[#allocation31_spill] sm:$0xff] %v13854_v29  ;;  %17196 = vst [vmem:[#allocation41_spill] sm:$0xff] %v13858_v60  ;;  %v6366_v36 = vadd.f32 %v6365_v21, %v6364_v0  ;;  %v13875_v44 = vsub.f32 %v17203_v19, %v13638_v11  ;;  %v13883_v12 = vsub.f32 %v17207_v37, %v13638_v11  ;;  %v17209_v0 = vld [vmem:[#allocation50_spill] sm:$0xff] }
 0x348   : > { %17182 = vst [vmem:[#allocation23_spill] sm:$0xff] %v13826_v59  ;;  %17190 = vst [vmem:[#allocation33_spill] sm:$0xff] %v13845_v41  ;;  %v13887_v51 = vsub.f32 %v17209_v0, %v13638_v11  ;;  %v17211_v21 = vld [vmem:[#allocation54_spill] sm:$0xff]  ;;  %v13895_v19 = vsub.f32 %v17213_v7, %v13638_v11 }
 0x349   : > { %17198 = vst [vmem:[#allocation44_spill] sm:$0xff] %v13862_v40  ;;  %17200 = vst [vmem:[#allocation38_spill] sm:$0xff] %v13867_v46  ;;  %v13891_v26 = vsub.f32 %v17211_v21, %v13638_v11  ;;  %v17215_v37 = vld [vmem:[#allocation66_spill] sm:$0xff]  ;;  %v17219_v21 = vld [vmem:[#allocation64_spill] sm:$0xff] }
 0x34a   : > { %17204 = vst [vmem:[#allocation53_spill] sm:$0xff] %v13875_v44  ;;  %17205 = vst [vmem:[#allocation110_spill] sm:$0xff] %v13877_v16  ;;  %v13898_v44 = vld [vmem:[%s12559_s29 + $0x18] sm:$0xff]  ;;  %v13901_v16 = vld [vmem:[%s12559_s29 + $0x10] sm:$0xff]  ;;  %v13914_v7 = vsub.f32 %v17219_v21, %v13638_v11 }
 0x34b   : > { %17206 = vst [vmem:[#allocation111_spill] sm:$0xff] %v13879_v17  ;;  %17208 = vst [vmem:[#allocation56_spill] sm:$0xff] %v13883_v12  ;;  %v6367_v17 = vsel %vm6008_vm7, %v6329_v33, 0.0  ;;  %v13906_v12 = vsub.f32 %v17215_v37, %v13638_v11  ;;  %v17217_v0 = vld [vmem:[#allocation62_spill] sm:$0xff]  ;;  %7892 = vrot.lane.b32.xlu1 %v13898_v44, %s10771_s30  ;;  %v13920_v33 = vsub.f32 %v13141_v24, %v13638_v11  ;;  %7890 = vrot.lane.b32.xlu0 %v13901_v16, %s10771_s30 }
 0x34c   : > { %17210 = vst [vmem:[#allocation50_spill] sm:$0xff] %v13887_v51  ;;  %17212 = vst [vmem:[#allocation54_spill] sm:$0xff] %v13891_v26  ;;  %v13910_v51 = vsub.f32 %v17217_v0, %v13638_v11  ;;  %v13924_v37 = vsub.f32 %v13151_v31, %v13638_v11  ;;  %v6368_v21 = vadd.f32 %v6367_v17, %v6366_v36  ;;  %v13957_v36 = vld [vmem:[%s12559_s29 + $0x38] sm:$0xff] }
 0x34d   : > { %17214 = vst [vmem:[#allocation63_spill] sm:$0xff] %v13895_v19  ;;  %17216 = vst [vmem:[#allocation66_spill] sm:$0xff] %v13906_v12  ;;  %v17223_v12 = vld [vmem:[#allocation67_spill] sm:$0xff]  ;;  %v13938_v24 = vsub.f32 %v13186_v18, %v13638_v11  ;;  %v13942_v31 = vsub.f32 %v13196_v53, %v13638_v11  ;;  %v13954_v17 = vsub.f32 %v13190_v38, %v13638_v11  ;;  %v13960_v18 = vld [vmem:[%s12559_s29 + $0x30] sm:$0xff] }
 0x34e   : > { %17218 = vst [vmem:[#allocation62_spill] sm:$0xff] %v13910_v51  ;;  %17220 = vst [vmem:[#allocation64_spill] sm:$0xff] %v13914_v7  ;;  %v13928_v0 = vsub.f32 %v17223_v12, %v13638_v11  ;;  %v17225_v51 = vld [vmem:[#allocation68_spill] sm:$0xff]  ;;  %v13946_v12 = vsub.f32 %v13180_v1, %v13638_v11  ;;  %v6331_v53 = vmul.f32 %v13678_v47, %v13678_v47  ;;  %v6369_v1 = vsel %vm6008_vm7, %v6330_v8, 0.0 }
 0x34f   : > { %17221 = vst [vmem:[#allocation112_spill] sm:$0xff] %v13920_v33  ;;  %17222 = vst [vmem:[#allocation113_spill] sm:$0xff] %v13924_v37  ;;  %v13932_v19 = vsub.f32 %v17225_v51, %v13638_v11  ;;  %v13948_v51 = vpop.permute.xlu1 %7071  ;;  %7896 = vrot.lane.b32.xlu1 %v13957_v36, %s10771_s30  ;;  %7894 = vrot.lane.b32.xlu0 %v13960_v18, %s10771_s30  ;;  %v6457_v8 = vmul.f32 %v13810_v2, %v13810_v2  ;;  %v13997_v2 = vld [vmem:[%s12559_s29 + $0x78] sm:$0xff] }
 0x350   : > { %17224 = vst [vmem:[#allocation67_spill] sm:$0xff] %v13928_v0  ;;  %17227 = vst [vmem:[#allocation114_spill] sm:$0xff] %v13938_v24  ;;  %v14000_v24 = vld [vmem:[%s12559_s29 + $0x70] sm:$0xff]  ;;  %v14021_v33 = vld [vmem:[%s12559_s29 + $0x98] sm:$0xff] }
 0x351   : > { %17226 = vst [vmem:[#allocation68_spill] sm:$0xff] %v13932_v19  ;;  %17228 = vst [vmem:[#allocation115_spill] sm:$0xff] %v13942_v31  ;;  %v13950_v19 = vpop.permute.xlu0 %7069  ;;  %v6456_v31 = vmul.f32 %v13806_v6, %v13806_v6 }
 0x352   : > { %17229 = vst [vmem:[#allocation116_spill] sm:$0xff] %v13946_v12  ;;  %17230 = vst [vmem:[#allocation117_spill] sm:$0xff] %v13948_v51  ;;  %v6370_v51 = vadd.f32 %v6369_v1, %v6368_v21  ;;  %v13977_v12 = vld [vmem:[%s12559_s29 + $0x50] sm:$0xff]  ;;  %v6332_v21 = vmul.f32 %v13682_v50, %v13682_v50  ;;  %v6371_v1 = vsel %vm6008_vm7, %v6331_v53, 0.0  ;;  %v6459_v53 = vmul.f32 %v13818_v10, %v13818_v10 }
 0x353   : > { %17231 = vst [vmem:[#allocation118_spill] sm:$0xff] %v13950_v19  ;;  %17232 = vst [vmem:[#allocation119_spill] sm:$0xff] %v13954_v17  ;;  %v13969_v38 = vpop.permute.xlu1 %7075  ;;  %v13974_v17 = vld [vmem:[%s12559_s29 + $0x58] sm:$0xff]  ;;  %7898 = vrot.lane.b32.xlu0 %v13977_v12, %s10771_s30  ;;  %v6488_v50 = vsel %vm6008_vm7, %v6456_v31, 0.0  ;;  %v6460_v10 = vmul.f32 %v13822_v5, %v13822_v5 }
 0x354   : > { %17233 = vst [vmem:[#allocation120_spill] sm:$0xff] %v13969_v38  ;;  %7900 = vrot.lane.b32.xlu1 %v13974_v17, %s10771_s30  ;;  %v6372_v38 = vadd.f32 %v6371_v1, %v6370_v51  ;;  %v6489_v51 = vsel %vm6008_vm7, %v6457_v8, 0.0  ;;  %v6333_v1 = vmul.f32 %v13686_v54, %v13686_v54  ;;  %v14024_v54 = vld [vmem:[%s12559_s29 + $0x90] sm:$0xff] }
 0x355   : > { %v13971_v19 = vpop.permute.xlu0 %7073 }
 0x356   : > { %17234 = vst [vmem:[#allocation121_spill] sm:$0xff] %v13971_v19  ;;  %v6458_v19 = vmul.f32 %v13814_v13, %v13814_v13 }
 0x357   : > { %v13992_v47 = vpop.permute.xlu1 %7079  ;;  %7902 = vrot.lane.b32.xlu0 %v14000_v24, %s10771_s30 }
 0x358   : > { %17235 = vst [vmem:[#allocation122_spill] sm:$0xff] %v13992_v47  ;;  %7904 = vrot.lane.b32.xlu1 %v13997_v2, %s10771_s30  ;;  %v6373_v47 = vsel %vm6008_vm7, %v6332_v21, 0.0  ;;  %v6491_v31 = vsel %vm6008_vm7, %v6458_v19, 0.0  ;;  %v6375_v19 = vsel %vm6008_vm7, %v6333_v1, 0.0 }
 0x359   : > { %v13994_v6 = vpop.permute.xlu0 %7077  ;;  %v6374_v13 = vadd.f32 %v6373_v47, %v6372_v38  ;;  %v6461_v47 = vmul.f32 %v13826_v59, %v13826_v59  ;;  %v6493_v38 = vsel %vm6008_vm7, %v6459_v53, 0.0  ;;  %v14045_v53 = vmul.f32 %v13694_v57, %v13694_v57 }
 0x35a   : > { %17236 = vst [vmem:[#allocation123_spill] sm:$0xff] %v13994_v6  ;;  %v6490_v6 = vadd.f32 %v6489_v51, %v6488_v50  ;;  %v6334_v50 = vmul.f32 %v13690_v61, %v13690_v61  ;;  %v6462_v51 = vmul.f32 %v13830_v35, %v13830_v35  ;;  %v6464_v35 = vmul.f32 %v13841_v63, %v13841_v63 }
 0x35b   : > { %v14016_v0 = vpop.permute.xlu1 %7083  ;;  %7906 = vrot.lane.b32.xlu0 %v14024_v54, %s10771_s30  ;;  %v6376_v21 = vadd.f32 %v6375_v19, %v6374_v13  ;;  %v14055_v13 = vld [vmem:[%s12559_s29 + $0xb0] sm:$0xff] }
 0x35c   : > { %17237 = vst [vmem:[#allocation124_spill] sm:$0xff] %v14016_v0  ;;  %v6492_v37 = vadd.f32 %v6491_v31, %v6490_v6  ;;  %7908 = vrot.lane.b32.xlu1 %v14021_v33, %s10771_s30  ;;  %v6495_v31 = vsel %vm6008_vm7, %v6460_v10, 0.0  ;;  %v6377_v19 = vsel %vm6008_vm7, %v6334_v50, 0.0  ;;  %v6463_v10 = vmul.f32 %v13837_v20, %v13837_v20 }
 0x35d   : > { %v14018_v8 = vpop.permute.xlu0 %7081  ;;  %v6467_v50 = vmul.f32 %v13854_v29, %v13854_v29  ;;  %v14073_v63 = vadd.f32 %v6377_v19, %v6376_v21  ;;  %v14094_v21 = vsub.f32 %v13415_v52, %v13638_v11  ;;  %v14098_v19 = vsub.f32 %v13405_v28, %v13638_v11  ;;  %v14166_v29 = vld [vmem:[%s12559_s29 + $0xf0] sm:$0xff] }
 0x35e   : > { %17238 = vst [vmem:[#allocation125_spill] sm:$0xff] %v14018_v8  ;;  %v6494_v6 = vadd.f32 %v6493_v38, %v6492_v37  ;;  %v14049_v37 = vmul.f32 %v13698_v34, %v13698_v34  ;;  %v14052_v38 = vld [vmem:[%s12559_s29 + $0xb8] sm:$0xff]  ;;  %v14117_v52 = vsub.f32 %v13449_v49, %v13638_v11  ;;  %v6503_v49 = vsel %vm6008_vm7, %v6464_v35, 0.0  ;;  %17260 = vst [vmem:[#allocation147_spill] sm:$0xff] %v14166_v29  ;;  %v17271_v8 = vld [vmem:[#allocation82_spill] sm:$0xff] }
 0x35f   : > { %v14039_v5 = vpop.permute.xlu1 %7087  ;;  %7910 = vrot.lane.b32.xlu0 %v14055_v13, %s10771_s30  ;;  %17244 = vst [vmem:[#allocation131_spill] sm:$0xff] %v14094_v21  ;;  %17245 = vst [vmem:[#allocation132_spill] sm:$0xff] %v14098_v19  ;;  %v14156_v35 = vsub.f32 %v13513_v14, %v13638_v11  ;;  %v14179_v14 = vsub.f32 %v13545_v23, %v13638_v11  ;;  %v14216_v34 = vsub.f32 %v17271_v8, %v13638_v11 }
 0x360   : > { %17239 = vst [vmem:[#allocation126_spill] sm:$0xff] %v14039_v5  ;;  %v6496_v1 = vadd.f32 %v6495_v31, %v6494_v6  ;;  %v6497_v5 = vsel %vm6008_vm7, %v6461_v47, 0.0  ;;  %7912 = vrot.lane.b32.xlu1 %v14052_v38, %s10771_s30  ;;  %v6465_v6 = vmul.f32 %v13845_v41, %v13845_v41  ;;  %v6466_v31 = vmul.f32 %v13850_v3, %v13850_v3 }
 0x361   : > { %v14041_v59 = vpop.permute.xlu0 %7085  ;;  %v14077_v47 = vmul.f32 %v13858_v60, %v13858_v60  ;;  %v14081_v41 = vmul.f32 %v13862_v40, %v13862_v40  ;;  %v14101_v60 = vld [vmem:[%s12559_s29 + $0xd8] sm:$0xff]  ;;  %v6501_v40 = vsel %vm6008_vm7, %v6463_v10, 0.0  ;;  %17248 = vst [vmem:[#allocation135_spill] sm:$0xff] %v14117_v52  ;;  %17257 = vst [vmem:[#allocation144_spill] sm:$0xff] %v14156_v35 }
 0x362   : > { %17240 = vst [vmem:[#allocation127_spill] sm:$0xff] %v14041_v59  ;;  %v6498_v20 = vadd.f32 %v6497_v5, %v6496_v1  ;;  %v6499_v59 = vsel %vm6008_vm7, %v6462_v51, 0.0  ;;  %v14090_v1 = vsub.f32 %v13409_v30, %v13638_v11  ;;  %v14104_v51 = vld [vmem:[%s12559_s29 + $0xd0] sm:$0xff]  ;;  %v14113_v30 = vsub.f32 %v13441_v55, %v13638_v11  ;;  %17262 = vst [vmem:[#allocation149_spill] sm:$0xff] %v14179_v14 }
 0x363   : > { %v14084_v3 = vpop.permute.xlu1 %7091  ;;  %v14131_v55 = vsub.f32 %v13473_v15, %v13638_v11  ;;  %7914 = vrot.lane.b32.xlu0 %v14104_v51, %s10771_s30 }
 0x364   : > { %17241 = vst [vmem:[#allocation128_spill] sm:$0xff] %v14084_v3  ;;  %v6500_v5 = vadd.f32 %v6499_v59, %v6498_v20  ;;  %17243 = vst [vmem:[#allocation130_spill] sm:$0xff] %v14090_v1  ;;  %v14109_v59 = vsub.f32 %v13413_v22, %v13638_v11  ;;  %7916 = vrot.lane.b32.xlu1 %v14101_v60, %s10771_s30  ;;  %v14123_v20 = vsub.f32 %v13437_v9, %v13638_v11 }
 0x365   : > { %v14086_v0 = vpop.permute.xlu0 %7089  ;;  %17247 = vst [vmem:[#allocation134_spill] sm:$0xff] %v14113_v30  ;;  %v14127_v22 = vsub.f32 %v13447_v39, %v13638_v11  ;;  %17251 = vst [vmem:[#allocation138_spill] sm:$0xff] %v14131_v55  ;;  %v14142_v9 = vsub.f32 %v13469_v56, %v13638_v11  ;;  %v14146_v39 = vsub.f32 %v13479_v43, %v13638_v11  ;;  %v14163_v56 = vld [vmem:[%s12559_s29 + $0xf8] sm:$0xff]  ;;  %v6505_v43 = vsel %vm6008_vm7, %v6465_v6, 0.0 }
 0x366   : > { %17242 = vst [vmem:[#allocation129_spill] sm:$0xff] %v14086_v0  ;;  %17246 = vst [vmem:[#allocation133_spill] sm:$0xff] %v14109_v59  ;;  %v6502_v28 = vadd.f32 %v6501_v40, %v6500_v5  ;;  %v14138_v40 = vsub.f32 %v13481_v42, %v13638_v11  ;;  %v14152_v5 = vsub.f32 %v13505_v48, %v13638_v11 }
 0x367   : > { %17249 = vst [vmem:[#allocation136_spill] sm:$0xff] %v14123_v20  ;;  %17250 = vst [vmem:[#allocation137_spill] sm:$0xff] %v14127_v22  ;;  %v14148_v10 = vpop.permute.xlu1 %7095  ;;  %v14160_v42 = vsub.f32 %v13501_v58, %v13638_v11  ;;  %v14175_v48 = vsub.f32 %v13537_v4, %v13638_v11  ;;  %v14191_v4 = vsub.f32 %v13543_v32, %v13638_v11  ;;  %7918 = vrot.lane.b32.xlu0 %v14166_v29, %s10771_s30  ;;  %v17269_v32 = vld [vmem:[#allocation75_spill] sm:$0xff]  ;;  %v14230_v29 = vld [vmem:[%s12559_s29 + $0x110] sm:$0xff] }
 0x368   : > { %17252 = vst [vmem:[#allocation139_spill] sm:$0xff] %v14138_v40  ;;  %17253 = vst [vmem:[#allocation140_spill] sm:$0xff] %v14142_v9  ;;  %v6504_v15 = vadd.f32 %v6503_v49, %v6502_v28  ;;  %v14171_v28 = vsub.f32 %v13511_v45, %v13638_v11  ;;  %7920 = vrot.lane.b32.xlu1 %v14163_v56, %s10771_s30  ;;  %v14187_v45 = vsub.f32 %v13533_v25, %v13638_v11  ;;  %v17266_v49 = vld [vmem:[#allocation74_spill] sm:$0xff]  ;;  %v17268_v25 = vld [vmem:[#allocation72_spill] sm:$0xff] }
 0x369   : > { %17254 = vst [vmem:[#allocation141_spill] sm:$0xff] %v14146_v39  ;;  %17255 = vst [vmem:[#allocation142_spill] sm:$0xff] %v14148_v10  ;;  %v14181_v58 = vpop.permute.xlu0 %7093  ;;  %v14195_v23 = vsub.f32 %v17266_v49, %v13638_v11  ;;  %v6507_v10 = vsel %vm6008_vm7, %v6466_v31, 0.0  ;;  %v14210_v3 = vsub.f32 %v17269_v32, %v13638_v11  ;;  %v17272_v31 = vld [vmem:[#allocation84_spill] sm:$0xff]  ;;  %v6509_v32 = vsel %vm6008_vm7, %v6467_v50, 0.0 }
 0x36a   : > { %17256 = vst [vmem:[#allocation143_spill] sm:$0xff] %v14152_v5  ;;  %17258 = vst [vmem:[#allocation145_spill] sm:$0xff] %v14160_v42  ;;  %v6506_v6 = vadd.f32 %v6505_v43, %v6504_v15  ;;  %v14206_v43 = vsub.f32 %v17268_v25, %v13638_v11  ;;  %v14220_v57 = vsub.f32 %v17272_v31, %v13638_v11  ;;  %v14227_v25 = vld [vmem:[%s12559_s29 + $0x118] sm:$0xff] }
 0x36b   : > { %17259 = vst [vmem:[#allocation146_spill] sm:$0xff] %v14163_v56  ;;  %17261 = vst [vmem:[#allocation148_spill] sm:$0xff] %v14175_v48  ;;  %v14212_v0 = vpop.permute.xlu1 %7099  ;;  %7922 = vrot.lane.b32.xlu0 %v14230_v29, %s10771_s30 }
 0x36c   : > { %17263 = vst [vmem:[#allocation150_spill] sm:$0xff] %v14181_v58  ;;  %17264 = vst [vmem:[#allocation151_spill] sm:$0xff] %v14187_v45  ;;  %v17267_v58 = vld [vmem:[#allocation76_spill] sm:$0xff]  ;;  %v6508_v49 = vadd.f32 %v6507_v10, %v6506_v6  ;;  %v17276_v10 = vld [vmem:[#allocation83_spill] sm:$0xff]  ;;  %7924 = vrot.lane.b32.xlu1 %v14227_v25, %s10771_s30 }
 0x36d   : > { %17265 = vst [vmem:[#allocation152_spill] sm:$0xff] %v14191_v4  ;;  %v14202_v15 = vsub.f32 %v17267_v58, %v13638_v11  ;;  %17270 = vst [vmem:[#allocation74_spill] sm:$0xff] %v14212_v0  ;;  %v17274_v58 = vld [vmem:[#allocation80_spill] sm:$0xff]  ;;  %v14235_v8 = vsub.f32 %v17276_v10, %v13638_v11  ;;  %v17278_v6 = vld [vmem:[#allocation86_spill] sm:$0xff] }
 0x36e   : > { %17273 = vst [vmem:[#allocation76_spill] sm:$0xff] %v14220_v57  ;;  %v14224_v61 = vsub.f32 %v17274_v58, %v13638_v11  ;;  %v14239_v31 = vsub.f32 %v17278_v6, %v13638_v11  ;;  %v17280_v0 = vld [vmem:[#allocation88_spill] sm:$0xff]  ;;  %v6510_v50 = vadd.f32 %v6509_v32, %v6508_v49  ;;  %v17282_v57 = vld [vmem:[#allocation85_spill] sm:$0xff]  ;;  %v17284_v10 = vld [vmem:[#allocation87_spill] sm:$0xff]  ;;  %v6511_v6 = vsel %vm6008_vm7, %v14077_v47, 0.0 }
 0x36f   : > { %17277 = vst [vmem:[#allocation75_spill] sm:$0xff] %v14235_v8  ;;  %v14243_v58 = vsub.f32 %v17280_v0, %v13638_v11  ;;  %v14251_v56 = vsub.f32 %v17282_v57, %v13638_v11  ;;  %v14255_v8 = vsub.f32 %v17284_v10, %v13638_v11  ;;  %v14264_v49 = vpop.permute.xlu1 %7103  ;;  %v14267_v32 = vld [vmem:[%s12559_s29 + $0x138] sm:$0xff]  ;;  %v6470_v10 = vmul.f32 %v13867_v46, %v13867_v46 }
 0x370   : > { %17275 = vst [vmem:[#allocation72_spill] sm:$0xff] %v14224_v61  ;;  %17279 = vst [vmem:[#allocation82_spill] sm:$0xff] %v14239_v31  ;;  %v6379_v61 = vsel %vm6008_vm7, %v14045_v53, 0.0  ;;  %v14262_v53 = vpop.permute.xlu0 %7097  ;;  %v6512_v57 = vadd.f32 %v6511_v6, %v6510_v50  ;;  %7928 = vrot.lane.b32.xlu1 %v14267_v32, %s10771_s30  ;;  %v6381_v47 = vsel %vm6008_vm7, %v14049_v37, 0.0  ;;  %v14287_v46 = vld [vmem:[%s12559_s29 + $0x158] sm:$0xff]  ;;  %v6590_v37 = vmul.f32 %v14090_v1, %v14090_v1  ;;  %v14318_v31 = vld [vmem:[%s12559_s29 + $0x170] sm:$0xff] }
 0x371   : > { %17281 = vst [vmem:[#allocation84_spill] sm:$0xff] %v14243_v58  ;;  %17283 = vst [vmem:[#allocation80_spill] sm:$0xff] %v14251_v56  ;;  %v6380_v0 = vadd.f32 %v6379_v61, %v14073_v63  ;;  %v14270_v56 = vld [vmem:[%s12559_s29 + $0x130] sm:$0xff]  ;;  %v6513_v61 = vsel %vm6008_vm7, %v14081_v41, 0.0  ;;  %v6337_v63 = vmul.f32 %v13702_v27, %v13702_v27  ;;  %v6515_v27 = vsel %vm6008_vm7, %v6470_v10, 0.0  ;;  %v14315_v58 = vld [vmem:[%s12559_s29 + $0x178] sm:$0xff] }
 0x372   : > { %17285 = vst [vmem:[#allocation83_spill] sm:$0xff] %v14255_v8  ;;  %17286 = vst [vmem:[#allocation86_spill] sm:$0xff] %v14262_v53  ;;  %v6514_v50 = vadd.f32 %v6513_v61, %v6512_v57  ;;  %7926 = vrot.lane.b32.xlu0 %v14270_v56, %s10771_s30  ;;  %v14290_v41 = vld [vmem:[%s12559_s29 + $0x150] sm:$0xff]  ;;  %v6471_v53 = vmul.f32 %v13871_v62, %v13871_v62  ;;  %v6591_v57 = vmul.f32 %v14094_v21, %v14094_v21  ;;  %v17293_v61 = vld [vmem:[#allocation89_spill] sm:$0xff] }
 0x373   : > { %17287 = vst [vmem:[#allocation88_spill] sm:$0xff] %v14264_v49  ;;  %17288 = vst [vmem:[#allocation85_spill] sm:$0xff] %v14270_v56  ;;  %v6382_v6 = vadd.f32 %v6381_v47, %v6380_v0  ;;  %v14284_v49 = vpop.permute.xlu1 %7107  ;;  %v6338_v47 = vmul.f32 %v17293_v61, %v17293_v61  ;;  %v6592_v62 = vmul.f32 %v14098_v19, %v14098_v19  ;;  %v17295_v21 = vld [vmem:[#allocation53_spill] sm:$0xff] }
 0x374   : > { %17289 = vst [vmem:[#allocation87_spill] sm:$0xff] %v14284_v49  ;;  %17290 = vst [vmem:[#allocation153_spill] sm:$0xff] %v14287_v46  ;;  %v14299_v0 = vpop.permute.xlu0 %7101  ;;  %7932 = vrot.lane.b32.xlu1 %v14287_v46, %s10771_s30  ;;  %v6383_v49 = vsel %vm6008_vm7, %v6337_v63, 0.0  ;;  %v6516_v8 = vadd.f32 %v6515_v27, %v6514_v50  ;;  %v6517_v61 = vsel %vm6008_vm7, %v6471_v53, 0.0  ;;  %v6593_v27 = vmul.f32 %v14109_v59, %v14109_v59  ;;  %v17298_v50 = vld [vmem:[#allocation90_spill] sm:$0xff]  ;;  %v14340_v46 = vld [vmem:[%s12559_s29 + $0x198] sm:$0xff] }
 0x375   : > { %17291 = vst [vmem:[#allocation154_spill] sm:$0xff] %v14290_v41  ;;  %17292 = vst [vmem:[#allocation155_spill] sm:$0xff] %v14299_v0  ;;  %v6384_v10 = vadd.f32 %v6383_v49, %v6382_v6  ;;  %v6472_v0 = vmul.f32 %v17295_v21, %v17295_v21  ;;  %v6622_v49 = vsel %vm6008_vm7, %v6590_v37, 0.0  ;;  %v6623_v63 = vsel %vm6008_vm7, %v6591_v57, 0.0 }
 0x376   : > { %7930 = vrot.lane.b32.xlu0 %v14290_v41, %s10771_s30  ;;  %17296 = vst [vmem:[#allocation157_spill] sm:$0xff] %v14315_v58  ;;  %17297 = vst [vmem:[#allocation158_spill] sm:$0xff] %v14318_v31  ;;  %v6339_v6 = vmul.f32 %v17298_v50, %v17298_v50  ;;  %v6385_v21 = vsel %vm6008_vm7, %v6338_v47, 0.0  ;;  %v6624_v19 = vadd.f32 %v6623_v63, %v6622_v49  ;;  %v6625_v37 = vsel %vm6008_vm7, %v6592_v62, 0.0  ;;  %v14343_v50 = vld [vmem:[%s12559_s29 + $0x190] sm:$0xff] }
 0x377   : > { %v14310_v1 = vpop.permute.xlu1 %7111  ;;  %v6386_v53 = vadd.f32 %v6385_v21, %v6384_v10  ;;  %v6594_v59 = vmul.f32 %v14113_v30, %v14113_v30  ;;  %17301 = vst [vmem:[#allocation161_spill] sm:$0xff] %v14340_v46  ;;  %17302 = vst [vmem:[#allocation162_spill] sm:$0xff] %v14343_v50  ;;  %v6519_v21 = vsel %vm6008_vm7, %v6472_v0, 0.0  ;;  %v6595_v47 = vmul.f32 %v14117_v52, %v14117_v52 }
 0x378   : > { %17294 = vst [vmem:[#allocation156_spill] sm:$0xff] %v14310_v1  ;;  %7936 = vrot.lane.b32.xlu1 %v14315_v58, %s10771_s30  ;;  %v6518_v1 = vadd.f32 %v6517_v61, %v6516_v8  ;;  %v14335_v57 = vpop.permute.xlu0 %7105  ;;  %v6626_v58 = vadd.f32 %v6625_v37, %v6624_v19  ;;  %v17303_v8 = vld [vmem:[#allocation56_spill] sm:$0xff]  ;;  %v6627_v62 = vsel %vm6008_vm7, %v6593_v27, 0.0  ;;  %v17304_v19 = vld [vmem:[#allocation65_spill] sm:$0xff]  ;;  %v6387_v49 = vsel %vm6008_vm7, %v6339_v6, 0.0 }
 0x379   : > { %17299 = vst [vmem:[#allocation159_spill] sm:$0xff] %v14335_v57  ;;  %v6473_v61 = vmul.f32 %v17303_v8, %v17303_v8  ;;  %v6340_v10 = vmul.f32 %v17304_v19, %v17304_v19  ;;  %v6388_v0 = vadd.f32 %v6387_v49, %v6386_v53  ;;  %v17305_v8 = vld [vmem:[#allocation50_spill] sm:$0xff]  ;;  %v6596_v27 = vmul.f32 %v14123_v20, %v14123_v20  ;;  %v14366_v19 = vld [vmem:[%s12559_s29 + $0x1b8] sm:$0xff]  ;;  %v14369_v6 = vld [vmem:[%s12559_s29 + $0x1b0] sm:$0xff] }
 0x37a   : > { %7934 = vrot.lane.b32.xlu0 %v14318_v31, %s10771_s30  ;;  %v6520_v63 = vadd.f32 %v6519_v21, %v6518_v1  ;;  %v6628_v37 = vadd.f32 %v6627_v62, %v6626_v58  ;;  %v6629_v57 = vsel %vm6008_vm7, %v6594_v59, 0.0  ;;  %17307 = vst [vmem:[#allocation164_spill] sm:$0xff] %v14366_v19  ;;  %17308 = vst [vmem:[#allocation165_spill] sm:$0xff] %v14369_v6  ;;  %v17309_v1 = vld [vmem:[#allocation91_spill] sm:$0xff]  ;;  %v6631_v62 = vsel %vm6008_vm7, %v6595_v47, 0.0 }
 0x37b   : > { %v14337_v41 = vpop.permute.xlu1 %7115  ;;  %v14373_v58 = vmul.f32 %v17309_v1, %v17309_v1  ;;  %v6521_v53 = vsel %vm6008_vm7, %v6473_v61, 0.0  ;;  %v6597_v21 = vmul.f32 %v14127_v22, %v14127_v22  ;;  %v6389_v59 = vsel %vm6008_vm7, %v6340_v10, 0.0 }
 0x37c   : > { %17300 = vst [vmem:[#allocation160_spill] sm:$0xff] %v14337_v41  ;;  %7940 = vrot.lane.b32.xlu1 %v14340_v46, %s10771_s30  ;;  %v6474_v41 = vmul.f32 %v17305_v8, %v17305_v8  ;;  %v6630_v30 = vadd.f32 %v6629_v57, %v6628_v37  ;;  %v14379_v49 = vpop.permute.xlu0 %7109  ;;  %v14386_v57 = vmul.f32 %v13891_v26, %v13891_v26  ;;  %v17314_v26 = vld [vmem:[#allocation2_spill] sm:$0xff] }
 0x37d   : > { %17310 = vst [vmem:[#allocation166_spill] sm:$0xff] %v14379_v49  ;;  %v6522_v37 = vadd.f32 %v6521_v53, %v6520_v63  ;;  %v6598_v8 = vmul.f32 %v14131_v55, %v14131_v55  ;;  %v6633_v49 = vsel %vm6008_vm7, %v6596_v27, 0.0  ;;  %v6599_v10 = vmul.f32 %v14138_v40, %v14138_v40  ;;  %v14405_v53 = vld [vmem:[%s12559_s29 + $0x1d8] sm:$0xff] }
 0x37e   : > { %7938 = vrot.lane.b32.xlu0 %v14343_v50, %s10771_s30  ;;  %v6632_v61 = vadd.f32 %v6631_v62, %v6630_v30  ;;  %v6523_v47 = vsel %vm6008_vm7, %v6474_v41, 0.0  ;;  %v6600_v30 = vmul.f32 %v14142_v9, %v14142_v9  ;;  %v6601_v63 = vmul.f32 %v14146_v39, %v14146_v39  ;;  %17312 = vst [vmem:[#allocation168_spill] sm:$0xff] %v14405_v53  ;;  %v14408_v41 = vld [vmem:[%s12559_s29 + $0x1d0] sm:$0xff] }
 0x37f   : > { %v14363_v52 = vpop.permute.xlu1 %7537  ;;  %17313 = vst [vmem:[#allocation169_spill] sm:$0xff] %v14408_v41  ;;  %v6602_v62 = vmul.f32 %v14152_v5, %v14152_v5  ;;  %v6603_v27 = vmul.f32 %v14156_v35, %v14156_v35  ;;  %v14425_v5 = vsub.f32 %v17314_v26, %v13638_v11  ;;  %v17316_v35 = vld [vmem:[#allocation8_spill] sm:$0xff]  ;;  %v6639_v55 = vsel %vm6008_vm7, %v6599_v10, 0.0  ;;  %v17334_v10 = vld [vmem:[#allocation9_spill] sm:$0xff] }
 0x380   : > { %17306 = vst [vmem:[#allocation163_spill] sm:$0xff] %v14363_v52  ;;  %7944 = vrot.lane.b32.xlu1 %v14366_v19, %s10771_s30  ;;  %v14390_v52 = vadd.f32 %v6389_v59, %v6388_v0  ;;  %v6634_v0 = vadd.f32 %v6633_v49, %v6632_v61  ;;  %v14416_v59 = vmul.f32 %v14160_v42, %v14160_v42  ;;  %v17318_v42 = vld [vmem:[#allocation13_spill] sm:$0xff]  ;;  %v17322_v26 = vld [vmem:[#allocation12_spill] sm:$0xff] }
 0x381   : > { %v14421_v49 = vadd.f32 %v6523_v47, %v6522_v37  ;;  %17315 = vst [vmem:[#allocation2_spill] sm:$0xff] %v14425_v5  ;;  %v14429_v39 = vsub.f32 %v17316_v35, %v13638_v11  ;;  %v14436_v9 = vsub.f32 %v17318_v42, %v13638_v11  ;;  %v17320_v37 = vld [vmem:[#allocation10_spill] sm:$0xff]  ;;  %v14444_v47 = vsub.f32 %v17322_v26, %v13638_v11  ;;  %v17328_v42 = vld [vmem:[#allocation15_spill] sm:$0xff]  ;;  %v17330_v26 = vld [vmem:[#allocation16_spill] sm:$0xff] }
 0x382   : > { %7942 = vrot.lane.b32.xlu0 %v14369_v6, %s10771_s30  ;;  %v14457_v1 = vsub.f32 %v17328_v42, %v13638_v11  ;;  %v6641_v6 = vsel %vm6008_vm7, %v6600_v30, 0.0  ;;  %v17348_v30 = vld [vmem:[#allocation40_spill] sm:$0xff] }
 0x383   : > { %v14396_v22 = vpop.permute.xlu1 %7541  ;;  %17317 = vst [vmem:[#allocation8_spill] sm:$0xff] %v14429_v39  ;;  %17319 = vst [vmem:[#allocation13_spill] sm:$0xff] %v14436_v9 }
 0x384   : > { %17311 = vst [vmem:[#allocation167_spill] sm:$0xff] %v14396_v22  ;;  %v6635_v22 = vsel %vm6008_vm7, %v6597_v21, 0.0  ;;  %7948 = vrot.lane.b32.xlu1 %v14405_v53, %s10771_s30  ;;  %v6637_v21 = vsel %vm6008_vm7, %v6598_v8, 0.0  ;;  %17323 = vst [vmem:[#allocation12_spill] sm:$0xff] %v14444_v47  ;;  %v17326_v8 = vld [vmem:[#allocation11_spill] sm:$0xff]  ;;  %v14463_v53 = vsub.f32 %v17330_v26, %v13638_v11 }
 0x385   : > { %v6636_v61 = vadd.f32 %v6635_v22, %v6634_v0  ;;  %v14440_v22 = vsub.f32 %v17320_v37, %v13638_v11  ;;  %v14446_v0 = vpop.permute.xlu0 %7113  ;;  %v14453_v20 = vsub.f32 %v17326_v8, %v13638_v11  ;;  %17329 = vst [vmem:[#allocation15_spill] sm:$0xff] %v14457_v1  ;;  %v9324_v37 = vld [vmem:[%s12559_s29 + $0x1f8] sm:$0xff]  ;;  %v17338_v26 = vld [vmem:[#allocation7_spill] sm:$0xff] }
 0x386   : > { %7946 = vrot.lane.b32.xlu0 %v14408_v41, %s10771_s30  ;;  %17324 = vst [vmem:[#allocation170_spill] sm:$0xff] %v14446_v0  ;;  %v9323_v41 = vld [vmem:[%s12559_s29 + $0x1f0] sm:$0xff]  ;;  %17331 = vst [vmem:[#allocation16_spill] sm:$0xff] %v14463_v53  ;;  %v17332_v0 = vld [vmem:[#allocation18_spill] sm:$0xff]  ;;  %v14481_v19 = vsub.f32 %v17338_v26, %v13638_v11  ;;  %v14502_v26 = vsub.f32 %v17348_v30, %v13638_v11 }
 0x387   : > { %17321 = vst [vmem:[#allocation10_spill] sm:$0xff] %v14440_v22  ;;  %v14448_v35 = vpop.permute.xlu1 %7545  ;;  %v6638_v40 = vadd.f32 %v6637_v21, %v6636_v61  ;;  %17327 = vst [vmem:[#allocation11_spill] sm:$0xff] %v14453_v20  ;;  %v14471_v61 = vsub.f32 %v17334_v10, %v13638_v11  ;;  %v17336_v21 = vld [vmem:[#allocation5_spill] sm:$0xff]  ;;  %v17342_v10 = vld [vmem:[#allocation35_spill] sm:$0xff] }
 0x388   : > { %17325 = vst [vmem:[#allocation171_spill] sm:$0xff] %v14448_v35  ;;  %v14467_v35 = vsub.f32 %v17332_v0, %v13638_v11  ;;  %v14475_v8 = vsub.f32 %v17336_v21, %v13638_v11  ;;  %7952 = vrot.lane.b32.xlu1 %v9324_v37, %s10771_s30  ;;  %17339 = vst [vmem:[#allocation7_spill] sm:$0xff] %v14481_v19  ;;  %v17340_v0 = vld [vmem:[#allocation25_spill] sm:$0xff]  ;;  %v14490_v46 = vsub.f32 %v17342_v10, %v13638_v11  ;;  %v17344_v21 = vld [vmem:[#allocation19_spill] sm:$0xff] }
 0x389   : > { %17335 = vst [vmem:[#allocation9_spill] sm:$0xff] %v14471_v61  ;;  %v6640_v42 = vadd.f32 %v6639_v55, %v6638_v40  ;;  %v14485_v50 = vsub.f32 %v17340_v0, %v13638_v11  ;;  %v14494_v37 = vsub.f32 %v17344_v21, %v13638_v11  ;;  %v17346_v55 = vld [vmem:[#allocation26_spill] sm:$0xff]  ;;  %17349 = vst [vmem:[#allocation40_spill] sm:$0xff] %v14502_v26  ;;  %v17351_v10 = vld [vmem:[#allocation47_spill] sm:$0xff] }
 0x38a   : > { %17333 = vst [vmem:[#allocation18_spill] sm:$0xff] %v14467_v35  ;;  %17337 = vst [vmem:[#allocation5_spill] sm:$0xff] %v14475_v8  ;;  %7950 = vrot.lane.b32.xlu0 %v9323_v41, %s10771_s30  ;;  %v14498_v40 = vsub.f32 %v17346_v55, %v13638_v11  ;;  %v6643_v41 = vsel %vm6008_vm7, %v6601_v63, 0.0  ;;  %v14509_v56 = vsub.f32 %v17351_v10, %v13638_v11  ;;  %v17353_v21 = vld [vmem:[#allocation39_spill] sm:$0xff]  ;;  %v17355_v55 = vld [vmem:[#allocation46_spill] sm:$0xff] }
 0x38b   : > { %17341 = vst [vmem:[#allocation25_spill] sm:$0xff] %v14485_v50  ;;  %17343 = vst [vmem:[#allocation35_spill] sm:$0xff] %v14490_v46  ;;  %v14504_v0 = vpop.permute.xlu1 %7549  ;;  %v6642_v31 = vadd.f32 %v6641_v6, %v6640_v42  ;;  %v17357_v30 = vld [vmem:[#allocation52_spill] sm:$0xff]  ;;  %v17359_v6 = vld [vmem:[#allocation59_spill] sm:$0xff] }
 0x38c   : > { %17345 = vst [vmem:[#allocation19_spill] sm:$0xff] %v14494_v37  ;;  %17347 = vst [vmem:[#allocation26_spill] sm:$0xff] %v14498_v40  ;;  %v14513_v37 = vsub.f32 %v17353_v21, %v13638_v11  ;;  %v14517_v40 = vsub.f32 %v17355_v55, %v13638_v11  ;;  %v14521_v26 = vsub.f32 %v17357_v30, %v13638_v11  ;;  %v17361_v63 = vld [vmem:[#allocation51_spill] sm:$0xff]  ;;  %8372 = vrot.lane.b32.xlu1 %v13898_v44, %s10772_s25  ;;  %v17370_v44 = vld [vmem:[#allocation69_spill] sm:$0xff] }
 0x38d   : > { %17350 = vst [vmem:[#allocation172_spill] sm:$0xff] %v14504_v0  ;;  %17352 = vst [vmem:[#allocation47_spill] sm:$0xff] %v14509_v56  ;;  %v14525_v42 = vsub.f32 %v17359_v6, %v13638_v11  ;;  %v14529_v10 = vsub.f32 %v17361_v63, %v13638_v11  ;;  %v14531_v0 = vpop.permute.xlu0 %7535  ;;  %v6644_v21 = vadd.f32 %v6643_v41, %v6642_v31  ;;  %v6645_v55 = vsel %vm6008_vm7, %v6602_v62, 0.0  ;;  %v17368_v63 = vld [vmem:[#allocation73_spill] sm:$0xff]  ;;  %v17372_v62 = vld [vmem:[#allocation71_spill] sm:$0xff] }
 0x38e   : > { %17354 = vst [vmem:[#allocation39_spill] sm:$0xff] %v14513_v37  ;;  %17356 = vst [vmem:[#allocation46_spill] sm:$0xff] %v14517_v40  ;;  %v17364_v40 = vld [vmem:[#allocation58_spill] sm:$0xff]  ;;  %8370 = vrot.lane.b32.xlu0 %v13901_v16, %s10772_s25  ;;  %v14552_v31 = vsub.f32 %v17370_v44, %v13638_v11  ;;  %v14556_v41 = vsub.f32 %v17372_v62, %v13638_v11  ;;  %v17380_v44 = vld [vmem:[#allocation77_spill] sm:$0xff]  ;;  %v6391_v62 = vsel %vm6008_vm7, %v14373_v58, 0.0  ;;  %v6525_v58 = vsel %vm6008_vm7, %v14386_v57, 0.0 }
 0x38f   : > { %17358 = vst [vmem:[#allocation52_spill] sm:$0xff] %v14521_v26  ;;  %17360 = vst [vmem:[#allocation59_spill] sm:$0xff] %v14525_v42  ;;  %v14538_v30 = vsub.f32 %v17364_v40, %v13638_v11  ;;  %v17366_v26 = vld [vmem:[#allocation70_spill] sm:$0xff] }
 0x390   : > { %17362 = vst [vmem:[#allocation51_spill] sm:$0xff] %v14529_v10  ;;  %17363 = vst [vmem:[#allocation173_spill] sm:$0xff] %v14531_v0  ;;  %v14542_v6 = vsub.f32 %v17366_v26, %v13638_v11  ;;  %v14548_v0 = vsub.f32 %v17368_v63, %v13638_v11  ;;  %v17374_v40 = vld [vmem:[#allocation78_spill] sm:$0xff]  ;;  %v14562_v26 = vpop.permute.xlu1 %7553  ;;  %v6646_v10 = vadd.f32 %v6645_v55, %v6644_v21  ;;  %v17378_v63 = vld [vmem:[#allocation81_spill] sm:$0xff]  ;;  %8376 = vrot.lane.b32.xlu1 %v13957_v36, %s10772_s25 }
 0x391   : > { %17365 = vst [vmem:[#allocation58_spill] sm:$0xff] %v14538_v30  ;;  %17371 = vst [vmem:[#allocation69_spill] sm:$0xff] %v14552_v31  ;;  %v14560_v30 = vsub.f32 %v17374_v40, %v13638_v11  ;;  %v14572_v31 = vsub.f32 %v17380_v44, %v13638_v11  ;;  %v6605_v40 = vmul.f32 %v14171_v28, %v14171_v28  ;;  %v17384_v55 = vld [vmem:[#allocation63_spill] sm:$0xff]  ;;  %v6649_v36 = vsel %vm6008_vm7, %v14416_v59, 0.0 }
 0x392   : > { %17367 = vst [vmem:[#allocation70_spill] sm:$0xff] %v14542_v6  ;;  %17369 = vst [vmem:[#allocation73_spill] sm:$0xff] %v14548_v0  ;;  %v17377_v6 = vld [vmem:[#allocation92_spill] sm:$0xff]  ;;  %v14568_v0 = vsub.f32 %v17378_v63, %v13638_v11  ;;  %v6392_v21 = vadd.f32 %v6391_v62, %v14390_v52  ;;  %v6476_v63 = vmul.f32 %v17384_v55, %v17384_v55  ;;  %8374 = vrot.lane.b32.xlu0 %v13960_v18, %s10772_s25  ;;  %v17387_v62 = vld [vmem:[#allocation93_spill] sm:$0xff] }
 0x393   : > { %17373 = vst [vmem:[#allocation71_spill] sm:$0xff] %v14556_v41  ;;  %17375 = vst [vmem:[#allocation78_spill] sm:$0xff] %v14560_v30  ;;  %v6342_v16 = vmul.f32 %v17377_v6, %v17377_v6  ;;  %v17382_v30 = vld [vmem:[#allocation79_spill] sm:$0xff]  ;;  %v6343_v55 = vmul.f32 %v17387_v62, %v17387_v62 }
 0x394   : > { %17376 = vst [vmem:[#allocation174_spill] sm:$0xff] %v14562_v26  ;;  %17379 = vst [vmem:[#allocation81_spill] sm:$0xff] %v14568_v0  ;;  %v6647_v26 = vsel %vm6008_vm7, %v6603_v27, 0.0  ;;  %v14581_v6 = vsub.f32 %v17382_v30, %v13638_v11  ;;  %v6526_v27 = vadd.f32 %v6525_v58, %v14421_v49  ;;  %v6606_v11 = vmul.f32 %v14175_v48, %v14175_v48  ;;  %v14597_v30 = vpop.permute.xlu0 %7539  ;;  %v14599_v52 = vpop.permute.xlu1 %7557 }
 0x395   : > { %17381 = vst [vmem:[#allocation77_spill] sm:$0xff] %v14572_v31  ;;  %v6648_v44 = vadd.f32 %v6647_v26, %v6646_v10  ;;  %17385 = vst [vmem:[#allocation175_spill] sm:$0xff] %v14597_v30  ;;  %v17388_v10 = vld [vmem:[#allocation94_spill] sm:$0xff]  ;;  %v6393_v18 = vsel %vm6008_vm7, %v6342_v16, 0.0  ;;  %v6607_v49 = vmul.f32 %v14179_v14, %v14179_v14  ;;  %v6651_v58 = vsel %vm6008_vm7, %v6605_v40, 0.0  ;;  %8380 = vrot.lane.b32.xlu1 %v13974_v17, %s10772_s25 }
 0x396   : > { %17383 = vst [vmem:[#allocation79_spill] sm:$0xff] %v14581_v6  ;;  %17386 = vst [vmem:[#allocation176_spill] sm:$0xff] %v14599_v52  ;;  %v6344_v26 = vmul.f32 %v17388_v10, %v17388_v10  ;;  %v6394_v59 = vadd.f32 %v6393_v18, %v6392_v21  ;;  %v17389_v30 = vld [vmem:[#allocation66_spill] sm:$0xff]  ;;  %v6527_v48 = vsel %vm6008_vm7, %v6476_v63, 0.0  ;;  %8378 = vrot.lane.b32.xlu0 %v13977_v12, %s10772_s25  ;;  %v6653_v14 = vsel %vm6008_vm7, %v6606_v11, 0.0  ;;  %v17391_v21 = vld [vmem:[#allocation95_spill] sm:$0xff] }
 0x397   : > { %v6650_v57 = vadd.f32 %v6649_v36, %v6648_v44  ;;  %v6477_v52 = vmul.f32 %v17389_v30, %v17389_v30  ;;  %v6528_v36 = vadd.f32 %v6527_v48, %v6526_v27  ;;  %v6608_v16 = vmul.f32 %v14187_v45, %v14187_v45  ;;  %v17392_v30 = vld [vmem:[#allocation96_spill] sm:$0xff]  ;;  %v17393_v27 = vld [vmem:[#allocation62_spill] sm:$0xff] }
 0x398   : > { %v6724_v40 = vmul.f32 %v14425_v5, %v14425_v5  ;;  %v14621_v17 = vpop.permute.xlu1 %7561  ;;  %v6345_v18 = vmul.f32 %v17391_v21, %v17391_v21  ;;  %v6346_v63 = vmul.f32 %v17392_v30, %v17392_v30  ;;  %v6725_v12 = vmul.f32 %v14429_v39, %v14429_v39  ;;  %v14635_v5 = vpop.permute.xlu0 %7543 }
 0x399   : > { %v6652_v44 = vadd.f32 %v6651_v58, %v6650_v57  ;;  %17390 = vst [vmem:[#allocation93_spill] sm:$0xff] %v14621_v17  ;;  %v6395_v48 = vsel %vm6008_vm7, %v6343_v55, 0.0  ;;  %v6478_v11 = vmul.f32 %v17393_v27, %v17393_v27  ;;  %v6609_v58 = vmul.f32 %v14191_v4, %v14191_v4  ;;  %17394 = vst [vmem:[#allocation94_spill] sm:$0xff] %v14635_v5 }
 0x39a   : > { %v6655_v17 = vsel %vm6008_vm7, %v6607_v49, 0.0  ;;  %8384 = vrot.lane.b32.xlu1 %v13997_v2, %s10772_s25  ;;  %v6396_v45 = vadd.f32 %v6395_v48, %v6394_v59  ;;  %v6726_v55 = vmul.f32 %v14436_v9, %v14436_v9  ;;  %8382 = vrot.lane.b32.xlu0 %v14000_v24, %s10772_s25  ;;  %v6610_v27 = vmul.f32 %v14195_v23, %v14195_v23 }
 0x39b   : > { %v6654_v57 = vadd.f32 %v6653_v14, %v6652_v44  ;;  %v6529_v14 = vsel %vm6008_vm7, %v6477_v52, 0.0  ;;  %v6657_v49 = vsel %vm6008_vm7, %v6608_v16, 0.0  ;;  %v6756_v5 = vsel %vm6008_vm7, %v6724_v40, 0.0 }
 0x39c   : > { %v6530_v39 = vadd.f32 %v6529_v14, %v6528_v36  ;;  %v14648_v4 = vpop.permute.xlu1 %7565  ;;  %v6397_v2 = vsel %vm6008_vm7, %v6344_v26, 0.0  ;;  %v6727_v59 = vmul.f32 %v14440_v22, %v14440_v22  ;;  %v6479_v24 = vmul.f32 %v13914_v7, %v13914_v7 }
 0x39d   : > { %v6656_v44 = vadd.f32 %v6655_v17, %v6654_v57  ;;  %17395 = vst [vmem:[#allocation95_spill] sm:$0xff] %v14648_v4  ;;  %v6757_v17 = vsel %vm6008_vm7, %v6725_v12, 0.0  ;;  %v6611_v36 = vmul.f32 %v14202_v15, %v14202_v15  ;;  %v6659_v16 = vsel %vm6008_vm7, %v6609_v58, 0.0  ;;  %v17411_v4 = vld [vmem:[#allocation99_spill] sm:$0xff] }
 0x39e   : > { %v6758_v57 = vadd.f32 %v6757_v17, %v6756_v5  ;;  %8388 = vrot.lane.b32.xlu1 %v14021_v33, %s10772_s25  ;;  %v6531_v26 = vsel %vm6008_vm7, %v6478_v11, 0.0  ;;  %v6728_v48 = vmul.f32 %v14444_v47, %v14444_v47  ;;  %v6759_v12 = vsel %vm6008_vm7, %v6726_v55, 0.0  ;;  %8386 = vrot.lane.b32.xlu0 %v14024_v54, %s10772_s25  ;;  %v14668_v5 = vpop.permute.xlu0 %7547  ;;  %v17446_v47 = vld [vmem:[#allocation164_spill] sm:$0xff] }
 0x39f   : > { %v6658_v52 = vadd.f32 %v6657_v49, %v6656_v44  ;;  %v6398_v14 = vadd.f32 %v6397_v2, %v6396_v45  ;;  %v6532_v44 = vadd.f32 %v6531_v26, %v6530_v39  ;;  %v6661_v49 = vsel %vm6008_vm7, %v6610_v27, 0.0  ;;  %17396 = vst [vmem:[#allocation96_spill] sm:$0xff] %v14668_v5  ;;  %v17398_v45 = vld [vmem:[#allocation112_spill] sm:$0xff]  ;;  %v17419_v5 = vld [vmem:[#allocation85_spill] sm:$0xff] }
 0x3a0   : > { %v6760_v58 = vadd.f32 %v6759_v12, %v6758_v57  ;;  %v14670_v17 = vpop.permute.xlu1 %7569  ;;  %v6612_v33 = vmul.f32 %v14206_v43, %v14206_v43  ;;  %v6761_v55 = vsel %vm6008_vm7, %v6727_v59, 0.0  ;;  %v6399_v54 = vsel %vm6008_vm7, %v6345_v18, 0.0 }
 0x3a1   : > { %v6660_v40 = vadd.f32 %v6659_v16, %v6658_v52  ;;  %17397 = vst [vmem:[#allocation177_spill] sm:$0xff] %v14670_v17  ;;  %v6729_v52 = vmul.f32 %v14453_v20, %v14453_v20  ;;  %v6480_v39 = vmul.f32 %v17398_v45, %v17398_v45  ;;  %v6663_v27 = vsel %vm6008_vm7, %v6611_v36, 0.0  ;;  %v17496_v45 = vld [vmem:[#allocation48_spill] sm:$0xff] }
 0x3a2   : > { %v6762_v2 = vadd.f32 %v6761_v55, %v6760_v58  ;;  %8392 = vrot.lane.b32.xlu1 %v14052_v38, %s10772_s25  ;;  %v6533_v16 = vsel %vm6008_vm7, %v6479_v24, 0.0  ;;  %v6730_v26 = vmul.f32 %v14457_v1, %v14457_v1  ;;  %8390 = vrot.lane.b32.xlu0 %v14055_v13, %s10772_s25  ;;  %v6400_v18 = vadd.f32 %v6399_v54, %v6398_v14  ;;  %v14700_v55 = vpop.permute.xlu0 %7551  ;;  %v17402_v54 = vld [vmem:[#allocation113_spill] sm:$0xff]  ;;  %v17443_v1 = vld [vmem:[#allocation162_spill] sm:$0xff] }
 0x3a3   : > { %v6662_v11 = vadd.f32 %v6661_v49, %v6660_v40  ;;  %v6763_v40 = vsel %vm6008_vm7, %v6728_v48, 0.0  ;;  %v6534_v59 = vadd.f32 %v6533_v16, %v6532_v44  ;;  %v6613_v36 = vmul.f32 %v14210_v3, %v14210_v3 }
 0x3a4   : > { %v6764_v12 = vadd.f32 %v6763_v40, %v6762_v2  ;;  %v14689_v49 = vpop.permute.xlu1 %7573  ;;  %v6665_v38 = vsel %vm6008_vm7, %v6612_v33, 0.0  ;;  %v6731_v24 = vmul.f32 %v14463_v53, %v14463_v53  ;;  %v6765_v58 = vsel %vm6008_vm7, %v6729_v52, 0.0 }
 0x3a5   : > { %v6664_v57 = vadd.f32 %v6663_v27, %v6662_v11  ;;  %17399 = vst [vmem:[#allocation178_spill] sm:$0xff] %v14689_v49  ;;  %v17400_v11 = vld [vmem:[#allocation97_spill] sm:$0xff]  ;;  %v6401_v13 = vsel %vm6008_vm7, %v6346_v63, 0.0  ;;  %v6481_v33 = vmul.f32 %v17402_v54, %v17402_v54  ;;  %v6535_v27 = vsel %vm6008_vm7, %v6480_v39, 0.0 }
 0x3a6   : > { %v6347_v48 = vmul.f32 %v17400_v11, %v17400_v11  ;;  %v6766_v44 = vadd.f32 %v6765_v58, %v6764_v12  ;;  %17401 = vst [vmem:[#allocation97_spill] sm:$0xff] %v14700_v55  ;;  %8396 = vrot.lane.b32.xlu1 %v14101_v60, %s10772_s25  ;;  %v6732_v52 = vmul.f32 %v14467_v35, %v14467_v35  ;;  %v6767_v2 = vsel %vm6008_vm7, %v6730_v26, 0.0  ;;  %v17404_v58 = vld [vmem:[#allocation98_spill] sm:$0xff]  ;;  %v17415_v55 = vld [vmem:[#allocation100_spill] sm:$0xff] }
 0x3a7   : > { %v6666_v14 = vadd.f32 %v6665_v38, %v6664_v57  ;;  %8394 = vrot.lane.b32.xlu0 %v14104_v51, %s10772_s25  ;;  %v6402_v63 = vadd.f32 %v6401_v13, %v6400_v18  ;;  %v6536_v16 = vadd.f32 %v6535_v27, %v6534_v59  ;;  %v6614_v60 = vmul.f32 %v14216_v34, %v14216_v34  ;;  %v17405_v13 = vld [vmem:[#allocation146_spill] sm:$0xff] }
 0x3a8   : > { %v6768_v57 = vadd.f32 %v6767_v2, %v6766_v44  ;;  %v14712_v40 = vpop.permute.xlu1 %7577  ;;  %v6667_v12 = vsel %vm6008_vm7, %v6613_v36, 0.0  ;;  %v6733_v39 = vmul.f32 %v14471_v61, %v14471_v61  ;;  %v6769_v38 = vsel %vm6008_vm7, %v6731_v24, 0.0  ;;  %v17406_v44 = vld [vmem:[#allocation67_spill] sm:$0xff]  ;;  %v17437_v35 = vld [vmem:[#allocation46_spill] sm:$0xff] }
 0x3a9   : > { %17403 = vst [vmem:[#allocation179_spill] sm:$0xff] %v14712_v40  ;;  %v6348_v26 = vmul.f32 %v17404_v58, %v17404_v58  ;;  %v6403_v51 = vsel %vm6008_vm7, %v6347_v48, 0.0  ;;  %v6668_v18 = vadd.f32 %v6667_v12, %v6666_v14  ;;  %v6482_v27 = vmul.f32 %v17406_v44, %v17406_v44  ;;  %v17407_v40 = vld [vmem:[#allocation147_spill] sm:$0xff]  ;;  %v17494_v44 = vld [vmem:[#allocation49_spill] sm:$0xff] }
 0x3aa   : > { %v6770_v59 = vadd.f32 %v6769_v38, %v6768_v57  ;;  %8400 = vrot.lane.b32.xlu1 %v17405_v13, %s10772_s25  ;;  %v6537_v36 = vsel %vm6008_vm7, %v6481_v33, 0.0  ;;  %v6734_v2 = vmul.f32 %v14475_v8, %v14475_v8  ;;  %v6771_v24 = vsel %vm6008_vm7, %v6732_v52, 0.0  ;;  %v14733_v57 = vpop.permute.xlu0 %7555  ;;  %v17410_v38 = vld [vmem:[#allocation76_spill] sm:$0xff]  ;;  %v17438_v61 = vld [vmem:[#allocation103_spill] sm:$0xff] }
 0x3ab   : > { %8398 = vrot.lane.b32.xlu0 %v17407_v40, %s10772_s25  ;;  %v6404_v49 = vadd.f32 %v6403_v51, %v6402_v63  ;;  %v6538_v48 = vadd.f32 %v6537_v36, %v6536_v16  ;;  %17408 = vst [vmem:[#allocation98_spill] sm:$0xff] %v14733_v57  ;;  %v6615_v13 = vmul.f32 %v17410_v38, %v17410_v38  ;;  %v6669_v33 = vsel %vm6008_vm7, %v6614_v60, 0.0 }
 0x3ac   : > { %v6772_v14 = vadd.f32 %v6771_v24, %v6770_v59  ;;  %v14735_v12 = vpop.permute.xlu1 %7581  ;;  %v6735_v17 = vmul.f32 %v14481_v19, %v14481_v19  ;;  %v6773_v52 = vsel %vm6008_vm7, %v6733_v39, 0.0  ;;  %v6349_v40 = vmul.f32 %v17411_v4, %v17411_v4  ;;  %v17412_v59 = vld [vmem:[#allocation68_spill] sm:$0xff]  ;;  %v17431_v19 = vld [vmem:[#allocation102_spill] sm:$0xff] }
 0x3ad   : > { %17409 = vst [vmem:[#allocation146_spill] sm:$0xff] %v14735_v12  ;;  %v6405_v63 = vsel %vm6008_vm7, %v6348_v26, 0.0  ;;  %v6670_v16 = vadd.f32 %v6669_v33, %v6668_v18  ;;  %v6483_v36 = vmul.f32 %v17412_v59, %v17412_v59  ;;  %v6539_v60 = vsel %vm6008_vm7, %v6482_v27, 0.0  ;;  %v17414_v33 = vld [vmem:[#allocation72_spill] sm:$0xff]  ;;  %v17495_v59 = vld [vmem:[#allocation43_spill] sm:$0xff] }
 0x3ae   : > { %v6774_v51 = vadd.f32 %v6773_v52, %v6772_v14  ;;  %8404 = vrot.lane.b32.xlu1 %v14227_v25, %s10772_s25  ;;  %v6736_v24 = vmul.f32 %v14485_v50, %v14485_v50  ;;  %v6775_v39 = vsel %vm6008_vm7, %v6734_v2, 0.0  ;;  %v6406_v12 = vadd.f32 %v6405_v63, %v6404_v49  ;;  %v14767_v63 = vpop.permute.xlu0 %7559  ;;  %v17422_v50 = vld [vmem:[#allocation26_spill] sm:$0xff] }
 0x3af   : > { %8402 = vrot.lane.b32.xlu0 %v14230_v29, %s10772_s25  ;;  %v6540_v26 = vadd.f32 %v6539_v60, %v6538_v48  ;;  %v6616_v25 = vmul.f32 %v17414_v33, %v17414_v33  ;;  %v6671_v52 = vsel %vm6008_vm7, %v6615_v13, 0.0  ;;  %v6737_v27 = vmul.f32 %v14490_v46, %v14490_v46  ;;  %17416 = vst [vmem:[#allocation76_spill] sm:$0xff] %v14767_v63  ;;  %v17423_v46 = vld [vmem:[#allocation101_spill] sm:$0xff] }
 0x3b0   : > { %v6776_v18 = vadd.f32 %v6775_v39, %v6774_v51  ;;  %v14756_v14 = vpop.permute.xlu1 %7585  ;;  %v6777_v57 = vsel %vm6008_vm7, %v6735_v17, 0.0  ;;  %v6350_v2 = vmul.f32 %v17415_v55, %v17415_v55  ;;  %v6407_v29 = vsel %vm6008_vm7, %v6349_v40, 0.0  ;;  %v17417_v51 = vld [vmem:[#allocation114_spill] sm:$0xff]  ;;  %v17418_v39 = vld [vmem:[#allocation19_spill] sm:$0xff] }
 0x3b1   : > { %17413 = vst [vmem:[#allocation147_spill] sm:$0xff] %v14756_v14  ;;  %v6672_v49 = vadd.f32 %v6671_v52, %v6670_v16  ;;  %v6484_v13 = vmul.f32 %v17417_v51, %v17417_v51  ;;  %v6541_v60 = vsel %vm6008_vm7, %v6483_v36, 0.0  ;;  %v6738_v17 = vmul.f32 %v17418_v39, %v17418_v39  ;;  %v17421_v52 = vld [vmem:[#allocation75_spill] sm:$0xff]  ;;  %v17492_v51 = vld [vmem:[#allocation36_spill] sm:$0xff] }
 0x3b2   : > { %v6778_v48 = vadd.f32 %v6777_v57, %v6776_v18  ;;  %8408 = vrot.lane.b32.xlu1 %v14267_v32, %s10772_s25  ;;  %v6779_v14 = vsel %vm6008_vm7, %v6736_v24, 0.0  ;;  %v6408_v40 = vadd.f32 %v6407_v29, %v6406_v12  ;;  %v6542_v57 = vadd.f32 %v6541_v60, %v6540_v26  ;;  %v17425_v29 = vld [vmem:[#allocation115_spill] sm:$0xff]  ;;  %v17426_v60 = vld [vmem:[#allocation40_spill] sm:$0xff] }
 0x3b3   : > { %8406 = vrot.lane.b32.xlu0 %v17419_v5, %s10772_s25  ;;  %v6617_v32 = vmul.f32 %v17421_v52, %v17421_v52  ;;  %v6673_v63 = vsel %vm6008_vm7, %v6616_v25, 0.0  ;;  %v6739_v36 = vmul.f32 %v17422_v50, %v17422_v50  ;;  %v6781_v39 = vsel %vm6008_vm7, %v6737_v27, 0.0  ;;  %v17427_v50 = vld [vmem:[#allocation154_spill] sm:$0xff] }
 0x3b4   : > { %v6780_v16 = vadd.f32 %v6779_v14, %v6778_v48  ;;  %v14779_v18 = vpop.permute.xlu1 %7589  ;;  %v6351_v24 = vmul.f32 %v17423_v46, %v17423_v46  ;;  %v6409_v5 = vsel %vm6008_vm7, %v6350_v2, 0.0  ;;  %v6674_v12 = vadd.f32 %v6673_v63, %v6672_v49  ;;  %v17424_v14 = vld [vmem:[#allocation153_spill] sm:$0xff]  ;;  %v14800_v63 = vpop.permute.xlu0 %7563 }
 0x3b5   : > { %17420 = vst [vmem:[#allocation99_spill] sm:$0xff] %v14779_v18  ;;  %v6485_v48 = vmul.f32 %v17425_v29, %v17425_v29  ;;  %v6543_v25 = vsel %vm6008_vm7, %v6484_v13, 0.0  ;;  %v6740_v18 = vmul.f32 %v17426_v60, %v17426_v60  ;;  %v6783_v27 = vsel %vm6008_vm7, %v6738_v17, 0.0  ;;  %17428 = vst [vmem:[#allocation72_spill] sm:$0xff] %v14800_v63  ;;  %v17434_v63 = vld [vmem:[#allocation158_spill] sm:$0xff]  ;;  %v17493_v29 = vld [vmem:[#allocation45_spill] sm:$0xff] }
 0x3b6   : > { %v6782_v26 = vadd.f32 %v6781_v39, %v6780_v16  ;;  %8412 = vrot.lane.b32.xlu1 %v17424_v14, %s10772_s25  ;;  %v6410_v8 = vadd.f32 %v6409_v5, %v6408_v40  ;;  %v6544_v2 = vadd.f32 %v6543_v25, %v6542_v57  ;;  %v17430_v16 = vld [vmem:[#allocation82_spill] sm:$0xff]  ;;  %v6675_v13 = vsel %vm6008_vm7, %v6617_v32, 0.0  ;;  %v17433_v25 = vld [vmem:[#allocation116_spill] sm:$0xff] }
 0x3b7   : > { %8410 = vrot.lane.b32.xlu0 %v17427_v50, %s10772_s25  ;;  %v6618_v14 = vmul.f32 %v17430_v16, %v17430_v16  ;;  %v6741_v60 = vmul.f32 %v14509_v56, %v14509_v56  ;;  %v6785_v17 = vsel %vm6008_vm7, %v6739_v36, 0.0  ;;  %v6352_v50 = vmul.f32 %v17431_v19, %v17431_v19 }
 0x3b8   : > { %v6784_v49 = vadd.f32 %v6783_v27, %v6782_v26  ;;  %v14802_v39 = vpop.permute.xlu1 %7593  ;;  %v6411_v40 = vsel %vm6008_vm7, %v6351_v24, 0.0  ;;  %v6676_v57 = vadd.f32 %v6675_v13, %v6674_v12  ;;  %v17432_v26 = vld [vmem:[#allocation157_spill] sm:$0xff]  ;;  %v6486_v27 = vmul.f32 %v17433_v25, %v17433_v25  ;;  %v17436_v13 = vld [vmem:[#allocation84_spill] sm:$0xff]  ;;  %v17490_v25 = vld [vmem:[#allocation34_spill] sm:$0xff] }
 0x3b9   : > { %17429 = vst [vmem:[#allocation100_spill] sm:$0xff] %v14802_v39  ;;  %v6545_v32 = vsel %vm6008_vm7, %v6485_v48, 0.0  ;;  %v6742_v39 = vmul.f32 %v14513_v37, %v14513_v37  ;;  %v6787_v36 = vsel %vm6008_vm7, %v6740_v18, 0.0  ;;  %v6412_v56 = vadd.f32 %v6411_v40, %v6410_v8  ;;  %v14834_v40 = vpop.permute.xlu0 %7567 }
 0x3ba   : > { %v6786_v5 = vadd.f32 %v6785_v17, %v6784_v49  ;;  %8416 = vrot.lane.b32.xlu1 %v17432_v26, %s10772_s25  ;;  %v6546_v24 = vadd.f32 %v6545_v32, %v6544_v2  ;;  %v6619_v17 = vmul.f32 %v17436_v13, %v17436_v13  ;;  %v6677_v26 = vsel %vm6008_vm7, %v6618_v14, 0.0  ;;  %17439 = vst [vmem:[#allocation75_spill] sm:$0xff] %v14834_v40  ;;  %v17441_v32 = vld [vmem:[#allocation119_spill] sm:$0xff] }
 0x3bb   : > { %8414 = vrot.lane.b32.xlu0 %v17434_v63, %s10772_s25  ;;  %v6743_v48 = vmul.f32 %v17437_v35, %v17437_v35  ;;  %v6789_v37 = vsel %vm6008_vm7, %v6741_v60, 0.0  ;;  %v6353_v18 = vmul.f32 %v17438_v61, %v17438_v61  ;;  %v6413_v63 = vsel %vm6008_vm7, %v6352_v50, 0.0 }
 0x3bc   : > { %v6788_v12 = vadd.f32 %v6787_v36, %v6786_v5  ;;  %v14823_v49 = vpop.permute.xlu1 %7597  ;;  %v6678_v8 = vadd.f32 %v6677_v26, %v6676_v57  ;;  %v17440_v5 = vld [vmem:[#allocation161_spill] sm:$0xff]  ;;  %v6487_v14 = vmul.f32 %v17441_v32, %v17441_v32  ;;  %v6547_v36 = vsel %vm6008_vm7, %v6486_v27, 0.0  ;;  %v17445_v26 = vld [vmem:[#allocation80_spill] sm:$0xff] }
 0x3bd   : > { %17435 = vst [vmem:[#allocation85_spill] sm:$0xff] %v14823_v49  ;;  %v17442_v49 = vld [vmem:[#allocation52_spill] sm:$0xff]  ;;  %v6791_v35 = vsel %vm6008_vm7, %v6742_v39, 0.0  ;;  %v6414_v50 = vadd.f32 %v6413_v63, %v6412_v56  ;;  %v6679_v40 = vsel %vm6008_vm7, %v6619_v17, 0.0  ;;  %v6745_v27 = vmul.f32 %v14525_v42, %v14525_v42  ;;  %v17448_v17 = vld [vmem:[#allocation165_spill] sm:$0xff] }
 0x3be   : > { %v6790_v2 = vadd.f32 %v6789_v37, %v6788_v12  ;;  %8420 = vrot.lane.b32.xlu1 %v17440_v5, %s10772_s25  ;;  %v6744_v60 = vmul.f32 %v17442_v49, %v17442_v49  ;;  %v6548_v37 = vadd.f32 %v6547_v36, %v6546_v24  ;;  %v6620_v5 = vmul.f32 %v17445_v26, %v17445_v26 }
 0x3bf   : > { %8418 = vrot.lane.b32.xlu0 %v17443_v1, %s10772_s25  ;;  %v6793_v49 = vsel %vm6008_vm7, %v6743_v48, 0.0  ;;  %v6680_v53 = vadd.f32 %v6679_v40, %v6678_v8  ;;  %v6415_v56 = vsel %vm6008_vm7, %v6353_v18, 0.0  ;;  %v6549_v1 = vsel %vm6008_vm7, %v6487_v14, 0.0  ;;  %v14863_v8 = vpop.permute.xlu0 %7571  ;;  %v17452_v14 = vld [vmem:[#allocation58_spill] sm:$0xff] }
 0x3c0   : > { %v6792_v57 = vadd.f32 %v6791_v35, %v6790_v2  ;;  %v14846_v12 = vpop.permute.xlu1 %7892  ;;  %v17447_v35 = vld [vmem:[#allocation51_spill] sm:$0xff]  ;;  %v6795_v63 = vsel %vm6008_vm7, %v6744_v60, 0.0  ;;  %v6416_v2 = vadd.f32 %v6415_v56, %v6414_v50  ;;  %v6550_v36 = vadd.f32 %v6549_v1, %v6548_v37  ;;  %17449 = vst [vmem:[#allocation153_spill] sm:$0xff] %v14863_v8  ;;  %v17453_v50 = vld [vmem:[#allocation168_spill] sm:$0xff]  ;;  %v17454_v37 = vld [vmem:[#allocation70_spill] sm:$0xff] }
 0x3c1   : > { %17444 = vst [vmem:[#allocation101_spill] sm:$0xff] %v14846_v12  ;;  %v6746_v24 = vmul.f32 %v17447_v35, %v17447_v35  ;;  %v6681_v40 = vsel %vm6008_vm7, %v6620_v5, 0.0  ;;  %v6797_v60 = vsel %vm6008_vm7, %v6745_v27, 0.0  ;;  %v17455_v1 = vld [vmem:[#allocation169_spill] sm:$0xff] }
 0x3c2   : > { %v6794_v39 = vadd.f32 %v6793_v49, %v6792_v57  ;;  %8424 = vrot.lane.b32.xlu1 %v17446_v47, %s10772_s25  ;;  %v17451_v47 = vld [vmem:[#allocation83_spill] sm:$0xff]  ;;  %v6747_v57 = vmul.f32 %v17452_v14, %v17452_v14  ;;  %v6682_v35 = vadd.f32 %v6681_v40, %v6680_v53  ;;  %v6551_v5 = vrot.slane %v6550_v36, 4  ;;  %v17457_v53 = vld [vmem:[#allocation73_spill] sm:$0xff] }
 0x3c3   : > { %8422 = vrot.lane.b32.xlu0 %v17448_v17, %s10772_s25  ;;  %v6621_v18 = vmul.f32 %v17451_v47, %v17451_v47  ;;  %v6799_v56 = vsel %vm6008_vm7, %v6746_v24, 0.0  ;;  %v17459_v24 = vld [vmem:[#allocation69_spill] sm:$0xff] }
 0x3c4   : > { %v6796_v48 = vadd.f32 %v6795_v63, %v6794_v39  ;;  %v14865_v49 = vpop.permute.xlu1 %7896  ;;  %v6748_v39 = vmul.f32 %v17454_v37, %v17454_v37  ;;  %v6417_v63 = vrot.slane %v6416_v2, 4  ;;  %v6801_v40 = vsel %vm6008_vm7, %v6747_v57, 0.0  ;;  %v14886_v37 = vpop.permute.xlu0 %7575 }
 0x3c5   : > { %17450 = vst [vmem:[#allocation154_spill] sm:$0xff] %v14865_v49  ;;  %v6683_v27 = vsel %vm6008_vm7, %v6621_v18, 0.0  ;;  %17458 = vst [vmem:[#allocation102_spill] sm:$0xff] %v14886_v37  ;;  %v6750_v14 = vmul.f32 %v17459_v24, %v17459_v24  ;;  %v6751_v18 = vmul.f32 %v14556_v41, %v14556_v41 }
 0x3c6   : > { %v6798_v42 = vadd.f32 %v6797_v60, %v6796_v48  ;;  %8428 = vrot.lane.b32.xlu1 %v17453_v50, %s10772_s25  ;;  %v6749_v48 = vmul.f32 %v17457_v53, %v17457_v53  ;;  %v6684_v60 = vadd.f32 %v6683_v27, %v6682_v35  ;;  %v6418_v20 = vadd.f32 %v6417_v63, %v6416_v2 }
 0x3c7   : > { %8426 = vrot.lane.b32.xlu0 %v17455_v1, %s10772_s25  ;;  %v6803_v1 = vsel %vm6008_vm7, %v6748_v39, 0.0  ;;  %v6809_v63 = vsel %vm6008_vm7, %v6751_v18, 0.0 }
 0x3c8   : > { %v6800_v17 = vadd.f32 %v6799_v56, %v6798_v42  ;;  %v14880_v8 = vpop.permute.xlu1 %7900  ;;  %v6552_v42 = vadd.f32 %v6551_v5, %v6550_v36  ;;  %v6805_v9 = vsel %vm6008_vm7, %v6749_v48, 0.0  ;;  %v6685_v57 = vrot.slane %v6684_v60, 4  ;;  %v14899_v2 = vpop.permute.xlu0 %7579 }
 0x3c9   : > { %17456 = vst [vmem:[#allocation82_spill] sm:$0xff] %v14880_v8  ;;  %v6419_v37 = vrot.slane %v6418_v20, 2  ;;  %17462 = vst [vmem:[#allocation158_spill] sm:$0xff] %v14899_v2  ;;  %v6753_v36 = vmul.f32 %v14568_v0, %v14568_v0  ;;  %v17528_v8 = vld [vmem:[#allocation139_spill] sm:$0xff] }
 0x3ca   : > { %v6802_v50 = vadd.f32 %v6801_v40, %v6800_v17  ;;  %v17461_v17 = vld [vmem:[#allocation78_spill] sm:$0xff]  ;;  %v6807_v40 = vsel %vm6008_vm7, %v6750_v14, 0.0  ;;  %v6553_v24 = vrot.slane %v6552_v42, 2  ;;  %v6686_v48 = vadd.f32 %v6685_v57, %v6684_v60 }
 0x3cb   : > { %v6752_v27 = vmul.f32 %v17461_v17, %v17461_v17  ;;  %v6420_v14 = vadd.f32 %v6419_v37, %v6418_v20 }
 0x3cc   : > { %v6804_v56 = vadd.f32 %v6803_v1, %v6802_v50  ;;  %v14894_v53 = vpop.permute.xlu1 %7904  ;;  %v6687_v18 = vrot.slane %v6686_v48, 2  ;;  %v14914_v41 = vpop.permute.xlu0 %7583 }
 0x3cd   : > { %17460 = vst [vmem:[#allocation157_spill] sm:$0xff] %v14894_v53  ;;  %v6811_v1 = vsel %vm6008_vm7, %v6752_v27, 0.0  ;;  %17465 = vst [vmem:[#allocation161_spill] sm:$0xff] %v14914_v41  ;;  %v6421_v57 = vrot.slane %v6420_v14, 1 }
 0x3ce   : > { %v6806_v35 = vadd.f32 %v6805_v9, %v6804_v56  ;;  %v6754_v9 = vmul.f32 %v14572_v31, %v14572_v31  ;;  %v6554_v56 = vadd.f32 %v6553_v24, %v6552_v42  ;;  %v6688_v24 = vadd.f32 %v6687_v18, %v6686_v48 }
 0x3cf   : > { %v6422_v27 = vadd.f32 %v6421_v57, %v6420_v14 }
 0x3d0   : > { %v6808_v39 = vadd.f32 %v6807_v40, %v6806_v35  ;;  %v14904_v5 = vpop.permute.xlu1 %7908  ;;  %v6755_v35 = vmul.f32 %v14581_v6, %v14581_v6  ;;  %v6813_v40 = vsel %vm6008_vm7, %v6753_v36, 0.0  ;;  %v6815_v60 = vsel %vm6008_vm7, %v6754_v9, 0.0 }
 0x3d1   : > { %17463 = vst [vmem:[#allocation84_spill] sm:$0xff] %v14904_v5  ;;  %v17517_v5 = vld [vmem:[#allocation130_spill] sm:$0xff] }
 0x3d2   : > { %v6810_v50 = vadd.f32 %v6809_v63, %v6808_v39  ;;  %v6555_v39 = vrot.slane %v6554_v56, 1  ;;  %v6817_v20 = vsel %vm6008_vm7, %v6755_v35, 0.0 }
 0x3d4   : > { %v6812_v17 = vadd.f32 %v6811_v1, %v6810_v50  ;;  %v14912_v2 = vpop.permute.xlu1 %7912  ;;  %v6556_v50 = vadd.f32 %v6555_v39, %v6554_v56  ;;  %v14920_v1 = vpop.permute.xlu0 %7587 }
 0x3d5   : > { %17464 = vst [vmem:[#allocation103_spill] sm:$0xff] %v14912_v2  ;;  %17467 = vst [vmem:[#allocation80_spill] sm:$0xff] %v14920_v1  ;;  %v17515_v2 = vld [vmem:[#allocation4_spill] sm:$0xff] }
 0x3d6   : > { %v6814_v0 = vadd.f32 %v6813_v40, %v6812_v17  ;;  %v6689_v17 = vrot.slane %v6688_v24, 1  ;;  %v6557_v41 = vadd.f32 %v6556_v50, %v6422_v27 }
 0x3d8   : > { %v6816_v63 = vadd.f32 %v6815_v60, %v6814_v0  ;;  %v14918_v37 = vpop.permute.xlu1 %7916  ;;  %v6690_v0 = vadd.f32 %v6689_v17, %v6688_v24  ;;  %v14926_v35 = vpop.permute.xlu0 %7591 }
 0x3d9   : > { %17466 = vst [vmem:[#allocation162_spill] sm:$0xff] %v14918_v37  ;;  %17470 = vst [vmem:[#allocation83_spill] sm:$0xff] %v14926_v35  ;;  %v17489_v35 = vld [vmem:[#allocation27_spill] sm:$0xff] }
 0x3da   : > { %v6818_v42 = vadd.f32 %v6817_v20, %v6816_v63  ;;  %v6691_v22 = vadd.f32 %v6690_v0, %v6557_v41 }
 0x3dc   : > { %v6819_v36 = vrot.slane %v6818_v42, 4  ;;  %v14922_v31 = vpop.permute.xlu1 %7920  ;;  %v14930_v57 = vpop.permute.xlu0 %7595 }
 0x3dd   : > { %17468 = vst [vmem:[#allocation164_spill] sm:$0xff] %v14922_v31  ;;  %17472 = vst [vmem:[#allocation169_spill] sm:$0xff] %v14930_v57 }
 0x3de   : > { %v6820_v40 = vadd.f32 %v6819_v36, %v6818_v42 }
 0x3e0   : > { %v6821_v9 = vrot.slane %v6820_v40, 2  ;;  %v14924_v6 = vpop.permute.xlu1 %7924  ;;  %v14936_v24 = vpop.permute.xlu0 %7890 }
 0x3e1   : > { %17469 = vst [vmem:[#allocation165_spill] sm:$0xff] %v14924_v6  ;;  %17475 = vst [vmem:[#allocation182_spill] sm:$0xff] %v14936_v24  ;;  %v17504_v6 = vld [vmem:[#allocation65_spill] sm:$0xff] }
 0x3e2   : > { %v6822_v60 = vadd.f32 %v6821_v9, %v6820_v40  ;;  %v17533_v24 = vld [vmem:[#allocation141_spill] sm:$0xff] }
 0x3e4   : > { %v6823_v48 = vrot.slane %v6822_v60, 1  ;;  %v14928_v18 = vpop.permute.xlu1 %7928  ;;  %v14940_v41 = vpop.permute.xlu0 %7894 }
 0x3e5   : > { %17471 = vst [vmem:[#allocation168_spill] sm:$0xff] %v14928_v18  ;;  %17477 = vst [vmem:[#allocation184_spill] sm:$0xff] %v14940_v41 }
 0x3e6   : > { %v6824_v14 = vadd.f32 %v6823_v48, %v6822_v60 }
 0x3e8   : > { %v6825_v56 = vadd.f32 %v6824_v14, %v6691_v22  ;;  %v14932_v39 = vpop.permute.xlu1 %7932  ;;  %v14948_v17 = vpop.permute.xlu0 %7898 }
 0x3e9   : > { %17473 = vst [vmem:[#allocation180_spill] sm:$0xff] %v14932_v39  ;;  %17480 = vst [vmem:[#allocation187_spill] sm:$0xff] %v14948_v17 }
 0x3ea   : > { %v6826_v63 = vmul.f32 0.0009765625, %v6825_v56  ;;  %v17485_v56 = vld [vmem:[#allocation37_spill] sm:$0xff] }
 0x3ec   : > { %v6827_v20 = vadd.f32 1e-05, %v6826_v63  ;;  %v14934_v42 = vpop.permute.xlu1 %7936 }
 0x3ed   : > { %17474 = vst [vmem:[#allocation181_spill] sm:$0xff] %v14934_v42 }
 0x3ee   : > { %10732 = vrsqrt.f32 %v6827_v20  ;;  %v17486_v20 = vld [vmem:[#allocation24_spill] sm:$0xff] }
 0x3f0   : > { %v14938_v27 = vpop.permute.xlu1 %7940 }
 0x3f1   : > { %17476 = vst [vmem:[#allocation183_spill] sm:$0xff] %v14938_v27 }
 0x3f4   : > { %v14942_v50 = vpop.permute.xlu1 %7944 }
 0x3f5   : > { %17478 = vst [vmem:[#allocation185_spill] sm:$0xff] %v14942_v50 }
 0x3f8   : > { %v14944_v36 = vpop.eup %10732  ;;  %v7949_v9 = vpop.permute.xlu1 %7948 }
 0x3f9   : > { %17479 = vst [vmem:[#allocation186_spill] sm:$0xff] %v14944_v36  ;;  %v7693_v22 = vmul.f32 %v14944_v36, %v17436_v13  ;;  %v14961_v13 = vpop.permute.xlu0 %7902  ;;  %v6834_v63 = vmul.f32 %v14944_v36, %v17485_v56  ;;  %v14973_v57 = vmul.f32 %v14944_v36, %v17486_v20  ;;  %v14985_v1 = vmul.f32 %v14944_v36, %v17489_v35  ;;  %v17491_v56 = vld [vmem:[#allocation32_spill] sm:$0xff] }
 0x3fa   : > { %17481 = vst [vmem:[#allocation188_spill] sm:$0xff] %v14961_v13  ;;  %v14989_v32 = vmul.f32 %v14944_v36, %v17490_v25  ;;  %v14993_v20 = vmul.f32 %v14944_v36, %v17491_v56  ;;  %v15005_v35 = vmul.f32 %v14944_v36, %v17494_v44  ;;  %v15009_v25 = vmul.f32 %v14944_v36, %v17495_v59  ;;  %v17500_v44 = vld [vmem:[#allocation55_spill] sm:$0xff]  ;;  %v17501_v59 = vld [vmem:[#allocation60_spill] sm:$0xff]  ;;  %v17524_v13 = vld [vmem:[#allocation137_spill] sm:$0xff] }
 0x3fb   : > { %vm7725_vm8 = vcmp.gt.f32.partialorder %v7693_v22, 0.0  ;;  %v7757_v40 = vmul.f32 0.2, %v7693_v22  ;;  %v15013_v56 = vmul.f32 %v14944_v36, %v17496_v45  ;;  %v15027_v27 = vmul.f32 %v14944_v36, %v17500_v44  ;;  %v17502_v45 = vld [vmem:[#allocation89_spill] sm:$0xff]  ;;  %v17505_v44 = vld [vmem:[#allocation91_spill] sm:$0xff] }
 0x3fc   : > { %vm6866_vm10 = vcmp.gt.f32.partialorder %v6834_v63, 0.0  ;;  %v15031_v42 = vmul.f32 %v14944_v36, %v17501_v59  ;;  %v15035_v39 = vmul.f32 %v14944_v36, %v17502_v45  ;;  %v15047_v31 = vmul.f32 %v14944_v36, %v17505_v44  ;;  %v17506_v59 = vld [vmem:[#allocation92_spill] sm:$0xff] }
 0x3fd   : > { %v7789_v0 = vsel %vm7725_vm8, %v7693_v22, %v7757_v40  ;;  %v14963_v60 = vpop.permute.xlu0 %7906  ;;  %v17487_v22 = vld [vmem:[#allocation28_spill] sm:$0xff]  ;;  %v15051_v37 = vmul.f32 %v14944_v36, %v17506_v59  ;;  %v15055_v45 = vmul.f32 %v14944_v36, %v17387_v62  ;;  %v15067_v44 = vmul.f32 %v14944_v36, %v17392_v30 }
 0x3fe   : > { %9290 = vst.msk [vmem:[%s14955_s6 + $0x1d8] sm:$0xff] %vm6008_vm7, %v7789_v0  ;;  %17482 = vst [vmem:[#allocation189_spill] sm:$0xff] %v14963_v60  ;;  %v14977_v40 = vmul.f32 %v14944_v36, %v17487_v22  ;;  %v14997_v22 = vmul.f32 %v14944_v36, %v17492_v51  ;;  %v17498_v51 = vld [vmem:[#allocation57_spill] sm:$0xff]  ;;  %v15071_v59 = vmul.f32 %v14944_v36, %v17400_v11  ;;  %v17523_v60 = vld [vmem:[#allocation136_spill] sm:$0xff]  ;;  %vm6861_vm11 = vcmp.gt.f32.partialorder %v14973_v57, 0.0 }
 0x3ff   : > { %9354 = vst.msk [vmem:[%s14955_s6 + $0x1d8] sm:$0xff] %vm7149_vm9, %v7949_v9  ;;  %v17488_v9 = vld [vmem:[#allocation22_spill] sm:$0xff]  ;;  %v15019_v7 = vmul.f32 %v14944_v36, %v17498_v51  ;;  %v15075_v62 = vmul.f32 %v14944_v36, %v17404_v58  ;;  %v15089_v30 = vmul.f32 %v14944_v36, %v17423_v46  ;;  %v15093_v11 = vmul.f32 %v14944_v36, %v17431_v19 }
 0x400   : > { %v14981_v0 = vmul.f32 %v14944_v36, %v17488_v9  ;;  %v15001_v9 = vmul.f32 %v14944_v36, %v17493_v29  ;;  %v17499_v29 = vld [vmem:[#allocation61_spill] sm:$0xff]  ;;  %v17503_v51 = vld [vmem:[#allocation90_spill] sm:$0xff]  ;;  %v15097_v58 = vmul.f32 %v14944_v36, %v17438_v61  ;;  %v15118_v61 = vmul.f32 %v14944_v36, %v17515_v2 }
 0x401   : > { %v14965_v48 = vpop.permute.xlu0 %7910  ;;  %v15023_v50 = vmul.f32 %v14944_v36, %v17499_v29  ;;  %v15039_v18 = vmul.f32 %v14944_v36, %v17503_v51  ;;  %v6898_v29 = vmul.f32 0.2, %v6834_v63  ;;  %v15059_v51 = vmul.f32 %v14944_v36, %v17388_v10 }
 0x402   : > { %17483 = vst [vmem:[#allocation190_spill] sm:$0xff] %v14965_v48  ;;  %v15079_v10 = vmul.f32 %v14944_v36, %v17411_v4  ;;  %v17507_v4 = vld [vmem:[#allocation3_spill] sm:$0xff]  ;;  %v17513_v48 = vld [vmem:[#allocation14_spill] sm:$0xff]  ;;  %17516 = vst [vmem:[#allocation34_spill] sm:$0xff] %v15118_v61  ;;  %vm6865_vm12 = vcmp.gt.f32.partialorder %v14989_v32, 0.0  ;;  %vm6862_vm13 = vcmp.gt.f32.partialorder %v14977_v40, 0.0 }
 0x403   : > { %v15114_v19 = vmul.f32 %v14944_v36, %v17513_v48  ;;  %v17522_v61 = vld [vmem:[#allocation135_spill] sm:$0xff]  ;;  %v6897_v17 = vmul.f32 0.2, %v14989_v32  ;;  %vm6863_vm14 = vcmp.gt.f32.partialorder %v14981_v0, 0.0  ;;  %v6896_v49 = vmul.f32 0.2, %v14985_v1 }
 0x404   : > { %vm6864_vm15 = vcmp.gt.f32.partialorder %v14985_v1, 0.0  ;;  %vm6867_vm0 = vcmp.gt.f32.partialorder %v14993_v20, 0.0  ;;  %vm6868_vm1 = vcmp.gt.f32.partialorder %v14997_v22, 0.0  ;;  %vm6869_vm2 = vcmp.gt.f32.partialorder %v15001_v9, 0.0 }
 0x405   : > { %v14967_v14 = vpop.permute.xlu0 %7914  ;;  %17514 = vst [vmem:[#allocation27_spill] sm:$0xff] %v15114_v19  ;;  %v17521_v19 = vld [vmem:[#allocation134_spill] sm:$0xff]  ;;  %vm6870_vm3 = vcmp.gt.f32.partialorder %v15005_v35, 0.0  ;;  %vm6871_vm4 = vcmp.gt.f32.partialorder %v15009_v25, 0.0  ;;  %vm6872_vm5 = vcmp.gt.f32.partialorder %v15013_v56, 0.0  ;;  %vm6873_vm6 = vcmp.gt.f32.partialorder %v15019_v7, 0.0 }
 0x406   : > { %17484 = vst [vmem:[#allocation191_spill] sm:$0xff] %v14967_v14  ;;  %v6930_v14 = vsel %vm6866_vm10, %v6834_v63, %v6898_v29  ;;  %v15101_v63 = vmul.f32 %v14944_v36, %v17507_v4  ;;  %v17511_v29 = vld [vmem:[#allocation17_spill] sm:$0xff]  ;;  %v15122_v4 = vmul.f32 %v14944_v36, %v17517_v5  ;;  %v15138_v2 = vmul.f32 %v14944_v36, %v17521_v19 }
 0x407   : > { %6962 = vst.msk [vmem:[%s14955_s6 + $0x48] sm:$0xff] %vm6008_vm7, %v6930_v14  ;;  %v15110_v46 = vmul.f32 %v14944_v36, %v17511_v29  ;;  %v15142_v5 = vmul.f32 %v14944_v36, %v17522_v61  ;;  %v6893_v19 = vmul.f32 0.2, %v14973_v57  ;;  %v6894_v61 = vmul.f32 0.2, %v14977_v40 }
 0x408   : > { %17508 = vst [vmem:[#allocation24_spill] sm:$0xff] %v15101_v63  ;;  %v17518_v63 = vld [vmem:[#allocation131_spill] sm:$0xff]  ;;  %vm6874_vm8 = vcmp.gt.f32.partialorder %v15023_v50, 0.0  ;;  %vm6875_vm10 = vcmp.gt.f32.partialorder %v15027_v27, 0.0 }
 0x409   : > { %v15015_v54 = vpop.permute.xlu0 %7918  ;;  %17512 = vst [vmem:[#allocation22_spill] sm:$0xff] %v15110_v46  ;;  %v17520_v46 = vld [vmem:[#allocation133_spill] sm:$0xff]  ;;  %v6925_v12 = vsel %vm6861_vm11, %v14973_v57, %v6893_v19  ;;  %v6900_v57 = vmul.f32 0.2, %v14997_v22  ;;  %vm6876_vm11 = vcmp.gt.f32.partialorder %v15031_v42, 0.0 }
 0x40a   : > { %17497 = vst [vmem:[#allocation37_spill] sm:$0xff] %v15015_v54  ;;  %v15043_v54 = vmul.f32 %v14944_v36, %v17504_v6  ;;  %v15063_v6 = vmul.f32 %v14944_v36, %v17391_v21  ;;  %v15083_v21 = vmul.f32 %v14944_v36, %v17415_v55  ;;  %v17509_v55 = vld [vmem:[#allocation108_spill] sm:$0xff]  ;;  %v15134_v48 = vmul.f32 %v14944_v36, %v17520_v46  ;;  %v17526_v46 = vld [vmem:[#allocation138_spill] sm:$0xff]  ;;  %v17535_v19 = vld [vmem:[#allocation105_spill] sm:$0xff] }
 0x40b   : > { %7155 = vst.msk [vmem:[%s14955_s6 + $0x48] sm:$0xff] %vm7149_vm9, %v17509_v55  ;;  %v15126_v55 = vmul.f32 %v14944_v36, %v17518_v63  ;;  %v15146_v63 = vmul.f32 %v14944_v36, %v17523_v60  ;;  %v15155_v53 = vmul.f32 %v14944_v36, %v17526_v46  ;;  %v15162_v60 = vmul.f32 %v14944_v36, %v17528_v8  ;;  %v17530_v46 = vld [vmem:[#allocation140_spill] sm:$0xff] }
 0x40c   : > { %v15169_v41 = vmul.f32 %v14944_v36, %v17530_v46  ;;  %v6929_v46 = vsel %vm6865_vm12, %v14989_v32, %v6897_v17  ;;  %6957 = vst.msk [vmem:[%s14955_s6] sm:$0xff] %vm6008_vm7, %v6925_v12  ;;  %v17536_v32 = vld [vmem:[#allocation144_spill] sm:$0xff]  ;;  %v17537_v17 = vld [vmem:[#allocation109_spill] sm:$0xff]  ;;  %vm6877_vm12 = vcmp.gt.f32.partialorder %v15035_v39, 0.0 }
 0x40d   : > { %v15106_v14 = vpop.permute.xlu0 %7922  ;;  %17527 = vst [vmem:[#allocation36_spill] sm:$0xff] %v15155_v53  ;;  %17529 = vst [vmem:[#allocation45_spill] sm:$0xff] %v15162_v60  ;;  %v15178_v60 = vmul.f32 %v14944_v36, %v17533_v24  ;;  %v6899_v53 = vmul.f32 0.2, %v14993_v20  ;;  %v6926_v24 = vsel %vm6862_vm13, %v14977_v40, %v6894_v61  ;;  %v15201_v12 = vmul.f32 %v14944_v36, %v17536_v32  ;;  %v17538_v61 = vld [vmem:[#allocation145_spill] sm:$0xff] }
 0x40e   : > { %17510 = vst [vmem:[#allocation28_spill] sm:$0xff] %v15106_v14  ;;  %v17519_v14 = vld [vmem:[#allocation132_spill] sm:$0xff]  ;;  %17531 = vst [vmem:[#allocation49_spill] sm:$0xff] %v15169_v41  ;;  %v17534_v41 = vld [vmem:[#allocation143_spill] sm:$0xff]  ;;  %v6928_v32 = vsel %vm6864_vm15, %v14985_v1, %v6896_v49  ;;  %vm6878_vm13 = vcmp.gt.f32.partialorder %v15039_v18, 0.0  ;;  %vm17614_vm15 = vcmp.gt.f32.partialorder %v15067_v44, 0.0 }
 0x40f   : > { %v15130_v29 = vmul.f32 %v14944_v36, %v17519_v14  ;;  %v15150_v14 = vmul.f32 %v14944_v36, %v17524_v13  ;;  %v6895_v13 = vmul.f32 0.2, %v14981_v0  ;;  %6961 = vst.msk [vmem:[%s14955_s6 + $0x40] sm:$0xff] %vm6008_vm7, %v6929_v46  ;;  %6958 = vst.msk [vmem:[%s14955_s6 + $0x8] sm:$0xff] %vm6008_vm7, %v6926_v24  ;;  %v15215_v46 = vmul.f32 %v14944_v36, %v17538_v61  ;;  %v17542_v61 = vld [vmem:[#allocation151_spill] sm:$0xff]  ;;  %v17543_v1 = vld [vmem:[#allocation104_spill] sm:$0xff] }
 0x410   : > { %7150 = vst.msk [vmem:[%s14955_s6] sm:$0xff] %vm7149_vm9, %v17535_v19  ;;  %7154 = vst.msk [vmem:[%s14955_s6 + $0x40] sm:$0xff] %vm7149_vm9, %v17537_v17  ;;  %v15219_v19 = vmul.f32 %v14944_v36, %v14171_v28  ;;  %v17541_v17 = vld [vmem:[#allocation149_spill] sm:$0xff]  ;;  %v6931_v49 = vsel %vm6867_vm0, %v14993_v20, %v6899_v53  ;;  %v6932_v53 = vsel %vm6868_vm1, %v14997_v22, %v6900_v57  ;;  %v17546_v20 = vld [vmem:[#allocation106_spill] sm:$0xff]  ;;  %vm6881_vm0 = vcmp.gt.f32.partialorder %v15051_v37, 0.0 }
 0x411   : > { %17525 = vst [vmem:[#allocation32_spill] sm:$0xff] %v15150_v14  ;;  %v15174_v8 = vpop.permute.xlu0 %7926  ;;  %v15187_v14 = vmul.f32 %v14944_v36, %v17534_v41  ;;  %v6901_v41 = vmul.f32 0.2, %v15001_v9  ;;  %v6927_v40 = vsel %vm6863_vm14, %v14981_v0, %v6895_v13  ;;  %v17539_v0 = vld [vmem:[#allocation107_spill] sm:$0xff]  ;;  %v17540_v13 = vld [vmem:[#allocation148_spill] sm:$0xff]  ;;  %v15236_v28 = vmul.f32 %v14944_v36, %v17541_v17  ;;  %6960 = vst.msk [vmem:[%s14955_s6 + $0x28] sm:$0xff] %vm6008_vm7, %v6928_v32 }
 0x412   : > { %17532 = vst [vmem:[#allocation43_spill] sm:$0xff] %v15174_v8  ;;  %6959 = vst.msk [vmem:[%s14955_s6 + $0x20] sm:$0xff] %vm6008_vm7, %v6927_v40  ;;  %v15232_v24 = vmul.f32 %v14944_v36, %v17540_v13  ;;  %v15240_v8 = vmul.f32 %v14944_v36, %v17542_v61  ;;  %v17544_v40 = vld [vmem:[#allocation152_spill] sm:$0xff]  ;;  %v15256_v13 = vmul.f32 %v14944_v36, %v14195_v23  ;;  %v17550_v57 = vld [vmem:[#allocation111_spill] sm:$0xff]  ;;  %v6904_v61 = vmul.f32 0.2, %v15013_v56 }
 0x413   : > { %7151 = vst.msk [vmem:[%s14955_s6 + $0x8] sm:$0xff] %vm7149_vm9, %v17539_v0  ;;  %7152 = vst.msk [vmem:[%s14955_s6 + $0x20] sm:$0xff] %vm7149_vm9, %v17543_v1  ;;  %v15252_v0 = vmul.f32 %v14944_v36, %v17544_v40  ;;  %v15260_v17 = vmul.f32 %v14944_v36, %v14202_v15  ;;  %v15274_v23 = vmul.f32 %v14944_v36, %v14206_v43  ;;  %v17551_v43 = vld [vmem:[#allocation110_spill] sm:$0xff]  ;;  %vm6886_vm1 = vcmp.gt.f32.partialorder %v15071_v59, 0.0 }
 0x414   : > { %6963 = vst.msk [vmem:[%s14955_s6 + $0x60] sm:$0xff] %vm6008_vm7, %v6931_v49  ;;  %v15278_v15 = vmul.f32 %v14944_v36, %v14210_v3  ;;  %v6933_v22 = vsel %vm6869_vm2, %v15001_v9, %v6901_v41  ;;  %6964 = vst.msk [vmem:[%s14955_s6 + $0x68] sm:$0xff] %vm6008_vm7, %v6932_v53  ;;  %v6902_v3 = vmul.f32 0.2, %v15005_v35  ;;  %v15300_v9 = vmul.f32 %v14944_v36, %v14216_v34  ;;  %v17553_v1 = vld [vmem:[#allocation118_spill] sm:$0xff] }
 0x415   : > { %17545 = vst [vmem:[#allocation48_spill] sm:$0xff] %v15260_v17  ;;  %7153 = vst.msk [vmem:[%s14955_s6 + $0x28] sm:$0xff] %vm7149_vm9, %v17546_v20  ;;  %v15270_v32 = vpop.permute.xlu0 %7930  ;;  %v6903_v41 = vmul.f32 0.2, %v15009_v25  ;;  %v15306_v49 = vmul.f32 0.2, %v15019_v7  ;;  %v15313_v40 = vmul.f32 %v14944_v36, %v17410_v38 }
 0x416   : > { %17547 = vst [vmem:[#allocation57_spill] sm:$0xff] %v15270_v32  ;;  %17548 = vst [vmem:[#allocation61_spill] sm:$0xff] %v15274_v23  ;;  %v15317_v34 = vmul.f32 0.2, %v15023_v50  ;;  %v15320_v53 = vmul.f32 0.2, %v15027_v27 }
 0x417   : > { %17549 = vst [vmem:[#allocation55_spill] sm:$0xff] %v15278_v15  ;;  %7156 = vst.msk [vmem:[%s14955_s6 + $0x60] sm:$0xff] %vm7149_vm9, %v17550_v57  ;;  %v15323_v20 = vmul.f32 0.2, %v15031_v42  ;;  %v15331_v38 = vmul.f32 0.2, %v15035_v39 }
 0x418   : > { %6965 = vst.msk [vmem:[%s14955_s6 + $0x80] sm:$0xff] %vm6008_vm7, %v6933_v22  ;;  %17552 = vst [vmem:[#allocation60_spill] sm:$0xff] %v15300_v9  ;;  %v15327_v22 = vmul.f32 %v14944_v36, %v17414_v33  ;;  %v15334_v57 = vmul.f32 0.2, %v15039_v18  ;;  %v15345_v33 = vmul.f32 0.2, %v15047_v31 }
 0x419   : > { %7157 = vst.msk [vmem:[%s14955_s6 + $0x68] sm:$0xff] %vm7149_vm9, %v17551_v43  ;;  %7158 = vst.msk [vmem:[%s14955_s6 + $0x80] sm:$0xff] %vm7149_vm9, %v17553_v1  ;;  %v15337_v43 = vmul.f32 0.2, %v15043_v54  ;;  %v15341_v1 = vmul.f32 %v14944_v36, %v17421_v52  ;;  %v15348_v32 = vmul.f32 0.2, %v15051_v37 }
 0x41a   : > { %17554 = vst [vmem:[#allocation89_spill] sm:$0xff] %v15313_v40  ;;  %17555 = vst [vmem:[#allocation90_spill] sm:$0xff] %v15327_v22  ;;  %v15351_v22 = vmul.f32 0.2, %v15055_v45  ;;  %v15353_v40 = vpop.permute.xlu0 %7934  ;;  %v15361_v52 = vmul.f32 0.2, %v15059_v51 }
 0x41b   : > { %17556 = vst [vmem:[#allocation65_spill] sm:$0xff] %v15337_v43  ;;  %17557 = vst [vmem:[#allocation91_spill] sm:$0xff] %v15341_v1  ;;  %v15357_v43 = vmul.f32 %v14944_v36, %v17430_v16  ;;  %v15364_v1 = vmul.f32 0.2, %v15063_v6  ;;  %v15375_v16 = vmul.f32 0.2, %v15071_v59 }
 0x41c   : > { %17558 = vst [vmem:[#allocation92_spill] sm:$0xff] %v15345_v33  ;;  %17559 = vst [vmem:[#allocation3_spill] sm:$0xff] %v15351_v22  ;;  %v15367_v33 = vmul.f32 0.2, %v15067_v44  ;;  %v15371_v22 = vmul.f32 %v14944_v36, %v17445_v26  ;;  %v15390_v26 = vmul.f32 0.2, %v15083_v21 }
 0x41d   : > { %17560 = vst [vmem:[#allocation108_spill] sm:$0xff] %v15353_v40  ;;  %17561 = vst [vmem:[#allocation17_spill] sm:$0xff] %v15357_v43  ;;  %v15378_v40 = vmul.f32 0.2, %v15075_v62  ;;  %vm17608_vm14 = vcmp.gt.f32.partialorder %v15055_v45, 0.0 }
 0x41e   : > { %17562 = vst [vmem:[#allocation14_spill] sm:$0xff] %v15361_v52  ;;  %17563 = vst [vmem:[#allocation4_spill] sm:$0xff] %v15364_v1  ;;  %v15381_v52 = vmul.f32 0.2, %v15079_v10  ;;  %v15385_v1 = vmul.f32 %v14944_v36, %v17451_v47  ;;  %v15403_v47 = vmul.f32 0.2, %v15097_v58 }
 0x41f   : > { %17564 = vst [vmem:[#allocation130_spill] sm:$0xff] %v15367_v33  ;;  %17565 = vst [vmem:[#allocation131_spill] sm:$0xff] %v15375_v16  ;;  %v15393_v33 = vmul.f32 0.2, %v15089_v30  ;;  %v15396_v16 = vmul.f32 0.2, %v15093_v11 }
 0x420   : > { %17566 = vst [vmem:[#allocation132_spill] sm:$0xff] %v15385_v1  ;;  %17569 = vst [vmem:[#allocation135_spill] sm:$0xff] %v15403_v47  ;;  %v15406_v36 = vmul.f32 0.2, %v15122_v4  ;;  %v15419_v47 = vmul.f32 0.2, %v15130_v29 }
 0x421   : > { %17567 = vst [vmem:[#allocation133_spill] sm:$0xff] %v15393_v33  ;;  %17568 = vst [vmem:[#allocation134_spill] sm:$0xff] %v15396_v16  ;;  %v15409_v33 = vmul.f32 0.2, %v15126_v55  ;;  %v6934_v16 = vsel %vm6870_vm3, %v15005_v35, %v6902_v3  ;;  %v6935_v35 = vsel %vm6871_vm4, %v15009_v25, %v6903_v41  ;;  %vm6890_vm3 = vcmp.gt.f32.partialorder %v15089_v30, 0.0 }
 0x422   : > { %17570 = vst [vmem:[#allocation136_spill] sm:$0xff] %v15406_v36  ;;  %17572 = vst [vmem:[#allocation138_spill] sm:$0xff] %v15419_v47  ;;  %v15422_v36 = vmul.f32 0.2, %v15134_v48  ;;  %v15437_v3 = vmul.f32 0.2, %v15142_v5  ;;  %v6936_v41 = vsel %vm6872_vm5, %v15013_v56, %v6904_v61  ;;  %v15453_v47 = vpop.permute.xlu0 %7938 }
 0x423   : > { %17571 = vst [vmem:[#allocation137_spill] sm:$0xff] %v15409_v33  ;;  %v15425_v33 = vmul.f32 0.2, %v15138_v2  ;;  %6966 = vst.msk [vmem:[%s14955_s6 + $0x88] sm:$0xff] %vm6008_vm7, %v6934_v16  ;;  %v17579_v16 = vld [vmem:[#allocation117_spill] sm:$0xff]  ;;  %vm7697_vm4 = vcmp.gt.f32.partialorder %v15126_v55, 0.0 }
 0x424   : > { %17573 = vst [vmem:[#allocation139_spill] sm:$0xff] %v15422_v36  ;;  %17575 = vst [vmem:[#allocation141_spill] sm:$0xff] %v15437_v3  ;;  %v17577_v36 = vld [vmem:[#allocation32_spill] sm:$0xff]  ;;  %v17582_v56 = vld [vmem:[#allocation45_spill] sm:$0xff]  ;;  %vm7701_vm5 = vcmp.gt.f32.partialorder %v15142_v5, 0.0 }
 0x425   : > { %17574 = vst [vmem:[#allocation140_spill] sm:$0xff] %v15425_v33  ;;  %v15440_v33 = vmul.f32 0.2, %v15146_v63  ;;  %v15443_v25 = vmul.f32 0.2, %v17577_v36  ;;  %6967 = vst.msk [vmem:[%s14955_s6 + $0xa0] sm:$0xff] %vm6008_vm7, %v6935_v35 }
 0x426   : > { %7159 = vst.msk [vmem:[%s14955_s6 + $0x88] sm:$0xff] %vm7149_vm9, %v17579_v16  ;;  %17580 = vst [vmem:[#allocation144_spill] sm:$0xff] %v15453_v47  ;;  %v15463_v61 = vmul.f32 0.2, %v17582_v56  ;;  %v17583_v35 = vld [vmem:[#allocation49_spill] sm:$0xff]  ;;  %v6937_v47 = vsel %vm6873_vm6, %v15019_v7, %v15306_v49  ;;  %vm7705_vm6 = vcmp.gt.f32.partialorder %v17582_v56, 0.0 }
 0x427   : > { %17576 = vst [vmem:[#allocation143_spill] sm:$0xff] %v15440_v33  ;;  %17578 = vst [vmem:[#allocation105_spill] sm:$0xff] %v15443_v25  ;;  %v17581_v25 = vld [vmem:[#allocation36_spill] sm:$0xff]  ;;  %v15466_v16 = vmul.f32 0.2, %v17583_v35  ;;  %v17585_v3 = vld [vmem:[#allocation121_spill] sm:$0xff] }
 0x428   : > { %v15460_v33 = vmul.f32 0.2, %v17581_v25  ;;  %6968 = vst.msk [vmem:[%s14955_s6 + $0xa8] sm:$0xff] %vm6008_vm7, %v6936_v41  ;;  %v15485_v7 = vmul.f32 0.2, %v15187_v14  ;;  %6969 = vst.msk [vmem:[%s14955_s6 + $0xc0] sm:$0xff] %vm6008_vm7, %v6937_v47  ;;  %v6939_v47 = vsel %vm6875_vm10, %v15027_v27, %v15320_v53 }
 0x429   : > { %17584 = vst [vmem:[#allocation109_spill] sm:$0xff] %v15466_v16  ;;  %7160 = vst.msk [vmem:[%s14955_s6 + $0xa0] sm:$0xff] %vm7149_vm9, %v17585_v3  ;;  %v15482_v16 = vmul.f32 0.2, %v15178_v60  ;;  %v15488_v49 = vmul.f32 0.2, %v15201_v12  ;;  %v6938_v3 = vsel %vm6874_vm8, %v15023_v50, %v15317_v34 }
 0x42a   : > { %v17587_v41 = vld [vmem:[#allocation120_spill] sm:$0xff]  ;;  %v15507_v50 = vmul.f32 0.2, %v15219_v19  ;;  %v15510_v34 = vmul.f32 0.2, %v15232_v24  ;;  %6970 = vst.msk [vmem:[%s14955_s6 + $0xc8] sm:$0xff] %vm6008_vm7, %v6938_v3  ;;  %v6940_v3 = vsel %vm6876_vm11, %v15031_v42, %v15323_v20 }
 0x42b   : > { %17586 = vst [vmem:[#allocation145_spill] sm:$0xff] %v15488_v49  ;;  %7161 = vst.msk [vmem:[%s14955_s6 + $0xa8] sm:$0xff] %vm7149_vm9, %v17587_v41  ;;  %v15504_v49 = vmul.f32 0.2, %v15215_v46  ;;  %v17589_v41 = vld [vmem:[#allocation123_spill] sm:$0xff]  ;;  %vm7709_vm8 = vcmp.gt.f32.partialorder %v15201_v12, 0.0 }
 0x42c   : > { %17588 = vst [vmem:[#allocation107_spill] sm:$0xff] %v15510_v34  ;;  %7162 = vst.msk [vmem:[%s14955_s6 + $0xc0] sm:$0xff] %vm7149_vm9, %v17589_v41  ;;  %v15526_v34 = vmul.f32 0.2, %v15236_v28  ;;  %v15529_v27 = vmul.f32 0.2, %v15240_v8 }
 0x42d   : > { %v15532_v53 = vmul.f32 0.2, %v15252_v0  ;;  %6971 = vst.msk [vmem:[%s14955_s6 + $0xe0] sm:$0xff] %vm6008_vm7, %v6939_v47  ;;  %v17591_v41 = vld [vmem:[#allocation122_spill] sm:$0xff]  ;;  %vm7713_vm10 = vcmp.gt.f32.partialorder %v15236_v28, 0.0  ;;  %v6941_v47 = vsel %vm6877_vm12, %v15035_v39, %v15331_v38  ;;  %6972 = vst.msk [vmem:[%s14955_s6 + $0xe8] sm:$0xff] %vm6008_vm7, %v6940_v3 }
 0x42e   : > { %7163 = vst.msk [vmem:[%s14955_s6 + $0xc8] sm:$0xff] %vm7149_vm9, %v17591_v41  ;;  %v15551_v42 = vmul.f32 0.2, %v15260_v17  ;;  %v15554_v20 = vmul.f32 0.2, %v15274_v23  ;;  %v17593_v41 = vld [vmem:[#allocation125_spill] sm:$0xff] }
 0x42f   : > { %17590 = vst [vmem:[#allocation148_spill] sm:$0xff] %v15532_v53  ;;  %v15548_v53 = vmul.f32 0.2, %v15256_v13  ;;  %7164 = vst.msk [vmem:[%s14955_s6 + $0xe0] sm:$0xff] %vm7149_vm9, %v17593_v41  ;;  %vm7717_vm11 = vcmp.gt.f32.partialorder %v15260_v17, 0.0  ;;  %v17594_v38 = vld [vmem:[#allocation89_spill] sm:$0xff]  ;;  %v6942_v41 = vsel %vm6878_vm13, %v15039_v18, %v15334_v57  ;;  %v15587_v17 = vpop.permute.xlu0 %7942 }
 0x430   : > { %17592 = vst [vmem:[#allocation149_spill] sm:$0xff] %v15554_v20  ;;  %v15570_v20 = vmul.f32 0.2, %v15278_v15  ;;  %v15573_v39 = vmul.f32 0.2, %v15300_v9  ;;  %6973 = vst.msk [vmem:[%s14955_s6 + $0x100] sm:$0xff] %vm6008_vm7, %v6941_v47 }
 0x431   : > { %v15576_v3 = vmul.f32 0.2, %v17594_v38  ;;  %v17596_v23 = vld [vmem:[#allocation124_spill] sm:$0xff]  ;;  %17597 = vst [vmem:[#allocation104_spill] sm:$0xff] %v15587_v17  ;;  %vm7721_vm12 = vcmp.gt.f32.partialorder %v17594_v38, 0.0  ;;  %v17598_v15 = vld [vmem:[#allocation90_spill] sm:$0xff] }
 0x432   : > { %7165 = vst.msk [vmem:[%s14955_s6 + $0xe8] sm:$0xff] %vm7149_vm9, %v17596_v23  ;;  %vm7722_vm2 = vcmp.gt.f32.partialorder %v17598_v15, 0.0  ;;  %v17599_v9 = vld [vmem:[#allocation91_spill] sm:$0xff]  ;;  %v15600_v23 = vmul.f32 0.2, %v15357_v43  ;;  %v17601_v57 = vld [vmem:[#allocation65_spill] sm:$0xff] }
 0x433   : > { %17595 = vst [vmem:[#allocation151_spill] sm:$0xff] %v15576_v3  ;;  %v15594_v3 = vmul.f32 0.2, %v17598_v15  ;;  %v15597_v18 = vmul.f32 0.2, %v17599_v9  ;;  %vm17602_vm13 = vcmp.gt.f32.partialorder %v15043_v54, 0.0 }
 0x434   : > { %17600 = vst [vmem:[#allocation152_spill] sm:$0xff] %v15600_v23  ;;  %v6943_v47 = vsel %vm17602_vm13, %v15043_v54, %v17601_v57  ;;  %6974 = vst.msk [vmem:[%s14955_s6 + $0x108] sm:$0xff] %vm6008_vm7, %v6942_v41  ;;  %v17603_v17 = vld [vmem:[#allocation127_spill] sm:$0xff]  ;;  %v15614_v43 = vmul.f32 0.2, %v15371_v22  ;;  %v17604_v9 = vld [vmem:[#allocation92_spill] sm:$0xff] }
 0x435   : > { %7166 = vst.msk [vmem:[%s14955_s6 + $0x100] sm:$0xff] %vm7149_vm9, %v17603_v17  ;;  %v15617_v23 = vmul.f32 0.2, %v15385_v1  ;;  %vm17605_vm13 = vcmp.gt.f32.partialorder %v15047_v31, 0.0  ;;  %v6945_v17 = vsel %vm6881_vm0, %v15051_v37, %v15348_v32  ;;  %v17606_v41 = vld [vmem:[#allocation126_spill] sm:$0xff]  ;;  %v17607_v57 = vld [vmem:[#allocation3_spill] sm:$0xff] }
 0x436   : > { %v6944_v54 = vsel %vm17605_vm13, %v15047_v31, %v17604_v9  ;;  %6975 = vst.msk [vmem:[%s14955_s6 + $0x120] sm:$0xff] %vm6008_vm7, %v6943_v47  ;;  %v6946_v1 = vsel %vm17608_vm14, %v15055_v45, %v17607_v57  ;;  %v17609_v31 = vld [vmem:[#allocation14_spill] sm:$0xff]  ;;  %vm17610_vm13 = vcmp.gt.f32.partialorder %v15059_v51, 0.0  ;;  %v17611_v37 = vld [vmem:[#allocation4_spill] sm:$0xff]  ;;  %vm17612_vm0 = vcmp.gt.f32.partialorder %v15063_v6, 0.0  ;;  %6977 = vst.msk [vmem:[%s14955_s6 + $0x140] sm:$0xff] %vm6008_vm7, %v6945_v17 }
 0x437   : > { %7167 = vst.msk [vmem:[%s14955_s6 + $0x108] sm:$0xff] %vm7149_vm9, %v17606_v41  ;;  %v6947_v9 = vsel %vm17610_vm13, %v15059_v51, %v17609_v31  ;;  %v6948_v32 = vsel %vm17612_vm0, %v15063_v6, %v17611_v37  ;;  %v17613_v47 = vld [vmem:[#allocation130_spill] sm:$0xff]  ;;  %v17615_v45 = vld [vmem:[#allocation129_spill] sm:$0xff]  ;;  %v17616_v57 = vld [vmem:[#allocation131_spill] sm:$0xff]  ;;  %vm17617_vm14 = vcmp.gt.f32.partialorder %v15075_v62, 0.0  ;;  %vm17619_vm13 = vcmp.gt.f32.partialorder %v15083_v21, 0.0 }
 0x438   : > { %v6949_v41 = vsel %vm17614_vm15, %v15067_v44, %v17613_v47  ;;  %6976 = vst.msk [vmem:[%s14955_s6 + $0x128] sm:$0xff] %vm6008_vm7, %v6944_v54  ;;  %v6950_v51 = vsel %vm6886_vm1, %v15071_v59, %v17616_v57  ;;  %v6951_v6 = vsel %vm17617_vm14, %v15075_v62, %v15378_v40  ;;  %vm17618_vm15 = vcmp.gt.f32.partialorder %v15079_v10, 0.0  ;;  %6978 = vst.msk [vmem:[%s14955_s6 + $0x148] sm:$0xff] %vm6008_vm7, %v6946_v1  ;;  %v17620_v59 = vld [vmem:[#allocation128_spill] sm:$0xff]  ;;  %v17621_v62 = vld [vmem:[#allocation150_spill] sm:$0xff] }
 0x439   : > { %7168 = vst.msk [vmem:[%s14955_s6 + $0x120] sm:$0xff] %vm7149_vm9, %v17615_v45  ;;  %v6952_v44 = vsel %vm17618_vm15, %v15079_v10, %v15381_v52  ;;  %v6953_v54 = vsel %vm17619_vm13, %v15083_v21, %v15390_v26  ;;  %7169 = vst.msk [vmem:[%s14955_s6 + $0x128] sm:$0xff] %vm7149_vm9, %v17620_v59  ;;  %v17622_v10 = vld [vmem:[#allocation133_spill] sm:$0xff]  ;;  %v17623_v40 = vld [vmem:[#allocation134_spill] sm:$0xff]  ;;  %vm17624_vm1 = vcmp.gt.f32.partialorder %v15093_v11, 0.0  ;;  %vm17626_vm0 = vcmp.gt.f32.partialorder %v15097_v58, 0.0 }
 0x43a   : > { %6979 = vst.msk [vmem:[%s14955_s6 + $0x160] sm:$0xff] %vm6008_vm7, %v6947_v9  ;;  %6980 = vst.msk [vmem:[%s14955_s6 + $0x168] sm:$0xff] %vm6008_vm7, %v6948_v32  ;;  %v6954_v21 = vsel %vm6890_vm3, %v15089_v30, %v17622_v10  ;;  %v6955_v1 = vsel %vm17624_vm1, %v15093_v11, %v17623_v40  ;;  %v17625_v52 = vld [vmem:[#allocation135_spill] sm:$0xff]  ;;  %v17627_v17 = vld [vmem:[#allocation136_spill] sm:$0xff]  ;;  %vm17628_vm14 = vcmp.gt.f32.partialorder %v15122_v4, 0.0  ;;  %vm17635_vm3 = vcmp.gt.f32.partialorder %v15130_v29, 0.0 }
 0x43b   : > { %6981 = vst.msk [vmem:[%s14955_s6 + $0x180] sm:$0xff] %vm6008_vm7, %v6949_v41  ;;  %v6956_v26 = vsel %vm17626_vm0, %v15097_v58, %v17625_v52  ;;  %v7760_v31 = vsel %vm17628_vm14, %v15122_v4, %v17627_v17  ;;  %6982 = vst.msk [vmem:[%s14955_s6 + $0x188] sm:$0xff] %vm6008_vm7, %v6950_v51  ;;  %v17629_v30 = vld [vmem:[#allocation142_spill] sm:$0xff]  ;;  %v17632_v4 = vld [vmem:[#allocation155_spill] sm:$0xff]  ;;  %vm17637_vm15 = vcmp.gt.f32.partialorder %v15134_v48, 0.0  ;;  %vm17639_vm13 = vcmp.gt.f32.partialorder %v15138_v2, 0.0 }
 0x43c   : > { %7170 = vst.msk [vmem:[%s14955_s6 + $0x140] sm:$0xff] %vm7149_vm9, %v17621_v62  ;;  %7171 = vst.msk [vmem:[%s14955_s6 + $0x148] sm:$0xff] %vm7149_vm9, %v17629_v30  ;;  %v17630_v11 = vld [vmem:[#allocation74_spill] sm:$0xff]  ;;  %v17633_v9 = vld [vmem:[#allocation137_spill] sm:$0xff]  ;;  %vm17648_vm1 = vcmp.gt.f32.partialorder %v17577_v36, 0.0  ;;  %vm17649_vm0 = vcmp.gt.f32.partialorder %v17581_v25, 0.0 }
 0x43d   : > { %6983 = vst.msk [vmem:[%s14955_s6 + $0x1a0] sm:$0xff] %vm6008_vm7, %v6951_v6  ;;  %6984 = vst.msk [vmem:[%s14955_s6 + $0x1a8] sm:$0xff] %vm6008_vm7, %v6952_v44  ;;  %v17631_v58 = vld [vmem:[#allocation86_spill] sm:$0xff]  ;;  %v7761_v37 = vsel %vm7697_vm4, %v15126_v55, %v17633_v9  ;;  %v17636_v41 = vld [vmem:[#allocation139_spill] sm:$0xff]  ;;  %v15757_v6 = vpop.permute.xlu0 %7946  ;;  %vm17646_vm4 = vcmp.gt.f32.partialorder %v15146_v63, 0.0  ;;  %v7768_v40 = vsel %vm17649_vm0, %v17581_v25, %v15460_v33  ;;  %v7769_v25 = vsel %vm7705_vm6, %v17582_v56, %v15463_v61 }
 0x43e   : > { %6985 = vst.msk [vmem:[%s14955_s6 + $0x1c0] sm:$0xff] %vm6008_vm7, %v6953_v54  ;;  %v17634_v32 = vld [vmem:[#allocation138_spill] sm:$0xff]  ;;  %v7763_v45 = vsel %vm17637_vm15, %v15134_v48, %v17636_v41  ;;  %v17638_v57 = vld [vmem:[#allocation140_spill] sm:$0xff]  ;;  %6986 = vst.msk [vmem:[%s14955_s6 + $0x1c8] sm:$0xff] %vm6008_vm7, %v6954_v21  ;;  %vm17656_vm14 = vcmp.gt.f32.partialorder %v15178_v60, 0.0  ;;  %vm17663_vm6 = vcmp.gt.f32.partialorder %v15215_v46, 0.0 }
 0x43f   : > { %7173 = vst.msk [vmem:[%s14955_s6 + $0x168] sm:$0xff] %vm7149_vm9, %v17630_v11  ;;  %7172 = vst.msk [vmem:[%s14955_s6 + $0x160] sm:$0xff] %vm7149_vm9, %v17631_v58  ;;  %v7762_v47 = vsel %vm17635_vm3, %v15130_v29, %v17634_v32  ;;  %v7764_v51 = vsel %vm17639_vm13, %v15138_v2, %v17638_v57  ;;  %v17640_v55 = vld [vmem:[#allocation88_spill] sm:$0xff]  ;;  %v17641_v29 = vld [vmem:[#allocation87_spill] sm:$0xff]  ;;  %vm17657_vm3 = vcmp.gt.f32.partialorder %v15187_v14, 0.0  ;;  %vm17664_vm15 = vcmp.gt.f32.partialorder %v15219_v19, 0.0 }
 0x440   : > { %7174 = vst.msk [vmem:[%s14955_s6 + $0x180] sm:$0xff] %vm7149_vm9, %v17632_v4  ;;  %7175 = vst.msk [vmem:[%s14955_s6 + $0x188] sm:$0xff] %vm7149_vm9, %v17640_v55  ;;  %v17642_v48 = vld [vmem:[#allocation159_spill] sm:$0xff]  ;;  %v17643_v2 = vld [vmem:[#allocation166_spill] sm:$0xff]  ;;  %v7772_v17 = vsel %vm17657_vm3, %v15187_v14, %v15485_v7  ;;  %v7774_v7 = vsel %vm17663_vm6, %v15215_v46, %v15504_v49  ;;  %vm17666_vm13 = vcmp.gt.f32.partialorder %v15232_v24, 0.0  ;;  %v7777_v49 = vsel %vm7713_vm10, %v15236_v28, %v15526_v34 }
 0x441   : > { %6987 = vst.msk [vmem:[%s14955_s6 + $0x1e0] sm:$0xff] %vm6008_vm7, %v6955_v1  ;;  %6988 = vst.msk [vmem:[%s14955_s6 + $0x1e8] sm:$0xff] %vm6008_vm7, %v6956_v26  ;;  %v17644_v44 = vld [vmem:[#allocation141_spill] sm:$0xff]  ;;  %v17645_v59 = vld [vmem:[#allocation143_spill] sm:$0xff]  ;;  %v7771_v26 = vsel %vm17656_vm14, %v15178_v60, %v15482_v16 }
 0x442   : > { %9261 = vst.msk [vmem:[%s14955_s6 + $0x10] sm:$0xff] %vm6008_vm7, %v7760_v31  ;;  %v7765_v54 = vsel %vm7701_vm5, %v15142_v5, %v17644_v44  ;;  %v7766_v62 = vsel %vm17646_vm4, %v15146_v63, %v17645_v59  ;;  %v17647_v10 = vld [vmem:[#allocation105_spill] sm:$0xff]  ;;  %9262 = vst.msk [vmem:[%s14955_s6 + $0x18] sm:$0xff] %vm6008_vm7, %v7761_v37  ;;  %v17650_v5 = vld [vmem:[#allocation156_spill] sm:$0xff]  ;;  %vm17655_vm5 = vcmp.gt.f32.partialorder %v17583_v35, 0.0  ;;  %v7775_v31 = vsel %vm17664_vm15, %v15219_v19, %v15507_v50 }
 0x443   : > { %7177 = vst.msk [vmem:[%s14955_s6 + $0x1a8] sm:$0xff] %vm7149_vm9, %v17641_v29  ;;  %7176 = vst.msk [vmem:[%s14955_s6 + $0x1a0] sm:$0xff] %vm7149_vm9, %v17642_v48  ;;  %v7767_v21 = vsel %vm17648_vm1, %v17577_v36, %v17647_v10  ;;  %v17651_v36 = vld [vmem:[#allocation160_spill] sm:$0xff]  ;;  %v17652_v63 = vld [vmem:[#allocation170_spill] sm:$0xff]  ;;  %vm17673_vm4 = vcmp.gt.f32.partialorder %v15252_v0, 0.0  ;;  %vm17674_vm1 = vcmp.gt.f32.partialorder %v15256_v13, 0.0  ;;  %v7786_v48 = vsel %vm7722_vm2, %v17598_v15, %v15594_v3  ;;  %v7953_v10 = vpop.permute.xlu1 %7952 }
 0x444   : > { %7178 = vst.msk [vmem:[%s14955_s6 + $0x1c0] sm:$0xff] %vm7149_vm9, %v17643_v2  ;;  %7179 = vst.msk [vmem:[%s14955_s6 + $0x1c8] sm:$0xff] %vm7149_vm9, %v17650_v5  ;;  %v17653_v33 = vld [vmem:[#allocation182_spill] sm:$0xff]  ;;  %v17654_v1 = vld [vmem:[#allocation109_spill] sm:$0xff]  ;;  %v7780_v9 = vsel %vm17674_vm1, %v15256_v13, %v15548_v53  ;;  %vm17701_vm2 = vcmp.gt.f32.partialorder %v15371_v22, 0.0 }
 0x445   : > { %9263 = vst.msk [vmem:[%s14955_s6 + $0x30] sm:$0xff] %vm6008_vm7, %v7762_v47  ;;  %9264 = vst.msk [vmem:[%s14955_s6 + $0x38] sm:$0xff] %vm6008_vm7, %v7763_v45  ;;  %v7770_v52 = vsel %vm17655_vm5, %v17583_v35, %v17654_v1  ;;  %v17658_v56 = vld [vmem:[#allocation101_spill] sm:$0xff]  ;;  %v17659_v60 = vld [vmem:[#allocation154_spill] sm:$0xff] }
 0x446   : > { %9265 = vst.msk [vmem:[%s14955_s6 + $0x50] sm:$0xff] %vm6008_vm7, %v7764_v51  ;;  %9266 = vst.msk [vmem:[%s14955_s6 + $0x58] sm:$0xff] %vm6008_vm7, %v7765_v54  ;;  %v17660_v14 = vld [vmem:[#allocation184_spill] sm:$0xff]  ;;  %v17661_v61 = vld [vmem:[#allocation187_spill] sm:$0xff] }
 0x447   : > { %7181 = vst.msk [vmem:[%s14955_s6 + $0x1e8] sm:$0xff] %vm7149_vm9, %v17651_v36  ;;  %7180 = vst.msk [vmem:[%s14955_s6 + $0x1e0] sm:$0xff] %vm7149_vm9, %v17652_v63  ;;  %v17662_v35 = vld [vmem:[#allocation145_spill] sm:$0xff]  ;;  %v17665_v30 = vld [vmem:[#allocation107_spill] sm:$0xff] }
 0x448   : > { %9325 = vst.msk [vmem:[%s14955_s6 + $0x10] sm:$0xff] %vm7149_vm9, %v17653_v33  ;;  %9326 = vst.msk [vmem:[%s14955_s6 + $0x18] sm:$0xff] %vm7149_vm9, %v17658_v56  ;;  %v7773_v16 = vsel %vm7709_vm8, %v15201_v12, %v17662_v35  ;;  %v7776_v11 = vsel %vm17666_vm13, %v15232_v24, %v17665_v30  ;;  %v17667_v12 = vld [vmem:[#allocation82_spill] sm:$0xff]  ;;  %v17668_v46 = vld [vmem:[#allocation157_spill] sm:$0xff]  ;;  %vm17671_vm8 = vcmp.gt.f32.partialorder %v15240_v8, 0.0 }
 0x449   : > { %9267 = vst.msk [vmem:[%s14955_s6 + $0x70] sm:$0xff] %vm6008_vm7, %v7766_v62  ;;  %9268 = vst.msk [vmem:[%s14955_s6 + $0x78] sm:$0xff] %vm6008_vm7, %v7767_v21  ;;  %v17669_v19 = vld [vmem:[#allocation188_spill] sm:$0xff]  ;;  %v17670_v24 = vld [vmem:[#allocation189_spill] sm:$0xff]  ;;  %v7778_v50 = vsel %vm17671_vm8, %v15240_v8, %v15529_v27  ;;  %v7951_v21 = vpop.permute.xlu0 %7950 }
 0x44a   : > { %9269 = vst.msk [vmem:[%s14955_s6 + $0x90] sm:$0xff] %vm6008_vm7, %v7768_v40  ;;  %9270 = vst.msk [vmem:[%s14955_s6 + $0x98] sm:$0xff] %vm6008_vm7, %v7769_v25  ;;  %v17672_v58 = vld [vmem:[#allocation148_spill] sm:$0xff]  ;;  %v17676_v28 = vld [vmem:[#allocation103_spill] sm:$0xff]  ;;  %v7790_v40 = vsel %vm17701_vm2, %v15371_v22, %v15614_v43 }
 0x44b   : > { %9328 = vst.msk [vmem:[%s14955_s6 + $0x38] sm:$0xff] %vm7149_vm9, %v17659_v60  ;;  %9327 = vst.msk [vmem:[%s14955_s6 + $0x30] sm:$0xff] %vm7149_vm9, %v17660_v14  ;;  %v7779_v4 = vsel %vm17673_vm4, %v15252_v0, %v17672_v58  ;;  %v17675_v8 = vld [vmem:[#allocation84_spill] sm:$0xff]  ;;  %v17677_v0 = vld [vmem:[#allocation190_spill] sm:$0xff] }
 0x44c   : > { %9329 = vst.msk [vmem:[%s14955_s6 + $0x50] sm:$0xff] %vm7149_vm9, %v17661_v61  ;;  %9330 = vst.msk [vmem:[%s14955_s6 + $0x58] sm:$0xff] %vm7149_vm9, %v17667_v12  ;;  %v17678_v13 = vld [vmem:[#allocation191_spill] sm:$0xff]  ;;  %v17679_v34 = vld [vmem:[#allocation48_spill] sm:$0xff] }
 0x44d   : > { %9271 = vst.msk [vmem:[%s14955_s6 + $0xb0] sm:$0xff] %vm6008_vm7, %v7770_v52  ;;  %9272 = vst.msk [vmem:[%s14955_s6 + $0xb8] sm:$0xff] %vm6008_vm7, %v7771_v26  ;;  %v7781_v27 = vsel %vm7717_vm11, %v17679_v34, %v15551_v42  ;;  %v17680_v53 = vld [vmem:[#allocation149_spill] sm:$0xff]  ;;  %v17683_v47 = vld [vmem:[#allocation55_spill] sm:$0xff] }
 0x44e   : > { %9273 = vst.msk [vmem:[%s14955_s6 + $0xd0] sm:$0xff] %vm6008_vm7, %v7772_v17  ;;  %9274 = vst.msk [vmem:[%s14955_s6 + $0xd8] sm:$0xff] %vm6008_vm7, %v7773_v16  ;;  %v17681_v37 = vld [vmem:[#allocation61_spill] sm:$0xff]  ;;  %vm17684_vm0 = vcmp.gt.f32.partialorder %v17683_v47, 0.0  ;;  %v17685_v45 = vld [vmem:[#allocation60_spill] sm:$0xff] }
 0x44f   : > { %9332 = vst.msk [vmem:[%s14955_s6 + $0x78] sm:$0xff] %vm7149_vm9, %v17668_v46  ;;  %9331 = vst.msk [vmem:[%s14955_s6 + $0x70] sm:$0xff] %vm7149_vm9, %v17669_v19  ;;  %vm17682_vm10 = vcmp.gt.f32.partialorder %v17681_v37, 0.0  ;;  %v7783_v41 = vsel %vm17684_vm0, %v17683_v47, %v15570_v20  ;;  %vm17686_vm5 = vcmp.gt.f32.partialorder %v17685_v45, 0.0  ;;  %v17687_v42 = vld [vmem:[#allocation162_spill] sm:$0xff]  ;;  %v17688_v20 = vld [vmem:[#allocation164_spill] sm:$0xff] }
 0x450   : > { %9333 = vst.msk [vmem:[%s14955_s6 + $0x90] sm:$0xff] %vm7149_vm9, %v17670_v24  ;;  %9334 = vst.msk [vmem:[%s14955_s6 + $0x98] sm:$0xff] %vm7149_vm9, %v17675_v8  ;;  %v7782_v32 = vsel %vm17682_vm10, %v17681_v37, %v17680_v53  ;;  %v7784_v57 = vsel %vm17686_vm5, %v17685_v45, %v15573_v39  ;;  %v17689_v39 = vld [vmem:[#allocation37_spill] sm:$0xff]  ;;  %v17690_v51 = vld [vmem:[#allocation28_spill] sm:$0xff] }
 0x451   : > { %9275 = vst.msk [vmem:[%s14955_s6 + $0xf0] sm:$0xff] %vm6008_vm7, %v7774_v7  ;;  %9276 = vst.msk [vmem:[%s14955_s6 + $0xf8] sm:$0xff] %vm6008_vm7, %v7775_v31  ;;  %v17691_v55 = vld [vmem:[#allocation151_spill] sm:$0xff]  ;;  %v17694_v54 = vld [vmem:[#allocation152_spill] sm:$0xff] }
 0x452   : > { %9277 = vst.msk [vmem:[%s14955_s6 + $0x110] sm:$0xff] %vm6008_vm7, %v7776_v11  ;;  %9278 = vst.msk [vmem:[%s14955_s6 + $0x118] sm:$0xff] %vm6008_vm7, %v7777_v49  ;;  %v7785_v29 = vsel %vm7721_vm12, %v17594_v38, %v17691_v55  ;;  %v17692_v2 = vld [vmem:[#allocation91_spill] sm:$0xff]  ;;  %v17695_v59 = vld [vmem:[#allocation17_spill] sm:$0xff] }
 0x453   : > { %9336 = vst.msk [vmem:[%s14955_s6 + $0xb8] sm:$0xff] %vm7149_vm9, %v17676_v28  ;;  %9335 = vst.msk [vmem:[%s14955_s6 + $0xb0] sm:$0xff] %vm7149_vm9, %v17677_v0  ;;  %vm17693_vm11 = vcmp.gt.f32.partialorder %v17692_v2, 0.0  ;;  %vm17696_vm14 = vcmp.gt.f32.partialorder %v17695_v59, 0.0  ;;  %v17697_v15 = vld [vmem:[#allocation165_spill] sm:$0xff]  ;;  %v17698_v38 = vld [vmem:[#allocation168_spill] sm:$0xff] }
 0x454   : > { %9337 = vst.msk [vmem:[%s14955_s6 + $0xd0] sm:$0xff] %vm7149_vm9, %v17678_v13  ;;  %9338 = vst.msk [vmem:[%s14955_s6 + $0xd8] sm:$0xff] %vm7149_vm9, %v17687_v42  ;;  %v7787_v44 = vsel %vm17693_vm11, %v17692_v2, %v15597_v18  ;;  %v7788_v62 = vsel %vm17696_vm14, %v17695_v59, %v17694_v54  ;;  %v17699_v3 = vld [vmem:[#allocation43_spill] sm:$0xff]  ;;  %v17700_v18 = vld [vmem:[#allocation57_spill] sm:$0xff] }
 0x455   : > { %9279 = vst.msk [vmem:[%s14955_s6 + $0x130] sm:$0xff] %vm6008_vm7, %v7778_v50  ;;  %9280 = vst.msk [vmem:[%s14955_s6 + $0x138] sm:$0xff] %vm6008_vm7, %v7779_v4  ;;  %v17702_v5 = vld [vmem:[#allocation132_spill] sm:$0xff]  ;;  %v17704_v63 = vld [vmem:[#allocation22_spill] sm:$0xff] }
 0x456   : > { %9281 = vst.msk [vmem:[%s14955_s6 + $0x150] sm:$0xff] %vm6008_vm7, %v7780_v9  ;;  %9282 = vst.msk [vmem:[%s14955_s6 + $0x158] sm:$0xff] %vm6008_vm7, %v7781_v27  ;;  %vm17703_vm12 = vcmp.gt.f32.partialorder %v17702_v5, 0.0  ;;  %vm7215_vm3 = vcmp.gt.f32.partialorder %v17704_v63, 0.0  ;;  %v7247_v22 = vmul.f32 0.2, %v17704_v63 }
 0x457   : > { %9340 = vst.msk [vmem:[%s14955_s6 + $0xf8] sm:$0xff] %vm7149_vm9, %v17688_v20  ;;  %9339 = vst.msk [vmem:[%s14955_s6 + $0xf0] sm:$0xff] %vm7149_vm9, %v17689_v39  ;;  %v7791_v36 = vsel %vm17703_vm12, %v17702_v5, %v15617_v23  ;;  %v17705_v43 = vld [vmem:[#allocation180_spill] sm:$0xff]  ;;  %v17706_v23 = vld [vmem:[#allocation181_spill] sm:$0xff] }
 0x458   : > { %9341 = vst.msk [vmem:[%s14955_s6 + $0x110] sm:$0xff] %vm7149_vm9, %v17690_v51  ;;  %9342 = vst.msk [vmem:[%s14955_s6 + $0x118] sm:$0xff] %vm7149_vm9, %v17697_v15  ;;  %v17707_v33 = vld [vmem:[#allocation108_spill] sm:$0xff]  ;;  %v17710_v26 = vld [vmem:[#allocation183_spill] sm:$0xff]  ;;  %v7279_v35 = vsel %vm7215_vm3, %v17704_v63, %v7247_v22 }
 0x459   : > { %9283 = vst.msk [vmem:[%s14955_s6 + $0x170] sm:$0xff] %vm6008_vm7, %v7782_v32  ;;  %9284 = vst.msk [vmem:[%s14955_s6 + $0x178] sm:$0xff] %vm6008_vm7, %v7783_v41  ;;  %v17708_v25 = vld [vmem:[#allocation144_spill] sm:$0xff]  ;;  %v17711_v17 = vld [vmem:[#allocation185_spill] sm:$0xff]  ;;  %7344 = vrot.lane.b32.xlu1 %v7279_v35, %s10772_s25 }
 0x45a   : > { %9285 = vst.msk [vmem:[%s14955_s6 + $0x190] sm:$0xff] %vm6008_vm7, %v7784_v57  ;;  %9286 = vst.msk [vmem:[%s14955_s6 + $0x198] sm:$0xff] %vm6008_vm7, %v7785_v29  ;;  %v17709_v1 = vld [vmem:[#allocation24_spill] sm:$0xff]  ;;  %v17713_v60 = vld [vmem:[#allocation23_spill] sm:$0xff] }
 0x45b   : > { %9344 = vst.msk [vmem:[%s14955_s6 + $0x138] sm:$0xff] %vm7149_vm9, %v17698_v38  ;;  %9343 = vst.msk [vmem:[%s14955_s6 + $0x130] sm:$0xff] %vm7149_vm9, %v17699_v3  ;;  %vm7214_vm6 = vcmp.gt.f32.partialorder %v17709_v1, 0.0  ;;  %v7246_v52 = vmul.f32 0.2, %v17709_v1  ;;  %v17712_v56 = vld [vmem:[#allocation104_spill] sm:$0xff] }
 0x45c   : > { %9345 = vst.msk [vmem:[%s14955_s6 + $0x150] sm:$0xff] %vm7149_vm9, %v17700_v18  ;;  %9346 = vst.msk [vmem:[%s14955_s6 + $0x158] sm:$0xff] %vm7149_vm9, %v17705_v43  ;;  %v17714_v14 = vld [vmem:[#allocation186_spill] sm:$0xff]  ;;  %v17716_v31 = vld [vmem:[#allocation20_spill] sm:$0xff] }
 0x45d   : > { %9287 = vst.msk [vmem:[%s14955_s6 + $0x1b0] sm:$0xff] %vm6008_vm7, %v7786_v48  ;;  %9288 = vst.msk [vmem:[%s14955_s6 + $0x1b8] sm:$0xff] %vm6008_vm7, %v7787_v44  ;;  %v7187_v61 = vmul.f32 %v17714_v14, %v17713_v60  ;;  %v17715_v16 = vld [vmem:[#allocation34_spill] sm:$0xff]  ;;  %v7186_v30 = vmul.f32 %v17714_v14, %v17716_v31  ;;  %v7278_v11 = vsel %vm7214_vm6, %v17709_v1, %v7246_v52  ;;  %v17718_v46 = vld [vmem:[#allocation21_spill] sm:$0xff]  ;;  %v16076_v1 = vpop.permute.xlu1 %8372  ;;  %v16079_v52 = vpop.permute.xlu0 %8370 }
 0x45e   : > { %9289 = vst.msk [vmem:[%s14955_s6 + $0x1d0] sm:$0xff] %vm6008_vm7, %v7788_v62  ;;  %9291 = vst.msk [vmem:[%s14955_s6 + $0x1f0] sm:$0xff] %vm6008_vm7, %v7790_v40  ;;  %v7249_v7 = vmul.f32 0.2, %v17715_v16  ;;  %7342 = vrot.lane.b32.xlu0 %v7278_v11, %s10772_s25  ;;  %v7189_v19 = vmul.f32 %v17714_v14, %v17718_v46  ;;  %v17719_v50 = vld [vmem:[#allocation6_spill] sm:$0xff]  ;;  %v17720_v8 = vld [vmem:[#allocation33_spill] sm:$0xff] }
 0x45f   : > { %9348 = vst.msk [vmem:[%s14955_s6 + $0x178] sm:$0xff] %vm7149_vm9, %v17706_v23  ;;  %9347 = vst.msk [vmem:[%s14955_s6 + $0x170] sm:$0xff] %vm7149_vm9, %v17707_v33  ;;  %v7251_v49 = vmul.f32 0.2, %v7187_v61  ;;  %v7188_v58 = vmul.f32 %v17714_v14, %v17719_v50  ;;  %v7250_v9 = vmul.f32 0.2, %v7186_v30  ;;  %v7191_v28 = vmul.f32 %v17714_v14, %v17720_v8 }
 0x460   : > { %9349 = vst.msk [vmem:[%s14955_s6 + $0x190] sm:$0xff] %vm7149_vm9, %v17708_v25  ;;  %9350 = vst.msk [vmem:[%s14955_s6 + $0x198] sm:$0xff] %vm7149_vm9, %v17710_v26  ;;  %vm7218_vm13 = vcmp.gt.f32.partialorder %v7186_v30, 0.0  ;;  %v7253_v13 = vmul.f32 0.2, %v7189_v19  ;;  %v17721_v34 = vld [vmem:[#allocation30_spill] sm:$0xff] }
 0x461   : > { %9292 = vst.msk [vmem:[%s14955_s6 + $0x1f8] sm:$0xff] %vm6008_vm7, %v7791_v36  ;;  %vm7217_vm7 = vcmp.gt.f32.partialorder %v17715_v16, 0.0  ;;  %v7190_v27 = vmul.f32 %v17714_v14, %v17721_v34  ;;  %v7282_v53 = vsel %vm7218_vm13, %v7186_v30, %v7250_v9  ;;  %vm7221_vm8 = vcmp.gt.f32.partialorder %v7189_v19, 0.0  ;;  %v17722_v32 = vld [vmem:[#allocation31_spill] sm:$0xff]  ;;  %v17723_v57 = vld [vmem:[#allocation29_spill] sm:$0xff]  ;;  %v17724_v51 = vld [vmem:[#allocation44_spill] sm:$0xff]  ;;  %v16087_v31 = vpop.permute.xlu1 %8376  ;;  %v16091_v46 = vpop.permute.xlu0 %8374 }
 0x462   : > { %9352 = vst.msk [vmem:[%s14955_s6 + $0x1b8] sm:$0xff] %vm7149_vm9, %v17711_v17  ;;  %9351 = vst.msk [vmem:[%s14955_s6 + $0x1b0] sm:$0xff] %vm7149_vm9, %v17712_v56  ;;  %v7281_v24 = vsel %vm7217_vm7, %v17715_v16, %v7249_v7  ;;  %v7252_v37 = vmul.f32 0.2, %v7188_v58  ;;  %vm7220_vm4 = vcmp.gt.f32.partialorder %v7188_v58, 0.0  ;;  %v7193_v47 = vmul.f32 %v17714_v14, %v17722_v32  ;;  %v17725_v2 = vld [vmem:[#allocation41_spill] sm:$0xff] }
 0x463   : > { %9353 = vst.msk [vmem:[%s14955_s6 + $0x1d0] sm:$0xff] %vm7149_vm9, %v15757_v6  ;;  %9356 = vst.msk [vmem:[%s14955_s6 + $0x1f8] sm:$0xff] %vm7149_vm9, %v7953_v10  ;;  %v17717_v6 = vld [vmem:[#allocation27_spill] sm:$0xff]  ;;  %7348 = vrot.lane.b32.xlu1 %v7281_v24, %s10772_s25  ;;  %v7285_v41 = vsel %vm7221_vm8, %v7189_v19, %v7253_v13  ;;  %v7255_v45 = vmul.f32 0.2, %v7191_v28  ;;  %v7192_v42 = vmul.f32 %v17714_v14, %v17723_v57  ;;  %vm7223_vm1 = vcmp.gt.f32.partialorder %v7191_v28, 0.0 }
 0x464   : > { %9355 = vst.msk [vmem:[%s14955_s6 + $0x1f0] sm:$0xff] %vm7149_vm9, %v7951_v21  ;;  %v7248_v12 = vmul.f32 0.2, %v17717_v6  ;;  %vm7216_vm15 = vcmp.gt.f32.partialorder %v17717_v6, 0.0  ;;  %vm7219_vm9 = vcmp.gt.f32.partialorder %v7187_v61, 0.0  ;;  %v7284_v20 = vsel %vm7220_vm4, %v7188_v58, %v7252_v37  ;;  %v17726_v62 = vld [vmem:[#allocation42_spill] sm:$0xff] }
 0x465   : > { %v7283_v0 = vsel %vm7219_vm9, %v7187_v61, %v7251_v49  ;;  %v7254_v39 = vmul.f32 0.2, %v7190_v27  ;;  %vm7222_vm10 = vcmp.gt.f32.partialorder %v7190_v27, 0.0  ;;  %v7195_v55 = vmul.f32 %v17714_v14, %v17724_v51  ;;  %v17727_v18 = vld [vmem:[#allocation38_spill] sm:$0xff]  ;;  %v17728_v5 = vld [vmem:[#allocation56_spill] sm:$0xff]  ;;  %v17729_v43 = vld [vmem:[#allocation53_spill] sm:$0xff] }
 0x466   : > { %v7280_v4 = vsel %vm7216_vm15, %v17717_v6, %v7248_v12  ;;  %v7287_v29 = vsel %vm7223_vm1, %v7191_v28, %v7255_v45  ;;  %v7257_v48 = vmul.f32 0.2, %v7193_v47  ;;  %v7194_v44 = vmul.f32 %v17714_v14, %v17725_v2  ;;  %v17730_v26 = vld [vmem:[#allocation54_spill] sm:$0xff]  ;;  %v17733_v19 = vld [vmem:[#allocation63_spill] sm:$0xff]  ;;  %v17734_v58 = vld [vmem:[#allocation64_spill] sm:$0xff] }
 0x467   : > { %7346 = vrot.lane.b32.xlu0 %v7280_v4, %s10772_s25  ;;  %7352 = vrot.lane.b32.xlu1 %v7283_v0, %s10772_s25  ;;  %v7286_v54 = vsel %vm7222_vm10, %v7190_v27, %v7254_v39  ;;  %vm7225_vm0 = vcmp.gt.f32.partialorder %v7193_v47, 0.0  ;;  %v7256_v59 = vmul.f32 0.2, %v7192_v42  ;;  %vm7224_vm5 = vcmp.gt.f32.partialorder %v7192_v42, 0.0  ;;  %v17731_v61 = vld [vmem:[#allocation50_spill] sm:$0xff]  ;;  %v16102_v27 = vpop.permute.xlu1 %8380  ;;  %v17736_v37 = vld [vmem:[#allocation113_spill] sm:$0xff] }
 0x468   : > { %v7197_v15 = vmul.f32 %v17714_v14, %v17726_v62  ;;  %v7289_v38 = vsel %vm7225_vm0, %v7193_v47, %v7257_v48  ;;  %v7259_v3 = vmul.f32 0.2, %v7195_v55  ;;  %v7196_v10 = vmul.f32 %v17714_v14, %v17727_v18  ;;  %v17732_v30 = vld [vmem:[#allocation66_spill] sm:$0xff]  ;;  %v17737_v45 = vld [vmem:[#allocation112_spill] sm:$0xff] }
 0x469   : > { %v7288_v21 = vsel %vm7224_vm5, %v7192_v42, %v7256_v59  ;;  %vm7227_vm11 = vcmp.gt.f32.partialorder %v7195_v55, 0.0  ;;  %v7258_v40 = vmul.f32 0.2, %v7194_v44  ;;  %vm7226_vm14 = vcmp.gt.f32.partialorder %v7194_v44, 0.0  ;;  %v17735_v28 = vld [vmem:[#allocation62_spill] sm:$0xff]  ;;  %v17738_v51 = vld [vmem:[#allocation68_spill] sm:$0xff] }
 0x46a   : > { %v7199_v36 = vmul.f32 %v17714_v14, %v17728_v5  ;;  %v7291_v63 = vsel %vm7227_vm11, %v7195_v55, %v7259_v3  ;;  %v7261_v22 = vmul.f32 0.2, %v7197_v15  ;;  %v7198_v23 = vmul.f32 %v17714_v14, %v17729_v43 }
 0x46b   : > { %7350 = vrot.lane.b32.xlu0 %v7282_v53, %s10772_s25  ;;  %7356 = vrot.lane.b32.xlu1 %v7285_v41, %s10772_s25  ;;  %v7290_v33 = vsel %vm7226_vm14, %v7194_v44, %v7258_v40  ;;  %vm7229_vm2 = vcmp.gt.f32.partialorder %v7197_v15, 0.0  ;;  %v7260_v25 = vmul.f32 0.2, %v7196_v10  ;;  %vm7228_vm12 = vcmp.gt.f32.partialorder %v7196_v10, 0.0  ;;  %v16105_v53 = vpop.permute.xlu0 %8378  ;;  %v16113_v39 = vpop.permute.xlu1 %8384  ;;  %v17739_v44 = vld [vmem:[#allocation67_spill] sm:$0xff] }
 0x46c   : > { %v7201_v17 = vmul.f32 %v17714_v14, %v17730_v26  ;;  %v7293_v56 = vsel %vm7229_vm2, %v7197_v15, %v7261_v22  ;;  %v7263_v60 = vmul.f32 0.2, %v7199_v36  ;;  %v7200_v35 = vmul.f32 %v17714_v14, %v17731_v61  ;;  %v17740_v15 = vld [vmem:[#allocation115_spill] sm:$0xff]  ;;  %v17744_v61 = vld [vmem:[#allocation8_spill] sm:$0xff] }
 0x46d   : > { %v7292_v16 = vsel %vm7228_vm12, %v7196_v10, %v7260_v25  ;;  %vm7231_vm3 = vcmp.gt.f32.partialorder %v7199_v36, 0.0  ;;  %v7262_v7 = vmul.f32 0.2, %v7198_v23  ;;  %vm7230_vm6 = vcmp.gt.f32.partialorder %v7198_v23, 0.0  ;;  %v17741_v10 = vld [vmem:[#allocation114_spill] sm:$0xff]  ;;  %v17742_v22 = vld [vmem:[#allocation119_spill] sm:$0xff] }
 0x46e   : > { %v7203_v11 = vmul.f32 %v17714_v14, %v17732_v30  ;;  %v7295_v6 = vsel %vm7231_vm3, %v7199_v36, %v7263_v60  ;;  %v7265_v12 = vmul.f32 0.2, %v7201_v17  ;;  %v7202_v24 = vmul.f32 %v17714_v14, %v17733_v19  ;;  %v17743_v25 = vld [vmem:[#allocation116_spill] sm:$0xff] }
 0x46f   : > { %7354 = vrot.lane.b32.xlu0 %v7284_v20, %s10772_s25  ;;  %7360 = vrot.lane.b32.xlu1 %v7287_v29, %s10772_s25  ;;  %v7294_v49 = vsel %vm7230_vm6, %v7198_v23, %v7262_v7  ;;  %vm7233_vm7 = vcmp.gt.f32.partialorder %v7201_v17, 0.0  ;;  %v7264_v50 = vmul.f32 0.2, %v7200_v35  ;;  %vm7232_vm15 = vcmp.gt.f32.partialorder %v7200_v35, 0.0  ;;  %v16117_v2 = vpop.permute.xlu0 %8382  ;;  %v16128_v36 = vpop.permute.xlu1 %8388 }
 0x470   : > { %v7205_v4 = vmul.f32 %v17714_v14, %v17734_v58  ;;  %v7297_v9 = vsel %vm7233_vm7, %v7201_v17, %v7265_v12  ;;  %v7267_v8 = vmul.f32 0.2, %v7203_v11  ;;  %v7204_v0 = vmul.f32 %v17714_v14, %v17735_v28 }
 0x471   : > { %v7296_v13 = vsel %vm7232_vm15, %v7200_v35, %v7264_v50  ;;  %vm7235_vm9 = vcmp.gt.f32.partialorder %v7203_v11, 0.0  ;;  %v7266_v34 = vmul.f32 0.2, %v7202_v24  ;;  %vm7234_vm13 = vcmp.gt.f32.partialorder %v7202_v24, 0.0 }
 0x472   : > { %v7207_v32 = vmul.f32 %v17714_v14, %v17736_v37  ;;  %v7299_v47 = vsel %vm7235_vm9, %v7203_v11, %v7267_v8  ;;  %v7269_v41 = vmul.f32 0.2, %v7205_v4  ;;  %v7206_v57 = vmul.f32 %v17714_v14, %v17737_v45  ;;  %v17745_v11 = vld [vmem:[#allocation2_spill] sm:$0xff] }
 0x473   : > { %7358 = vrot.lane.b32.xlu0 %v7286_v54, %s10772_s25  ;;  %7364 = vrot.lane.b32.xlu1 %v7289_v38, %s10772_s25  ;;  %v7298_v42 = vsel %vm7234_vm13, %v7202_v24, %v7266_v34  ;;  %vm7237_vm8 = vcmp.gt.f32.partialorder %v7205_v4, 0.0  ;;  %v7268_v20 = vmul.f32 0.2, %v7204_v0  ;;  %vm7236_vm4 = vcmp.gt.f32.partialorder %v7204_v0, 0.0  ;;  %v16139_v60 = vpop.permute.xlu1 %8392  ;;  %v17746_v24 = vld [vmem:[#allocation10_spill] sm:$0xff]  ;;  %v17748_v34 = vld [vmem:[#allocation11_spill] sm:$0xff] }
 0x474   : > { %v7209_v55 = vmul.f32 %v17714_v14, %v17738_v51  ;;  %v7301_v29 = vsel %vm7237_vm8, %v7205_v4, %v7269_v41  ;;  %v7271_v48 = vmul.f32 0.2, %v7207_v32  ;;  %v7208_v54 = vmul.f32 %v17714_v14, %v17739_v44  ;;  %v17747_v4 = vld [vmem:[#allocation13_spill] sm:$0xff]  ;;  %v17749_v41 = vld [vmem:[#allocation12_spill] sm:$0xff] }
 0x475   : > { %v7300_v59 = vsel %vm7236_vm4, %v7204_v0, %v7268_v20  ;;  %vm7239_vm1 = vcmp.gt.f32.partialorder %v7207_v32, 0.0  ;;  %v7270_v62 = vmul.f32 0.2, %v7206_v57  ;;  %vm7238_vm10 = vcmp.gt.f32.partialorder %v7206_v57, 0.0  ;;  %v17750_v51 = vld [vmem:[#allocation16_spill] sm:$0xff] }
 0x476   : > { %v7211_v38 = vmul.f32 %v17714_v14, %v17740_v15  ;;  %v7303_v3 = vsel %vm7239_vm1, %v7207_v32, %v7271_v48  ;;  %v7273_v18 = vmul.f32 0.2, %v7209_v55  ;;  %vm7241_vm0 = vcmp.gt.f32.partialorder %v7209_v55, 0.0 }
 0x477   : > { %7362 = vrot.lane.b32.xlu0 %v7288_v21, %s10772_s25  ;;  %7368 = vrot.lane.b32.xlu1 %v7291_v63, %s10772_s25  ;;  %v7210_v21 = vmul.f32 %v17714_v14, %v17741_v10  ;;  %v7302_v40 = vsel %vm7238_vm10, %v7206_v57, %v7270_v62  ;;  %v7272_v5 = vmul.f32 0.2, %v7208_v54  ;;  %vm7240_vm5 = vcmp.gt.f32.partialorder %v7208_v54, 0.0  ;;  %v16131_v63 = vpop.permute.xlu0 %8386  ;;  %v16154_v0 = vpop.permute.xlu1 %8396 }
 0x478   : > { %v7213_v43 = vmul.f32 %v17714_v14, %v17742_v22  ;;  %v7305_v23 = vsel %vm7241_vm0, %v7209_v55, %v7273_v18  ;;  %v7212_v26 = vmul.f32 %v17714_v14, %v17743_v25  ;;  %vm7243_vm11 = vcmp.gt.f32.partialorder %v7211_v38, 0.0 }
 0x479   : > { %v7304_v17 = vsel %vm7240_vm5, %v7208_v54, %v7272_v5  ;;  %vm7242_vm14 = vcmp.gt.f32.partialorder %v7210_v21, 0.0  ;;  %v8019_v35 = vmul.f32 %v17714_v14, %v17744_v61  ;;  %v8023_v37 = vmul.f32 %v17714_v14, %v17748_v34  ;;  %v17751_v54 = vld [vmem:[#allocation15_spill] sm:$0xff] }
 0x47a   : > { %v7277_v7 = vmul.f32 0.2, %v7213_v43  ;;  %vm7245_vm2 = vcmp.gt.f32.partialorder %v7213_v43, 0.0  ;;  %v7276_v19 = vmul.f32 0.2, %v7212_v26  ;;  %vm7244_vm12 = vcmp.gt.f32.partialorder %v7212_v26, 0.0 }
 0x47b   : > { %7366 = vrot.lane.b32.xlu0 %v7290_v33, %s10772_s25  ;;  %7372 = vrot.lane.b32.xlu1 %v7293_v56, %s10772_s25  ;;  %v7275_v33 = vmul.f32 0.2, %v7211_v38  ;;  %v7274_v56 = vmul.f32 0.2, %v7210_v21  ;;  %v16143_v30 = vpop.permute.xlu0 %8390  ;;  %v8083_v58 = vmul.f32 0.2, %v8019_v35  ;;  %v8022_v45 = vmul.f32 %v17714_v14, %v17749_v41  ;;  %v16165_v20 = vpop.permute.xlu1 %8400 }
 0x47c   : > { %v7309_v50 = vsel %vm7245_vm2, %v7213_v43, %v7277_v7  ;;  %v7308_v8 = vsel %vm7244_vm12, %v7212_v26, %v7276_v19  ;;  %vm8051_vm3 = vcmp.gt.f32.partialorder %v8019_v35, 0.0  ;;  %v8025_v55 = vmul.f32 %v17714_v14, %v17750_v51 }
 0x47d   : > { %v7306_v12 = vsel %vm7242_vm14, %v7210_v21, %v7274_v56  ;;  %v8115_v32 = vsel %vm8051_vm3, %v8019_v35, %v8083_v58  ;;  %v8087_v48 = vmul.f32 0.2, %v8023_v37  ;;  %vm8055_vm9 = vcmp.gt.f32.partialorder %v8023_v37, 0.0  ;;  %v17753_v21 = vld [vmem:[#allocation18_spill] sm:$0xff]  ;;  %v17755_v56 = vld [vmem:[#allocation5_spill] sm:$0xff] }
 0x47e   : > { %v8086_v15 = vmul.f32 0.2, %v8022_v45  ;;  %vm8054_vm13 = vcmp.gt.f32.partialorder %v8022_v45, 0.0  ;;  %v8089_v10 = vmul.f32 0.2, %v8025_v55  ;;  %vm8057_vm8 = vcmp.gt.f32.partialorder %v8025_v55, 0.0 }
 0x47f   : > { %7370 = vrot.lane.b32.xlu0 %v7292_v16, %s10772_s25  ;;  %7376 = vrot.lane.b32.xlu1 %v7295_v6, %s10772_s25  ;;  %v7307_v16 = vsel %vm7243_vm11, %v7211_v38, %v7275_v33  ;;  %v8018_v6 = vmul.f32 %v17714_v14, %v17745_v11  ;;  %v17752_v38 = vld [vmem:[#allocation9_spill] sm:$0xff]  ;;  %v8119_v18 = vsel %vm8055_vm9, %v8023_v37, %v8087_v48  ;;  %v16180_v43 = vpop.permute.xlu1 %8404  ;;  %v17754_v33 = vld [vmem:[#allocation7_spill] sm:$0xff]  ;;  %v17761_v48 = vld [vmem:[#allocation40_spill] sm:$0xff] }
 0x480   : > { %v8118_v5 = vsel %vm8054_vm13, %v8022_v45, %v8086_v15  ;;  %v8029_v25 = vmul.f32 %v17714_v14, %v17754_v33  ;;  %v8121_v26 = vsel %vm8057_vm8, %v8025_v55, %v8089_v10  ;;  %v8028_v61 = vmul.f32 %v17714_v14, %v17755_v56  ;;  %v17756_v11 = vld [vmem:[#allocation35_spill] sm:$0xff] }
 0x481   : > { %v8082_v28 = vmul.f32 0.2, %v8018_v6  ;;  %vm8050_vm6 = vcmp.gt.f32.partialorder %v8018_v6, 0.0  ;;  %v17759_v37 = vld [vmem:[#allocation19_spill] sm:$0xff] }
 0x482   : > { %v8093_v19 = vmul.f32 0.2, %v8029_v25  ;;  %vm8061_vm0 = vcmp.gt.f32.partialorder %v8029_v25, 0.0  ;;  %vm8060_vm5 = vcmp.gt.f32.partialorder %v8028_v61, 0.0 }
 0x483   : > { %7374 = vrot.lane.b32.xlu0 %v7294_v49, %s10772_s25  ;;  %7380 = vrot.lane.b32.xlu1 %v7297_v9, %s10772_s25  ;;  %v8021_v49 = vmul.f32 %v17714_v14, %v17746_v24  ;;  %v8020_v9 = vmul.f32 %v17714_v14, %v17747_v4  ;;  %v8114_v57 = vsel %vm8050_vm6, %v8018_v6, %v8082_v28  ;;  %v16191_v7 = vpop.permute.xlu1 %8408  ;;  %v8092_v4 = vmul.f32 0.2, %v8028_v61 }
 0x484   : > { %v8031_v6 = vmul.f32 %v17714_v14, %v17756_v11  ;;  %v8125_v28 = vsel %vm8061_vm0, %v8029_v25, %v8093_v19  ;;  %v17764_v25 = vld [vmem:[#allocation59_spill] sm:$0xff]  ;;  %v17766_v19 = vld [vmem:[#allocation58_spill] sm:$0xff]  ;;  %vm7438_vm0 = vcmask 785920  }
 0x485   : > { %vm8053_vm7 = vcmp.gt.f32.partialorder %v8021_v49, 0.0  ;;  %vm8052_vm15 = vcmp.gt.f32.partialorder %v8020_v9, 0.0 }
 0x486   : > { %v8095_v34 = vmul.f32 0.2, %v8031_v6  ;;  %vm8063_vm11 = vcmp.gt.f32.partialorder %v8031_v6, 0.0 }
 0x487   : > { %7378 = vrot.lane.b32.xlu0 %v7296_v13, %s10772_s25  ;;  %7384 = vrot.lane.b32.xlu1 %v7299_v47, %s10772_s25  ;;  %v16157_v13 = vpop.permute.xlu0 %8394  ;;  %v8085_v47 = vmul.f32 0.2, %v8021_v49  ;;  %v16206_v45 = vpop.permute.xlu1 %8412 }
 0x488   : > { %v8127_v55 = vsel %vm8063_vm11, %v8031_v6, %v8095_v34  ;;  %vm7631_vm11 = vcmask 1048320  }
 0x48b   : > { %7382 = vrot.lane.b32.xlu0 %v7298_v42, %s10772_s25  ;;  %7388 = vrot.lane.b32.xlu1 %v7301_v29, %s10772_s25  ;;  %v8084_v42 = vmul.f32 0.2, %v8020_v9  ;;  %v8117_v29 = vsel %vm8053_vm7, %v8021_v49, %v8085_v47  ;;  %v16169_v44 = vpop.permute.xlu0 %8398  ;;  %v17757_v49 = vld [vmem:[#allocation25_spill] sm:$0xff]  ;;  %v8124_v47 = vsel %vm8060_vm5, %v8028_v61, %v8092_v4  ;;  %v16217_v15 = vpop.permute.xlu1 %8416  ;;  %v17765_v61 = vld [vmem:[#allocation52_spill] sm:$0xff]  ;;  %v17767_v4 = vld [vmem:[#allocation51_spill] sm:$0xff] }
 0x48d   : > { %v8116_v62 = vsel %vm8052_vm15, %v8020_v9, %v8084_v42  ;;  %v17758_v9 = vld [vmem:[#allocation26_spill] sm:$0xff]  ;;  %v17760_v42 = vld [vmem:[#allocation47_spill] sm:$0xff] }
 0x48e   : > { %v8035_v51 = vmul.f32 %v17714_v14, %v17760_v42 }
 0x48f   : > { %7386 = vrot.lane.b32.xlu0 %v7300_v59, %s10772_s25  ;;  %7392 = vrot.lane.b32.xlu1 %v7303_v3, %s10772_s25  ;;  %v8024_v59 = vmul.f32 %v17714_v14, %v17751_v54  ;;  %v8027_v3 = vmul.f32 %v17714_v14, %v17752_v38  ;;  %v8034_v54 = vmul.f32 %v17714_v14, %v17761_v48  ;;  %v17762_v38 = vld [vmem:[#allocation46_spill] sm:$0xff]  ;;  %v16232_v6 = vpop.permute.xlu1 %8420 }
 0x490   : > { %v8099_v10 = vmul.f32 0.2, %v8035_v51  ;;  %vm8067_vm3 = vcmp.gt.f32.partialorder %v8035_v51, 0.0 }
 0x491   : > { %v8088_v22 = vmul.f32 0.2, %v8024_v59  ;;  %vm8056_vm4 = vcmp.gt.f32.partialorder %v8024_v59, 0.0  ;;  %vm8059_vm1 = vcmp.gt.f32.partialorder %v8027_v3, 0.0  ;;  %v8098_v33 = vmul.f32 0.2, %v8034_v54 }
 0x492   : > { %vm8066_vm6 = vcmp.gt.f32.partialorder %v8034_v54, 0.0 }
 0x493   : > { %7390 = vrot.lane.b32.xlu0 %v7302_v40, %s10772_s25  ;;  %7396 = vrot.lane.b32.xlu1 %v7305_v23, %s10772_s25  ;;  %v8026_v40 = vmul.f32 %v17714_v14, %v17753_v21  ;;  %v16183_v23 = vpop.permute.xlu0 %8402  ;;  %v8120_v35 = vsel %vm8056_vm4, %v8024_v59, %v8088_v22  ;;  %v16243_v34 = vpop.permute.xlu1 %8424 }
 0x495   : > { %vm8058_vm10 = vcmp.gt.f32.partialorder %v8026_v40, 0.0 }
 0x497   : > { %7394 = vrot.lane.b32.xlu0 %v7304_v17, %s10772_s25  ;;  %7400 = vrot.lane.b32.xlu1 %v7307_v16, %s10772_s25  ;;  %v8091_v17 = vmul.f32 0.2, %v8027_v3  ;;  %v8090_v16 = vmul.f32 0.2, %v8026_v40  ;;  %v16195_v24 = vpop.permute.xlu0 %8406 }
 0x499   : > { %v8122_v58 = vsel %vm8058_vm10, %v8026_v40, %v8090_v16  ;;  %v17763_v40 = vld [vmem:[#allocation39_spill] sm:$0xff]  ;;  %v8130_v16 = vsel %vm8066_vm6, %v8034_v54, %v8098_v33  ;;  %v17772_v33 = vld [vmem:[#allocation78_spill] sm:$0xff] }
 0x49a   : > { %v17770_v54 = vld [vmem:[#allocation71_spill] sm:$0xff] }
 0x49b   : > { %7398 = vrot.lane.b32.xlu0 %v7306_v12, %s10772_s25  ;;  %7404 = vrot.lane.b32.xlu1 %v7309_v50, %s10772_s25  ;;  %v8123_v12 = vsel %vm8059_vm1, %v8027_v3, %v8091_v17  ;;  %v8030_v50 = vmul.f32 %v17714_v14, %v17757_v49  ;;  %v8037_v3 = vmul.f32 %v17714_v14, %v17762_v38 }
 0x49c   : > { %v8131_v17 = vsel %vm8067_vm3, %v8035_v51, %v8099_v10  ;;  %v8041_v49 = vmul.f32 %v17714_v14, %v17766_v19  ;;  %v17769_v51 = vld [vmem:[#allocation70_spill] sm:$0xff]  ;;  %v17774_v19 = vld [vmem:[#allocation79_spill] sm:$0xff] }
 0x49d   : > { %v8094_v41 = vmul.f32 0.2, %v8030_v50  ;;  %vm8062_vm14 = vcmp.gt.f32.partialorder %v8030_v50, 0.0  ;;  %v8101_v56 = vmul.f32 0.2, %v8037_v3  ;;  %vm8069_vm7 = vcmp.gt.f32.partialorder %v8037_v3, 0.0 }
 0x49e   : > { %v8105_v42 = vmul.f32 0.2, %v8041_v49  ;;  %vm8073_vm8 = vcmp.gt.f32.partialorder %v8041_v49, 0.0 }
 0x49f   : > { %7402 = vrot.lane.b32.xlu0 %v7308_v8, %s10772_s25  ;;  %8180 = vrot.lane.b32.xlu1 %v8115_v32, %s10772_s25  ;;  %v8033_v8 = vmul.f32 %v17714_v14, %v17758_v9  ;;  %v8032_v32 = vmul.f32 %v17714_v14, %v17759_v37  ;;  %v8126_v59 = vsel %vm8062_vm14, %v8030_v50, %v8094_v41  ;;  %v17768_v37 = vld [vmem:[#allocation73_spill] sm:$0xff] }
 0x4a0   : > { %v8133_v50 = vsel %vm8069_vm7, %v8037_v3, %v8101_v56  ;;  %v8040_v9 = vmul.f32 %v17714_v14, %v17767_v4  ;;  %v17771_v3 = vld [vmem:[#allocation69_spill] sm:$0xff] }
 0x4a1   : > { %vm8065_vm2 = vcmp.gt.f32.partialorder %v8033_v8, 0.0  ;;  %vm8064_vm12 = vcmp.gt.f32.partialorder %v8032_v32, 0.0 }
 0x4a2   : > { %v8104_v48 = vmul.f32 0.2, %v8040_v9  ;;  %vm8072_vm4 = vcmp.gt.f32.partialorder %v8040_v9, 0.0 }
 0x4a3   : > { %8178 = vrot.lane.b32.xlu0 %v8114_v57, %s10772_s25  ;;  %8184 = vrot.lane.b32.xlu1 %v8117_v29, %s10772_s25  ;;  %v16209_v57 = vpop.permute.xlu0 %8410  ;;  %v8097_v29 = vmul.f32 0.2, %v8033_v8 }
 0x4a4   : > { %v8136_v10 = vsel %vm8072_vm4, %v8040_v9, %v8104_v48  ;;  %v17775_v9 = vld [vmem:[#allocation77_spill] sm:$0xff] }
 0x4a7   : > { %8182 = vrot.lane.b32.xlu0 %v8116_v62, %s10772_s25  ;;  %8188 = vrot.lane.b32.xlu1 %v8119_v18, %s10772_s25  ;;  %v8096_v62 = vmul.f32 0.2, %v8032_v32  ;;  %v8129_v18 = vsel %vm8065_vm2, %v8033_v8, %v8097_v29  ;;  %v16221_v21 = vpop.permute.xlu0 %8414 }
 0x4a9   : > { %v8128_v22 = vsel %vm8064_vm12, %v8032_v32, %v8096_v62  ;;  %v8043_v32 = vmul.f32 %v17714_v14, %v17768_v37  ;;  %v8137_v62 = vsel %vm8073_vm8, %v8041_v49, %v8105_v42  ;;  %v8049_v49 = vmul.f32 %v17714_v14, %v17774_v19  ;;  %v17785_v19 = vld [vmem:[#allocation97_spill] sm:$0xff] }
 0x4ab   : > { %8186 = vrot.lane.b32.xlu0 %v8118_v5, %s10772_s25  ;;  %8192 = vrot.lane.b32.xlu1 %v8121_v26, %s10772_s25  ;;  %v8036_v5 = vmul.f32 %v17714_v14, %v17763_v40  ;;  %v8039_v26 = vmul.f32 %v17714_v14, %v17764_v25  ;;  %v8107_v38 = vmul.f32 0.2, %v8043_v32  ;;  %v16258_v40 = vpop.permute.xlu1 %8428  ;;  %vm8075_vm1 = vcmp.gt.f32.partialorder %v8043_v32, 0.0 }
 0x4ac   : > { %v8046_v25 = vmul.f32 %v17714_v14, %v17772_v33  ;;  %vm8081_vm3 = vcmp.gt.f32.partialorder %v8049_v49, 0.0 }
 0x4ad   : > { %v8100_v11 = vmul.f32 0.2, %v8036_v5  ;;  %vm8068_vm15 = vcmp.gt.f32.partialorder %v8036_v5, 0.0  ;;  %vm8071_vm9 = vcmp.gt.f32.partialorder %v8039_v26, 0.0  ;;  %v8139_v56 = vsel %vm8075_vm1, %v8043_v32, %v8107_v38 }
 0x4ae   : > { %v8110_v32 = vmul.f32 0.2, %v8046_v25  ;;  %vm8078_vm12 = vcmp.gt.f32.partialorder %v8046_v25, 0.0 }
 0x4af   : > { %8190 = vrot.lane.b32.xlu0 %v8120_v35, %s10772_s25  ;;  %8196 = vrot.lane.b32.xlu1 %v8123_v12, %s10772_s25  ;;  %v8038_v35 = vmul.f32 %v17714_v14, %v17765_v61  ;;  %v16235_v12 = vpop.permute.xlu0 %8418  ;;  %v8132_v8 = vsel %vm8068_vm15, %v8036_v5, %v8100_v11 }
 0x4b0   : > { %v8142_v48 = vsel %vm8078_vm12, %v8046_v25, %v8110_v32 }
 0x4b1   : > { %vm8070_vm13 = vcmp.gt.f32.partialorder %v8038_v35, 0.0 }
 0x4b3   : > { %8194 = vrot.lane.b32.xlu0 %v8122_v58, %s10772_s25  ;;  %8200 = vrot.lane.b32.xlu1 %v8125_v28, %s10772_s25  ;;  %v8103_v58 = vmul.f32 0.2, %v8039_v26  ;;  %v8102_v28 = vmul.f32 0.2, %v8038_v35  ;;  %v16247_v41 = vpop.permute.xlu0 %8422 }
 0x4b5   : > { %v8134_v29 = vsel %vm8070_vm13, %v8038_v35, %v8102_v28  ;;  %v17776_v28 = vld [vmem:[#allocation163_spill] sm:$0xff] }
 0x4b7   : > { %8198 = vrot.lane.b32.xlu0 %v8124_v47, %s10772_s25  ;;  %8204 = vrot.lane.b32.xlu1 %v8127_v55, %s10772_s25  ;;  %v8135_v47 = vsel %vm8071_vm9, %v8039_v26, %v8103_v58  ;;  %v8042_v55 = vmul.f32 %v17714_v14, %v17769_v51  ;;  %v17773_v26 = vld [vmem:[#allocation81_spill] sm:$0xff] }
 0x4b9   : > { %v8106_v5 = vmul.f32 0.2, %v8042_v55  ;;  %vm8074_vm10 = vcmp.gt.f32.partialorder %v8042_v55, 0.0 }
 0x4bb   : > { %8202 = vrot.lane.b32.xlu0 %v8126_v59, %s10772_s25  ;;  %8208 = vrot.lane.b32.xlu1 %v8129_v18, %s10772_s25  ;;  %v8045_v59 = vmul.f32 %v17714_v14, %v17770_v54  ;;  %v8044_v18 = vmul.f32 %v17714_v14, %v17771_v3  ;;  %v8138_v35 = vsel %vm8074_vm10, %v8042_v55, %v8106_v5  ;;  %v8113_v55 = vmul.f32 0.2, %v8049_v49  ;;  %v17781_v5 = vld [vmem:[#allocation94_spill] sm:$0xff] }
 0x4bd   : > { %v8109_v61 = vmul.f32 0.2, %v8045_v59  ;;  %vm8077_vm5 = vcmp.gt.f32.partialorder %v8045_v59, 0.0  ;;  %vm8076_vm14 = vcmp.gt.f32.partialorder %v8044_v18, 0.0  ;;  %v8145_v3 = vsel %vm8081_vm3, %v8049_v49, %v8113_v55 }
 0x4bf   : > { %8206 = vrot.lane.b32.xlu0 %v8128_v22, %s10772_s25  ;;  %8212 = vrot.lane.b32.xlu1 %v8131_v17, %s10772_s25  ;;  %v16261_v22 = vpop.permute.xlu0 %8426  ;;  %v8047_v17 = vmul.f32 %v17714_v14, %v17773_v26  ;;  %v8141_v4 = vsel %vm8077_vm5, %v8045_v59, %v8109_v61  ;;  %v17779_v59 = vld [vmem:[#allocation175_spill] sm:$0xff]  ;;  %v17782_v26 = vld [vmem:[#allocation172_spill] sm:$0xff] }
 0x4c0   : > { %v10762_v61 = vld [vmem:[%s12559_s29 + $0x1f0] sm:$0xff] }
 0x4c1   : > { %vm8079_vm2 = vcmp.gt.f32.partialorder %v8047_v17, 0.0 }
 0x4c3   : > { %8210 = vrot.lane.b32.xlu0 %v8130_v16, %s10772_s25  ;;  %8216 = vrot.lane.b32.xlu1 %v8133_v50, %s10772_s25  ;;  %v8108_v16 = vmul.f32 0.2, %v8044_v18  ;;  %v8111_v50 = vmul.f32 0.2, %v8047_v17 }
 0x4c5   : > { %v8140_v37 = vsel %vm8076_vm14, %v8044_v18, %v8108_v16  ;;  %v8143_v51 = vsel %vm8079_vm2, %v8047_v17, %v8111_v50  ;;  %v17780_v18 = vld [vmem:[#allocation171_spill] sm:$0xff]  ;;  %v10761_v17 = vld [vmem:[%s12559_s29 + $0x1f8] sm:$0xff] }
 0x4c7   : > { %8214 = vrot.lane.b32.xlu0 %v8132_v8, %s10772_s25  ;;  %8220 = vrot.lane.b32.xlu1 %v8135_v47, %s10772_s25  ;;  %v8048_v8 = vmul.f32 %v17714_v14, %v17775_v9  ;;  %v17777_v47 = vld [vmem:[#allocation173_spill] sm:$0xff] }
 0x4c9   : > { %v8112_v54 = vmul.f32 0.2, %v8048_v8  ;;  %vm8080_vm6 = vcmp.gt.f32.partialorder %v8048_v8, 0.0 }
 0x4cb   : > { %8218 = vrot.lane.b32.xlu0 %v8134_v29, %s10772_s25  ;;  %8224 = vrot.lane.b32.xlu1 %v8137_v62, %s10772_s25  ;;  %v7345_v11 = vpop.permute.xlu1 %7344  ;;  %v17778_v29 = vld [vmem:[#allocation167_spill] sm:$0xff] }
 0x4cc   : > { %7440 = vst.msk [vmem:[%s14955_s6 + $0x8] sm:$0xff] %vm7438_vm0, %v7345_v11  ;;  %v17784_v11 = vld [vmem:[#allocation174_spill] sm:$0xff] }
 0x4cd   : > { %7633 = vst.msk [vmem:[%s14955_s6 + $0x8] sm:$0xff] %vm7631_vm11, %v17776_v28  ;;  %v17788_v28 = vld [vmem:[#allocation93_spill] sm:$0xff] }
 0x4cf   : > { %8222 = vrot.lane.b32.xlu0 %v8136_v10, %s10772_s25  ;;  %8228 = vrot.lane.b32.xlu1 %v8139_v56, %s10772_s25  ;;  %v8144_v10 = vsel %vm8080_vm6, %v8048_v8, %v8112_v54  ;;  %v17783_v56 = vld [vmem:[#allocation96_spill] sm:$0xff] }
 0x4d0   : > { %v7343_v58 = vpop.permute.xlu0 %7342 }
 0x4d1   : > { %7439 = vst.msk [vmem:[%s14955_s6] sm:$0xff] %vm7438_vm0, %v7343_v58  ;;  %v17786_v58 = vld [vmem:[#allocation176_spill] sm:$0xff] }
 0x4d2   : > { %7632 = vst.msk [vmem:[%s14955_s6] sm:$0xff] %vm7631_vm11, %v17777_v47 }
 0x4d3   : > { %8226 = vrot.lane.b32.xlu0 %v8138_v35, %s10772_s25  ;;  %8232 = vrot.lane.b32.xlu1 %v8141_v4, %s10772_s25  ;;  %v17787_v4 = vld [vmem:[#allocation98_spill] sm:$0xff] }
 0x4d5   : > { %v7349_v14 = vpop.permute.xlu1 %7348 }
 0x4d6   : > { %7442 = vst.msk [vmem:[%s14955_s6 + $0x28] sm:$0xff] %vm7438_vm0, %v7349_v14  ;;  %v17790_v14 = vld [vmem:[#allocation95_spill] sm:$0xff] }
 0x4d7   : > { %8230 = vrot.lane.b32.xlu0 %v8140_v37, %s10772_s25  ;;  %7635 = vst.msk [vmem:[%s14955_s6 + $0x28] sm:$0xff] %vm7631_vm11, %v17778_v29  ;;  %8236 = vrot.lane.b32.xlu1 %v8143_v51, %s10772_s25  ;;  %v17789_v37 = vld [vmem:[#allocation76_spill] sm:$0xff]  ;;  %v17792_v29 = vld [vmem:[#allocation177_spill] sm:$0xff] }
 0x4d9   : > { %v7347_v42 = vpop.permute.xlu0 %7346  ;;  %v7353_v62 = vpop.permute.xlu1 %7352 }
 0x4da   : > { %7441 = vst.msk [vmem:[%s14955_s6 + $0x20] sm:$0xff] %vm7438_vm0, %v7347_v42  ;;  %7444 = vst.msk [vmem:[%s14955_s6 + $0x48] sm:$0xff] %vm7438_vm0, %v7353_v62  ;;  %v17791_v42 = vld [vmem:[#allocation72_spill] sm:$0xff]  ;;  %v17794_v62 = vld [vmem:[#allocation178_spill] sm:$0xff] }
 0x4db   : > { %7634 = vst.msk [vmem:[%s14955_s6 + $0x20] sm:$0xff] %vm7631_vm11, %v17779_v59  ;;  %8234 = vrot.lane.b32.xlu0 %v8142_v48, %s10772_s25  ;;  %7637 = vst.msk [vmem:[%s14955_s6 + $0x48] sm:$0xff] %vm7631_vm11, %v17780_v18  ;;  %8240 = vrot.lane.b32.xlu1 %v8145_v3, %s10772_s25  ;;  %v17793_v48 = vld [vmem:[#allocation75_spill] sm:$0xff] }
 0x4dd   : > { %v7351_v38 = vpop.permute.xlu0 %7350  ;;  %v7357_v33 = vpop.permute.xlu1 %7356 }
 0x4de   : > { %7443 = vst.msk [vmem:[%s14955_s6 + $0x40] sm:$0xff] %vm7438_vm0, %v7351_v38  ;;  %7446 = vst.msk [vmem:[%s14955_s6 + $0x68] sm:$0xff] %vm7438_vm0, %v7357_v33  ;;  %v17795_v38 = vld [vmem:[#allocation153_spill] sm:$0xff] }
 0x4df   : > { %7636 = vst.msk [vmem:[%s14955_s6 + $0x40] sm:$0xff] %vm7631_vm11, %v17781_v5  ;;  %8238 = vrot.lane.b32.xlu0 %v8144_v10, %s10772_s25  ;;  %7639 = vst.msk [vmem:[%s14955_s6 + $0x68] sm:$0xff] %vm7631_vm11, %v17782_v26  ;;  %8432 = vrot.lane.b32.xlu1 %v10761_v17, %s10772_s25  ;;  %v17796_v10 = vld [vmem:[#allocation179_spill] sm:$0xff]  ;;  %v17797_v5 = vld [vmem:[#allocation102_spill] sm:$0xff] }
 0x4e0   : > { %v17798_v26 = vld [vmem:[#allocation146_spill] sm:$0xff] }
 0x4e1   : > { %v7355_v25 = vpop.permute.xlu0 %7354  ;;  %v7361_v35 = vpop.permute.xlu1 %7360  ;;  %v17799_v17 = vld [vmem:[#allocation158_spill] sm:$0xff] }
 0x4e2   : > { %7445 = vst.msk [vmem:[%s14955_s6 + $0x60] sm:$0xff] %vm7438_vm0, %v7355_v25  ;;  %7448 = vst.msk [vmem:[%s14955_s6 + $0x88] sm:$0xff] %vm7438_vm0, %v7361_v35  ;;  %v17800_v35 = vld [vmem:[#allocation147_spill] sm:$0xff] }
 0x4e3   : > { %7638 = vst.msk [vmem:[%s14955_s6 + $0x60] sm:$0xff] %vm7631_vm11, %v17783_v56  ;;  %8430 = vrot.lane.b32.xlu0 %v10762_v61, %s10772_s25  ;;  %7641 = vst.msk [vmem:[%s14955_s6 + $0x88] sm:$0xff] %vm7631_vm11, %v17784_v11 }
 0x4e5   : > { %v7359_v16 = vpop.permute.xlu0 %7358  ;;  %v7365_v49 = vpop.permute.xlu1 %7364 }
 0x4e6   : > { %7447 = vst.msk [vmem:[%s14955_s6 + $0x80] sm:$0xff] %vm7438_vm0, %v7359_v16  ;;  %7450 = vst.msk [vmem:[%s14955_s6 + $0xa8] sm:$0xff] %vm7438_vm0, %v7365_v49  ;;  %v17801_v16 = vld [vmem:[#allocation161_spill] sm:$0xff]  ;;  %v17802_v49 = vld [vmem:[#allocation99_spill] sm:$0xff] }
 0x4e7   : > { %7640 = vst.msk [vmem:[%s14955_s6 + $0x80] sm:$0xff] %vm7631_vm11, %v17785_v19  ;;  %7643 = vst.msk [vmem:[%s14955_s6 + $0xa8] sm:$0xff] %vm7631_vm11, %v17786_v58 }
 0x4e9   : > { %v7363_v50 = vpop.permute.xlu0 %7362  ;;  %v7369_v9 = vpop.permute.xlu1 %7368 }
 0x4ea   : > { %7449 = vst.msk [vmem:[%s14955_s6 + $0xa0] sm:$0xff] %vm7438_vm0, %v7363_v50  ;;  %7452 = vst.msk [vmem:[%s14955_s6 + $0xc8] sm:$0xff] %vm7438_vm0, %v7369_v9  ;;  %v17803_v50 = vld [vmem:[#allocation80_spill] sm:$0xff] }
 0x4eb   : > { %7642 = vst.msk [vmem:[%s14955_s6 + $0xa0] sm:$0xff] %vm7631_vm11, %v17787_v4  ;;  %7645 = vst.msk [vmem:[%s14955_s6 + $0xc8] sm:$0xff] %vm7631_vm11, %v17788_v28  ;;  %v17804_v9 = vld [vmem:[#allocation100_spill] sm:$0xff] }
 0x4ed   : > { %v7367_v8 = vpop.permute.xlu0 %7366  ;;  %v7373_v32 = vpop.permute.xlu1 %7372 }
 0x4ee   : > { %7451 = vst.msk [vmem:[%s14955_s6 + $0xc0] sm:$0xff] %vm7438_vm0, %v7367_v8  ;;  %7454 = vst.msk [vmem:[%s14955_s6 + $0xe8] sm:$0xff] %vm7438_vm0, %v7373_v32  ;;  %v17805_v8 = vld [vmem:[#allocation83_spill] sm:$0xff]  ;;  %v17806_v32 = vld [vmem:[#allocation85_spill] sm:$0xff] }
 0x4ef   : > { %7644 = vst.msk [vmem:[%s14955_s6 + $0xc0] sm:$0xff] %vm7631_vm11, %v17789_v37  ;;  %7647 = vst.msk [vmem:[%s14955_s6 + $0xe8] sm:$0xff] %vm7631_vm11, %v17790_v14 }
 0x4f1   : > { %v7371_v47 = vpop.permute.xlu0 %7370  ;;  %v7377_v51 = vpop.permute.xlu1 %7376 }
 0x4f2   : > { %7453 = vst.msk [vmem:[%s14955_s6 + $0xe0] sm:$0xff] %vm7438_vm0, %v7371_v47  ;;  %7456 = vst.msk [vmem:[%s14955_s6 + $0x108] sm:$0xff] %vm7438_vm0, %v7377_v51  ;;  %v17807_v47 = vld [vmem:[#allocation169_spill] sm:$0xff] }
 0x4f3   : > { %7646 = vst.msk [vmem:[%s14955_s6 + $0xe0] sm:$0xff] %vm7631_vm11, %v17791_v42  ;;  %7649 = vst.msk [vmem:[%s14955_s6 + $0x108] sm:$0xff] %vm7631_vm11, %v17792_v29 }
 0x4f5   : > { %v7375_v55 = vpop.permute.xlu0 %7374  ;;  %v7381_v54 = vpop.permute.xlu1 %7380 }
 0x4f6   : > { %7455 = vst.msk [vmem:[%s14955_s6 + $0x100] sm:$0xff] %vm7438_vm0, %v7375_v55  ;;  %7458 = vst.msk [vmem:[%s14955_s6 + $0x128] sm:$0xff] %vm7438_vm0, %v7381_v54 }
 0x4f7   : > { %7648 = vst.msk [vmem:[%s14955_s6 + $0x100] sm:$0xff] %vm7631_vm11, %v17793_v48  ;;  %7651 = vst.msk [vmem:[%s14955_s6 + $0x128] sm:$0xff] %vm7631_vm11, %v17794_v62 }
 0x4f9   : > { %v7379_v59 = vpop.permute.xlu0 %7378  ;;  %v7385_v3 = vpop.permute.xlu1 %7384 }
 0x4fa   : > { %7457 = vst.msk [vmem:[%s14955_s6 + $0x120] sm:$0xff] %vm7438_vm0, %v7379_v59  ;;  %7460 = vst.msk [vmem:[%s14955_s6 + $0x148] sm:$0xff] %vm7438_vm0, %v7385_v3 }
 0x4fb   : > { %7650 = vst.msk [vmem:[%s14955_s6 + $0x120] sm:$0xff] %vm7631_vm11, %v17795_v38  ;;  %7653 = vst.msk [vmem:[%s14955_s6 + $0x148] sm:$0xff] %vm7631_vm11, %v17796_v10 }
 0x4fd   : > { %v7383_v18 = vpop.permute.xlu0 %7382  ;;  %v7389_v33 = vpop.permute.xlu1 %7388 }
 0x4fe   : > { %7459 = vst.msk [vmem:[%s14955_s6 + $0x140] sm:$0xff] %vm7438_vm0, %v7383_v18  ;;  %7462 = vst.msk [vmem:[%s14955_s6 + $0x168] sm:$0xff] %vm7438_vm0, %v7389_v33 }
 0x4ff   : > { %7652 = vst.msk [vmem:[%s14955_s6 + $0x140] sm:$0xff] %vm7631_vm11, %v17797_v5  ;;  %7655 = vst.msk [vmem:[%s14955_s6 + $0x168] sm:$0xff] %vm7631_vm11, %v17798_v26 }
 0x501   : > { %v7387_v25 = vpop.permute.xlu0 %7386  ;;  %v7393_v56 = vpop.permute.xlu1 %7392 }
 0x502   : > { %7461 = vst.msk [vmem:[%s14955_s6 + $0x160] sm:$0xff] %vm7438_vm0, %v7387_v25  ;;  %7464 = vst.msk [vmem:[%s14955_s6 + $0x188] sm:$0xff] %vm7438_vm0, %v7393_v56 }
 0x503   : > { %7654 = vst.msk [vmem:[%s14955_s6 + $0x160] sm:$0xff] %vm7631_vm11, %v17799_v17  ;;  %7657 = vst.msk [vmem:[%s14955_s6 + $0x188] sm:$0xff] %vm7631_vm11, %v17800_v35 }
 0x505   : > { %v7391_v61 = vpop.permute.xlu0 %7390  ;;  %v7397_v11 = vpop.permute.xlu1 %7396 }
 0x506   : > { %7463 = vst.msk [vmem:[%s14955_s6 + $0x180] sm:$0xff] %vm7438_vm0, %v7391_v61  ;;  %7466 = vst.msk [vmem:[%s14955_s6 + $0x1a8] sm:$0xff] %vm7438_vm0, %v7397_v11 }
 0x507   : > { %7656 = vst.msk [vmem:[%s14955_s6 + $0x180] sm:$0xff] %vm7631_vm11, %v17801_v16  ;;  %7659 = vst.msk [vmem:[%s14955_s6 + $0x1a8] sm:$0xff] %vm7631_vm11, %v17802_v49 }
 0x509   : > { %v7395_v19 = vpop.permute.xlu0 %7394  ;;  %v7401_v58 = vpop.permute.xlu1 %7400 }
 0x50a   : > { %7465 = vst.msk [vmem:[%s14955_s6 + $0x1a0] sm:$0xff] %vm7438_vm0, %v7395_v19  ;;  %7468 = vst.msk [vmem:[%s14955_s6 + $0x1c8] sm:$0xff] %vm7438_vm0, %v7401_v58 }
 0x50b   : > { %7658 = vst.msk [vmem:[%s14955_s6 + $0x1a0] sm:$0xff] %vm7631_vm11, %v17803_v50  ;;  %7661 = vst.msk [vmem:[%s14955_s6 + $0x1c8] sm:$0xff] %vm7631_vm11, %v17804_v9 }
 0x50d   : > { %v7399_v4 = vpop.permute.xlu0 %7398  ;;  %v7405_v28 = vpop.permute.xlu1 %7404 }
 0x50e   : > { %7467 = vst.msk [vmem:[%s14955_s6 + $0x1c0] sm:$0xff] %vm7438_vm0, %v7399_v4  ;;  %7470 = vst.msk [vmem:[%s14955_s6 + $0x1e8] sm:$0xff] %vm7438_vm0, %v7405_v28 }
 0x50f   : > { %7660 = vst.msk [vmem:[%s14955_s6 + $0x1c0] sm:$0xff] %vm7631_vm11, %v17805_v8  ;;  %7663 = vst.msk [vmem:[%s14955_s6 + $0x1e8] sm:$0xff] %vm7631_vm11, %v17806_v32 }
 0x511   : > { %v7403_v37 = vpop.permute.xlu0 %7402  ;;  %v8181_v14 = vpop.permute.xlu1 %8180 }
 0x512   : > { %7469 = vst.msk [vmem:[%s14955_s6 + $0x1e0] sm:$0xff] %vm7438_vm0, %v7403_v37  ;;  %9358 = vst.msk [vmem:[%s14955_s6 + $0x18] sm:$0xff] %vm7438_vm0, %v8181_v14 }
 0x513   : > { %7662 = vst.msk [vmem:[%s14955_s6 + $0x1e0] sm:$0xff] %vm7631_vm11, %v17807_v47  ;;  %9422 = vst.msk [vmem:[%s14955_s6 + $0x18] sm:$0xff] %vm7631_vm11, %v16076_v1 }
 0x515   : > { %v8179_v42 = vpop.permute.xlu0 %8178  ;;  %v8185_v51 = vpop.permute.xlu1 %8184 }
 0x516   : > { %9357 = vst.msk [vmem:[%s14955_s6 + $0x10] sm:$0xff] %vm7438_vm0, %v8179_v42  ;;  %9360 = vst.msk [vmem:[%s14955_s6 + $0x38] sm:$0xff] %vm7438_vm0, %v8185_v51 }
 0x517   : > { %9421 = vst.msk [vmem:[%s14955_s6 + $0x10] sm:$0xff] %vm7631_vm11, %v16079_v52  ;;  %9424 = vst.msk [vmem:[%s14955_s6 + $0x38] sm:$0xff] %vm7631_vm11, %v16087_v31 }
 0x519   : > { %v8183_v55 = vpop.permute.xlu0 %8182  ;;  %v8189_v1 = vpop.permute.xlu1 %8188 }
 0x51a   : > { %9359 = vst.msk [vmem:[%s14955_s6 + $0x30] sm:$0xff] %vm7438_vm0, %v8183_v55  ;;  %9362 = vst.msk [vmem:[%s14955_s6 + $0x58] sm:$0xff] %vm7438_vm0, %v8189_v1 }
 0x51b   : > { %9423 = vst.msk [vmem:[%s14955_s6 + $0x30] sm:$0xff] %vm7631_vm11, %v16091_v46  ;;  %9426 = vst.msk [vmem:[%s14955_s6 + $0x58] sm:$0xff] %vm7631_vm11, %v16102_v27 }
 0x51d   : > { %v8187_v52 = vpop.permute.xlu0 %8186  ;;  %v8193_v31 = vpop.permute.xlu1 %8192 }
 0x51e   : > { %9361 = vst.msk [vmem:[%s14955_s6 + $0x50] sm:$0xff] %vm7438_vm0, %v8187_v52  ;;  %9364 = vst.msk [vmem:[%s14955_s6 + $0x78] sm:$0xff] %vm7438_vm0, %v8193_v31 }
 0x51f   : > { %9425 = vst.msk [vmem:[%s14955_s6 + $0x50] sm:$0xff] %vm7631_vm11, %v16105_v53  ;;  %9428 = vst.msk [vmem:[%s14955_s6 + $0x78] sm:$0xff] %vm7631_vm11, %v16113_v39 }
 0x521   : > { %v8191_v46 = vpop.permute.xlu0 %8190  ;;  %v8197_v27 = vpop.permute.xlu1 %8196 }
 0x522   : > { %9363 = vst.msk [vmem:[%s14955_s6 + $0x70] sm:$0xff] %vm7438_vm0, %v8191_v46  ;;  %9366 = vst.msk [vmem:[%s14955_s6 + $0x98] sm:$0xff] %vm7438_vm0, %v8197_v27 }
 0x523   : > { %9427 = vst.msk [vmem:[%s14955_s6 + $0x70] sm:$0xff] %vm7631_vm11, %v16117_v2  ;;  %9430 = vst.msk [vmem:[%s14955_s6 + $0x98] sm:$0xff] %vm7631_vm11, %v16128_v36 }
 0x525   : > { %v8195_v53 = vpop.permute.xlu0 %8194  ;;  %v8201_v39 = vpop.permute.xlu1 %8200 }
 0x526   : > { %9365 = vst.msk [vmem:[%s14955_s6 + $0x90] sm:$0xff] %vm7438_vm0, %v8195_v53  ;;  %9368 = vst.msk [vmem:[%s14955_s6 + $0xb8] sm:$0xff] %vm7438_vm0, %v8201_v39 }
 0x527   : > { %9429 = vst.msk [vmem:[%s14955_s6 + $0x90] sm:$0xff] %vm7631_vm11, %v16131_v63  ;;  %9432 = vst.msk [vmem:[%s14955_s6 + $0xb8] sm:$0xff] %vm7631_vm11, %v16139_v60 }
 0x529   : > { %v8199_v2 = vpop.permute.xlu0 %8198  ;;  %v8205_v36 = vpop.permute.xlu1 %8204 }
 0x52a   : > { %9367 = vst.msk [vmem:[%s14955_s6 + $0xb0] sm:$0xff] %vm7438_vm0, %v8199_v2  ;;  %9370 = vst.msk [vmem:[%s14955_s6 + $0xd8] sm:$0xff] %vm7438_vm0, %v8205_v36 }
 0x52b   : > { %9431 = vst.msk [vmem:[%s14955_s6 + $0xb0] sm:$0xff] %vm7631_vm11, %v16143_v30  ;;  %9434 = vst.msk [vmem:[%s14955_s6 + $0xd8] sm:$0xff] %vm7631_vm11, %v16154_v0 }
 0x52d   : > { %v8203_v63 = vpop.permute.xlu0 %8202  ;;  %v8209_v60 = vpop.permute.xlu1 %8208 }
 0x52e   : > { %9369 = vst.msk [vmem:[%s14955_s6 + $0xd0] sm:$0xff] %vm7438_vm0, %v8203_v63  ;;  %9372 = vst.msk [vmem:[%s14955_s6 + $0xf8] sm:$0xff] %vm7438_vm0, %v8209_v60 }
 0x52f   : > { %9433 = vst.msk [vmem:[%s14955_s6 + $0xd0] sm:$0xff] %vm7631_vm11, %v16157_v13  ;;  %9436 = vst.msk [vmem:[%s14955_s6 + $0xf8] sm:$0xff] %vm7631_vm11, %v16165_v20 }
 0x531   : > { %v8207_v30 = vpop.permute.xlu0 %8206  ;;  %v8213_v0 = vpop.permute.xlu1 %8212 }
 0x532   : > { %9371 = vst.msk [vmem:[%s14955_s6 + $0xf0] sm:$0xff] %vm7438_vm0, %v8207_v30  ;;  %9374 = vst.msk [vmem:[%s14955_s6 + $0x118] sm:$0xff] %vm7438_vm0, %v8213_v0 }
 0x533   : > { %9435 = vst.msk [vmem:[%s14955_s6 + $0xf0] sm:$0xff] %vm7631_vm11, %v16169_v44  ;;  %9438 = vst.msk [vmem:[%s14955_s6 + $0x118] sm:$0xff] %vm7631_vm11, %v16180_v43 }
 0x535   : > { %v8211_v13 = vpop.permute.xlu0 %8210  ;;  %v8217_v20 = vpop.permute.xlu1 %8216 }
 0x536   : > { %9373 = vst.msk [vmem:[%s14955_s6 + $0x110] sm:$0xff] %vm7438_vm0, %v8211_v13  ;;  %9376 = vst.msk [vmem:[%s14955_s6 + $0x138] sm:$0xff] %vm7438_vm0, %v8217_v20 }
 0x537   : > { %9437 = vst.msk [vmem:[%s14955_s6 + $0x110] sm:$0xff] %vm7631_vm11, %v16183_v23  ;;  %9440 = vst.msk [vmem:[%s14955_s6 + $0x138] sm:$0xff] %vm7631_vm11, %v16191_v7 }
 0x539   : > { %v8215_v44 = vpop.permute.xlu0 %8214  ;;  %v8221_v43 = vpop.permute.xlu1 %8220 }
 0x53a   : > { %9375 = vst.msk [vmem:[%s14955_s6 + $0x130] sm:$0xff] %vm7438_vm0, %v8215_v44  ;;  %9378 = vst.msk [vmem:[%s14955_s6 + $0x158] sm:$0xff] %vm7438_vm0, %v8221_v43 }
 0x53b   : > { %9439 = vst.msk [vmem:[%s14955_s6 + $0x130] sm:$0xff] %vm7631_vm11, %v16195_v24  ;;  %9442 = vst.msk [vmem:[%s14955_s6 + $0x158] sm:$0xff] %vm7631_vm11, %v16206_v45 }
 0x53d   : > { %v8219_v23 = vpop.permute.xlu0 %8218  ;;  %v8225_v7 = vpop.permute.xlu1 %8224 }
 0x53e   : > { %9377 = vst.msk [vmem:[%s14955_s6 + $0x150] sm:$0xff] %vm7438_vm0, %v8219_v23  ;;  %9380 = vst.msk [vmem:[%s14955_s6 + $0x178] sm:$0xff] %vm7438_vm0, %v8225_v7 }
 0x53f   : > { %9441 = vst.msk [vmem:[%s14955_s6 + $0x150] sm:$0xff] %vm7631_vm11, %v16209_v57  ;;  %9444 = vst.msk [vmem:[%s14955_s6 + $0x178] sm:$0xff] %vm7631_vm11, %v16217_v15 }
 0x541   : > { %v8223_v24 = vpop.permute.xlu0 %8222  ;;  %v8229_v45 = vpop.permute.xlu1 %8228 }
 0x542   : > { %9379 = vst.msk [vmem:[%s14955_s6 + $0x170] sm:$0xff] %vm7438_vm0, %v8223_v24  ;;  %9382 = vst.msk [vmem:[%s14955_s6 + $0x198] sm:$0xff] %vm7438_vm0, %v8229_v45 }
 0x543   : > { %9443 = vst.msk [vmem:[%s14955_s6 + $0x170] sm:$0xff] %vm7631_vm11, %v16221_v21  ;;  %9446 = vst.msk [vmem:[%s14955_s6 + $0x198] sm:$0xff] %vm7631_vm11, %v16232_v6 }
 0x545   : > { %v8227_v57 = vpop.permute.xlu0 %8226  ;;  %v8233_v15 = vpop.permute.xlu1 %8232 }
 0x546   : > { %9381 = vst.msk [vmem:[%s14955_s6 + $0x190] sm:$0xff] %vm7438_vm0, %v8227_v57  ;;  %9384 = vst.msk [vmem:[%s14955_s6 + $0x1b8] sm:$0xff] %vm7438_vm0, %v8233_v15 }
 0x547   : > { %9445 = vst.msk [vmem:[%s14955_s6 + $0x190] sm:$0xff] %vm7631_vm11, %v16235_v12  ;;  %9448 = vst.msk [vmem:[%s14955_s6 + $0x1b8] sm:$0xff] %vm7631_vm11, %v16243_v34 }
 0x549   : > { %v8231_v21 = vpop.permute.xlu0 %8230  ;;  %v8237_v6 = vpop.permute.xlu1 %8236 }
 0x54a   : > { %9383 = vst.msk [vmem:[%s14955_s6 + $0x1b0] sm:$0xff] %vm7438_vm0, %v8231_v21  ;;  %9386 = vst.msk [vmem:[%s14955_s6 + $0x1d8] sm:$0xff] %vm7438_vm0, %v8237_v6 }
 0x54b   : > { %9447 = vst.msk [vmem:[%s14955_s6 + $0x1b0] sm:$0xff] %vm7631_vm11, %v16247_v41  ;;  %9450 = vst.msk [vmem:[%s14955_s6 + $0x1d8] sm:$0xff] %vm7631_vm11, %v16258_v40 }
 0x54d   : > { %v8235_v29 = vpop.permute.xlu0 %8234  ;;  %v8241_v12 = vpop.permute.xlu1 %8240 }
 0x54e   : > { %9385 = vst.msk [vmem:[%s14955_s6 + $0x1d0] sm:$0xff] %vm7438_vm0, %v8235_v29  ;;  %9388 = vst.msk [vmem:[%s14955_s6 + $0x1f8] sm:$0xff] %vm7438_vm0, %v8241_v12 }
 0x54f   : > { %9449 = vst.msk [vmem:[%s14955_s6 + $0x1d0] sm:$0xff] %vm7631_vm11, %v16261_v22 }
 0x551   : > { %v8239_v34 = vpop.permute.xlu0 %8238  ;;  %v8433_v48 = vpop.permute.xlu1 %8432 }
 0x552   : > { %9387 = vst.msk [vmem:[%s14955_s6 + $0x1f0] sm:$0xff] %vm7438_vm0, %v8239_v34 }
 0x553   : > { %9452 = vst.msk [vmem:[%s14955_s6 + $0x1f8] sm:$0xff] %vm7631_vm11, %v8433_v48 }
 0x555   : > { %v8431_v41 = vpop.permute.xlu0 %8430 }
 0x556   : > { %9451 = vst.msk [vmem:[%s14955_s6 + $0x1f0] sm:$0xff] %vm7631_vm11, %v8431_v41 }
 0x557 PF: > { %s13_s12 = sadd.s32 1, %s10769_s12  }
 0x558   : > { %p10_p4 = scmp.ge.s32.totalorder %s13_s12, 4  }
 0x55a   :  { %12 = sbr.rel (!%p10_p4) target bundleno = 1 (0x1), region = 84 }

</bundles_post_ra>
